<compile_context>
chip_gen: v5e
topology: v5e:2x2
jax: 0.10.0
libtpu: 0.0.40
codegen_flags: <defaults>
</compile_context>

<pallas_src>
import math

import jax
import jax.numpy as jnp
from jax.experimental import pallas as pl
from jax.experimental.pallas import tpu as pltpu  # noqa: F401  (TPU backend)

# ----------------------------- sizes ---------------------------------------
B = 2            # batch
S = 8            # sequence length (team size)
D_IN = 32        # d_input == d_embed (embedding = Identity)
D_TF = 32        # d_tf == encoder.dim (must be even)
N_HEADS = 4      # transformer heads
D_HEAD = D_TF // N_HEADS
D_FF = 64        # transformer feed-forward hidden
N_ENC_LAYERS = 2
N_DEC_LAYERS = 2
D_FINAL = D_TF   # pooling != Flatten, bidirectional != concat -> d_final = d_tf
N_OUT_HEADS = 3
LN_EPS = 1e-5
SLAB_LANES = 128
ATTN_SCALE = 1.0 / math.sqrt(D_HEAD)
NB = 2 * B       # stacked [left, right] batch


# ----------------------------- fused kernel --------------------------------
def make_kernel(layout):
    """Build the fused forward kernel; `layout` maps name -> (row_off, rows, cols)."""

    def kernel(left_ref, right_ref, slab_ref, out_ref):
        # ---- static slab reads (all offsets 8-sublane aligned) -------------
        def W(name):
            o, r, c = layout[name]
            return slab_ref[o:o + r, 0:c]

        # ---- helpers --------------------------------------------------------
        def linear2d(x2, w, b, relu=False):
            y = jnp.dot(x2, w, preferred_element_type=jnp.float32) + b
            return jnp.maximum(y, 0.0) if relu else y

        def mlp3d(x3, w1, b1, w2, b2, relu2):
            n_, s_, d_ = x3.shape
            h = linear2d(x3.reshape(n_ * s_, d_), w1, b1, relu=True)
            h = linear2d(h, w2, b2, relu=relu2)
            return h.reshape(n_, s_, h.shape[-1])

        def add_ln(x3, res3, g, b):
            y = x3 + res3
            # one-pass stats: two independent lane reduces (overlap on XLU)
            mu = jnp.sum(y, axis=-1, keepdims=True) * (1.0 / D_TF)
            ms = jnp.sum(y * y, axis=-1, keepdims=True) * (1.0 / D_TF)
            var = jnp.maximum(ms - mu * mu, 0.0)
            return (y - mu) * jax.lax.rsqrt(var + LN_EPS) * g + b

        def attn_core(q3, k3, v3, wo, bo):
            # scale already folded into Q weights at pack time
            n_, sq, d_ = q3.shape
            out2 = jnp.zeros((n_ * sq, d_), jnp.float32)
            for hd in range(N_HEADS):                      # static unroll
                lo = hd * D_HEAD
                sc = jnp.einsum("bqd,bkd->bqk",
                                q3[:, :, lo:lo + D_HEAD], k3[:, :, lo:lo + D_HEAD],
                                preferred_element_type=jnp.float32)
                sc = sc - jnp.max(sc, axis=-1, keepdims=True)
                e = jnp.exp(sc)
                p = e * pl.reciprocal(jnp.sum(e, axis=-1, keepdims=True), approx=True)
                ctx = jnp.einsum("bqk,bkd->bqd", p, v3[:, :, lo:lo + D_HEAD],
                                 preferred_element_type=jnp.float32)
                # head-merge folded into the output projection (no lane concat)
                out2 = out2 + jnp.dot(ctx.reshape(n_ * sq, D_HEAD), wo[lo:lo + D_HEAD, :],
                                      preferred_element_type=jnp.float32)
            return (out2 + bo).reshape(n_, sq, d_)

        def mha_self(x3, wqkv, bqkv, wo, bo):
            n_, s_, d_ = x3.shape
            qkv = linear2d(x3.reshape(n_ * s_, d_), wqkv, bqkv)    # fused QKV (N=96)
            q = qkv[:, 0 * d_:1 * d_].reshape(n_, s_, d_)
            k = qkv[:, 1 * d_:2 * d_].reshape(n_, s_, d_)
            v = qkv[:, 2 * d_:3 * d_].reshape(n_, s_, d_)
            return attn_core(q, k, v, wo, bo)

        # --------------------------- forward ---------------------------------
        # embedding == Identity; pos_encoder = False; dim = 3; dropout = eval
        left2 = left_ref[...].reshape(B * S, D_IN)
        right2 = right_ref[...].reshape(B * S, D_IN)
        x2 = jnp.concatenate([left2, right2], axis=0)              # (2B*S, D)

        # shared token-wise MLP encoder, run ONCE on the stacked batch
        h2 = linear2d(x2, W("enc_w1"), W("enc_b1"), relu=True)
        h2 = linear2d(h2, W("enc_w2"), W("enc_b2"), relu=True)     # (2B*S, D)

        mem = h2.reshape(NB, S, D_TF)                              # enc([left, right])
        # decoder input = encoder output with the two batch halves swapped
        tgt2 = jnp.concatenate([h2[B * S:], h2[:B * S]], axis=0)   # enc([right, left])
        out = tgt2.reshape(NB, S, D_TF)

        # transformer encoder (post-norm), both directions batched together
        for i in range(N_ENC_LAYERS):
            a = mha_self(mem, W(f"enc{i}_wqkv"), W(f"enc{i}_bqkv"),
                         W(f"enc{i}_wo"), W(f"enc{i}_bo"))
            mem = add_ln(a, mem, W(f"enc{i}_ln1_g"), W(f"enc{i}_ln1_b"))
            f = mlp3d(mem, W(f"enc{i}_fw1"), W(f"enc{i}_fb1"),
                      W(f"enc{i}_fw2"), W(f"enc{i}_fb2"), relu2=False)
            mem = add_ln(f, mem, W(f"enc{i}_ln2_g"), W(f"enc{i}_ln2_b"))

        # hoisted cross-attention K/V for BOTH decoder layers: one N=128 matmul
        kv_all = linear2d(mem.reshape(NB * S, D_TF),
                          W("dec_cross_kv_w"), W("dec_cross_kv_b"))  # (2B*S, 128)

        # transformer decoder (post-norm): rows 0..B-1 = dec(right, enc(left)),
        #                                  rows B..2B-1 = dec(left,  enc(right))
        for i in range(N_DEC_LAYERS):
            a = mha_self(out, W(f"dec{i}_swqkv"), W(f"dec{i}_sbqkv"),
                         W(f"dec{i}_swo"), W(f"dec{i}_sbo"))
            out = add_ln(a, out, W(f"dec{i}_ln1_g"), W(f"dec{i}_ln1_b"))

            q = linear2d(out.reshape(NB * S, D_TF),
                         W(f"dec{i}_cwq"), W(f"dec{i}_cbq")).reshape(NB, S, D_TF)
            base = i * 2 * D_TF
            k = kv_all[:, base:base + D_TF].reshape(NB, S, D_TF)
            v = kv_all[:, base + D_TF:base + 2 * D_TF].reshape(NB, S, D_TF)
            a = attn_core(q, k, v, W(f"dec{i}_cwo"), W(f"dec{i}_cbo"))
            out = add_ln(a, out, W(f"dec{i}_ln2_g"), W(f"dec{i}_ln2_b"))

            f = mlp3d(out, W(f"dec{i}_fw1"), W(f"dec{i}_fb1"),
                      W(f"dec{i}_fw2"), W(f"dec{i}_fb2"), relu2=False)
            out = add_ln(f, out, W(f"dec{i}_ln3_g"), W(f"dec{i}_ln3_b"))

        # GlobalPooling1D (mean over sequence) + bidirectional = "mean"
        pooled = jnp.mean(out, axis=1)                             # (2B, D)
        fused = 0.5 * (pooled[:B] + pooled[B:])                    # (B, D)

        # final MLP stack (2x Linear + ReLU)
        h = linear2d(fused, W("fin_w1"), W("fin_b1"), relu=True)
        h = linear2d(h, W("fin_w2"), W("fin_b2"), relu=True)

        # 3 heads (Identity -> Dropout(eval) -> Linear(32,1) -> Tanh), merged
        y = jnp.tanh(jnp.dot(h, W("heads_w"), preferred_element_type=jnp.float32)
                     + W("heads_b"))
        out_ref[...] = y.astype(out_ref.dtype)                     # (B, 3)

    return kernel


# ----------------------------- weight slab packing --------------------------
def pack_params(params):
    """Pack all weights into one (R, 128) f32 slab; returns (slab, layout).

    Applies host-side weight transforms:
      * folds the 1/sqrt(d_head) attention scale into the Q weights/biases,
      * fuses both decoder layers' cross-attention K/V projections into one
        (32, 128) weight for the hoisted single matmul.
    """
    names, arrays = [], []

    def add(name, arr):
        names.append(name)
        arrays.append(jnp.asarray(arr, jnp.float32))

    enc = params["encoder"]
    add("enc_w1", enc["w1"]); add("enc_b1", enc["b1"])
    add("enc_w2", enc["w2"]); add("enc_b2", enc["b2"])

    for i, lp in enumerate(params["tf_encoder"]):
        a = lp["attn"]
        wqkv = a["wqkv"].at[:, :D_TF].multiply(ATTN_SCALE)   # fold scale into Q cols
        bqkv = a["bqkv"].at[:, :D_TF].multiply(ATTN_SCALE)
        add(f"enc{i}_wqkv", wqkv); add(f"enc{i}_bqkv", bqkv)
        add(f"enc{i}_wo", a["wo"]); add(f"enc{i}_bo", a["bo"])
        add(f"enc{i}_ln1_g", lp["ln1_g"]); add(f"enc{i}_ln1_b", lp["ln1_b"])
        ff = lp["ff"]
        add(f"enc{i}_fw1", ff["w1"]); add(f"enc{i}_fb1", ff["b1"])
        add(f"enc{i}_fw2", ff["w2"]); add(f"enc{i}_fb2", ff["b2"])
        add(f"enc{i}_ln2_g", lp["ln2_g"]); add(f"enc{i}_ln2_b", lp["ln2_b"])

    # fused, hoisted cross-attention K/V projection (layer0 K,V | layer1 K,V)
    kvw = jnp.concatenate([lp["cross_attn"]["wkv"] for lp in params["tf_decoder"]], axis=1)
    kvb = jnp.concatenate([lp["cross_attn"]["bkv"] for lp in params["tf_decoder"]], axis=1)
    add("dec_cross_kv_w", kvw); add("dec_cross_kv_b", kvb)

    for i, lp in enumerate(params["tf_decoder"]):
        sa = lp["self_attn"]
        wqkv = sa["wqkv"].at[:, :D_TF].multiply(ATTN_SCALE)
        bqkv = sa["bqkv"].at[:, :D_TF].multiply(ATTN_SCALE)
        add(f"dec{i}_swqkv", wqkv); add(f"dec{i}_sbqkv", bqkv)
        add(f"dec{i}_swo", sa["wo"]); add(f"dec{i}_sbo", sa["bo"])
        add(f"dec{i}_ln1_g", lp["ln1_g"]); add(f"dec{i}_ln1_b", lp["ln1_b"])
        ca = lp["cross_attn"]
        add(f"dec{i}_cwq", ca["wq"] * ATTN_SCALE); add(f"dec{i}_cbq", ca["bq"] * ATTN_SCALE)
        add(f"dec{i}_cwo", ca["wo"]); add(f"dec{i}_cbo", ca["bo"])
        add(f"dec{i}_ln2_g", lp["ln2_g"]); add(f"dec{i}_ln2_b", lp["ln2_b"])
        ff = lp["ff"]
        add(f"dec{i}_fw1", ff["w1"]); add(f"dec{i}_fb1", ff["b1"])
        add(f"dec{i}_fw2", ff["w2"]); add(f"dec{i}_fb2", ff["b2"])
        add(f"dec{i}_ln3_g", lp["ln3_g"]); add(f"dec{i}_ln3_b", lp["ln3_b"])

    fin = params["final"]
    add("fin_w1", fin["w1"]); add("fin_b1", fin["b1"])
    add("fin_w2", fin["w2"]); add("fin_b2", fin["b2"])
    add("heads_w", params["heads_w"]); add("heads_b", params["heads_b"])

    layout = {}
    blocks = []
    off = 0
    for name, arr in zip(names, arrays):
        if arr.ndim == 1:
            arr = arr.reshape(1, -1)
        r, c = int(arr.shape[0]), int(arr.shape[1])
        rpad = ((r + 7) // 8) * 8                      # 8-sublane aligned blocks
        blk = jnp.zeros((rpad, SLAB_LANES), jnp.float32).at[:r, :c].set(arr)
        blocks.append(blk)
        layout[name] = (off, r, c)
        off += rpad
    slab = jnp.concatenate(blocks, axis=0)             # one DMA for all weights
    return slab, layout


# ----------------------------- wrapper ---------------------------------------
def result_predictor_forward(left, right, slab, layout):
    b_ = left.shape[0]
    ce = pl.CostEstimate(
        flops=3_000_000,
        transcendentals=20_000,
        bytes_accessed=int(slab.size * 4 + left.size * 4 + right.size * 4
                           + b_ * N_OUT_HEADS * 4),
    )
    # TODO(synk): for non-toy batch sizes, add a ("parallel",) grid over the
    # batch axis so both v7x TensorCores get work; at B=2 grid=() is optimal.
    out = pl.pallas_call(
        make_kernel(layout),
        out_shape=jax.ShapeDtypeStruct((b_, N_OUT_HEADS), jnp.float32),
        cost_estimate=ce,
    )(left, right, slab)
    # module returns a list of 3 (B, 1) tensors
    return [out[:, i:i + 1] for i in range(N_OUT_HEADS)]


# ----------------------------- deterministic init ----------------------------
def init_linear(key, d_in, d_out):
    kw, kb = jax.random.split(key)
    w = jax.random.normal(kw, (d_in, d_out), jnp.float32) / math.sqrt(d_in)
    b = 0.01 * jax.random.normal(kb, (1, d_out), jnp.float32)
    return w, b


def init_self_attn(key, d):
    kq, kk, kv, ko = jax.random.split(key, 4)
    wq, bq = init_linear(kq, d, d)
    wk, bk = init_linear(kk, d, d)
    wv, bv = init_linear(kv, d, d)
    wo, bo = init_linear(ko, d, d)
    return {"wqkv": jnp.concatenate([wq, wk, wv], axis=1),
            "bqkv": jnp.concatenate([bq, bk, bv], axis=1),
            "wo": wo, "bo": bo}


def init_cross_attn(key, d):
    kq, kk, kv, ko = jax.random.split(key, 4)
    wq, bq = init_linear(kq, d, d)
    wk, bk = init_linear(kk, d, d)
    wv, bv = init_linear(kv, d, d)
    wo, bo = init_linear(ko, d, d)
    return {"wq": wq, "bq": bq,
            "wkv": jnp.concatenate([wk, wv], axis=1),
            "bkv": jnp.concatenate([bk, bv], axis=1),
            "wo": wo, "bo": bo}


def init_ln(d):
    return jnp.ones((1, d), jnp.float32), jnp.zeros((1, d), jnp.float32)


def init_enc_layer(key, d, d_ff):
    k1, k2, k3 = jax.random.split(key, 3)
    w1, b1 = init_linear(k2, d, d_ff)
    w2, b2 = init_linear(k3, d_ff, d)
    g1, be1 = init_ln(d)
    g2, be2 = init_ln(d)
    return {"attn": init_self_attn(k1, d),
            "ln1_g": g1, "ln1_b": be1,
            "ff": {"w1": w1, "b1": b1, "w2": w2, "b2": b2},
            "ln2_g": g2, "ln2_b": be2}


def init_dec_layer(key, d, d_ff):
    k1, k2, k3, k4 = jax.random.split(key, 4)
    w1, b1 = init_linear(k3, d, d_ff)
    w2, b2 = init_linear(k4, d_ff, d)
    g1, be1 = init_ln(d)
    g2, be2 = init_ln(d)
    g3, be3 = init_ln(d)
    return {"self_attn": init_self_attn(k1, d),
            "cross_attn": init_cross_attn(k2, d),
            "ln1_g": g1, "ln1_b": be1,
            "ln2_g": g2, "ln2_b": be2,
            "ff": {"w1": w1, "b1": b1, "w2": w2, "b2": b2},
            "ln3_g": g3, "ln3_b": be3}


def init_params(key):
    keys = jax.random.split(key, 16)
    enc_w1, enc_b1 = init_linear(keys[0], D_IN, D_TF)
    enc_w2, enc_b2 = init_linear(keys[1], D_TF, D_TF)
    tf_enc = [init_enc_layer(keys[2 + i], D_TF, D_FF) for i in range(N_ENC_LAYERS)]
    tf_dec = [init_dec_layer(keys[4 + i], D_TF, D_FF) for i in range(N_DEC_LAYERS)]
    fin_w1, fin_b1 = init_linear(keys[6], D_FINAL, D_FINAL)
    fin_w2, fin_b2 = init_linear(keys[7], D_FINAL, D_FINAL)
    head_ws, head_bs = [], []
    for i in range(N_OUT_HEADS):
        w, b = init_linear(keys[8 + i], D_FINAL, 1)
        head_ws.append(w)
        head_bs.append(b)
    return {
        "encoder": {"w1": enc_w1, "b1": enc_b1, "w2": enc_w2, "b2": enc_b2},
        "tf_encoder": tf_enc,
        "tf_decoder": tf_dec,
        "final": {"w1": fin_w1, "b1": fin_b1, "w2": fin_w2, "b2": fin_b2},
        "heads_w": jnp.concatenate(head_ws, axis=1),   # (D_FINAL, 3)
        "heads_b": jnp.concatenate(head_bs, axis=1),   # (1, 3)
    }


# ----------------------------- main ------------------------------------------
if __name__ == "__main__":
    key = jax.random.PRNGKey(0)
    kp, kl, kr = jax.random.split(key, 3)
    params = init_params(kp)
    slab, layout = pack_params(params)

    left = jax.random.normal(kl, (B, S, D_IN), jnp.float32)
    right = jax.random.normal(kr, (B, S, D_IN), jnp.float32)

    fwd = jax.jit(lambda l, r, s: result_predictor_forward(l, r, s, layout))
    outputs = fwd(left, right, slab)
    for o in outputs:
        jax.block_until_ready(o)
    assert len(outputs) == N_OUT_HEADS and all(o.shape == (B, 1) for o in outputs)
    print("KERNEL_OK")
</pallas_src>

<mosaic_0001>
module attributes {stable_mosaic.version = 11 : i64} {
  func.func @kernel(%arg0: memref<2x8x32xf32, #tpu.memory_space<vmem>>, %arg1: memref<2x8x32xf32, #tpu.memory_space<vmem>>, %arg2: memref<1328x128xf32, #tpu.memory_space<vmem>>, %arg3: memref<2x3xf32, #tpu.memory_space<vmem>>) attributes {dimension_semantics = [], scalar_prefetch = 0 : i64, scratch_operands = 0 : i64, tpu.core_type = #tpu.core_type<tc>} {
    %c0 = arith.constant 0 : index
    %c0_0 = arith.constant 0 : index
    %c0_1 = arith.constant 0 : index
    %0 = vector.load %arg0[%c0, %c0_0, %c0_1] : memref<2x8x32xf32, #tpu.memory_space<vmem>>, vector<2x8x32xf32>
    %1 = vector.shape_cast %0 : vector<2x8x32xf32> to vector<16x32xf32>
    %c0_2 = arith.constant 0 : index
    %c0_3 = arith.constant 0 : index
    %c0_4 = arith.constant 0 : index
    %2 = vector.load %arg1[%c0_2, %c0_3, %c0_4] : memref<2x8x32xf32, #tpu.memory_space<vmem>>, vector<2x8x32xf32>
    %3 = vector.shape_cast %2 : vector<2x8x32xf32> to vector<16x32xf32>
    %4 = tpu.concatenate %1, %3 in 0 : vector<16x32xf32>, vector<16x32xf32> -> vector<32x32xf32>
    %c0_5 = arith.constant 0 : index
    %c0_6 = arith.constant 0 : index
    %5 = vector.load %arg2[%c0_5, %c0_6] : memref<1328x128xf32, #tpu.memory_space<vmem>>, vector<32x32xf32>
    %c32 = arith.constant 32 : index
    %c0_7 = arith.constant 0 : index
    %6 = vector.load %arg2[%c32, %c0_7] : memref<1328x128xf32, #tpu.memory_space<vmem>>, vector<1x32xf32>
    %cst = arith.constant dense<0.000000e+00> : vector<32x32xf32>
    %7 = tpu.matmul %4, %5, %cst {dimension_numbers = #tpu.dot_dimension_numbers<[1], [0], [0], [1], [0, 0, 1, 1], [], []>} : vector<32x32xf32>, vector<32x32xf32>, vector<32x32xf32> -> vector<32x32xf32>
    %8 = vector.broadcast %6 : vector<1x32xf32> to vector<32x32xf32>
    %9 = arith.addf %7, %8 : vector<32x32xf32>
    %cst_8 = arith.constant 0.000000e+00 : f32
    %10 = vector.broadcast %cst_8 : f32 to vector<32x32xf32>
    %11 = arith.maximumf %9, %10 : vector<32x32xf32>
    %c40 = arith.constant 40 : index
    %c0_9 = arith.constant 0 : index
    %12 = vector.load %arg2[%c40, %c0_9] : memref<1328x128xf32, #tpu.memory_space<vmem>>, vector<32x32xf32>
    %c72 = arith.constant 72 : index
    %c0_10 = arith.constant 0 : index
    %13 = vector.load %arg2[%c72, %c0_10] : memref<1328x128xf32, #tpu.memory_space<vmem>>, vector<1x32xf32>
    %cst_11 = arith.constant dense<0.000000e+00> : vector<32x32xf32>
    %14 = tpu.matmul %11, %12, %cst_11 {dimension_numbers = #tpu.dot_dimension_numbers<[1], [0], [0], [1], [0, 0, 1, 1], [], []>} : vector<32x32xf32>, vector<32x32xf32>, vector<32x32xf32> -> vector<32x32xf32>
    %15 = vector.broadcast %13 : vector<1x32xf32> to vector<32x32xf32>
    %16 = arith.addf %14, %15 : vector<32x32xf32>
    %cst_12 = arith.constant 0.000000e+00 : f32
    %17 = vector.broadcast %cst_12 : f32 to vector<32x32xf32>
    %18 = arith.maximumf %16, %17 : vector<32x32xf32>
    %19 = vector.shape_cast %18 : vector<32x32xf32> to vector<4x8x32xf32>
    %20 = vector.extract_strided_slice %18 {offsets = [16, 0], sizes = [16, 32], strides = [1, 1]} : vector<32x32xf32> to vector<16x32xf32>
    %21 = vector.extract_strided_slice %18 {offsets = [0, 0], sizes = [16, 32], strides = [1, 1]} : vector<32x32xf32> to vector<16x32xf32>
    %22 = tpu.concatenate %20, %21 in 0 : vector<16x32xf32>, vector<16x32xf32> -> vector<32x32xf32>
    %23 = vector.shape_cast %22 : vector<32x32xf32> to vector<4x8x32xf32>
    %c80 = arith.constant 80 : index
    %c0_13 = arith.constant 0 : index
    %24 = vector.load %arg2[%c80, %c0_13] : memref<1328x128xf32, #tpu.memory_space<vmem>>, vector<32x96xf32>
    %c112 = arith.constant 112 : index
    %c0_14 = arith.constant 0 : index
    %25 = vector.load %arg2[%c112, %c0_14] : memref<1328x128xf32, #tpu.memory_space<vmem>>, vector<1x96xf32>
    %c120 = arith.constant 120 : index
    %c0_15 = arith.constant 0 : index
    %26 = vector.load %arg2[%c120, %c0_15] : memref<1328x128xf32, #tpu.memory_space<vmem>>, vector<32x32xf32>
    %c152 = arith.constant 152 : index
    %c0_16 = arith.constant 0 : index
    %27 = vector.load %arg2[%c152, %c0_16] : memref<1328x128xf32, #tpu.memory_space<vmem>>, vector<1x32xf32>
    %28 = vector.shape_cast %19 : vector<4x8x32xf32> to vector<32x32xf32>
    %cst_17 = arith.constant dense<0.000000e+00> : vector<32x96xf32>
    %29 = tpu.matmul %28, %24, %cst_17 {dimension_numbers = #tpu.dot_dimension_numbers<[1], [0], [0], [1], [0, 0, 1, 1], [], []>} : vector<32x32xf32>, vector<32x96xf32>, vector<32x96xf32> -> vector<32x96xf32>
    %30 = vector.broadcast %25 : vector<1x96xf32> to vector<32x96xf32>
    %31 = arith.addf %29, %30 : vector<32x96xf32>
    %32 = vector.extract_strided_slice %31 {offsets = [0, 0], sizes = [32, 32], strides = [1, 1]} : vector<32x96xf32> to vector<32x32xf32>
    %33 = vector.shape_cast %32 : vector<32x32xf32> to vector<4x8x32xf32>
    %34 = vector.extract_strided_slice %31 {offsets = [0, 32], sizes = [32, 32], strides = [1, 1]} : vector<32x96xf32> to vector<32x32xf32>
    %35 = vector.shape_cast %34 : vector<32x32xf32> to vector<4x8x32xf32>
    %36 = vector.extract_strided_slice %31 {offsets = [0, 64], sizes = [32, 32], strides = [1, 1]} : vector<32x96xf32> to vector<32x32xf32>
    %37 = vector.shape_cast %36 : vector<32x32xf32> to vector<4x8x32xf32>
    %cst_18 = arith.constant 0.000000e+00 : f32
    %38 = vector.broadcast %cst_18 : f32 to vector<32x32xf32>
    %39 = vector.extract_strided_slice %33 {offsets = [0, 0, 0], sizes = [4, 8, 8], strides = [1, 1, 1]} : vector<4x8x32xf32> to vector<4x8x8xf32>
    %40 = vector.extract_strided_slice %35 {offsets = [0, 0, 0], sizes = [4, 8, 8], strides = [1, 1, 1]} : vector<4x8x32xf32> to vector<4x8x8xf32>
    "tpu.trace_start"() <{level = 10 : i32, message = "bqd,bkd->bqk"}> : () -> ()
    %cst_19 = arith.constant dense<0.000000e+00> : vector<4x8x8xf32>
    %41 = tpu.matmul %39, %40, %cst_19 {dimension_numbers = #tpu.dot_dimension_numbers<[2], [2], [1], [1], [0, 0, 0, 1, 1, 1], [0], [0]>} : vector<4x8x8xf32>, vector<4x8x8xf32>, vector<4x8x8xf32> -> vector<4x8x8xf32>
    "tpu.trace_stop"() : () -> ()
    %cst_20 = arith.constant dense<0xFF800000> : vector<4x8xf32>
    %42 = vector.multi_reduction <maximumf>, %41, %cst_20 [2] : vector<4x8x8xf32> to vector<4x8xf32>
    %43 = vector.shape_cast %42 : vector<4x8xf32> to vector<4x8x1xf32>
    %44 = vector.broadcast %43 : vector<4x8x1xf32> to vector<4x8x8xf32>
    %45 = arith.subf %41, %44 : vector<4x8x8xf32>
    %46 = math.exp %45 : vector<4x8x8xf32>
    %cst_21 = arith.constant dense<0.000000e+00> : vector<4x8xf32>
    %47 = vector.multi_reduction <add>, %46, %cst_21 [2] : vector<4x8x8xf32> to vector<4x8xf32>
    %48 = vector.shape_cast %47 : vector<4x8xf32> to vector<4x8x1xf32>
    %49 = tpu.reciprocal %48 {approx = true} : vector<4x8x1xf32> -> vector<4x8x1xf32>
    %50 = vector.broadcast %49 : vector<4x8x1xf32> to vector<4x8x8xf32>
    %51 = arith.mulf %46, %50 : vector<4x8x8xf32>
    %52 = vector.extract_strided_slice %37 {offsets = [0, 0, 0], sizes = [4, 8, 8], strides = [1, 1, 1]} : vector<4x8x32xf32> to vector<4x8x8xf32>
    "tpu.trace_start"() <{level = 10 : i32, message = "bqk,bkd->bqd"}> : () -> ()
    %cst_22 = arith.constant dense<0.000000e+00> : vector<4x8x8xf32>
    %53 = tpu.matmul %51, %52, %cst_22 {dimension_numbers = #tpu.dot_dimension_numbers<[2], [1], [1], [2], [0, 0, 0, 1, 1, 2], [0], [0]>} : vector<4x8x8xf32>, vector<4x8x8xf32>, vector<4x8x8xf32> -> vector<4x8x8xf32>
    "tpu.trace_stop"() : () -> ()
    %54 = vector.shape_cast %53 : vector<4x8x8xf32> to vector<32x8xf32>
    %55 = vector.extract_strided_slice %26 {offsets = [0, 0], sizes = [8, 32], strides = [1, 1]} : vector<32x32xf32> to vector<8x32xf32>
    %cst_23 = arith.constant dense<0.000000e+00> : vector<32x32xf32>
    %56 = tpu.matmul %54, %55, %cst_23 {dimension_numbers = #tpu.dot_dimension_numbers<[1], [0], [0], [1], [0, 0, 1, 1], [], []>} : vector<32x8xf32>, vector<8x32xf32>, vector<32x32xf32> -> vector<32x32xf32>
    %57 = arith.addf %38, %56 : vector<32x32xf32>
    %58 = vector.extract_strided_slice %33 {offsets = [0, 0, 8], sizes = [4, 8, 8], strides = [1, 1, 1]} : vector<4x8x32xf32> to vector<4x8x8xf32>
    %59 = vector.extract_strided_slice %35 {offsets = [0, 0, 8], sizes = [4, 8, 8], strides = [1, 1, 1]} : vector<4x8x32xf32> to vector<4x8x8xf32>
    "tpu.trace_start"() <{level = 10 : i32, message = "bqd,bkd->bqk"}> : () -> ()
    %cst_24 = arith.constant dense<0.000000e+00> : vector<4x8x8xf32>
    %60 = tpu.matmul %58, %59, %cst_24 {dimension_numbers = #tpu.dot_dimension_numbers<[2], [2], [1], [1], [0, 0, 0, 1, 1, 1], [0], [0]>} : vector<4x8x8xf32>, vector<4x8x8xf32>, vector<4x8x8xf32> -> vector<4x8x8xf32>
    "tpu.trace_stop"() : () -> ()
    %cst_25 = arith.constant dense<0xFF800000> : vector<4x8xf32>
    %61 = vector.multi_reduction <maximumf>, %60, %cst_25 [2] : vector<4x8x8xf32> to vector<4x8xf32>
    %62 = vector.shape_cast %61 : vector<4x8xf32> to vector<4x8x1xf32>
    %63 = vector.broadcast %62 : vector<4x8x1xf32> to vector<4x8x8xf32>
    %64 = arith.subf %60, %63 : vector<4x8x8xf32>
    %65 = math.exp %64 : vector<4x8x8xf32>
    %cst_26 = arith.constant dense<0.000000e+00> : vector<4x8xf32>
    %66 = vector.multi_reduction <add>, %65, %cst_26 [2] : vector<4x8x8xf32> to vector<4x8xf32>
    %67 = vector.shape_cast %66 : vector<4x8xf32> to vector<4x8x1xf32>
    %68 = tpu.reciprocal %67 {approx = true} : vector<4x8x1xf32> -> vector<4x8x1xf32>
    %69 = vector.broadcast %68 : vector<4x8x1xf32> to vector<4x8x8xf32>
    %70 = arith.mulf %65, %69 : vector<4x8x8xf32>
    %71 = vector.extract_strided_slice %37 {offsets = [0, 0, 8], sizes = [4, 8, 8], strides = [1, 1, 1]} : vector<4x8x32xf32> to vector<4x8x8xf32>
    "tpu.trace_start"() <{level = 10 : i32, message = "bqk,bkd->bqd"}> : () -> ()
    %cst_27 = arith.constant dense<0.000000e+00> : vector<4x8x8xf32>
    %72 = tpu.matmul %70, %71, %cst_27 {dimension_numbers = #tpu.dot_dimension_numbers<[2], [1], [1], [2], [0, 0, 0, 1, 1, 2], [0], [0]>} : vector<4x8x8xf32>, vector<4x8x8xf32>, vector<4x8x8xf32> -> vector<4x8x8xf32>
    "tpu.trace_stop"() : () -> ()
    %73 = vector.shape_cast %72 : vector<4x8x8xf32> to vector<32x8xf32>
    %74 = vector.extract_strided_slice %26 {offsets = [8, 0], sizes = [8, 32], strides = [1, 1]} : vector<32x32xf32> to vector<8x32xf32>
    %cst_28 = arith.constant dense<0.000000e+00> : vector<32x32xf32>
    %75 = tpu.matmul %73, %74, %cst_28 {dimension_numbers = #tpu.dot_dimension_numbers<[1], [0], [0], [1], [0, 0, 1, 1], [], []>} : vector<32x8xf32>, vector<8x32xf32>, vector<32x32xf32> -> vector<32x32xf32>
    %76 = arith.addf %57, %75 : vector<32x32xf32>
    %77 = vector.extract_strided_slice %33 {offsets = [0, 0, 16], sizes = [4, 8, 8], strides = [1, 1, 1]} : vector<4x8x32xf32> to vector<4x8x8xf32>
    %78 = vector.extract_strided_slice %35 {offsets = [0, 0, 16], sizes = [4, 8, 8], strides = [1, 1, 1]} : vector<4x8x32xf32> to vector<4x8x8xf32>
    "tpu.trace_start"() <{level = 10 : i32, message = "bqd,bkd->bqk"}> : () -> ()
    %cst_29 = arith.constant dense<0.000000e+00> : vector<4x8x8xf32>
    %79 = tpu.matmul %77, %78, %cst_29 {dimension_numbers = #tpu.dot_dimension_numbers<[2], [2], [1], [1], [0, 0, 0, 1, 1, 1], [0], [0]>} : vector<4x8x8xf32>, vector<4x8x8xf32>, vector<4x8x8xf32> -> vector<4x8x8xf32>
    "tpu.trace_stop"() : () -> ()
    %cst_30 = arith.constant dense<0xFF800000> : vector<4x8xf32>
    %80 = vector.multi_reduction <maximumf>, %79, %cst_30 [2] : vector<4x8x8xf32> to vector<4x8xf32>
    %81 = vector.shape_cast %80 : vector<4x8xf32> to vector<4x8x1xf32>
    %82 = vector.broadcast %81 : vector<4x8x1xf32> to vector<4x8x8xf32>
    %83 = arith.subf %79, %82 : vector<4x8x8xf32>
    %84 = math.exp %83 : vector<4x8x8xf32>
    %cst_31 = arith.constant dense<0.000000e+00> : vector<4x8xf32>
    %85 = vector.multi_reduction <add>, %84, %cst_31 [2] : vector<4x8x8xf32> to vector<4x8xf32>
    %86 = vector.shape_cast %85 : vector<4x8xf32> to vector<4x8x1xf32>
    %87 = tpu.reciprocal %86 {approx = true} : vector<4x8x1xf32> -> vector<4x8x1xf32>
    %88 = vector.broadcast %87 : vector<4x8x1xf32> to vector<4x8x8xf32>
    %89 = arith.mulf %84, %88 : vector<4x8x8xf32>
    %90 = vector.extract_strided_slice %37 {offsets = [0, 0, 16], sizes = [4, 8, 8], strides = [1, 1, 1]} : vector<4x8x32xf32> to vector<4x8x8xf32>
    "tpu.trace_start"() <{level = 10 : i32, message = "bqk,bkd->bqd"}> : () -> ()
    %cst_32 = arith.constant dense<0.000000e+00> : vector<4x8x8xf32>
    %91 = tpu.matmul %89, %90, %cst_32 {dimension_numbers = #tpu.dot_dimension_numbers<[2], [1], [1], [2], [0, 0, 0, 1, 1, 2], [0], [0]>} : vector<4x8x8xf32>, vector<4x8x8xf32>, vector<4x8x8xf32> -> vector<4x8x8xf32>
    "tpu.trace_stop"() : () -> ()
    %92 = vector.shape_cast %91 : vector<4x8x8xf32> to vector<32x8xf32>
    %93 = vector.extract_strided_slice %26 {offsets = [16, 0], sizes = [8, 32], strides = [1, 1]} : vector<32x32xf32> to vector<8x32xf32>
    %cst_33 = arith.constant dense<0.000000e+00> : vector<32x32xf32>
    %94 = tpu.matmul %92, %93, %cst_33 {dimension_numbers = #tpu.dot_dimension_numbers<[1], [0], [0], [1], [0, 0, 1, 1], [], []>} : vector<32x8xf32>, vector<8x32xf32>, vector<32x32xf32> -> vector<32x32xf32>
    %95 = arith.addf %76, %94 : vector<32x32xf32>
    %96 = vector.extract_strided_slice %33 {offsets = [0, 0, 24], sizes = [4, 8, 8], strides = [1, 1, 1]} : vector<4x8x32xf32> to vector<4x8x8xf32>
    %97 = vector.extract_strided_slice %35 {offsets = [0, 0, 24], sizes = [4, 8, 8], strides = [1, 1, 1]} : vector<4x8x32xf32> to vector<4x8x8xf32>
    "tpu.trace_start"() <{level = 10 : i32, message = "bqd,bkd->bqk"}> : () -> ()
    %cst_34 = arith.constant dense<0.000000e+00> : vector<4x8x8xf32>
    %98 = tpu.matmul %96, %97, %cst_34 {dimension_numbers = #tpu.dot_dimension_numbers<[2], [2], [1], [1], [0, 0, 0, 1, 1, 1], [0], [0]>} : vector<4x8x8xf32>, vector<4x8x8xf32>, vector<4x8x8xf32> -> vector<4x8x8xf32>
    "tpu.trace_stop"() : () -> ()
    %cst_35 = arith.constant dense<0xFF800000> : vector<4x8xf32>
    %99 = vector.multi_reduction <maximumf>, %98, %cst_35 [2] : vector<4x8x8xf32> to vector<4x8xf32>
    %100 = vector.shape_cast %99 : vector<4x8xf32> to vector<4x8x1xf32>
    %101 = vector.broadcast %100 : vector<4x8x1xf32> to vector<4x8x8xf32>
    %102 = arith.subf %98, %101 : vector<4x8x8xf32>
    %103 = math.exp %102 : vector<4x8x8xf32>
    %cst_36 = arith.constant dense<0.000000e+00> : vector<4x8xf32>
    %104 = vector.multi_reduction <add>, %103, %cst_36 [2] : vector<4x8x8xf32> to vector<4x8xf32>
    %105 = vector.shape_cast %104 : vector<4x8xf32> to vector<4x8x1xf32>
    %106 = tpu.reciprocal %105 {approx = true} : vector<4x8x1xf32> -> vector<4x8x1xf32>
    %107 = vector.broadcast %106 : vector<4x8x1xf32> to vector<4x8x8xf32>
    %108 = arith.mulf %103, %107 : vector<4x8x8xf32>
    %109 = vector.extract_strided_slice %37 {offsets = [0, 0, 24], sizes = [4, 8, 8], strides = [1, 1, 1]} : vector<4x8x32xf32> to vector<4x8x8xf32>
    "tpu.trace_start"() <{level = 10 : i32, message = "bqk,bkd->bqd"}> : () -> ()
    %cst_37 = arith.constant dense<0.000000e+00> : vector<4x8x8xf32>
    %110 = tpu.matmul %108, %109, %cst_37 {dimension_numbers = #tpu.dot_dimension_numbers<[2], [1], [1], [2], [0, 0, 0, 1, 1, 2], [0], [0]>} : vector<4x8x8xf32>, vector<4x8x8xf32>, vector<4x8x8xf32> -> vector<4x8x8xf32>
    "tpu.trace_stop"() : () -> ()
    %111 = vector.shape_cast %110 : vector<4x8x8xf32> to vector<32x8xf32>
    %112 = vector.extract_strided_slice %26 {offsets = [24, 0], sizes = [8, 32], strides = [1, 1]} : vector<32x32xf32> to vector<8x32xf32>
    %cst_38 = arith.constant dense<0.000000e+00> : vector<32x32xf32>
    %113 = tpu.matmul %111, %112, %cst_38 {dimension_numbers = #tpu.dot_dimension_numbers<[1], [0], [0], [1], [0, 0, 1, 1], [], []>} : vector<32x8xf32>, vector<8x32xf32>, vector<32x32xf32> -> vector<32x32xf32>
    %114 = arith.addf %95, %113 : vector<32x32xf32>
    %115 = vector.broadcast %27 : vector<1x32xf32> to vector<32x32xf32>
    %116 = arith.addf %114, %115 : vector<32x32xf32>
    %117 = vector.shape_cast %116 : vector<32x32xf32> to vector<4x8x32xf32>
    %c160 = arith.constant 160 : index
    %c0_39 = arith.constant 0 : index
    %118 = vector.load %arg2[%c160, %c0_39] : memref<1328x128xf32, #tpu.memory_space<vmem>>, vector<1x32xf32>
    %c168 = arith.constant 168 : index
    %c0_40 = arith.constant 0 : index
    %119 = vector.load %arg2[%c168, %c0_40] : memref<1328x128xf32, #tpu.memory_space<vmem>>, vector<1x32xf32>
    %120 = arith.addf %117, %19 : vector<4x8x32xf32>
    %cst_41 = arith.constant dense<0.000000e+00> : vector<4x8xf32>
    %121 = vector.multi_reduction <add>, %120, %cst_41 [2] : vector<4x8x32xf32> to vector<4x8xf32>
    %122 = vector.shape_cast %121 : vector<4x8xf32> to vector<4x8x1xf32>
    %cst_42 = arith.constant 3.125000e-02 : f32
    %123 = vector.broadcast %cst_42 : f32 to vector<4x8x1xf32>
    %124 = arith.mulf %122, %123 : vector<4x8x1xf32>
    %125 = arith.mulf %120, %120 : vector<4x8x32xf32>
    %cst_43 = arith.constant dense<0.000000e+00> : vector<4x8xf32>
    %126 = vector.multi_reduction <add>, %125, %cst_43 [2] : vector<4x8x32xf32> to vector<4x8xf32>
    %127 = vector.shape_cast %126 : vector<4x8xf32> to vector<4x8x1xf32>
    %cst_44 = arith.constant 3.125000e-02 : f32
    %128 = vector.broadcast %cst_44 : f32 to vector<4x8x1xf32>
    %129 = arith.mulf %127, %128 : vector<4x8x1xf32>
    %130 = arith.mulf %124, %124 : vector<4x8x1xf32>
    %131 = arith.subf %129, %130 : vector<4x8x1xf32>
    %cst_45 = arith.constant 0.000000e+00 : f32
    %132 = vector.broadcast %cst_45 : f32 to vector<4x8x1xf32>
    %133 = arith.maximumf %131, %132 : vector<4x8x1xf32>
    %134 = vector.broadcast %124 : vector<4x8x1xf32> to vector<4x8x32xf32>
    %135 = arith.subf %120, %134 : vector<4x8x32xf32>
    %cst_46 = arith.constant 9.99999974E-6 : f32
    %136 = vector.broadcast %cst_46 : f32 to vector<4x8x1xf32>
    %137 = arith.addf %133, %136 : vector<4x8x1xf32>
    %138 = math.rsqrt %137 : vector<4x8x1xf32>
    %139 = vector.broadcast %138 : vector<4x8x1xf32> to vector<4x8x32xf32>
    %140 = arith.mulf %135, %139 : vector<4x8x32xf32>
    %141 = vector.shape_cast %118 : vector<1x32xf32> to vector<1x1x32xf32>
    %142 = vector.broadcast %141 : vector<1x1x32xf32> to vector<4x8x32xf32>
    %143 = arith.mulf %140, %142 : vector<4x8x32xf32>
    %144 = vector.shape_cast %119 : vector<1x32xf32> to vector<1x1x32xf32>
    %145 = vector.broadcast %144 : vector<1x1x32xf32> to vector<4x8x32xf32>
    %146 = arith.addf %143, %145 : vector<4x8x32xf32>
    %c176 = arith.constant 176 : index
    %c0_47 = arith.constant 0 : index
    %147 = vector.load %arg2[%c176, %c0_47] : memref<1328x128xf32, #tpu.memory_space<vmem>>, vector<32x64xf32>
    %c208 = arith.constant 208 : index
    %c0_48 = arith.constant 0 : index
    %148 = vector.load %arg2[%c208, %c0_48] : memref<1328x128xf32, #tpu.memory_space<vmem>>, vector<1x64xf32>
    %c216 = arith.constant 216 : index
    %c0_49 = arith.constant 0 : index
    %149 = vector.load %arg2[%c216, %c0_49] : memref<1328x128xf32, #tpu.memory_space<vmem>>, vector<64x32xf32>
    %c280 = arith.constant 280 : index
    %c0_50 = arith.constant 0 : index
    %150 = vector.load %arg2[%c280, %c0_50] : memref<1328x128xf32, #tpu.memory_space<vmem>>, vector<1x32xf32>
    %151 = vector.shape_cast %146 : vector<4x8x32xf32> to vector<32x32xf32>
    %cst_51 = arith.constant dense<0.000000e+00> : vector<32x64xf32>
    %152 = tpu.matmul %151, %147, %cst_51 {dimension_numbers = #tpu.dot_dimension_numbers<[1], [0], [0], [1], [0, 0, 1, 1], [], []>} : vector<32x32xf32>, vector<32x64xf32>, vector<32x64xf32> -> vector<32x64xf32>
    %153 = vector.broadcast %148 : vector<1x64xf32> to vector<32x64xf32>
    %154 = arith.addf %152, %153 : vector<32x64xf32>
    %cst_52 = arith.constant 0.000000e+00 : f32
    %155 = vector.broadcast %cst_52 : f32 to vector<32x64xf32>
    %156 = arith.maximumf %154, %155 : vector<32x64xf32>
    %cst_53 = arith.constant dense<0.000000e+00> : vector<32x32xf32>
    %157 = tpu.matmul %156, %149, %cst_53 {dimension_numbers = #tpu.dot_dimension_numbers<[1], [0], [0], [1], [0, 0, 1, 1], [], []>} : vector<32x64xf32>, vector<64x32xf32>, vector<32x32xf32> -> vector<32x32xf32>
    %158 = vector.broadcast %150 : vector<1x32xf32> to vector<32x32xf32>
    %159 = arith.addf %157, %158 : vector<32x32xf32>
    %160 = vector.shape_cast %159 : vector<32x32xf32> to vector<4x8x32xf32>
    %c288 = arith.constant 288 : index
    %c0_54 = arith.constant 0 : index
    %161 = vector.load %arg2[%c288, %c0_54] : memref<1328x128xf32, #tpu.memory_space<vmem>>, vector<1x32xf32>
    %c296 = arith.constant 296 : index
    %c0_55 = arith.constant 0 : index
    %162 = vector.load %arg2[%c296, %c0_55] : memref<1328x128xf32, #tpu.memory_space<vmem>>, vector<1x32xf32>
    %163 = arith.addf %160, %146 : vector<4x8x32xf32>
    %cst_56 = arith.constant dense<0.000000e+00> : vector<4x8xf32>
    %164 = vector.multi_reduction <add>, %163, %cst_56 [2] : vector<4x8x32xf32> to vector<4x8xf32>
    %165 = vector.shape_cast %164 : vector<4x8xf32> to vector<4x8x1xf32>
    %cst_57 = arith.constant 3.125000e-02 : f32
    %166 = vector.broadcast %cst_57 : f32 to vector<4x8x1xf32>
    %167 = arith.mulf %165, %166 : vector<4x8x1xf32>
    %168 = arith.mulf %163, %163 : vector<4x8x32xf32>
    %cst_58 = arith.constant dense<0.000000e+00> : vector<4x8xf32>
    %169 = vector.multi_reduction <add>, %168, %cst_58 [2] : vector<4x8x32xf32> to vector<4x8xf32>
    %170 = vector.shape_cast %169 : vector<4x8xf32> to vector<4x8x1xf32>
    %cst_59 = arith.constant 3.125000e-02 : f32
    %171 = vector.broadcast %cst_59 : f32 to vector<4x8x1xf32>
    %172 = arith.mulf %170, %171 : vector<4x8x1xf32>
    %173 = arith.mulf %167, %167 : vector<4x8x1xf32>
    %174 = arith.subf %172, %173 : vector<4x8x1xf32>
    %cst_60 = arith.constant 0.000000e+00 : f32
    %175 = vector.broadcast %cst_60 : f32 to vector<4x8x1xf32>
    %176 = arith.maximumf %174, %175 : vector<4x8x1xf32>
    %177 = vector.broadcast %167 : vector<4x8x1xf32> to vector<4x8x32xf32>
    %178 = arith.subf %163, %177 : vector<4x8x32xf32>
    %cst_61 = arith.constant 9.99999974E-6 : f32
    %179 = vector.broadcast %cst_61 : f32 to vector<4x8x1xf32>
    %180 = arith.addf %176, %179 : vector<4x8x1xf32>
    %181 = math.rsqrt %180 : vector<4x8x1xf32>
    %182 = vector.broadcast %181 : vector<4x8x1xf32> to vector<4x8x32xf32>
    %183 = arith.mulf %178, %182 : vector<4x8x32xf32>
    %184 = vector.shape_cast %161 : vector<1x32xf32> to vector<1x1x32xf32>
    %185 = vector.broadcast %184 : vector<1x1x32xf32> to vector<4x8x32xf32>
    %186 = arith.mulf %183, %185 : vector<4x8x32xf32>
    %187 = vector.shape_cast %162 : vector<1x32xf32> to vector<1x1x32xf32>
    %188 = vector.broadcast %187 : vector<1x1x32xf32> to vector<4x8x32xf32>
    %189 = arith.addf %186, %188 : vector<4x8x32xf32>
    %c304 = arith.constant 304 : index
    %c0_62 = arith.constant 0 : index
    %190 = vector.load %arg2[%c304, %c0_62] : memref<1328x128xf32, #tpu.memory_space<vmem>>, vector<32x96xf32>
    %c336 = arith.constant 336 : index
    %c0_63 = arith.constant 0 : index
    %191 = vector.load %arg2[%c336, %c0_63] : memref<1328x128xf32, #tpu.memory_space<vmem>>, vector<1x96xf32>
    %c344 = arith.constant 344 : index
    %c0_64 = arith.constant 0 : index
    %192 = vector.load %arg2[%c344, %c0_64] : memref<1328x128xf32, #tpu.memory_space<vmem>>, vector<32x32xf32>
    %c376 = arith.constant 376 : index
    %c0_65 = arith.constant 0 : index
    %193 = vector.load %arg2[%c376, %c0_65] : memref<1328x128xf32, #tpu.memory_space<vmem>>, vector<1x32xf32>
    %194 = vector.shape_cast %189 : vector<4x8x32xf32> to vector<32x32xf32>
    %cst_66 = arith.constant dense<0.000000e+00> : vector<32x96xf32>
    %195 = tpu.matmul %194, %190, %cst_66 {dimension_numbers = #tpu.dot_dimension_numbers<[1], [0], [0], [1], [0, 0, 1, 1], [], []>} : vector<32x32xf32>, vector<32x96xf32>, vector<32x96xf32> -> vector<32x96xf32>
    %196 = vector.broadcast %191 : vector<1x96xf32> to vector<32x96xf32>
    %197 = arith.addf %195, %196 : vector<32x96xf32>
    %198 = vector.extract_strided_slice %197 {offsets = [0, 0], sizes = [32, 32], strides = [1, 1]} : vector<32x96xf32> to vector<32x32xf32>
    %199 = vector.shape_cast %198 : vector<32x32xf32> to vector<4x8x32xf32>
    %200 = vector.extract_strided_slice %197 {offsets = [0, 32], sizes = [32, 32], strides = [1, 1]} : vector<32x96xf32> to vector<32x32xf32>
    %201 = vector.shape_cast %200 : vector<32x32xf32> to vector<4x8x32xf32>
    %202 = vector.extract_strided_slice %197 {offsets = [0, 64], sizes = [32, 32], strides = [1, 1]} : vector<32x96xf32> to vector<32x32xf32>
    %203 = vector.shape_cast %202 : vector<32x32xf32> to vector<4x8x32xf32>
    %cst_67 = arith.constant 0.000000e+00 : f32
    %204 = vector.broadcast %cst_67 : f32 to vector<32x32xf32>
    %205 = vector.extract_strided_slice %199 {offsets = [0, 0, 0], sizes = [4, 8, 8], strides = [1, 1, 1]} : vector<4x8x32xf32> to vector<4x8x8xf32>
    %206 = vector.extract_strided_slice %201 {offsets = [0, 0, 0], sizes = [4, 8, 8], strides = [1, 1, 1]} : vector<4x8x32xf32> to vector<4x8x8xf32>
    "tpu.trace_start"() <{level = 10 : i32, message = "bqd,bkd->bqk"}> : () -> ()
    %cst_68 = arith.constant dense<0.000000e+00> : vector<4x8x8xf32>
    %207 = tpu.matmul %205, %206, %cst_68 {dimension_numbers = #tpu.dot_dimension_numbers<[2], [2], [1], [1], [0, 0, 0, 1, 1, 1], [0], [0]>} : vector<4x8x8xf32>, vector<4x8x8xf32>, vector<4x8x8xf32> -> vector<4x8x8xf32>
    "tpu.trace_stop"() : () -> ()
    %cst_69 = arith.constant dense<0xFF800000> : vector<4x8xf32>
    %208 = vector.multi_reduction <maximumf>, %207, %cst_69 [2] : vector<4x8x8xf32> to vector<4x8xf32>
    %209 = vector.shape_cast %208 : vector<4x8xf32> to vector<4x8x1xf32>
    %210 = vector.broadcast %209 : vector<4x8x1xf32> to vector<4x8x8xf32>
    %211 = arith.subf %207, %210 : vector<4x8x8xf32>
    %212 = math.exp %211 : vector<4x8x8xf32>
    %cst_70 = arith.constant dense<0.000000e+00> : vector<4x8xf32>
    %213 = vector.multi_reduction <add>, %212, %cst_70 [2] : vector<4x8x8xf32> to vector<4x8xf32>
    %214 = vector.shape_cast %213 : vector<4x8xf32> to vector<4x8x1xf32>
    %215 = tpu.reciprocal %214 {approx = true} : vector<4x8x1xf32> -> vector<4x8x1xf32>
    %216 = vector.broadcast %215 : vector<4x8x1xf32> to vector<4x8x8xf32>
    %217 = arith.mulf %212, %216 : vector<4x8x8xf32>
    %218 = vector.extract_strided_slice %203 {offsets = [0, 0, 0], sizes = [4, 8, 8], strides = [1, 1, 1]} : vector<4x8x32xf32> to vector<4x8x8xf32>
    "tpu.trace_start"() <{level = 10 : i32, message = "bqk,bkd->bqd"}> : () -> ()
    %cst_71 = arith.constant dense<0.000000e+00> : vector<4x8x8xf32>
    %219 = tpu.matmul %217, %218, %cst_71 {dimension_numbers = #tpu.dot_dimension_numbers<[2], [1], [1], [2], [0, 0, 0, 1, 1, 2], [0], [0]>} : vector<4x8x8xf32>, vector<4x8x8xf32>, vector<4x8x8xf32> -> vector<4x8x8xf32>
    "tpu.trace_stop"() : () -> ()
    %220 = vector.shape_cast %219 : vector<4x8x8xf32> to vector<32x8xf32>
    %221 = vector.extract_strided_slice %192 {offsets = [0, 0], sizes = [8, 32], strides = [1, 1]} : vector<32x32xf32> to vector<8x32xf32>
    %cst_72 = arith.constant dense<0.000000e+00> : vector<32x32xf32>
    %222 = tpu.matmul %220, %221, %cst_72 {dimension_numbers = #tpu.dot_dimension_numbers<[1], [0], [0], [1], [0, 0, 1, 1], [], []>} : vector<32x8xf32>, vector<8x32xf32>, vector<32x32xf32> -> vector<32x32xf32>
    %223 = arith.addf %204, %222 : vector<32x32xf32>
    %224 = vector.extract_strided_slice %199 {offsets = [0, 0, 8], sizes = [4, 8, 8], strides = [1, 1, 1]} : vector<4x8x32xf32> to vector<4x8x8xf32>
    %225 = vector.extract_strided_slice %201 {offsets = [0, 0, 8], sizes = [4, 8, 8], strides = [1, 1, 1]} : vector<4x8x32xf32> to vector<4x8x8xf32>
    "tpu.trace_start"() <{level = 10 : i32, message = "bqd,bkd->bqk"}> : () -> ()
    %cst_73 = arith.constant dense<0.000000e+00> : vector<4x8x8xf32>
    %226 = tpu.matmul %224, %225, %cst_73 {dimension_numbers = #tpu.dot_dimension_numbers<[2], [2], [1], [1], [0, 0, 0, 1, 1, 1], [0], [0]>} : vector<4x8x8xf32>, vector<4x8x8xf32>, vector<4x8x8xf32> -> vector<4x8x8xf32>
    "tpu.trace_stop"() : () -> ()
    %cst_74 = arith.constant dense<0xFF800000> : vector<4x8xf32>
    %227 = vector.multi_reduction <maximumf>, %226, %cst_74 [2] : vector<4x8x8xf32> to vector<4x8xf32>
    %228 = vector.shape_cast %227 : vector<4x8xf32> to vector<4x8x1xf32>
    %229 = vector.broadcast %228 : vector<4x8x1xf32> to vector<4x8x8xf32>
    %230 = arith.subf %226, %229 : vector<4x8x8xf32>
    %231 = math.exp %230 : vector<4x8x8xf32>
    %cst_75 = arith.constant dense<0.000000e+00> : vector<4x8xf32>
    %232 = vector.multi_reduction <add>, %231, %cst_75 [2] : vector<4x8x8xf32> to vector<4x8xf32>
    %233 = vector.shape_cast %232 : vector<4x8xf32> to vector<4x8x1xf32>
    %234 = tpu.reciprocal %233 {approx = true} : vector<4x8x1xf32> -> vector<4x8x1xf32>
    %235 = vector.broadcast %234 : vector<4x8x1xf32> to vector<4x8x8xf32>
    %236 = arith.mulf %231, %235 : vector<4x8x8xf32>
    %237 = vector.extract_strided_slice %203 {offsets = [0, 0, 8], sizes = [4, 8, 8], strides = [1, 1, 1]} : vector<4x8x32xf32> to vector<4x8x8xf32>
    "tpu.trace_start"() <{level = 10 : i32, message = "bqk,bkd->bqd"}> : () -> ()
    %cst_76 = arith.constant dense<0.000000e+00> : vector<4x8x8xf32>
    %238 = tpu.matmul %236, %237, %cst_76 {dimension_numbers = #tpu.dot_dimension_numbers<[2], [1], [1], [2], [0, 0, 0, 1, 1, 2], [0], [0]>} : vector<4x8x8xf32>, vector<4x8x8xf32>, vector<4x8x8xf32> -> vector<4x8x8xf32>
    "tpu.trace_stop"() : () -> ()
    %239 = vector.shape_cast %238 : vector<4x8x8xf32> to vector<32x8xf32>
    %240 = vector.extract_strided_slice %192 {offsets = [8, 0], sizes = [8, 32], strides = [1, 1]} : vector<32x32xf32> to vector<8x32xf32>
    %cst_77 = arith.constant dense<0.000000e+00> : vector<32x32xf32>
    %241 = tpu.matmul %239, %240, %cst_77 {dimension_numbers = #tpu.dot_dimension_numbers<[1], [0], [0], [1], [0, 0, 1, 1], [], []>} : vector<32x8xf32>, vector<8x32xf32>, vector<32x32xf32> -> vector<32x32xf32>
    %242 = arith.addf %223, %241 : vector<32x32xf32>
    %243 = vector.extract_strided_slice %199 {offsets = [0, 0, 16], sizes = [4, 8, 8], strides = [1, 1, 1]} : vector<4x8x32xf32> to vector<4x8x8xf32>
    %244 = vector.extract_strided_slice %201 {offsets = [0, 0, 16], sizes = [4, 8, 8], strides = [1, 1, 1]} : vector<4x8x32xf32> to vector<4x8x8xf32>
    "tpu.trace_start"() <{level = 10 : i32, message = "bqd,bkd->bqk"}> : () -> ()
    %cst_78 = arith.constant dense<0.000000e+00> : vector<4x8x8xf32>
    %245 = tpu.matmul %243, %244, %cst_78 {dimension_numbers = #tpu.dot_dimension_numbers<[2], [2], [1], [1], [0, 0, 0, 1, 1, 1], [0], [0]>} : vector<4x8x8xf32>, vector<4x8x8xf32>, vector<4x8x8xf32> -> vector<4x8x8xf32>
    "tpu.trace_stop"() : () -> ()
    %cst_79 = arith.constant dense<0xFF800000> : vector<4x8xf32>
    %246 = vector.multi_reduction <maximumf>, %245, %cst_79 [2] : vector<4x8x8xf32> to vector<4x8xf32>
    %247 = vector.shape_cast %246 : vector<4x8xf32> to vector<4x8x1xf32>
    %248 = vector.broadcast %247 : vector<4x8x1xf32> to vector<4x8x8xf32>
    %249 = arith.subf %245, %248 : vector<4x8x8xf32>
    %250 = math.exp %249 : vector<4x8x8xf32>
    %cst_80 = arith.constant dense<0.000000e+00> : vector<4x8xf32>
    %251 = vector.multi_reduction <add>, %250, %cst_80 [2] : vector<4x8x8xf32> to vector<4x8xf32>
    %252 = vector.shape_cast %251 : vector<4x8xf32> to vector<4x8x1xf32>
    %253 = tpu.reciprocal %252 {approx = true} : vector<4x8x1xf32> -> vector<4x8x1xf32>
    %254 = vector.broadcast %253 : vector<4x8x1xf32> to vector<4x8x8xf32>
    %255 = arith.mulf %250, %254 : vector<4x8x8xf32>
    %256 = vector.extract_strided_slice %203 {offsets = [0, 0, 16], sizes = [4, 8, 8], strides = [1, 1, 1]} : vector<4x8x32xf32> to vector<4x8x8xf32>
    "tpu.trace_start"() <{level = 10 : i32, message = "bqk,bkd->bqd"}> : () -> ()
    %cst_81 = arith.constant dense<0.000000e+00> : vector<4x8x8xf32>
    %257 = tpu.matmul %255, %256, %cst_81 {dimension_numbers = #tpu.dot_dimension_numbers<[2], [1], [1], [2], [0, 0, 0, 1, 1, 2], [0], [0]>} : vector<4x8x8xf32>, vector<4x8x8xf32>, vector<4x8x8xf32> -> vector<4x8x8xf32>
    "tpu.trace_stop"() : () -> ()
    %258 = vector.shape_cast %257 : vector<4x8x8xf32> to vector<32x8xf32>
    %259 = vector.extract_strided_slice %192 {offsets = [16, 0], sizes = [8, 32], strides = [1, 1]} : vector<32x32xf32> to vector<8x32xf32>
    %cst_82 = arith.constant dense<0.000000e+00> : vector<32x32xf32>
    %260 = tpu.matmul %258, %259, %cst_82 {dimension_numbers = #tpu.dot_dimension_numbers<[1], [0], [0], [1], [0, 0, 1, 1], [], []>} : vector<32x8xf32>, vector<8x32xf32>, vector<32x32xf32> -> vector<32x32xf32>
    %261 = arith.addf %242, %260 : vector<32x32xf32>
    %262 = vector.extract_strided_slice %199 {offsets = [0, 0, 24], sizes = [4, 8, 8], strides = [1, 1, 1]} : vector<4x8x32xf32> to vector<4x8x8xf32>
    %263 = vector.extract_strided_slice %201 {offsets = [0, 0, 24], sizes = [4, 8, 8], strides = [1, 1, 1]} : vector<4x8x32xf32> to vector<4x8x8xf32>
    "tpu.trace_start"() <{level = 10 : i32, message = "bqd,bkd->bqk"}> : () -> ()
    %cst_83 = arith.constant dense<0.000000e+00> : vector<4x8x8xf32>
    %264 = tpu.matmul %262, %263, %cst_83 {dimension_numbers = #tpu.dot_dimension_numbers<[2], [2], [1], [1], [0, 0, 0, 1, 1, 1], [0], [0]>} : vector<4x8x8xf32>, vector<4x8x8xf32>, vector<4x8x8xf32> -> vector<4x8x8xf32>
    "tpu.trace_stop"() : () -> ()
    %cst_84 = arith.constant dense<0xFF800000> : vector<4x8xf32>
    %265 = vector.multi_reduction <maximumf>, %264, %cst_84 [2] : vector<4x8x8xf32> to vector<4x8xf32>
    %266 = vector.shape_cast %265 : vector<4x8xf32> to vector<4x8x1xf32>
    %267 = vector.broadcast %266 : vector<4x8x1xf32> to vector<4x8x8xf32>
    %268 = arith.subf %264, %267 : vector<4x8x8xf32>
    %269 = math.exp %268 : vector<4x8x8xf32>
    %cst_85 = arith.constant dense<0.000000e+00> : vector<4x8xf32>
    %270 = vector.multi_reduction <add>, %269, %cst_85 [2] : vector<4x8x8xf32> to vector<4x8xf32>
    %271 = vector.shape_cast %270 : vector<4x8xf32> to vector<4x8x1xf32>
    %272 = tpu.reciprocal %271 {approx = true} : vector<4x8x1xf32> -> vector<4x8x1xf32>
    %273 = vector.broadcast %272 : vector<4x8x1xf32> to vector<4x8x8xf32>
    %274 = arith.mulf %269, %273 : vector<4x8x8xf32>
    %275 = vector.extract_strided_slice %203 {offsets = [0, 0, 24], sizes = [4, 8, 8], strides = [1, 1, 1]} : vector<4x8x32xf32> to vector<4x8x8xf32>
    "tpu.trace_start"() <{level = 10 : i32, message = "bqk,bkd->bqd"}> : () -> ()
    %cst_86 = arith.constant dense<0.000000e+00> : vector<4x8x8xf32>
    %276 = tpu.matmul %274, %275, %cst_86 {dimension_numbers = #tpu.dot_dimension_numbers<[2], [1], [1], [2], [0, 0, 0, 1, 1, 2], [0], [0]>} : vector<4x8x8xf32>, vector<4x8x8xf32>, vector<4x8x8xf32> -> vector<4x8x8xf32>
    "tpu.trace_stop"() : () -> ()
    %277 = vector.shape_cast %276 : vector<4x8x8xf32> to vector<32x8xf32>
    %278 = vector.extract_strided_slice %192 {offsets = [24, 0], sizes = [8, 32], strides = [1, 1]} : vector<32x32xf32> to vector<8x32xf32>
    %cst_87 = arith.constant dense<0.000000e+00> : vector<32x32xf32>
    %279 = tpu.matmul %277, %278, %cst_87 {dimension_numbers = #tpu.dot_dimension_numbers<[1], [0], [0], [1], [0, 0, 1, 1], [], []>} : vector<32x8xf32>, vector<8x32xf32>, vector<32x32xf32> -> vector<32x32xf32>
    %280 = arith.addf %261, %279 : vector<32x32xf32>
    %281 = vector.broadcast %193 : vector<1x32xf32> to vector<32x32xf32>
    %282 = arith.addf %280, %281 : vector<32x32xf32>
    %283 = vector.shape_cast %282 : vector<32x32xf32> to vector<4x8x32xf32>
    %c384 = arith.constant 384 : index
    %c0_88 = arith.constant 0 : index
    %284 = vector.load %arg2[%c384, %c0_88] : memref<1328x128xf32, #tpu.memory_space<vmem>>, vector<1x32xf32>
    %c392 = arith.constant 392 : index
    %c0_89 = arith.constant 0 : index
    %285 = vector.load %arg2[%c392, %c0_89] : memref<1328x128xf32, #tpu.memory_space<vmem>>, vector<1x32xf32>
    %286 = arith.addf %283, %189 : vector<4x8x32xf32>
    %cst_90 = arith.constant dense<0.000000e+00> : vector<4x8xf32>
    %287 = vector.multi_reduction <add>, %286, %cst_90 [2] : vector<4x8x32xf32> to vector<4x8xf32>
    %288 = vector.shape_cast %287 : vector<4x8xf32> to vector<4x8x1xf32>
    %cst_91 = arith.constant 3.125000e-02 : f32
    %289 = vector.broadcast %cst_91 : f32 to vector<4x8x1xf32>
    %290 = arith.mulf %288, %289 : vector<4x8x1xf32>
    %291 = arith.mulf %286, %286 : vector<4x8x32xf32>
    %cst_92 = arith.constant dense<0.000000e+00> : vector<4x8xf32>
    %292 = vector.multi_reduction <add>, %291, %cst_92 [2] : vector<4x8x32xf32> to vector<4x8xf32>
    %293 = vector.shape_cast %292 : vector<4x8xf32> to vector<4x8x1xf32>
    %cst_93 = arith.constant 3.125000e-02 : f32
    %294 = vector.broadcast %cst_93 : f32 to vector<4x8x1xf32>
    %295 = arith.mulf %293, %294 : vector<4x8x1xf32>
    %296 = arith.mulf %290, %290 : vector<4x8x1xf32>
    %297 = arith.subf %295, %296 : vector<4x8x1xf32>
    %cst_94 = arith.constant 0.000000e+00 : f32
    %298 = vector.broadcast %cst_94 : f32 to vector<4x8x1xf32>
    %299 = arith.maximumf %297, %298 : vector<4x8x1xf32>
    %300 = vector.broadcast %290 : vector<4x8x1xf32> to vector<4x8x32xf32>
    %301 = arith.subf %286, %300 : vector<4x8x32xf32>
    %cst_95 = arith.constant 9.99999974E-6 : f32
    %302 = vector.broadcast %cst_95 : f32 to vector<4x8x1xf32>
    %303 = arith.addf %299, %302 : vector<4x8x1xf32>
    %304 = math.rsqrt %303 : vector<4x8x1xf32>
    %305 = vector.broadcast %304 : vector<4x8x1xf32> to vector<4x8x32xf32>
    %306 = arith.mulf %301, %305 : vector<4x8x32xf32>
    %307 = vector.shape_cast %284 : vector<1x32xf32> to vector<1x1x32xf32>
    %308 = vector.broadcast %307 : vector<1x1x32xf32> to vector<4x8x32xf32>
    %309 = arith.mulf %306, %308 : vector<4x8x32xf32>
    %310 = vector.shape_cast %285 : vector<1x32xf32> to vector<1x1x32xf32>
    %311 = vector.broadcast %310 : vector<1x1x32xf32> to vector<4x8x32xf32>
    %312 = arith.addf %309, %311 : vector<4x8x32xf32>
    %c400 = arith.constant 400 : index
    %c0_96 = arith.constant 0 : index
    %313 = vector.load %arg2[%c400, %c0_96] : memref<1328x128xf32, #tpu.memory_space<vmem>>, vector<32x64xf32>
    %c432 = arith.constant 432 : index
    %c0_97 = arith.constant 0 : index
    %314 = vector.load %arg2[%c432, %c0_97] : memref<1328x128xf32, #tpu.memory_space<vmem>>, vector<1x64xf32>
    %c440 = arith.constant 440 : index
    %c0_98 = arith.constant 0 : index
    %315 = vector.load %arg2[%c440, %c0_98] : memref<1328x128xf32, #tpu.memory_space<vmem>>, vector<64x32xf32>
    %c504 = arith.constant 504 : index
    %c0_99 = arith.constant 0 : index
    %316 = vector.load %arg2[%c504, %c0_99] : memref<1328x128xf32, #tpu.memory_space<vmem>>, vector<1x32xf32>
    %317 = vector.shape_cast %312 : vector<4x8x32xf32> to vector<32x32xf32>
    %cst_100 = arith.constant dense<0.000000e+00> : vector<32x64xf32>
    %318 = tpu.matmul %317, %313, %cst_100 {dimension_numbers = #tpu.dot_dimension_numbers<[1], [0], [0], [1], [0, 0, 1, 1], [], []>} : vector<32x32xf32>, vector<32x64xf32>, vector<32x64xf32> -> vector<32x64xf32>
    %319 = vector.broadcast %314 : vector<1x64xf32> to vector<32x64xf32>
    %320 = arith.addf %318, %319 : vector<32x64xf32>
    %cst_101 = arith.constant 0.000000e+00 : f32
    %321 = vector.broadcast %cst_101 : f32 to vector<32x64xf32>
    %322 = arith.maximumf %320, %321 : vector<32x64xf32>
    %cst_102 = arith.constant dense<0.000000e+00> : vector<32x32xf32>
    %323 = tpu.matmul %322, %315, %cst_102 {dimension_numbers = #tpu.dot_dimension_numbers<[1], [0], [0], [1], [0, 0, 1, 1], [], []>} : vector<32x64xf32>, vector<64x32xf32>, vector<32x32xf32> -> vector<32x32xf32>
    %324 = vector.broadcast %316 : vector<1x32xf32> to vector<32x32xf32>
    %325 = arith.addf %323, %324 : vector<32x32xf32>
    %326 = vector.shape_cast %325 : vector<32x32xf32> to vector<4x8x32xf32>
    %c512 = arith.constant 512 : index
    %c0_103 = arith.constant 0 : index
    %327 = vector.load %arg2[%c512, %c0_103] : memref<1328x128xf32, #tpu.memory_space<vmem>>, vector<1x32xf32>
    %c520 = arith.constant 520 : index
    %c0_104 = arith.constant 0 : index
    %328 = vector.load %arg2[%c520, %c0_104] : memref<1328x128xf32, #tpu.memory_space<vmem>>, vector<1x32xf32>
    %329 = arith.addf %326, %312 : vector<4x8x32xf32>
    %cst_105 = arith.constant dense<0.000000e+00> : vector<4x8xf32>
    %330 = vector.multi_reduction <add>, %329, %cst_105 [2] : vector<4x8x32xf32> to vector<4x8xf32>
    %331 = vector.shape_cast %330 : vector<4x8xf32> to vector<4x8x1xf32>
    %cst_106 = arith.constant 3.125000e-02 : f32
    %332 = vector.broadcast %cst_106 : f32 to vector<4x8x1xf32>
    %333 = arith.mulf %331, %332 : vector<4x8x1xf32>
    %334 = arith.mulf %329, %329 : vector<4x8x32xf32>
    %cst_107 = arith.constant dense<0.000000e+00> : vector<4x8xf32>
    %335 = vector.multi_reduction <add>, %334, %cst_107 [2] : vector<4x8x32xf32> to vector<4x8xf32>
    %336 = vector.shape_cast %335 : vector<4x8xf32> to vector<4x8x1xf32>
    %cst_108 = arith.constant 3.125000e-02 : f32
    %337 = vector.broadcast %cst_108 : f32 to vector<4x8x1xf32>
    %338 = arith.mulf %336, %337 : vector<4x8x1xf32>
    %339 = arith.mulf %333, %333 : vector<4x8x1xf32>
    %340 = arith.subf %338, %339 : vector<4x8x1xf32>
    %cst_109 = arith.constant 0.000000e+00 : f32
    %341 = vector.broadcast %cst_109 : f32 to vector<4x8x1xf32>
    %342 = arith.maximumf %340, %341 : vector<4x8x1xf32>
    %343 = vector.broadcast %333 : vector<4x8x1xf32> to vector<4x8x32xf32>
    %344 = arith.subf %329, %343 : vector<4x8x32xf32>
    %cst_110 = arith.constant 9.99999974E-6 : f32
    %345 = vector.broadcast %cst_110 : f32 to vector<4x8x1xf32>
    %346 = arith.addf %342, %345 : vector<4x8x1xf32>
    %347 = math.rsqrt %346 : vector<4x8x1xf32>
    %348 = vector.broadcast %347 : vector<4x8x1xf32> to vector<4x8x32xf32>
    %349 = arith.mulf %344, %348 : vector<4x8x32xf32>
    %350 = vector.shape_cast %327 : vector<1x32xf32> to vector<1x1x32xf32>
    %351 = vector.broadcast %350 : vector<1x1x32xf32> to vector<4x8x32xf32>
    %352 = arith.mulf %349, %351 : vector<4x8x32xf32>
    %353 = vector.shape_cast %328 : vector<1x32xf32> to vector<1x1x32xf32>
    %354 = vector.broadcast %353 : vector<1x1x32xf32> to vector<4x8x32xf32>
    %355 = arith.addf %352, %354 : vector<4x8x32xf32>
    %356 = vector.shape_cast %355 : vector<4x8x32xf32> to vector<32x32xf32>
    %c528 = arith.constant 528 : index
    %c0_111 = arith.constant 0 : index
    %357 = vector.load %arg2[%c528, %c0_111] : memref<1328x128xf32, #tpu.memory_space<vmem>>, vector<32x128xf32>
    %c560 = arith.constant 560 : index
    %c0_112 = arith.constant 0 : index
    %358 = vector.load %arg2[%c560, %c0_112] : memref<1328x128xf32, #tpu.memory_space<vmem>>, vector<1x128xf32>
    %cst_113 = arith.constant dense<0.000000e+00> : vector<32x128xf32>
    %359 = tpu.matmul %356, %357, %cst_113 {dimension_numbers = #tpu.dot_dimension_numbers<[1], [0], [0], [1], [0, 0, 1, 1], [], []>} : vector<32x32xf32>, vector<32x128xf32>, vector<32x128xf32> -> vector<32x128xf32>
    %360 = vector.broadcast %358 : vector<1x128xf32> to vector<32x128xf32>
    %361 = arith.addf %359, %360 : vector<32x128xf32>
    %c568 = arith.constant 568 : index
    %c0_114 = arith.constant 0 : index
    %362 = vector.load %arg2[%c568, %c0_114] : memref<1328x128xf32, #tpu.memory_space<vmem>>, vector<32x96xf32>
    %c600 = arith.constant 600 : index
    %c0_115 = arith.constant 0 : index
    %363 = vector.load %arg2[%c600, %c0_115] : memref<1328x128xf32, #tpu.memory_space<vmem>>, vector<1x96xf32>
    %c608 = arith.constant 608 : index
    %c0_116 = arith.constant 0 : index
    %364 = vector.load %arg2[%c608, %c0_116] : memref<1328x128xf32, #tpu.memory_space<vmem>>, vector<32x32xf32>
    %c640 = arith.constant 640 : index
    %c0_117 = arith.constant 0 : index
    %365 = vector.load %arg2[%c640, %c0_117] : memref<1328x128xf32, #tpu.memory_space<vmem>>, vector<1x32xf32>
    %366 = vector.shape_cast %23 : vector<4x8x32xf32> to vector<32x32xf32>
    %cst_118 = arith.constant dense<0.000000e+00> : vector<32x96xf32>
    %367 = tpu.matmul %366, %362, %cst_118 {dimension_numbers = #tpu.dot_dimension_numbers<[1], [0], [0], [1], [0, 0, 1, 1], [], []>} : vector<32x32xf32>, vector<32x96xf32>, vector<32x96xf32> -> vector<32x96xf32>
    %368 = vector.broadcast %363 : vector<1x96xf32> to vector<32x96xf32>
    %369 = arith.addf %367, %368 : vector<32x96xf32>
    %370 = vector.extract_strided_slice %369 {offsets = [0, 0], sizes = [32, 32], strides = [1, 1]} : vector<32x96xf32> to vector<32x32xf32>
    %371 = vector.shape_cast %370 : vector<32x32xf32> to vector<4x8x32xf32>
    %372 = vector.extract_strided_slice %369 {offsets = [0, 32], sizes = [32, 32], strides = [1, 1]} : vector<32x96xf32> to vector<32x32xf32>
    %373 = vector.shape_cast %372 : vector<32x32xf32> to vector<4x8x32xf32>
    %374 = vector.extract_strided_slice %369 {offsets = [0, 64], sizes = [32, 32], strides = [1, 1]} : vector<32x96xf32> to vector<32x32xf32>
    %375 = vector.shape_cast %374 : vector<32x32xf32> to vector<4x8x32xf32>
    %cst_119 = arith.constant 0.000000e+00 : f32
    %376 = vector.broadcast %cst_119 : f32 to vector<32x32xf32>
    %377 = vector.extract_strided_slice %371 {offsets = [0, 0, 0], sizes = [4, 8, 8], strides = [1, 1, 1]} : vector<4x8x32xf32> to vector<4x8x8xf32>
    %378 = vector.extract_strided_slice %373 {offsets = [0, 0, 0], sizes = [4, 8, 8], strides = [1, 1, 1]} : vector<4x8x32xf32> to vector<4x8x8xf32>
    "tpu.trace_start"() <{level = 10 : i32, message = "bqd,bkd->bqk"}> : () -> ()
    %cst_120 = arith.constant dense<0.000000e+00> : vector<4x8x8xf32>
    %379 = tpu.matmul %377, %378, %cst_120 {dimension_numbers = #tpu.dot_dimension_numbers<[2], [2], [1], [1], [0, 0, 0, 1, 1, 1], [0], [0]>} : vector<4x8x8xf32>, vector<4x8x8xf32>, vector<4x8x8xf32> -> vector<4x8x8xf32>
    "tpu.trace_stop"() : () -> ()
    %cst_121 = arith.constant dense<0xFF800000> : vector<4x8xf32>
    %380 = vector.multi_reduction <maximumf>, %379, %cst_121 [2] : vector<4x8x8xf32> to vector<4x8xf32>
    %381 = vector.shape_cast %380 : vector<4x8xf32> to vector<4x8x1xf32>
    %382 = vector.broadcast %381 : vector<4x8x1xf32> to vector<4x8x8xf32>
    %383 = arith.subf %379, %382 : vector<4x8x8xf32>
    %384 = math.exp %383 : vector<4x8x8xf32>
    %cst_122 = arith.constant dense<0.000000e+00> : vector<4x8xf32>
    %385 = vector.multi_reduction <add>, %384, %cst_122 [2] : vector<4x8x8xf32> to vector<4x8xf32>
    %386 = vector.shape_cast %385 : vector<4x8xf32> to vector<4x8x1xf32>
    %387 = tpu.reciprocal %386 {approx = true} : vector<4x8x1xf32> -> vector<4x8x1xf32>
    %388 = vector.broadcast %387 : vector<4x8x1xf32> to vector<4x8x8xf32>
    %389 = arith.mulf %384, %388 : vector<4x8x8xf32>
    %390 = vector.extract_strided_slice %375 {offsets = [0, 0, 0], sizes = [4, 8, 8], strides = [1, 1, 1]} : vector<4x8x32xf32> to vector<4x8x8xf32>
    "tpu.trace_start"() <{level = 10 : i32, message = "bqk,bkd->bqd"}> : () -> ()
    %cst_123 = arith.constant dense<0.000000e+00> : vector<4x8x8xf32>
    %391 = tpu.matmul %389, %390, %cst_123 {dimension_numbers = #tpu.dot_dimension_numbers<[2], [1], [1], [2], [0, 0, 0, 1, 1, 2], [0], [0]>} : vector<4x8x8xf32>, vector<4x8x8xf32>, vector<4x8x8xf32> -> vector<4x8x8xf32>
    "tpu.trace_stop"() : () -> ()
    %392 = vector.shape_cast %391 : vector<4x8x8xf32> to vector<32x8xf32>
    %393 = vector.extract_strided_slice %364 {offsets = [0, 0], sizes = [8, 32], strides = [1, 1]} : vector<32x32xf32> to vector<8x32xf32>
    %cst_124 = arith.constant dense<0.000000e+00> : vector<32x32xf32>
    %394 = tpu.matmul %392, %393, %cst_124 {dimension_numbers = #tpu.dot_dimension_numbers<[1], [0], [0], [1], [0, 0, 1, 1], [], []>} : vector<32x8xf32>, vector<8x32xf32>, vector<32x32xf32> -> vector<32x32xf32>
    %395 = arith.addf %376, %394 : vector<32x32xf32>
    %396 = vector.extract_strided_slice %371 {offsets = [0, 0, 8], sizes = [4, 8, 8], strides = [1, 1, 1]} : vector<4x8x32xf32> to vector<4x8x8xf32>
    %397 = vector.extract_strided_slice %373 {offsets = [0, 0, 8], sizes = [4, 8, 8], strides = [1, 1, 1]} : vector<4x8x32xf32> to vector<4x8x8xf32>
    "tpu.trace_start"() <{level = 10 : i32, message = "bqd,bkd->bqk"}> : () -> ()
    %cst_125 = arith.constant dense<0.000000e+00> : vector<4x8x8xf32>
    %398 = tpu.matmul %396, %397, %cst_125 {dimension_numbers = #tpu.dot_dimension_numbers<[2], [2], [1], [1], [0, 0, 0, 1, 1, 1], [0], [0]>} : vector<4x8x8xf32>, vector<4x8x8xf32>, vector<4x8x8xf32> -> vector<4x8x8xf32>
    "tpu.trace_stop"() : () -> ()
    %cst_126 = arith.constant dense<0xFF800000> : vector<4x8xf32>
    %399 = vector.multi_reduction <maximumf>, %398, %cst_126 [2] : vector<4x8x8xf32> to vector<4x8xf32>
    %400 = vector.shape_cast %399 : vector<4x8xf32> to vector<4x8x1xf32>
    %401 = vector.broadcast %400 : vector<4x8x1xf32> to vector<4x8x8xf32>
    %402 = arith.subf %398, %401 : vector<4x8x8xf32>
    %403 = math.exp %402 : vector<4x8x8xf32>
    %cst_127 = arith.constant dense<0.000000e+00> : vector<4x8xf32>
    %404 = vector.multi_reduction <add>, %403, %cst_127 [2] : vector<4x8x8xf32> to vector<4x8xf32>
    %405 = vector.shape_cast %404 : vector<4x8xf32> to vector<4x8x1xf32>
    %406 = tpu.reciprocal %405 {approx = true} : vector<4x8x1xf32> -> vector<4x8x1xf32>
    %407 = vector.broadcast %406 : vector<4x8x1xf32> to vector<4x8x8xf32>
    %408 = arith.mulf %403, %407 : vector<4x8x8xf32>
    %409 = vector.extract_strided_slice %375 {offsets = [0, 0, 8], sizes = [4, 8, 8], strides = [1, 1, 1]} : vector<4x8x32xf32> to vector<4x8x8xf32>
    "tpu.trace_start"() <{level = 10 : i32, message = "bqk,bkd->bqd"}> : () -> ()
    %cst_128 = arith.constant dense<0.000000e+00> : vector<4x8x8xf32>
    %410 = tpu.matmul %408, %409, %cst_128 {dimension_numbers = #tpu.dot_dimension_numbers<[2], [1], [1], [2], [0, 0, 0, 1, 1, 2], [0], [0]>} : vector<4x8x8xf32>, vector<4x8x8xf32>, vector<4x8x8xf32> -> vector<4x8x8xf32>
    "tpu.trace_stop"() : () -> ()
    %411 = vector.shape_cast %410 : vector<4x8x8xf32> to vector<32x8xf32>
    %412 = vector.extract_strided_slice %364 {offsets = [8, 0], sizes = [8, 32], strides = [1, 1]} : vector<32x32xf32> to vector<8x32xf32>
    %cst_129 = arith.constant dense<0.000000e+00> : vector<32x32xf32>
    %413 = tpu.matmul %411, %412, %cst_129 {dimension_numbers = #tpu.dot_dimension_numbers<[1], [0], [0], [1], [0, 0, 1, 1], [], []>} : vector<32x8xf32>, vector<8x32xf32>, vector<32x32xf32> -> vector<32x32xf32>
    %414 = arith.addf %395, %413 : vector<32x32xf32>
    %415 = vector.extract_strided_slice %371 {offsets = [0, 0, 16], sizes = [4, 8, 8], strides = [1, 1, 1]} : vector<4x8x32xf32> to vector<4x8x8xf32>
    %416 = vector.extract_strided_slice %373 {offsets = [0, 0, 16], sizes = [4, 8, 8], strides = [1, 1, 1]} : vector<4x8x32xf32> to vector<4x8x8xf32>
    "tpu.trace_start"() <{level = 10 : i32, message = "bqd,bkd->bqk"}> : () -> ()
    %cst_130 = arith.constant dense<0.000000e+00> : vector<4x8x8xf32>
    %417 = tpu.matmul %415, %416, %cst_130 {dimension_numbers = #tpu.dot_dimension_numbers<[2], [2], [1], [1], [0, 0, 0, 1, 1, 1], [0], [0]>} : vector<4x8x8xf32>, vector<4x8x8xf32>, vector<4x8x8xf32> -> vector<4x8x8xf32>
    "tpu.trace_stop"() : () -> ()
    %cst_131 = arith.constant dense<0xFF800000> : vector<4x8xf32>
    %418 = vector.multi_reduction <maximumf>, %417, %cst_131 [2] : vector<4x8x8xf32> to vector<4x8xf32>
    %419 = vector.shape_cast %418 : vector<4x8xf32> to vector<4x8x1xf32>
    %420 = vector.broadcast %419 : vector<4x8x1xf32> to vector<4x8x8xf32>
    %421 = arith.subf %417, %420 : vector<4x8x8xf32>
    %422 = math.exp %421 : vector<4x8x8xf32>
    %cst_132 = arith.constant dense<0.000000e+00> : vector<4x8xf32>
    %423 = vector.multi_reduction <add>, %422, %cst_132 [2] : vector<4x8x8xf32> to vector<4x8xf32>
    %424 = vector.shape_cast %423 : vector<4x8xf32> to vector<4x8x1xf32>
    %425 = tpu.reciprocal %424 {approx = true} : vector<4x8x1xf32> -> vector<4x8x1xf32>
    %426 = vector.broadcast %425 : vector<4x8x1xf32> to vector<4x8x8xf32>
    %427 = arith.mulf %422, %426 : vector<4x8x8xf32>
    %428 = vector.extract_strided_slice %375 {offsets = [0, 0, 16], sizes = [4, 8, 8], strides = [1, 1, 1]} : vector<4x8x32xf32> to vector<4x8x8xf32>
    "tpu.trace_start"() <{level = 10 : i32, message = "bqk,bkd->bqd"}> : () -> ()
    %cst_133 = arith.constant dense<0.000000e+00> : vector<4x8x8xf32>
    %429 = tpu.matmul %427, %428, %cst_133 {dimension_numbers = #tpu.dot_dimension_numbers<[2], [1], [1], [2], [0, 0, 0, 1, 1, 2], [0], [0]>} : vector<4x8x8xf32>, vector<4x8x8xf32>, vector<4x8x8xf32> -> vector<4x8x8xf32>
    "tpu.trace_stop"() : () -> ()
    %430 = vector.shape_cast %429 : vector<4x8x8xf32> to vector<32x8xf32>
    %431 = vector.extract_strided_slice %364 {offsets = [16, 0], sizes = [8, 32], strides = [1, 1]} : vector<32x32xf32> to vector<8x32xf32>
    %cst_134 = arith.constant dense<0.000000e+00> : vector<32x32xf32>
    %432 = tpu.matmul %430, %431, %cst_134 {dimension_numbers = #tpu.dot_dimension_numbers<[1], [0], [0], [1], [0, 0, 1, 1], [], []>} : vector<32x8xf32>, vector<8x32xf32>, vector<32x32xf32> -> vector<32x32xf32>
    %433 = arith.addf %414, %432 : vector<32x32xf32>
    %434 = vector.extract_strided_slice %371 {offsets = [0, 0, 24], sizes = [4, 8, 8], strides = [1, 1, 1]} : vector<4x8x32xf32> to vector<4x8x8xf32>
    %435 = vector.extract_strided_slice %373 {offsets = [0, 0, 24], sizes = [4, 8, 8], strides = [1, 1, 1]} : vector<4x8x32xf32> to vector<4x8x8xf32>
    "tpu.trace_start"() <{level = 10 : i32, message = "bqd,bkd->bqk"}> : () -> ()
    %cst_135 = arith.constant dense<0.000000e+00> : vector<4x8x8xf32>
    %436 = tpu.matmul %434, %435, %cst_135 {dimension_numbers = #tpu.dot_dimension_numbers<[2], [2], [1], [1], [0, 0, 0, 1, 1, 1], [0], [0]>} : vector<4x8x8xf32>, vector<4x8x8xf32>, vector<4x8x8xf32> -> vector<4x8x8xf32>
    "tpu.trace_stop"() : () -> ()
    %cst_136 = arith.constant dense<0xFF800000> : vector<4x8xf32>
    %437 = vector.multi_reduction <maximumf>, %436, %cst_136 [2] : vector<4x8x8xf32> to vector<4x8xf32>
    %438 = vector.shape_cast %437 : vector<4x8xf32> to vector<4x8x1xf32>
    %439 = vector.broadcast %438 : vector<4x8x1xf32> to vector<4x8x8xf32>
    %440 = arith.subf %436, %439 : vector<4x8x8xf32>
    %441 = math.exp %440 : vector<4x8x8xf32>
    %cst_137 = arith.constant dense<0.000000e+00> : vector<4x8xf32>
    %442 = vector.multi_reduction <add>, %441, %cst_137 [2] : vector<4x8x8xf32> to vector<4x8xf32>
    %443 = vector.shape_cast %442 : vector<4x8xf32> to vector<4x8x1xf32>
    %444 = tpu.reciprocal %443 {approx = true} : vector<4x8x1xf32> -> vector<4x8x1xf32>
    %445 = vector.broadcast %444 : vector<4x8x1xf32> to vector<4x8x8xf32>
    %446 = arith.mulf %441, %445 : vector<4x8x8xf32>
    %447 = vector.extract_strided_slice %375 {offsets = [0, 0, 24], sizes = [4, 8, 8], strides = [1, 1, 1]} : vector<4x8x32xf32> to vector<4x8x8xf32>
    "tpu.trace_start"() <{level = 10 : i32, message = "bqk,bkd->bqd"}> : () -> ()
    %cst_138 = arith.constant dense<0.000000e+00> : vector<4x8x8xf32>
    %448 = tpu.matmul %446, %447, %cst_138 {dimension_numbers = #tpu.dot_dimension_numbers<[2], [1], [1], [2], [0, 0, 0, 1, 1, 2], [0], [0]>} : vector<4x8x8xf32>, vector<4x8x8xf32>, vector<4x8x8xf32> -> vector<4x8x8xf32>
    "tpu.trace_stop"() : () -> ()
    %449 = vector.shape_cast %448 : vector<4x8x8xf32> to vector<32x8xf32>
    %450 = vector.extract_strided_slice %364 {offsets = [24, 0], sizes = [8, 32], strides = [1, 1]} : vector<32x32xf32> to vector<8x32xf32>
    %cst_139 = arith.constant dense<0.000000e+00> : vector<32x32xf32>
    %451 = tpu.matmul %449, %450, %cst_139 {dimension_numbers = #tpu.dot_dimension_numbers<[1], [0], [0], [1], [0, 0, 1, 1], [], []>} : vector<32x8xf32>, vector<8x32xf32>, vector<32x32xf32> -> vector<32x32xf32>
    %452 = arith.addf %433, %451 : vector<32x32xf32>
    %453 = vector.broadcast %365 : vector<1x32xf32> to vector<32x32xf32>
    %454 = arith.addf %452, %453 : vector<32x32xf32>
    %455 = vector.shape_cast %454 : vector<32x32xf32> to vector<4x8x32xf32>
    %c648 = arith.constant 648 : index
    %c0_140 = arith.constant 0 : index
    %456 = vector.load %arg2[%c648, %c0_140] : memref<1328x128xf32, #tpu.memory_space<vmem>>, vector<1x32xf32>
    %c656 = arith.constant 656 : index
    %c0_141 = arith.constant 0 : index
    %457 = vector.load %arg2[%c656, %c0_141] : memref<1328x128xf32, #tpu.memory_space<vmem>>, vector<1x32xf32>
    %458 = arith.addf %455, %23 : vector<4x8x32xf32>
    %cst_142 = arith.constant dense<0.000000e+00> : vector<4x8xf32>
    %459 = vector.multi_reduction <add>, %458, %cst_142 [2] : vector<4x8x32xf32> to vector<4x8xf32>
    %460 = vector.shape_cast %459 : vector<4x8xf32> to vector<4x8x1xf32>
    %cst_143 = arith.constant 3.125000e-02 : f32
    %461 = vector.broadcast %cst_143 : f32 to vector<4x8x1xf32>
    %462 = arith.mulf %460, %461 : vector<4x8x1xf32>
    %463 = arith.mulf %458, %458 : vector<4x8x32xf32>
    %cst_144 = arith.constant dense<0.000000e+00> : vector<4x8xf32>
    %464 = vector.multi_reduction <add>, %463, %cst_144 [2] : vector<4x8x32xf32> to vector<4x8xf32>
    %465 = vector.shape_cast %464 : vector<4x8xf32> to vector<4x8x1xf32>
    %cst_145 = arith.constant 3.125000e-02 : f32
    %466 = vector.broadcast %cst_145 : f32 to vector<4x8x1xf32>
    %467 = arith.mulf %465, %466 : vector<4x8x1xf32>
    %468 = arith.mulf %462, %462 : vector<4x8x1xf32>
    %469 = arith.subf %467, %468 : vector<4x8x1xf32>
    %cst_146 = arith.constant 0.000000e+00 : f32
    %470 = vector.broadcast %cst_146 : f32 to vector<4x8x1xf32>
    %471 = arith.maximumf %469, %470 : vector<4x8x1xf32>
    %472 = vector.broadcast %462 : vector<4x8x1xf32> to vector<4x8x32xf32>
    %473 = arith.subf %458, %472 : vector<4x8x32xf32>
    %cst_147 = arith.constant 9.99999974E-6 : f32
    %474 = vector.broadcast %cst_147 : f32 to vector<4x8x1xf32>
    %475 = arith.addf %471, %474 : vector<4x8x1xf32>
    %476 = math.rsqrt %475 : vector<4x8x1xf32>
    %477 = vector.broadcast %476 : vector<4x8x1xf32> to vector<4x8x32xf32>
    %478 = arith.mulf %473, %477 : vector<4x8x32xf32>
    %479 = vector.shape_cast %456 : vector<1x32xf32> to vector<1x1x32xf32>
    %480 = vector.broadcast %479 : vector<1x1x32xf32> to vector<4x8x32xf32>
    %481 = arith.mulf %478, %480 : vector<4x8x32xf32>
    %482 = vector.shape_cast %457 : vector<1x32xf32> to vector<1x1x32xf32>
    %483 = vector.broadcast %482 : vector<1x1x32xf32> to vector<4x8x32xf32>
    %484 = arith.addf %481, %483 : vector<4x8x32xf32>
    %485 = vector.shape_cast %484 : vector<4x8x32xf32> to vector<32x32xf32>
    %c664 = arith.constant 664 : index
    %c0_148 = arith.constant 0 : index
    %486 = vector.load %arg2[%c664, %c0_148] : memref<1328x128xf32, #tpu.memory_space<vmem>>, vector<32x32xf32>
    %c696 = arith.constant 696 : index
    %c0_149 = arith.constant 0 : index
    %487 = vector.load %arg2[%c696, %c0_149] : memref<1328x128xf32, #tpu.memory_space<vmem>>, vector<1x32xf32>
    %cst_150 = arith.constant dense<0.000000e+00> : vector<32x32xf32>
    %488 = tpu.matmul %485, %486, %cst_150 {dimension_numbers = #tpu.dot_dimension_numbers<[1], [0], [0], [1], [0, 0, 1, 1], [], []>} : vector<32x32xf32>, vector<32x32xf32>, vector<32x32xf32> -> vector<32x32xf32>
    %489 = vector.broadcast %487 : vector<1x32xf32> to vector<32x32xf32>
    %490 = arith.addf %488, %489 : vector<32x32xf32>
    %491 = vector.shape_cast %490 : vector<32x32xf32> to vector<4x8x32xf32>
    %492 = vector.extract_strided_slice %361 {offsets = [0, 0], sizes = [32, 32], strides = [1, 1]} : vector<32x128xf32> to vector<32x32xf32>
    %493 = vector.shape_cast %492 : vector<32x32xf32> to vector<4x8x32xf32>
    %494 = vector.extract_strided_slice %361 {offsets = [0, 32], sizes = [32, 32], strides = [1, 1]} : vector<32x128xf32> to vector<32x32xf32>
    %495 = vector.shape_cast %494 : vector<32x32xf32> to vector<4x8x32xf32>
    %c704 = arith.constant 704 : index
    %c0_151 = arith.constant 0 : index
    %496 = vector.load %arg2[%c704, %c0_151] : memref<1328x128xf32, #tpu.memory_space<vmem>>, vector<32x32xf32>
    %c736 = arith.constant 736 : index
    %c0_152 = arith.constant 0 : index
    %497 = vector.load %arg2[%c736, %c0_152] : memref<1328x128xf32, #tpu.memory_space<vmem>>, vector<1x32xf32>
    %cst_153 = arith.constant 0.000000e+00 : f32
    %498 = vector.broadcast %cst_153 : f32 to vector<32x32xf32>
    %499 = vector.extract_strided_slice %491 {offsets = [0, 0, 0], sizes = [4, 8, 8], strides = [1, 1, 1]} : vector<4x8x32xf32> to vector<4x8x8xf32>
    %500 = vector.extract_strided_slice %493 {offsets = [0, 0, 0], sizes = [4, 8, 8], strides = [1, 1, 1]} : vector<4x8x32xf32> to vector<4x8x8xf32>
    "tpu.trace_start"() <{level = 10 : i32, message = "bqd,bkd->bqk"}> : () -> ()
    %cst_154 = arith.constant dense<0.000000e+00> : vector<4x8x8xf32>
    %501 = tpu.matmul %499, %500, %cst_154 {dimension_numbers = #tpu.dot_dimension_numbers<[2], [2], [1], [1], [0, 0, 0, 1, 1, 1], [0], [0]>} : vector<4x8x8xf32>, vector<4x8x8xf32>, vector<4x8x8xf32> -> vector<4x8x8xf32>
    "tpu.trace_stop"() : () -> ()
    %cst_155 = arith.constant dense<0xFF800000> : vector<4x8xf32>
    %502 = vector.multi_reduction <maximumf>, %501, %cst_155 [2] : vector<4x8x8xf32> to vector<4x8xf32>
    %503 = vector.shape_cast %502 : vector<4x8xf32> to vector<4x8x1xf32>
    %504 = vector.broadcast %503 : vector<4x8x1xf32> to vector<4x8x8xf32>
    %505 = arith.subf %501, %504 : vector<4x8x8xf32>
    %506 = math.exp %505 : vector<4x8x8xf32>
    %cst_156 = arith.constant dense<0.000000e+00> : vector<4x8xf32>
    %507 = vector.multi_reduction <add>, %506, %cst_156 [2] : vector<4x8x8xf32> to vector<4x8xf32>
    %508 = vector.shape_cast %507 : vector<4x8xf32> to vector<4x8x1xf32>
    %509 = tpu.reciprocal %508 {approx = true} : vector<4x8x1xf32> -> vector<4x8x1xf32>
    %510 = vector.broadcast %509 : vector<4x8x1xf32> to vector<4x8x8xf32>
    %511 = arith.mulf %506, %510 : vector<4x8x8xf32>
    %512 = vector.extract_strided_slice %495 {offsets = [0, 0, 0], sizes = [4, 8, 8], strides = [1, 1, 1]} : vector<4x8x32xf32> to vector<4x8x8xf32>
    "tpu.trace_start"() <{level = 10 : i32, message = "bqk,bkd->bqd"}> : () -> ()
    %cst_157 = arith.constant dense<0.000000e+00> : vector<4x8x8xf32>
    %513 = tpu.matmul %511, %512, %cst_157 {dimension_numbers = #tpu.dot_dimension_numbers<[2], [1], [1], [2], [0, 0, 0, 1, 1, 2], [0], [0]>} : vector<4x8x8xf32>, vector<4x8x8xf32>, vector<4x8x8xf32> -> vector<4x8x8xf32>
    "tpu.trace_stop"() : () -> ()
    %514 = vector.shape_cast %513 : vector<4x8x8xf32> to vector<32x8xf32>
    %515 = vector.extract_strided_slice %496 {offsets = [0, 0], sizes = [8, 32], strides = [1, 1]} : vector<32x32xf32> to vector<8x32xf32>
    %cst_158 = arith.constant dense<0.000000e+00> : vector<32x32xf32>
    %516 = tpu.matmul %514, %515, %cst_158 {dimension_numbers = #tpu.dot_dimension_numbers<[1], [0], [0], [1], [0, 0, 1, 1], [], []>} : vector<32x8xf32>, vector<8x32xf32>, vector<32x32xf32> -> vector<32x32xf32>
    %517 = arith.addf %498, %516 : vector<32x32xf32>
    %518 = vector.extract_strided_slice %491 {offsets = [0, 0, 8], sizes = [4, 8, 8], strides = [1, 1, 1]} : vector<4x8x32xf32> to vector<4x8x8xf32>
    %519 = vector.extract_strided_slice %493 {offsets = [0, 0, 8], sizes = [4, 8, 8], strides = [1, 1, 1]} : vector<4x8x32xf32> to vector<4x8x8xf32>
    "tpu.trace_start"() <{level = 10 : i32, message = "bqd,bkd->bqk"}> : () -> ()
    %cst_159 = arith.constant dense<0.000000e+00> : vector<4x8x8xf32>
    %520 = tpu.matmul %518, %519, %cst_159 {dimension_numbers = #tpu.dot_dimension_numbers<[2], [2], [1], [1], [0, 0, 0, 1, 1, 1], [0], [0]>} : vector<4x8x8xf32>, vector<4x8x8xf32>, vector<4x8x8xf32> -> vector<4x8x8xf32>
    "tpu.trace_stop"() : () -> ()
    %cst_160 = arith.constant dense<0xFF800000> : vector<4x8xf32>
    %521 = vector.multi_reduction <maximumf>, %520, %cst_160 [2] : vector<4x8x8xf32> to vector<4x8xf32>
    %522 = vector.shape_cast %521 : vector<4x8xf32> to vector<4x8x1xf32>
    %523 = vector.broadcast %522 : vector<4x8x1xf32> to vector<4x8x8xf32>
    %524 = arith.subf %520, %523 : vector<4x8x8xf32>
    %525 = math.exp %524 : vector<4x8x8xf32>
    %cst_161 = arith.constant dense<0.000000e+00> : vector<4x8xf32>
    %526 = vector.multi_reduction <add>, %525, %cst_161 [2] : vector<4x8x8xf32> to vector<4x8xf32>
    %527 = vector.shape_cast %526 : vector<4x8xf32> to vector<4x8x1xf32>
    %528 = tpu.reciprocal %527 {approx = true} : vector<4x8x1xf32> -> vector<4x8x1xf32>
    %529 = vector.broadcast %528 : vector<4x8x1xf32> to vector<4x8x8xf32>
    %530 = arith.mulf %525, %529 : vector<4x8x8xf32>
    %531 = vector.extract_strided_slice %495 {offsets = [0, 0, 8], sizes = [4, 8, 8], strides = [1, 1, 1]} : vector<4x8x32xf32> to vector<4x8x8xf32>
    "tpu.trace_start"() <{level = 10 : i32, message = "bqk,bkd->bqd"}> : () -> ()
    %cst_162 = arith.constant dense<0.000000e+00> : vector<4x8x8xf32>
    %532 = tpu.matmul %530, %531, %cst_162 {dimension_numbers = #tpu.dot_dimension_numbers<[2], [1], [1], [2], [0, 0, 0, 1, 1, 2], [0], [0]>} : vector<4x8x8xf32>, vector<4x8x8xf32>, vector<4x8x8xf32> -> vector<4x8x8xf32>
    "tpu.trace_stop"() : () -> ()
    %533 = vector.shape_cast %532 : vector<4x8x8xf32> to vector<32x8xf32>
    %534 = vector.extract_strided_slice %496 {offsets = [8, 0], sizes = [8, 32], strides = [1, 1]} : vector<32x32xf32> to vector<8x32xf32>
    %cst_163 = arith.constant dense<0.000000e+00> : vector<32x32xf32>
    %535 = tpu.matmul %533, %534, %cst_163 {dimension_numbers = #tpu.dot_dimension_numbers<[1], [0], [0], [1], [0, 0, 1, 1], [], []>} : vector<32x8xf32>, vector<8x32xf32>, vector<32x32xf32> -> vector<32x32xf32>
    %536 = arith.addf %517, %535 : vector<32x32xf32>
    %537 = vector.extract_strided_slice %491 {offsets = [0, 0, 16], sizes = [4, 8, 8], strides = [1, 1, 1]} : vector<4x8x32xf32> to vector<4x8x8xf32>
    %538 = vector.extract_strided_slice %493 {offsets = [0, 0, 16], sizes = [4, 8, 8], strides = [1, 1, 1]} : vector<4x8x32xf32> to vector<4x8x8xf32>
    "tpu.trace_start"() <{level = 10 : i32, message = "bqd,bkd->bqk"}> : () -> ()
    %cst_164 = arith.constant dense<0.000000e+00> : vector<4x8x8xf32>
    %539 = tpu.matmul %537, %538, %cst_164 {dimension_numbers = #tpu.dot_dimension_numbers<[2], [2], [1], [1], [0, 0, 0, 1, 1, 1], [0], [0]>} : vector<4x8x8xf32>, vector<4x8x8xf32>, vector<4x8x8xf32> -> vector<4x8x8xf32>
    "tpu.trace_stop"() : () -> ()
    %cst_165 = arith.constant dense<0xFF800000> : vector<4x8xf32>
    %540 = vector.multi_reduction <maximumf>, %539, %cst_165 [2] : vector<4x8x8xf32> to vector<4x8xf32>
    %541 = vector.shape_cast %540 : vector<4x8xf32> to vector<4x8x1xf32>
    %542 = vector.broadcast %541 : vector<4x8x1xf32> to vector<4x8x8xf32>
    %543 = arith.subf %539, %542 : vector<4x8x8xf32>
    %544 = math.exp %543 : vector<4x8x8xf32>
    %cst_166 = arith.constant dense<0.000000e+00> : vector<4x8xf32>
    %545 = vector.multi_reduction <add>, %544, %cst_166 [2] : vector<4x8x8xf32> to vector<4x8xf32>
    %546 = vector.shape_cast %545 : vector<4x8xf32> to vector<4x8x1xf32>
    %547 = tpu.reciprocal %546 {approx = true} : vector<4x8x1xf32> -> vector<4x8x1xf32>
    %548 = vector.broadcast %547 : vector<4x8x1xf32> to vector<4x8x8xf32>
    %549 = arith.mulf %544, %548 : vector<4x8x8xf32>
    %550 = vector.extract_strided_slice %495 {offsets = [0, 0, 16], sizes = [4, 8, 8], strides = [1, 1, 1]} : vector<4x8x32xf32> to vector<4x8x8xf32>
    "tpu.trace_start"() <{level = 10 : i32, message = "bqk,bkd->bqd"}> : () -> ()
    %cst_167 = arith.constant dense<0.000000e+00> : vector<4x8x8xf32>
    %551 = tpu.matmul %549, %550, %cst_167 {dimension_numbers = #tpu.dot_dimension_numbers<[2], [1], [1], [2], [0, 0, 0, 1, 1, 2], [0], [0]>} : vector<4x8x8xf32>, vector<4x8x8xf32>, vector<4x8x8xf32> -> vector<4x8x8xf32>
    "tpu.trace_stop"() : () -> ()
    %552 = vector.shape_cast %551 : vector<4x8x8xf32> to vector<32x8xf32>
    %553 = vector.extract_strided_slice %496 {offsets = [16, 0], sizes = [8, 32], strides = [1, 1]} : vector<32x32xf32> to vector<8x32xf32>
    %cst_168 = arith.constant dense<0.000000e+00> : vector<32x32xf32>
    %554 = tpu.matmul %552, %553, %cst_168 {dimension_numbers = #tpu.dot_dimension_numbers<[1], [0], [0], [1], [0, 0, 1, 1], [], []>} : vector<32x8xf32>, vector<8x32xf32>, vector<32x32xf32> -> vector<32x32xf32>
    %555 = arith.addf %536, %554 : vector<32x32xf32>
    %556 = vector.extract_strided_slice %491 {offsets = [0, 0, 24], sizes = [4, 8, 8], strides = [1, 1, 1]} : vector<4x8x32xf32> to vector<4x8x8xf32>
    %557 = vector.extract_strided_slice %493 {offsets = [0, 0, 24], sizes = [4, 8, 8], strides = [1, 1, 1]} : vector<4x8x32xf32> to vector<4x8x8xf32>
    "tpu.trace_start"() <{level = 10 : i32, message = "bqd,bkd->bqk"}> : () -> ()
    %cst_169 = arith.constant dense<0.000000e+00> : vector<4x8x8xf32>
    %558 = tpu.matmul %556, %557, %cst_169 {dimension_numbers = #tpu.dot_dimension_numbers<[2], [2], [1], [1], [0, 0, 0, 1, 1, 1], [0], [0]>} : vector<4x8x8xf32>, vector<4x8x8xf32>, vector<4x8x8xf32> -> vector<4x8x8xf32>
    "tpu.trace_stop"() : () -> ()
    %cst_170 = arith.constant dense<0xFF800000> : vector<4x8xf32>
    %559 = vector.multi_reduction <maximumf>, %558, %cst_170 [2] : vector<4x8x8xf32> to vector<4x8xf32>
    %560 = vector.shape_cast %559 : vector<4x8xf32> to vector<4x8x1xf32>
    %561 = vector.broadcast %560 : vector<4x8x1xf32> to vector<4x8x8xf32>
    %562 = arith.subf %558, %561 : vector<4x8x8xf32>
    %563 = math.exp %562 : vector<4x8x8xf32>
    %cst_171 = arith.constant dense<0.000000e+00> : vector<4x8xf32>
    %564 = vector.multi_reduction <add>, %563, %cst_171 [2] : vector<4x8x8xf32> to vector<4x8xf32>
    %565 = vector.shape_cast %564 : vector<4x8xf32> to vector<4x8x1xf32>
    %566 = tpu.reciprocal %565 {approx = true} : vector<4x8x1xf32> -> vector<4x8x1xf32>
    %567 = vector.broadcast %566 : vector<4x8x1xf32> to vector<4x8x8xf32>
    %568 = arith.mulf %563, %567 : vector<4x8x8xf32>
    %569 = vector.extract_strided_slice %495 {offsets = [0, 0, 24], sizes = [4, 8, 8], strides = [1, 1, 1]} : vector<4x8x32xf32> to vector<4x8x8xf32>
    "tpu.trace_start"() <{level = 10 : i32, message = "bqk,bkd->bqd"}> : () -> ()
    %cst_172 = arith.constant dense<0.000000e+00> : vector<4x8x8xf32>
    %570 = tpu.matmul %568, %569, %cst_172 {dimension_numbers = #tpu.dot_dimension_numbers<[2], [1], [1], [2], [0, 0, 0, 1, 1, 2], [0], [0]>} : vector<4x8x8xf32>, vector<4x8x8xf32>, vector<4x8x8xf32> -> vector<4x8x8xf32>
    "tpu.trace_stop"() : () -> ()
    %571 = vector.shape_cast %570 : vector<4x8x8xf32> to vector<32x8xf32>
    %572 = vector.extract_strided_slice %496 {offsets = [24, 0], sizes = [8, 32], strides = [1, 1]} : vector<32x32xf32> to vector<8x32xf32>
    %cst_173 = arith.constant dense<0.000000e+00> : vector<32x32xf32>
    %573 = tpu.matmul %571, %572, %cst_173 {dimension_numbers = #tpu.dot_dimension_numbers<[1], [0], [0], [1], [0, 0, 1, 1], [], []>} : vector<32x8xf32>, vector<8x32xf32>, vector<32x32xf32> -> vector<32x32xf32>
    %574 = arith.addf %555, %573 : vector<32x32xf32>
    %575 = vector.broadcast %497 : vector<1x32xf32> to vector<32x32xf32>
    %576 = arith.addf %574, %575 : vector<32x32xf32>
    %577 = vector.shape_cast %576 : vector<32x32xf32> to vector<4x8x32xf32>
    %c744 = arith.constant 744 : index
    %c0_174 = arith.constant 0 : index
    %578 = vector.load %arg2[%c744, %c0_174] : memref<1328x128xf32, #tpu.memory_space<vmem>>, vector<1x32xf32>
    %c752 = arith.constant 752 : index
    %c0_175 = arith.constant 0 : index
    %579 = vector.load %arg2[%c752, %c0_175] : memref<1328x128xf32, #tpu.memory_space<vmem>>, vector<1x32xf32>
    %580 = arith.addf %577, %484 : vector<4x8x32xf32>
    %cst_176 = arith.constant dense<0.000000e+00> : vector<4x8xf32>
    %581 = vector.multi_reduction <add>, %580, %cst_176 [2] : vector<4x8x32xf32> to vector<4x8xf32>
    %582 = vector.shape_cast %581 : vector<4x8xf32> to vector<4x8x1xf32>
    %cst_177 = arith.constant 3.125000e-02 : f32
    %583 = vector.broadcast %cst_177 : f32 to vector<4x8x1xf32>
    %584 = arith.mulf %582, %583 : vector<4x8x1xf32>
    %585 = arith.mulf %580, %580 : vector<4x8x32xf32>
    %cst_178 = arith.constant dense<0.000000e+00> : vector<4x8xf32>
    %586 = vector.multi_reduction <add>, %585, %cst_178 [2] : vector<4x8x32xf32> to vector<4x8xf32>
    %587 = vector.shape_cast %586 : vector<4x8xf32> to vector<4x8x1xf32>
    %cst_179 = arith.constant 3.125000e-02 : f32
    %588 = vector.broadcast %cst_179 : f32 to vector<4x8x1xf32>
    %589 = arith.mulf %587, %588 : vector<4x8x1xf32>
    %590 = arith.mulf %584, %584 : vector<4x8x1xf32>
    %591 = arith.subf %589, %590 : vector<4x8x1xf32>
    %cst_180 = arith.constant 0.000000e+00 : f32
    %592 = vector.broadcast %cst_180 : f32 to vector<4x8x1xf32>
    %593 = arith.maximumf %591, %592 : vector<4x8x1xf32>
    %594 = vector.broadcast %584 : vector<4x8x1xf32> to vector<4x8x32xf32>
    %595 = arith.subf %580, %594 : vector<4x8x32xf32>
    %cst_181 = arith.constant 9.99999974E-6 : f32
    %596 = vector.broadcast %cst_181 : f32 to vector<4x8x1xf32>
    %597 = arith.addf %593, %596 : vector<4x8x1xf32>
    %598 = math.rsqrt %597 : vector<4x8x1xf32>
    %599 = vector.broadcast %598 : vector<4x8x1xf32> to vector<4x8x32xf32>
    %600 = arith.mulf %595, %599 : vector<4x8x32xf32>
    %601 = vector.shape_cast %578 : vector<1x32xf32> to vector<1x1x32xf32>
    %602 = vector.broadcast %601 : vector<1x1x32xf32> to vector<4x8x32xf32>
    %603 = arith.mulf %600, %602 : vector<4x8x32xf32>
    %604 = vector.shape_cast %579 : vector<1x32xf32> to vector<1x1x32xf32>
    %605 = vector.broadcast %604 : vector<1x1x32xf32> to vector<4x8x32xf32>
    %606 = arith.addf %603, %605 : vector<4x8x32xf32>
    %c760 = arith.constant 760 : index
    %c0_182 = arith.constant 0 : index
    %607 = vector.load %arg2[%c760, %c0_182] : memref<1328x128xf32, #tpu.memory_space<vmem>>, vector<32x64xf32>
    %c792 = arith.constant 792 : index
    %c0_183 = arith.constant 0 : index
    %608 = vector.load %arg2[%c792, %c0_183] : memref<1328x128xf32, #tpu.memory_space<vmem>>, vector<1x64xf32>
    %c800 = arith.constant 800 : index
    %c0_184 = arith.constant 0 : index
    %609 = vector.load %arg2[%c800, %c0_184] : memref<1328x128xf32, #tpu.memory_space<vmem>>, vector<64x32xf32>
    %c864 = arith.constant 864 : index
    %c0_185 = arith.constant 0 : index
    %610 = vector.load %arg2[%c864, %c0_185] : memref<1328x128xf32, #tpu.memory_space<vmem>>, vector<1x32xf32>
    %611 = vector.shape_cast %606 : vector<4x8x32xf32> to vector<32x32xf32>
    %cst_186 = arith.constant dense<0.000000e+00> : vector<32x64xf32>
    %612 = tpu.matmul %611, %607, %cst_186 {dimension_numbers = #tpu.dot_dimension_numbers<[1], [0], [0], [1], [0, 0, 1, 1], [], []>} : vector<32x32xf32>, vector<32x64xf32>, vector<32x64xf32> -> vector<32x64xf32>
    %613 = vector.broadcast %608 : vector<1x64xf32> to vector<32x64xf32>
    %614 = arith.addf %612, %613 : vector<32x64xf32>
    %cst_187 = arith.constant 0.000000e+00 : f32
    %615 = vector.broadcast %cst_187 : f32 to vector<32x64xf32>
    %616 = arith.maximumf %614, %615 : vector<32x64xf32>
    %cst_188 = arith.constant dense<0.000000e+00> : vector<32x32xf32>
    %617 = tpu.matmul %616, %609, %cst_188 {dimension_numbers = #tpu.dot_dimension_numbers<[1], [0], [0], [1], [0, 0, 1, 1], [], []>} : vector<32x64xf32>, vector<64x32xf32>, vector<32x32xf32> -> vector<32x32xf32>
    %618 = vector.broadcast %610 : vector<1x32xf32> to vector<32x32xf32>
    %619 = arith.addf %617, %618 : vector<32x32xf32>
    %620 = vector.shape_cast %619 : vector<32x32xf32> to vector<4x8x32xf32>
    %c872 = arith.constant 872 : index
    %c0_189 = arith.constant 0 : index
    %621 = vector.load %arg2[%c872, %c0_189] : memref<1328x128xf32, #tpu.memory_space<vmem>>, vector<1x32xf32>
    %c880 = arith.constant 880 : index
    %c0_190 = arith.constant 0 : index
    %622 = vector.load %arg2[%c880, %c0_190] : memref<1328x128xf32, #tpu.memory_space<vmem>>, vector<1x32xf32>
    %623 = arith.addf %620, %606 : vector<4x8x32xf32>
    %cst_191 = arith.constant dense<0.000000e+00> : vector<4x8xf32>
    %624 = vector.multi_reduction <add>, %623, %cst_191 [2] : vector<4x8x32xf32> to vector<4x8xf32>
    %625 = vector.shape_cast %624 : vector<4x8xf32> to vector<4x8x1xf32>
    %cst_192 = arith.constant 3.125000e-02 : f32
    %626 = vector.broadcast %cst_192 : f32 to vector<4x8x1xf32>
    %627 = arith.mulf %625, %626 : vector<4x8x1xf32>
    %628 = arith.mulf %623, %623 : vector<4x8x32xf32>
    %cst_193 = arith.constant dense<0.000000e+00> : vector<4x8xf32>
    %629 = vector.multi_reduction <add>, %628, %cst_193 [2] : vector<4x8x32xf32> to vector<4x8xf32>
    %630 = vector.shape_cast %629 : vector<4x8xf32> to vector<4x8x1xf32>
    %cst_194 = arith.constant 3.125000e-02 : f32
    %631 = vector.broadcast %cst_194 : f32 to vector<4x8x1xf32>
    %632 = arith.mulf %630, %631 : vector<4x8x1xf32>
    %633 = arith.mulf %627, %627 : vector<4x8x1xf32>
    %634 = arith.subf %632, %633 : vector<4x8x1xf32>
    %cst_195 = arith.constant 0.000000e+00 : f32
    %635 = vector.broadcast %cst_195 : f32 to vector<4x8x1xf32>
    %636 = arith.maximumf %634, %635 : vector<4x8x1xf32>
    %637 = vector.broadcast %627 : vector<4x8x1xf32> to vector<4x8x32xf32>
    %638 = arith.subf %623, %637 : vector<4x8x32xf32>
    %cst_196 = arith.constant 9.99999974E-6 : f32
    %639 = vector.broadcast %cst_196 : f32 to vector<4x8x1xf32>
    %640 = arith.addf %636, %639 : vector<4x8x1xf32>
    %641 = math.rsqrt %640 : vector<4x8x1xf32>
    %642 = vector.broadcast %641 : vector<4x8x1xf32> to vector<4x8x32xf32>
    %643 = arith.mulf %638, %642 : vector<4x8x32xf32>
    %644 = vector.shape_cast %621 : vector<1x32xf32> to vector<1x1x32xf32>
    %645 = vector.broadcast %644 : vector<1x1x32xf32> to vector<4x8x32xf32>
    %646 = arith.mulf %643, %645 : vector<4x8x32xf32>
    %647 = vector.shape_cast %622 : vector<1x32xf32> to vector<1x1x32xf32>
    %648 = vector.broadcast %647 : vector<1x1x32xf32> to vector<4x8x32xf32>
    %649 = arith.addf %646, %648 : vector<4x8x32xf32>
    %c888 = arith.constant 888 : index
    %c0_197 = arith.constant 0 : index
    %650 = vector.load %arg2[%c888, %c0_197] : memref<1328x128xf32, #tpu.memory_space<vmem>>, vector<32x96xf32>
    %c920 = arith.constant 920 : index
    %c0_198 = arith.constant 0 : index
    %651 = vector.load %arg2[%c920, %c0_198] : memref<1328x128xf32, #tpu.memory_space<vmem>>, vector<1x96xf32>
    %c928 = arith.constant 928 : index
    %c0_199 = arith.constant 0 : index
    %652 = vector.load %arg2[%c928, %c0_199] : memref<1328x128xf32, #tpu.memory_space<vmem>>, vector<32x32xf32>
    %c960 = arith.constant 960 : index
    %c0_200 = arith.constant 0 : index
    %653 = vector.load %arg2[%c960, %c0_200] : memref<1328x128xf32, #tpu.memory_space<vmem>>, vector<1x32xf32>
    %654 = vector.shape_cast %649 : vector<4x8x32xf32> to vector<32x32xf32>
    %cst_201 = arith.constant dense<0.000000e+00> : vector<32x96xf32>
    %655 = tpu.matmul %654, %650, %cst_201 {dimension_numbers = #tpu.dot_dimension_numbers<[1], [0], [0], [1], [0, 0, 1, 1], [], []>} : vector<32x32xf32>, vector<32x96xf32>, vector<32x96xf32> -> vector<32x96xf32>
    %656 = vector.broadcast %651 : vector<1x96xf32> to vector<32x96xf32>
    %657 = arith.addf %655, %656 : vector<32x96xf32>
    %658 = vector.extract_strided_slice %657 {offsets = [0, 0], sizes = [32, 32], strides = [1, 1]} : vector<32x96xf32> to vector<32x32xf32>
    %659 = vector.shape_cast %658 : vector<32x32xf32> to vector<4x8x32xf32>
    %660 = vector.extract_strided_slice %657 {offsets = [0, 32], sizes = [32, 32], strides = [1, 1]} : vector<32x96xf32> to vector<32x32xf32>
    %661 = vector.shape_cast %660 : vector<32x32xf32> to vector<4x8x32xf32>
    %662 = vector.extract_strided_slice %657 {offsets = [0, 64], sizes = [32, 32], strides = [1, 1]} : vector<32x96xf32> to vector<32x32xf32>
    %663 = vector.shape_cast %662 : vector<32x32xf32> to vector<4x8x32xf32>
    %cst_202 = arith.constant 0.000000e+00 : f32
    %664 = vector.broadcast %cst_202 : f32 to vector<32x32xf32>
    %665 = vector.extract_strided_slice %659 {offsets = [0, 0, 0], sizes = [4, 8, 8], strides = [1, 1, 1]} : vector<4x8x32xf32> to vector<4x8x8xf32>
    %666 = vector.extract_strided_slice %661 {offsets = [0, 0, 0], sizes = [4, 8, 8], strides = [1, 1, 1]} : vector<4x8x32xf32> to vector<4x8x8xf32>
    "tpu.trace_start"() <{level = 10 : i32, message = "bqd,bkd->bqk"}> : () -> ()
    %cst_203 = arith.constant dense<0.000000e+00> : vector<4x8x8xf32>
    %667 = tpu.matmul %665, %666, %cst_203 {dimension_numbers = #tpu.dot_dimension_numbers<[2], [2], [1], [1], [0, 0, 0, 1, 1, 1], [0], [0]>} : vector<4x8x8xf32>, vector<4x8x8xf32>, vector<4x8x8xf32> -> vector<4x8x8xf32>
    "tpu.trace_stop"() : () -> ()
    %cst_204 = arith.constant dense<0xFF800000> : vector<4x8xf32>
    %668 = vector.multi_reduction <maximumf>, %667, %cst_204 [2] : vector<4x8x8xf32> to vector<4x8xf32>
    %669 = vector.shape_cast %668 : vector<4x8xf32> to vector<4x8x1xf32>
    %670 = vector.broadcast %669 : vector<4x8x1xf32> to vector<4x8x8xf32>
    %671 = arith.subf %667, %670 : vector<4x8x8xf32>
    %672 = math.exp %671 : vector<4x8x8xf32>
    %cst_205 = arith.constant dense<0.000000e+00> : vector<4x8xf32>
    %673 = vector.multi_reduction <add>, %672, %cst_205 [2] : vector<4x8x8xf32> to vector<4x8xf32>
    %674 = vector.shape_cast %673 : vector<4x8xf32> to vector<4x8x1xf32>
    %675 = tpu.reciprocal %674 {approx = true} : vector<4x8x1xf32> -> vector<4x8x1xf32>
    %676 = vector.broadcast %675 : vector<4x8x1xf32> to vector<4x8x8xf32>
    %677 = arith.mulf %672, %676 : vector<4x8x8xf32>
    %678 = vector.extract_strided_slice %663 {offsets = [0, 0, 0], sizes = [4, 8, 8], strides = [1, 1, 1]} : vector<4x8x32xf32> to vector<4x8x8xf32>
    "tpu.trace_start"() <{level = 10 : i32, message = "bqk,bkd->bqd"}> : () -> ()
    %cst_206 = arith.constant dense<0.000000e+00> : vector<4x8x8xf32>
    %679 = tpu.matmul %677, %678, %cst_206 {dimension_numbers = #tpu.dot_dimension_numbers<[2], [1], [1], [2], [0, 0, 0, 1, 1, 2], [0], [0]>} : vector<4x8x8xf32>, vector<4x8x8xf32>, vector<4x8x8xf32> -> vector<4x8x8xf32>
    "tpu.trace_stop"() : () -> ()
    %680 = vector.shape_cast %679 : vector<4x8x8xf32> to vector<32x8xf32>
    %681 = vector.extract_strided_slice %652 {offsets = [0, 0], sizes = [8, 32], strides = [1, 1]} : vector<32x32xf32> to vector<8x32xf32>
    %cst_207 = arith.constant dense<0.000000e+00> : vector<32x32xf32>
    %682 = tpu.matmul %680, %681, %cst_207 {dimension_numbers = #tpu.dot_dimension_numbers<[1], [0], [0], [1], [0, 0, 1, 1], [], []>} : vector<32x8xf32>, vector<8x32xf32>, vector<32x32xf32> -> vector<32x32xf32>
    %683 = arith.addf %664, %682 : vector<32x32xf32>
    %684 = vector.extract_strided_slice %659 {offsets = [0, 0, 8], sizes = [4, 8, 8], strides = [1, 1, 1]} : vector<4x8x32xf32> to vector<4x8x8xf32>
    %685 = vector.extract_strided_slice %661 {offsets = [0, 0, 8], sizes = [4, 8, 8], strides = [1, 1, 1]} : vector<4x8x32xf32> to vector<4x8x8xf32>
    "tpu.trace_start"() <{level = 10 : i32, message = "bqd,bkd->bqk"}> : () -> ()
    %cst_208 = arith.constant dense<0.000000e+00> : vector<4x8x8xf32>
    %686 = tpu.matmul %684, %685, %cst_208 {dimension_numbers = #tpu.dot_dimension_numbers<[2], [2], [1], [1], [0, 0, 0, 1, 1, 1], [0], [0]>} : vector<4x8x8xf32>, vector<4x8x8xf32>, vector<4x8x8xf32> -> vector<4x8x8xf32>
    "tpu.trace_stop"() : () -> ()
    %cst_209 = arith.constant dense<0xFF800000> : vector<4x8xf32>
    %687 = vector.multi_reduction <maximumf>, %686, %cst_209 [2] : vector<4x8x8xf32> to vector<4x8xf32>
    %688 = vector.shape_cast %687 : vector<4x8xf32> to vector<4x8x1xf32>
    %689 = vector.broadcast %688 : vector<4x8x1xf32> to vector<4x8x8xf32>
    %690 = arith.subf %686, %689 : vector<4x8x8xf32>
    %691 = math.exp %690 : vector<4x8x8xf32>
    %cst_210 = arith.constant dense<0.000000e+00> : vector<4x8xf32>
    %692 = vector.multi_reduction <add>, %691, %cst_210 [2] : vector<4x8x8xf32> to vector<4x8xf32>
    %693 = vector.shape_cast %692 : vector<4x8xf32> to vector<4x8x1xf32>
    %694 = tpu.reciprocal %693 {approx = true} : vector<4x8x1xf32> -> vector<4x8x1xf32>
    %695 = vector.broadcast %694 : vector<4x8x1xf32> to vector<4x8x8xf32>
    %696 = arith.mulf %691, %695 : vector<4x8x8xf32>
    %697 = vector.extract_strided_slice %663 {offsets = [0, 0, 8], sizes = [4, 8, 8], strides = [1, 1, 1]} : vector<4x8x32xf32> to vector<4x8x8xf32>
    "tpu.trace_start"() <{level = 10 : i32, message = "bqk,bkd->bqd"}> : () -> ()
    %cst_211 = arith.constant dense<0.000000e+00> : vector<4x8x8xf32>
    %698 = tpu.matmul %696, %697, %cst_211 {dimension_numbers = #tpu.dot_dimension_numbers<[2], [1], [1], [2], [0, 0, 0, 1, 1, 2], [0], [0]>} : vector<4x8x8xf32>, vector<4x8x8xf32>, vector<4x8x8xf32> -> vector<4x8x8xf32>
    "tpu.trace_stop"() : () -> ()
    %699 = vector.shape_cast %698 : vector<4x8x8xf32> to vector<32x8xf32>
    %700 = vector.extract_strided_slice %652 {offsets = [8, 0], sizes = [8, 32], strides = [1, 1]} : vector<32x32xf32> to vector<8x32xf32>
    %cst_212 = arith.constant dense<0.000000e+00> : vector<32x32xf32>
    %701 = tpu.matmul %699, %700, %cst_212 {dimension_numbers = #tpu.dot_dimension_numbers<[1], [0], [0], [1], [0, 0, 1, 1], [], []>} : vector<32x8xf32>, vector<8x32xf32>, vector<32x32xf32> -> vector<32x32xf32>
    %702 = arith.addf %683, %701 : vector<32x32xf32>
    %703 = vector.extract_strided_slice %659 {offsets = [0, 0, 16], sizes = [4, 8, 8], strides = [1, 1, 1]} : vector<4x8x32xf32> to vector<4x8x8xf32>
    %704 = vector.extract_strided_slice %661 {offsets = [0, 0, 16], sizes = [4, 8, 8], strides = [1, 1, 1]} : vector<4x8x32xf32> to vector<4x8x8xf32>
    "tpu.trace_start"() <{level = 10 : i32, message = "bqd,bkd->bqk"}> : () -> ()
    %cst_213 = arith.constant dense<0.000000e+00> : vector<4x8x8xf32>
    %705 = tpu.matmul %703, %704, %cst_213 {dimension_numbers = #tpu.dot_dimension_numbers<[2], [2], [1], [1], [0, 0, 0, 1, 1, 1], [0], [0]>} : vector<4x8x8xf32>, vector<4x8x8xf32>, vector<4x8x8xf32> -> vector<4x8x8xf32>
    "tpu.trace_stop"() : () -> ()
    %cst_214 = arith.constant dense<0xFF800000> : vector<4x8xf32>
    %706 = vector.multi_reduction <maximumf>, %705, %cst_214 [2] : vector<4x8x8xf32> to vector<4x8xf32>
    %707 = vector.shape_cast %706 : vector<4x8xf32> to vector<4x8x1xf32>
    %708 = vector.broadcast %707 : vector<4x8x1xf32> to vector<4x8x8xf32>
    %709 = arith.subf %705, %708 : vector<4x8x8xf32>
    %710 = math.exp %709 : vector<4x8x8xf32>
    %cst_215 = arith.constant dense<0.000000e+00> : vector<4x8xf32>
    %711 = vector.multi_reduction <add>, %710, %cst_215 [2] : vector<4x8x8xf32> to vector<4x8xf32>
    %712 = vector.shape_cast %711 : vector<4x8xf32> to vector<4x8x1xf32>
    %713 = tpu.reciprocal %712 {approx = true} : vector<4x8x1xf32> -> vector<4x8x1xf32>
    %714 = vector.broadcast %713 : vector<4x8x1xf32> to vector<4x8x8xf32>
    %715 = arith.mulf %710, %714 : vector<4x8x8xf32>
    %716 = vector.extract_strided_slice %663 {offsets = [0, 0, 16], sizes = [4, 8, 8], strides = [1, 1, 1]} : vector<4x8x32xf32> to vector<4x8x8xf32>
    "tpu.trace_start"() <{level = 10 : i32, message = "bqk,bkd->bqd"}> : () -> ()
    %cst_216 = arith.constant dense<0.000000e+00> : vector<4x8x8xf32>
    %717 = tpu.matmul %715, %716, %cst_216 {dimension_numbers = #tpu.dot_dimension_numbers<[2], [1], [1], [2], [0, 0, 0, 1, 1, 2], [0], [0]>} : vector<4x8x8xf32>, vector<4x8x8xf32>, vector<4x8x8xf32> -> vector<4x8x8xf32>
    "tpu.trace_stop"() : () -> ()
    %718 = vector.shape_cast %717 : vector<4x8x8xf32> to vector<32x8xf32>
    %719 = vector.extract_strided_slice %652 {offsets = [16, 0], sizes = [8, 32], strides = [1, 1]} : vector<32x32xf32> to vector<8x32xf32>
    %cst_217 = arith.constant dense<0.000000e+00> : vector<32x32xf32>
    %720 = tpu.matmul %718, %719, %cst_217 {dimension_numbers = #tpu.dot_dimension_numbers<[1], [0], [0], [1], [0, 0, 1, 1], [], []>} : vector<32x8xf32>, vector<8x32xf32>, vector<32x32xf32> -> vector<32x32xf32>
    %721 = arith.addf %702, %720 : vector<32x32xf32>
    %722 = vector.extract_strided_slice %659 {offsets = [0, 0, 24], sizes = [4, 8, 8], strides = [1, 1, 1]} : vector<4x8x32xf32> to vector<4x8x8xf32>
    %723 = vector.extract_strided_slice %661 {offsets = [0, 0, 24], sizes = [4, 8, 8], strides = [1, 1, 1]} : vector<4x8x32xf32> to vector<4x8x8xf32>
    "tpu.trace_start"() <{level = 10 : i32, message = "bqd,bkd->bqk"}> : () -> ()
    %cst_218 = arith.constant dense<0.000000e+00> : vector<4x8x8xf32>
    %724 = tpu.matmul %722, %723, %cst_218 {dimension_numbers = #tpu.dot_dimension_numbers<[2], [2], [1], [1], [0, 0, 0, 1, 1, 1], [0], [0]>} : vector<4x8x8xf32>, vector<4x8x8xf32>, vector<4x8x8xf32> -> vector<4x8x8xf32>
    "tpu.trace_stop"() : () -> ()
    %cst_219 = arith.constant dense<0xFF800000> : vector<4x8xf32>
    %725 = vector.multi_reduction <maximumf>, %724, %cst_219 [2] : vector<4x8x8xf32> to vector<4x8xf32>
    %726 = vector.shape_cast %725 : vector<4x8xf32> to vector<4x8x1xf32>
    %727 = vector.broadcast %726 : vector<4x8x1xf32> to vector<4x8x8xf32>
    %728 = arith.subf %724, %727 : vector<4x8x8xf32>
    %729 = math.exp %728 : vector<4x8x8xf32>
    %cst_220 = arith.constant dense<0.000000e+00> : vector<4x8xf32>
    %730 = vector.multi_reduction <add>, %729, %cst_220 [2] : vector<4x8x8xf32> to vector<4x8xf32>
    %731 = vector.shape_cast %730 : vector<4x8xf32> to vector<4x8x1xf32>
    %732 = tpu.reciprocal %731 {approx = true} : vector<4x8x1xf32> -> vector<4x8x1xf32>
    %733 = vector.broadcast %732 : vector<4x8x1xf32> to vector<4x8x8xf32>
    %734 = arith.mulf %729, %733 : vector<4x8x8xf32>
    %735 = vector.extract_strided_slice %663 {offsets = [0, 0, 24], sizes = [4, 8, 8], strides = [1, 1, 1]} : vector<4x8x32xf32> to vector<4x8x8xf32>
    "tpu.trace_start"() <{level = 10 : i32, message = "bqk,bkd->bqd"}> : () -> ()
    %cst_221 = arith.constant dense<0.000000e+00> : vector<4x8x8xf32>
    %736 = tpu.matmul %734, %735, %cst_221 {dimension_numbers = #tpu.dot_dimension_numbers<[2], [1], [1], [2], [0, 0, 0, 1, 1, 2], [0], [0]>} : vector<4x8x8xf32>, vector<4x8x8xf32>, vector<4x8x8xf32> -> vector<4x8x8xf32>
    "tpu.trace_stop"() : () -> ()
    %737 = vector.shape_cast %736 : vector<4x8x8xf32> to vector<32x8xf32>
    %738 = vector.extract_strided_slice %652 {offsets = [24, 0], sizes = [8, 32], strides = [1, 1]} : vector<32x32xf32> to vector<8x32xf32>
    %cst_222 = arith.constant dense<0.000000e+00> : vector<32x32xf32>
    %739 = tpu.matmul %737, %738, %cst_222 {dimension_numbers = #tpu.dot_dimension_numbers<[1], [0], [0], [1], [0, 0, 1, 1], [], []>} : vector<32x8xf32>, vector<8x32xf32>, vector<32x32xf32> -> vector<32x32xf32>
    %740 = arith.addf %721, %739 : vector<32x32xf32>
    %741 = vector.broadcast %653 : vector<1x32xf32> to vector<32x32xf32>
    %742 = arith.addf %740, %741 : vector<32x32xf32>
    %743 = vector.shape_cast %742 : vector<32x32xf32> to vector<4x8x32xf32>
    %c968 = arith.constant 968 : index
    %c0_223 = arith.constant 0 : index
    %744 = vector.load %arg2[%c968, %c0_223] : memref<1328x128xf32, #tpu.memory_space<vmem>>, vector<1x32xf32>
    %c976 = arith.constant 976 : index
    %c0_224 = arith.constant 0 : index
    %745 = vector.load %arg2[%c976, %c0_224] : memref<1328x128xf32, #tpu.memory_space<vmem>>, vector<1x32xf32>
    %746 = arith.addf %743, %649 : vector<4x8x32xf32>
    %cst_225 = arith.constant dense<0.000000e+00> : vector<4x8xf32>
    %747 = vector.multi_reduction <add>, %746, %cst_225 [2] : vector<4x8x32xf32> to vector<4x8xf32>
    %748 = vector.shape_cast %747 : vector<4x8xf32> to vector<4x8x1xf32>
    %cst_226 = arith.constant 3.125000e-02 : f32
    %749 = vector.broadcast %cst_226 : f32 to vector<4x8x1xf32>
    %750 = arith.mulf %748, %749 : vector<4x8x1xf32>
    %751 = arith.mulf %746, %746 : vector<4x8x32xf32>
    %cst_227 = arith.constant dense<0.000000e+00> : vector<4x8xf32>
    %752 = vector.multi_reduction <add>, %751, %cst_227 [2] : vector<4x8x32xf32> to vector<4x8xf32>
    %753 = vector.shape_cast %752 : vector<4x8xf32> to vector<4x8x1xf32>
    %cst_228 = arith.constant 3.125000e-02 : f32
    %754 = vector.broadcast %cst_228 : f32 to vector<4x8x1xf32>
    %755 = arith.mulf %753, %754 : vector<4x8x1xf32>
    %756 = arith.mulf %750, %750 : vector<4x8x1xf32>
    %757 = arith.subf %755, %756 : vector<4x8x1xf32>
    %cst_229 = arith.constant 0.000000e+00 : f32
    %758 = vector.broadcast %cst_229 : f32 to vector<4x8x1xf32>
    %759 = arith.maximumf %757, %758 : vector<4x8x1xf32>
    %760 = vector.broadcast %750 : vector<4x8x1xf32> to vector<4x8x32xf32>
    %761 = arith.subf %746, %760 : vector<4x8x32xf32>
    %cst_230 = arith.constant 9.99999974E-6 : f32
    %762 = vector.broadcast %cst_230 : f32 to vector<4x8x1xf32>
    %763 = arith.addf %759, %762 : vector<4x8x1xf32>
    %764 = math.rsqrt %763 : vector<4x8x1xf32>
    %765 = vector.broadcast %764 : vector<4x8x1xf32> to vector<4x8x32xf32>
    %766 = arith.mulf %761, %765 : vector<4x8x32xf32>
    %767 = vector.shape_cast %744 : vector<1x32xf32> to vector<1x1x32xf32>
    %768 = vector.broadcast %767 : vector<1x1x32xf32> to vector<4x8x32xf32>
    %769 = arith.mulf %766, %768 : vector<4x8x32xf32>
    %770 = vector.shape_cast %745 : vector<1x32xf32> to vector<1x1x32xf32>
    %771 = vector.broadcast %770 : vector<1x1x32xf32> to vector<4x8x32xf32>
    %772 = arith.addf %769, %771 : vector<4x8x32xf32>
    %773 = vector.shape_cast %772 : vector<4x8x32xf32> to vector<32x32xf32>
    %c984 = arith.constant 984 : index
    %c0_231 = arith.constant 0 : index
    %774 = vector.load %arg2[%c984, %c0_231] : memref<1328x128xf32, #tpu.memory_space<vmem>>, vector<32x32xf32>
    %c1016 = arith.constant 1016 : index
    %c0_232 = arith.constant 0 : index
    %775 = vector.load %arg2[%c1016, %c0_232] : memref<1328x128xf32, #tpu.memory_space<vmem>>, vector<1x32xf32>
    %cst_233 = arith.constant dense<0.000000e+00> : vector<32x32xf32>
    %776 = tpu.matmul %773, %774, %cst_233 {dimension_numbers = #tpu.dot_dimension_numbers<[1], [0], [0], [1], [0, 0, 1, 1], [], []>} : vector<32x32xf32>, vector<32x32xf32>, vector<32x32xf32> -> vector<32x32xf32>
    %777 = vector.broadcast %775 : vector<1x32xf32> to vector<32x32xf32>
    %778 = arith.addf %776, %777 : vector<32x32xf32>
    %779 = vector.shape_cast %778 : vector<32x32xf32> to vector<4x8x32xf32>
    %780 = vector.extract_strided_slice %361 {offsets = [0, 64], sizes = [32, 32], strides = [1, 1]} : vector<32x128xf32> to vector<32x32xf32>
    %781 = vector.shape_cast %780 : vector<32x32xf32> to vector<4x8x32xf32>
    %782 = vector.extract_strided_slice %361 {offsets = [0, 96], sizes = [32, 32], strides = [1, 1]} : vector<32x128xf32> to vector<32x32xf32>
    %783 = vector.shape_cast %782 : vector<32x32xf32> to vector<4x8x32xf32>
    %c1024 = arith.constant 1024 : index
    %c0_234 = arith.constant 0 : index
    %784 = vector.load %arg2[%c1024, %c0_234] : memref<1328x128xf32, #tpu.memory_space<vmem>>, vector<32x32xf32>
    %c1056 = arith.constant 1056 : index
    %c0_235 = arith.constant 0 : index
    %785 = vector.load %arg2[%c1056, %c0_235] : memref<1328x128xf32, #tpu.memory_space<vmem>>, vector<1x32xf32>
    %cst_236 = arith.constant 0.000000e+00 : f32
    %786 = vector.broadcast %cst_236 : f32 to vector<32x32xf32>
    %787 = vector.extract_strided_slice %779 {offsets = [0, 0, 0], sizes = [4, 8, 8], strides = [1, 1, 1]} : vector<4x8x32xf32> to vector<4x8x8xf32>
    %788 = vector.extract_strided_slice %781 {offsets = [0, 0, 0], sizes = [4, 8, 8], strides = [1, 1, 1]} : vector<4x8x32xf32> to vector<4x8x8xf32>
    "tpu.trace_start"() <{level = 10 : i32, message = "bqd,bkd->bqk"}> : () -> ()
    %cst_237 = arith.constant dense<0.000000e+00> : vector<4x8x8xf32>
    %789 = tpu.matmul %787, %788, %cst_237 {dimension_numbers = #tpu.dot_dimension_numbers<[2], [2], [1], [1], [0, 0, 0, 1, 1, 1], [0], [0]>} : vector<4x8x8xf32>, vector<4x8x8xf32>, vector<4x8x8xf32> -> vector<4x8x8xf32>
    "tpu.trace_stop"() : () -> ()
    %cst_238 = arith.constant dense<0xFF800000> : vector<4x8xf32>
    %790 = vector.multi_reduction <maximumf>, %789, %cst_238 [2] : vector<4x8x8xf32> to vector<4x8xf32>
    %791 = vector.shape_cast %790 : vector<4x8xf32> to vector<4x8x1xf32>
    %792 = vector.broadcast %791 : vector<4x8x1xf32> to vector<4x8x8xf32>
    %793 = arith.subf %789, %792 : vector<4x8x8xf32>
    %794 = math.exp %793 : vector<4x8x8xf32>
    %cst_239 = arith.constant dense<0.000000e+00> : vector<4x8xf32>
    %795 = vector.multi_reduction <add>, %794, %cst_239 [2] : vector<4x8x8xf32> to vector<4x8xf32>
    %796 = vector.shape_cast %795 : vector<4x8xf32> to vector<4x8x1xf32>
    %797 = tpu.reciprocal %796 {approx = true} : vector<4x8x1xf32> -> vector<4x8x1xf32>
    %798 = vector.broadcast %797 : vector<4x8x1xf32> to vector<4x8x8xf32>
    %799 = arith.mulf %794, %798 : vector<4x8x8xf32>
    %800 = vector.extract_strided_slice %783 {offsets = [0, 0, 0], sizes = [4, 8, 8], strides = [1, 1, 1]} : vector<4x8x32xf32> to vector<4x8x8xf32>
    "tpu.trace_start"() <{level = 10 : i32, message = "bqk,bkd->bqd"}> : () -> ()
    %cst_240 = arith.constant dense<0.000000e+00> : vector<4x8x8xf32>
    %801 = tpu.matmul %799, %800, %cst_240 {dimension_numbers = #tpu.dot_dimension_numbers<[2], [1], [1], [2], [0, 0, 0, 1, 1, 2], [0], [0]>} : vector<4x8x8xf32>, vector<4x8x8xf32>, vector<4x8x8xf32> -> vector<4x8x8xf32>
    "tpu.trace_stop"() : () -> ()
    %802 = vector.shape_cast %801 : vector<4x8x8xf32> to vector<32x8xf32>
    %803 = vector.extract_strided_slice %784 {offsets = [0, 0], sizes = [8, 32], strides = [1, 1]} : vector<32x32xf32> to vector<8x32xf32>
    %cst_241 = arith.constant dense<0.000000e+00> : vector<32x32xf32>
    %804 = tpu.matmul %802, %803, %cst_241 {dimension_numbers = #tpu.dot_dimension_numbers<[1], [0], [0], [1], [0, 0, 1, 1], [], []>} : vector<32x8xf32>, vector<8x32xf32>, vector<32x32xf32> -> vector<32x32xf32>
    %805 = arith.addf %786, %804 : vector<32x32xf32>
    %806 = vector.extract_strided_slice %779 {offsets = [0, 0, 8], sizes = [4, 8, 8], strides = [1, 1, 1]} : vector<4x8x32xf32> to vector<4x8x8xf32>
    %807 = vector.extract_strided_slice %781 {offsets = [0, 0, 8], sizes = [4, 8, 8], strides = [1, 1, 1]} : vector<4x8x32xf32> to vector<4x8x8xf32>
    "tpu.trace_start"() <{level = 10 : i32, message = "bqd,bkd->bqk"}> : () -> ()
    %cst_242 = arith.constant dense<0.000000e+00> : vector<4x8x8xf32>
    %808 = tpu.matmul %806, %807, %cst_242 {dimension_numbers = #tpu.dot_dimension_numbers<[2], [2], [1], [1], [0, 0, 0, 1, 1, 1], [0], [0]>} : vector<4x8x8xf32>, vector<4x8x8xf32>, vector<4x8x8xf32> -> vector<4x8x8xf32>
    "tpu.trace_stop"() : () -> ()
    %cst_243 = arith.constant dense<0xFF800000> : vector<4x8xf32>
    %809 = vector.multi_reduction <maximumf>, %808, %cst_243 [2] : vector<4x8x8xf32> to vector<4x8xf32>
    %810 = vector.shape_cast %809 : vector<4x8xf32> to vector<4x8x1xf32>
    %811 = vector.broadcast %810 : vector<4x8x1xf32> to vector<4x8x8xf32>
    %812 = arith.subf %808, %811 : vector<4x8x8xf32>
    %813 = math.exp %812 : vector<4x8x8xf32>
    %cst_244 = arith.constant dense<0.000000e+00> : vector<4x8xf32>
    %814 = vector.multi_reduction <add>, %813, %cst_244 [2] : vector<4x8x8xf32> to vector<4x8xf32>
    %815 = vector.shape_cast %814 : vector<4x8xf32> to vector<4x8x1xf32>
    %816 = tpu.reciprocal %815 {approx = true} : vector<4x8x1xf32> -> vector<4x8x1xf32>
    %817 = vector.broadcast %816 : vector<4x8x1xf32> to vector<4x8x8xf32>
    %818 = arith.mulf %813, %817 : vector<4x8x8xf32>
    %819 = vector.extract_strided_slice %783 {offsets = [0, 0, 8], sizes = [4, 8, 8], strides = [1, 1, 1]} : vector<4x8x32xf32> to vector<4x8x8xf32>
    "tpu.trace_start"() <{level = 10 : i32, message = "bqk,bkd->bqd"}> : () -> ()
    %cst_245 = arith.constant dense<0.000000e+00> : vector<4x8x8xf32>
    %820 = tpu.matmul %818, %819, %cst_245 {dimension_numbers = #tpu.dot_dimension_numbers<[2], [1], [1], [2], [0, 0, 0, 1, 1, 2], [0], [0]>} : vector<4x8x8xf32>, vector<4x8x8xf32>, vector<4x8x8xf32> -> vector<4x8x8xf32>
    "tpu.trace_stop"() : () -> ()
    %821 = vector.shape_cast %820 : vector<4x8x8xf32> to vector<32x8xf32>
    %822 = vector.extract_strided_slice %784 {offsets = [8, 0], sizes = [8, 32], strides = [1, 1]} : vector<32x32xf32> to vector<8x32xf32>
    %cst_246 = arith.constant dense<0.000000e+00> : vector<32x32xf32>
    %823 = tpu.matmul %821, %822, %cst_246 {dimension_numbers = #tpu.dot_dimension_numbers<[1], [0], [0], [1], [0, 0, 1, 1], [], []>} : vector<32x8xf32>, vector<8x32xf32>, vector<32x32xf32> -> vector<32x32xf32>
    %824 = arith.addf %805, %823 : vector<32x32xf32>
    %825 = vector.extract_strided_slice %779 {offsets = [0, 0, 16], sizes = [4, 8, 8], strides = [1, 1, 1]} : vector<4x8x32xf32> to vector<4x8x8xf32>
    %826 = vector.extract_strided_slice %781 {offsets = [0, 0, 16], sizes = [4, 8, 8], strides = [1, 1, 1]} : vector<4x8x32xf32> to vector<4x8x8xf32>
    "tpu.trace_start"() <{level = 10 : i32, message = "bqd,bkd->bqk"}> : () -> ()
    %cst_247 = arith.constant dense<0.000000e+00> : vector<4x8x8xf32>
    %827 = tpu.matmul %825, %826, %cst_247 {dimension_numbers = #tpu.dot_dimension_numbers<[2], [2], [1], [1], [0, 0, 0, 1, 1, 1], [0], [0]>} : vector<4x8x8xf32>, vector<4x8x8xf32>, vector<4x8x8xf32> -> vector<4x8x8xf32>
    "tpu.trace_stop"() : () -> ()
    %cst_248 = arith.constant dense<0xFF800000> : vector<4x8xf32>
    %828 = vector.multi_reduction <maximumf>, %827, %cst_248 [2] : vector<4x8x8xf32> to vector<4x8xf32>
    %829 = vector.shape_cast %828 : vector<4x8xf32> to vector<4x8x1xf32>
    %830 = vector.broadcast %829 : vector<4x8x1xf32> to vector<4x8x8xf32>
    %831 = arith.subf %827, %830 : vector<4x8x8xf32>
    %832 = math.exp %831 : vector<4x8x8xf32>
    %cst_249 = arith.constant dense<0.000000e+00> : vector<4x8xf32>
    %833 = vector.multi_reduction <add>, %832, %cst_249 [2] : vector<4x8x8xf32> to vector<4x8xf32>
    %834 = vector.shape_cast %833 : vector<4x8xf32> to vector<4x8x1xf32>
    %835 = tpu.reciprocal %834 {approx = true} : vector<4x8x1xf32> -> vector<4x8x1xf32>
    %836 = vector.broadcast %835 : vector<4x8x1xf32> to vector<4x8x8xf32>
    %837 = arith.mulf %832, %836 : vector<4x8x8xf32>
    %838 = vector.extract_strided_slice %783 {offsets = [0, 0, 16], sizes = [4, 8, 8], strides = [1, 1, 1]} : vector<4x8x32xf32> to vector<4x8x8xf32>
    "tpu.trace_start"() <{level = 10 : i32, message = "bqk,bkd->bqd"}> : () -> ()
    %cst_250 = arith.constant dense<0.000000e+00> : vector<4x8x8xf32>
    %839 = tpu.matmul %837, %838, %cst_250 {dimension_numbers = #tpu.dot_dimension_numbers<[2], [1], [1], [2], [0, 0, 0, 1, 1, 2], [0], [0]>} : vector<4x8x8xf32>, vector<4x8x8xf32>, vector<4x8x8xf32> -> vector<4x8x8xf32>
    "tpu.trace_stop"() : () -> ()
    %840 = vector.shape_cast %839 : vector<4x8x8xf32> to vector<32x8xf32>
    %841 = vector.extract_strided_slice %784 {offsets = [16, 0], sizes = [8, 32], strides = [1, 1]} : vector<32x32xf32> to vector<8x32xf32>
    %cst_251 = arith.constant dense<0.000000e+00> : vector<32x32xf32>
    %842 = tpu.matmul %840, %841, %cst_251 {dimension_numbers = #tpu.dot_dimension_numbers<[1], [0], [0], [1], [0, 0, 1, 1], [], []>} : vector<32x8xf32>, vector<8x32xf32>, vector<32x32xf32> -> vector<32x32xf32>
    %843 = arith.addf %824, %842 : vector<32x32xf32>
    %844 = vector.extract_strided_slice %779 {offsets = [0, 0, 24], sizes = [4, 8, 8], strides = [1, 1, 1]} : vector<4x8x32xf32> to vector<4x8x8xf32>
    %845 = vector.extract_strided_slice %781 {offsets = [0, 0, 24], sizes = [4, 8, 8], strides = [1, 1, 1]} : vector<4x8x32xf32> to vector<4x8x8xf32>
    "tpu.trace_start"() <{level = 10 : i32, message = "bqd,bkd->bqk"}> : () -> ()
    %cst_252 = arith.constant dense<0.000000e+00> : vector<4x8x8xf32>
    %846 = tpu.matmul %844, %845, %cst_252 {dimension_numbers = #tpu.dot_dimension_numbers<[2], [2], [1], [1], [0, 0, 0, 1, 1, 1], [0], [0]>} : vector<4x8x8xf32>, vector<4x8x8xf32>, vector<4x8x8xf32> -> vector<4x8x8xf32>
    "tpu.trace_stop"() : () -> ()
    %cst_253 = arith.constant dense<0xFF800000> : vector<4x8xf32>
    %847 = vector.multi_reduction <maximumf>, %846, %cst_253 [2] : vector<4x8x8xf32> to vector<4x8xf32>
    %848 = vector.shape_cast %847 : vector<4x8xf32> to vector<4x8x1xf32>
    %849 = vector.broadcast %848 : vector<4x8x1xf32> to vector<4x8x8xf32>
    %850 = arith.subf %846, %849 : vector<4x8x8xf32>
    %851 = math.exp %850 : vector<4x8x8xf32>
    %cst_254 = arith.constant dense<0.000000e+00> : vector<4x8xf32>
    %852 = vector.multi_reduction <add>, %851, %cst_254 [2] : vector<4x8x8xf32> to vector<4x8xf32>
    %853 = vector.shape_cast %852 : vector<4x8xf32> to vector<4x8x1xf32>
    %854 = tpu.reciprocal %853 {approx = true} : vector<4x8x1xf32> -> vector<4x8x1xf32>
    %855 = vector.broadcast %854 : vector<4x8x1xf32> to vector<4x8x8xf32>
    %856 = arith.mulf %851, %855 : vector<4x8x8xf32>
    %857 = vector.extract_strided_slice %783 {offsets = [0, 0, 24], sizes = [4, 8, 8], strides = [1, 1, 1]} : vector<4x8x32xf32> to vector<4x8x8xf32>
    "tpu.trace_start"() <{level = 10 : i32, message = "bqk,bkd->bqd"}> : () -> ()
    %cst_255 = arith.constant dense<0.000000e+00> : vector<4x8x8xf32>
    %858 = tpu.matmul %856, %857, %cst_255 {dimension_numbers = #tpu.dot_dimension_numbers<[2], [1], [1], [2], [0, 0, 0, 1, 1, 2], [0], [0]>} : vector<4x8x8xf32>, vector<4x8x8xf32>, vector<4x8x8xf32> -> vector<4x8x8xf32>
    "tpu.trace_stop"() : () -> ()
    %859 = vector.shape_cast %858 : vector<4x8x8xf32> to vector<32x8xf32>
    %860 = vector.extract_strided_slice %784 {offsets = [24, 0], sizes = [8, 32], strides = [1, 1]} : vector<32x32xf32> to vector<8x32xf32>
    %cst_256 = arith.constant dense<0.000000e+00> : vector<32x32xf32>
    %861 = tpu.matmul %859, %860, %cst_256 {dimension_numbers = #tpu.dot_dimension_numbers<[1], [0], [0], [1], [0, 0, 1, 1], [], []>} : vector<32x8xf32>, vector<8x32xf32>, vector<32x32xf32> -> vector<32x32xf32>
    %862 = arith.addf %843, %861 : vector<32x32xf32>
    %863 = vector.broadcast %785 : vector<1x32xf32> to vector<32x32xf32>
    %864 = arith.addf %862, %863 : vector<32x32xf32>
    %865 = vector.shape_cast %864 : vector<32x32xf32> to vector<4x8x32xf32>
    %c1064 = arith.constant 1064 : index
    %c0_257 = arith.constant 0 : index
    %866 = vector.load %arg2[%c1064, %c0_257] : memref<1328x128xf32, #tpu.memory_space<vmem>>, vector<1x32xf32>
    %c1072 = arith.constant 1072 : index
    %c0_258 = arith.constant 0 : index
    %867 = vector.load %arg2[%c1072, %c0_258] : memref<1328x128xf32, #tpu.memory_space<vmem>>, vector<1x32xf32>
    %868 = arith.addf %865, %772 : vector<4x8x32xf32>
    %cst_259 = arith.constant dense<0.000000e+00> : vector<4x8xf32>
    %869 = vector.multi_reduction <add>, %868, %cst_259 [2] : vector<4x8x32xf32> to vector<4x8xf32>
    %870 = vector.shape_cast %869 : vector<4x8xf32> to vector<4x8x1xf32>
    %cst_260 = arith.constant 3.125000e-02 : f32
    %871 = vector.broadcast %cst_260 : f32 to vector<4x8x1xf32>
    %872 = arith.mulf %870, %871 : vector<4x8x1xf32>
    %873 = arith.mulf %868, %868 : vector<4x8x32xf32>
    %cst_261 = arith.constant dense<0.000000e+00> : vector<4x8xf32>
    %874 = vector.multi_reduction <add>, %873, %cst_261 [2] : vector<4x8x32xf32> to vector<4x8xf32>
    %875 = vector.shape_cast %874 : vector<4x8xf32> to vector<4x8x1xf32>
    %cst_262 = arith.constant 3.125000e-02 : f32
    %876 = vector.broadcast %cst_262 : f32 to vector<4x8x1xf32>
    %877 = arith.mulf %875, %876 : vector<4x8x1xf32>
    %878 = arith.mulf %872, %872 : vector<4x8x1xf32>
    %879 = arith.subf %877, %878 : vector<4x8x1xf32>
    %cst_263 = arith.constant 0.000000e+00 : f32
    %880 = vector.broadcast %cst_263 : f32 to vector<4x8x1xf32>
    %881 = arith.maximumf %879, %880 : vector<4x8x1xf32>
    %882 = vector.broadcast %872 : vector<4x8x1xf32> to vector<4x8x32xf32>
    %883 = arith.subf %868, %882 : vector<4x8x32xf32>
    %cst_264 = arith.constant 9.99999974E-6 : f32
    %884 = vector.broadcast %cst_264 : f32 to vector<4x8x1xf32>
    %885 = arith.addf %881, %884 : vector<4x8x1xf32>
    %886 = math.rsqrt %885 : vector<4x8x1xf32>
    %887 = vector.broadcast %886 : vector<4x8x1xf32> to vector<4x8x32xf32>
    %888 = arith.mulf %883, %887 : vector<4x8x32xf32>
    %889 = vector.shape_cast %866 : vector<1x32xf32> to vector<1x1x32xf32>
    %890 = vector.broadcast %889 : vector<1x1x32xf32> to vector<4x8x32xf32>
    %891 = arith.mulf %888, %890 : vector<4x8x32xf32>
    %892 = vector.shape_cast %867 : vector<1x32xf32> to vector<1x1x32xf32>
    %893 = vector.broadcast %892 : vector<1x1x32xf32> to vector<4x8x32xf32>
    %894 = arith.addf %891, %893 : vector<4x8x32xf32>
    %c1080 = arith.constant 1080 : index
    %c0_265 = arith.constant 0 : index
    %895 = vector.load %arg2[%c1080, %c0_265] : memref<1328x128xf32, #tpu.memory_space<vmem>>, vector<32x64xf32>
    %c1112 = arith.constant 1112 : index
    %c0_266 = arith.constant 0 : index
    %896 = vector.load %arg2[%c1112, %c0_266] : memref<1328x128xf32, #tpu.memory_space<vmem>>, vector<1x64xf32>
    %c1120 = arith.constant 1120 : index
    %c0_267 = arith.constant 0 : index
    %897 = vector.load %arg2[%c1120, %c0_267] : memref<1328x128xf32, #tpu.memory_space<vmem>>, vector<64x32xf32>
    %c1184 = arith.constant 1184 : index
    %c0_268 = arith.constant 0 : index
    %898 = vector.load %arg2[%c1184, %c0_268] : memref<1328x128xf32, #tpu.memory_space<vmem>>, vector<1x32xf32>
    %899 = vector.shape_cast %894 : vector<4x8x32xf32> to vector<32x32xf32>
    %cst_269 = arith.constant dense<0.000000e+00> : vector<32x64xf32>
    %900 = tpu.matmul %899, %895, %cst_269 {dimension_numbers = #tpu.dot_dimension_numbers<[1], [0], [0], [1], [0, 0, 1, 1], [], []>} : vector<32x32xf32>, vector<32x64xf32>, vector<32x64xf32> -> vector<32x64xf32>
    %901 = vector.broadcast %896 : vector<1x64xf32> to vector<32x64xf32>
    %902 = arith.addf %900, %901 : vector<32x64xf32>
    %cst_270 = arith.constant 0.000000e+00 : f32
    %903 = vector.broadcast %cst_270 : f32 to vector<32x64xf32>
    %904 = arith.maximumf %902, %903 : vector<32x64xf32>
    %cst_271 = arith.constant dense<0.000000e+00> : vector<32x32xf32>
    %905 = tpu.matmul %904, %897, %cst_271 {dimension_numbers = #tpu.dot_dimension_numbers<[1], [0], [0], [1], [0, 0, 1, 1], [], []>} : vector<32x64xf32>, vector<64x32xf32>, vector<32x32xf32> -> vector<32x32xf32>
    %906 = vector.broadcast %898 : vector<1x32xf32> to vector<32x32xf32>
    %907 = arith.addf %905, %906 : vector<32x32xf32>
    %908 = vector.shape_cast %907 : vector<32x32xf32> to vector<4x8x32xf32>
    %c1192 = arith.constant 1192 : index
    %c0_272 = arith.constant 0 : index
    %909 = vector.load %arg2[%c1192, %c0_272] : memref<1328x128xf32, #tpu.memory_space<vmem>>, vector<1x32xf32>
    %c1200 = arith.constant 1200 : index
    %c0_273 = arith.constant 0 : index
    %910 = vector.load %arg2[%c1200, %c0_273] : memref<1328x128xf32, #tpu.memory_space<vmem>>, vector<1x32xf32>
    %911 = arith.addf %908, %894 : vector<4x8x32xf32>
    %cst_274 = arith.constant dense<0.000000e+00> : vector<4x8xf32>
    %912 = vector.multi_reduction <add>, %911, %cst_274 [2] : vector<4x8x32xf32> to vector<4x8xf32>
    %913 = vector.shape_cast %912 : vector<4x8xf32> to vector<4x8x1xf32>
    %cst_275 = arith.constant 3.125000e-02 : f32
    %914 = vector.broadcast %cst_275 : f32 to vector<4x8x1xf32>
    %915 = arith.mulf %913, %914 : vector<4x8x1xf32>
    %916 = arith.mulf %911, %911 : vector<4x8x32xf32>
    %cst_276 = arith.constant dense<0.000000e+00> : vector<4x8xf32>
    %917 = vector.multi_reduction <add>, %916, %cst_276 [2] : vector<4x8x32xf32> to vector<4x8xf32>
    %918 = vector.shape_cast %917 : vector<4x8xf32> to vector<4x8x1xf32>
    %cst_277 = arith.constant 3.125000e-02 : f32
    %919 = vector.broadcast %cst_277 : f32 to vector<4x8x1xf32>
    %920 = arith.mulf %918, %919 : vector<4x8x1xf32>
    %921 = arith.mulf %915, %915 : vector<4x8x1xf32>
    %922 = arith.subf %920, %921 : vector<4x8x1xf32>
    %cst_278 = arith.constant 0.000000e+00 : f32
    %923 = vector.broadcast %cst_278 : f32 to vector<4x8x1xf32>
    %924 = arith.maximumf %922, %923 : vector<4x8x1xf32>
    %925 = vector.broadcast %915 : vector<4x8x1xf32> to vector<4x8x32xf32>
    %926 = arith.subf %911, %925 : vector<4x8x32xf32>
    %cst_279 = arith.constant 9.99999974E-6 : f32
    %927 = vector.broadcast %cst_279 : f32 to vector<4x8x1xf32>
    %928 = arith.addf %924, %927 : vector<4x8x1xf32>
    %929 = math.rsqrt %928 : vector<4x8x1xf32>
    %930 = vector.broadcast %929 : vector<4x8x1xf32> to vector<4x8x32xf32>
    %931 = arith.mulf %926, %930 : vector<4x8x32xf32>
    %932 = vector.shape_cast %909 : vector<1x32xf32> to vector<1x1x32xf32>
    %933 = vector.broadcast %932 : vector<1x1x32xf32> to vector<4x8x32xf32>
    %934 = arith.mulf %931, %933 : vector<4x8x32xf32>
    %935 = vector.shape_cast %910 : vector<1x32xf32> to vector<1x1x32xf32>
    %936 = vector.broadcast %935 : vector<1x1x32xf32> to vector<4x8x32xf32>
    %937 = arith.addf %934, %936 : vector<4x8x32xf32>
    %cst_280 = arith.constant dense<0.000000e+00> : vector<4x32xf32>
    %938 = vector.multi_reduction <add>, %937, %cst_280 [1] : vector<4x8x32xf32> to vector<4x32xf32>
    %cst_281 = arith.constant 8.000000e+00 : f32
    %939 = vector.broadcast %cst_281 : f32 to vector<4x32xf32>
    %940 = arith.divf %938, %939 : vector<4x32xf32>
    %941 = vector.extract_strided_slice %940 {offsets = [0, 0], sizes = [2, 32], strides = [1, 1]} : vector<4x32xf32> to vector<2x32xf32>
    %942 = vector.extract_strided_slice %940 {offsets = [2, 0], sizes = [2, 32], strides = [1, 1]} : vector<4x32xf32> to vector<2x32xf32>
    %943 = arith.addf %941, %942 : vector<2x32xf32>
    %cst_282 = arith.constant 5.000000e-01 : f32
    %944 = vector.broadcast %cst_282 : f32 to vector<2x32xf32>
    %945 = arith.mulf %944, %943 : vector<2x32xf32>
    %c1208 = arith.constant 1208 : index
    %c0_283 = arith.constant 0 : index
    %946 = vector.load %arg2[%c1208, %c0_283] : memref<1328x128xf32, #tpu.memory_space<vmem>>, vector<32x32xf32>
    %c1240 = arith.constant 1240 : index
    %c0_284 = arith.constant 0 : index
    %947 = vector.load %arg2[%c1240, %c0_284] : memref<1328x128xf32, #tpu.memory_space<vmem>>, vector<1x32xf32>
    %cst_285 = arith.constant dense<0.000000e+00> : vector<2x32xf32>
    %948 = tpu.matmul %945, %946, %cst_285 {dimension_numbers = #tpu.dot_dimension_numbers<[1], [0], [0], [1], [0, 0, 1, 1], [], []>} : vector<2x32xf32>, vector<32x32xf32>, vector<2x32xf32> -> vector<2x32xf32>
    %949 = vector.broadcast %947 : vector<1x32xf32> to vector<2x32xf32>
    %950 = arith.addf %948, %949 : vector<2x32xf32>
    %cst_286 = arith.constant 0.000000e+00 : f32
    %951 = vector.broadcast %cst_286 : f32 to vector<2x32xf32>
    %952 = arith.maximumf %950, %951 : vector<2x32xf32>
    %c1248 = arith.constant 1248 : index
    %c0_287 = arith.constant 0 : index
    %953 = vector.load %arg2[%c1248, %c0_287] : memref<1328x128xf32, #tpu.memory_space<vmem>>, vector<32x32xf32>
    %c1280 = arith.constant 1280 : index
    %c0_288 = arith.constant 0 : index
    %954 = vector.load %arg2[%c1280, %c0_288] : memref<1328x128xf32, #tpu.memory_space<vmem>>, vector<1x32xf32>
    %cst_289 = arith.constant dense<0.000000e+00> : vector<2x32xf32>
    %955 = tpu.matmul %952, %953, %cst_289 {dimension_numbers = #tpu.dot_dimension_numbers<[1], [0], [0], [1], [0, 0, 1, 1], [], []>} : vector<2x32xf32>, vector<32x32xf32>, vector<2x32xf32> -> vector<2x32xf32>
    %956 = vector.broadcast %954 : vector<1x32xf32> to vector<2x32xf32>
    %957 = arith.addf %955, %956 : vector<2x32xf32>
    %cst_290 = arith.constant 0.000000e+00 : f32
    %958 = vector.broadcast %cst_290 : f32 to vector<2x32xf32>
    %959 = arith.maximumf %957, %958 : vector<2x32xf32>
    %c1288 = arith.constant 1288 : index
    %c0_291 = arith.constant 0 : index
    %960 = vector.load %arg2[%c1288, %c0_291] : memref<1328x128xf32, #tpu.memory_space<vmem>>, vector<32x3xf32>
    %cst_292 = arith.constant dense<0.000000e+00> : vector<2x3xf32>
    %961 = tpu.matmul %959, %960, %cst_292 {dimension_numbers = #tpu.dot_dimension_numbers<[1], [0], [0], [1], [0, 0, 1, 1], [], []>} : vector<2x32xf32>, vector<32x3xf32>, vector<2x3xf32> -> vector<2x3xf32>
    %c1320 = arith.constant 1320 : index
    %c0_293 = arith.constant 0 : index
    %962 = vector.load %arg2[%c1320, %c0_293] : memref<1328x128xf32, #tpu.memory_space<vmem>>, vector<1x3xf32>
    %963 = vector.broadcast %962 : vector<1x3xf32> to vector<2x3xf32>
    %964 = arith.addf %961, %963 : vector<2x3xf32>
    %965 = math.tanh %964 : vector<2x3xf32>
    %c0_294 = arith.constant 0 : index
    %c0_295 = arith.constant 0 : index
    %966 = vector.load %arg3[%c0_294, %c0_295] : memref<2x3xf32, #tpu.memory_space<vmem>>, vector<2x3xf32>
    tpu.vector_store %arg3[%c0_294, %c0_295], %965 {strides = array<i32>} : memref<2x3xf32, #tpu.memory_space<vmem>>, vector<2x3xf32>,
    return
  }
}

</mosaic_0001>

<bundles_post_ra>
// kernel: _lambda_.1
= control target key start
LH: loop header
LB: loop body
LE: loop exit
PB: predicated region body
PF: predicated region fallthrough
CT: control target
= control target key end

     0   :  { %8 = vsyncpa [#allocation3], 0  ;;  %s12878_s0 = inlined_call_operand.hbm [shape: f32[2,8,32], index: 0, kind: input, shape index: {}]   ;;  %s12879_s1 = inlined_call_operand.hbm [shape: f32[2,8,32], index: 1, kind: input, shape index: {}]   ;;  %s12880_s2 = inlined_call_operand.hbm [shape: f32[1328,128], index: 2, kind: input, shape index: {}]   ;;  %s12881_s3 = inlined_call_operand.vmem [shape: f32[2,3], index: 3, kind: output, shape index: {}]  }
   0x1   :  { %9 = vsyncpa [#allocation5], 0  ;;  %s27_s14 = sshll.u32 %s12879_s1, 4  ;;  %s10683_s15 = smov [#allocation4]   ;;  %s28_s14 = int_to_ptr.hbm [resolvable:$true] %s27_s14 }
   0x2   :  { %s29_s16 = sshll.u32 %s10683_s15, 4  ;;  %s14_s19 = sshll.u32 %s12878_s0, 4  ;;  %s30_s16 = int_to_ptr.vmem [resolvable:$true] %s29_s16  ;;  %s15_s19 = int_to_ptr.hbm [resolvable:$true] %s14_s19 }
   0x3   :  { %s10684_s20 = smov 128   ;;  %s10685_s21 = smov 8  }
   0x4   :  { %35 = dma.hbm_to_vmem [thread:$0]  %s28_s14, 256, %s30_s16, [#allocation5], %s10684_s20, %s10684_s20, %s10685_s21  }
   0x5   :  { %s10686_s22 = smov [#allocation2]   ;;  %s40_s26 = sshll.u32 %s12880_s2, 4  ;;  %s41_s26 = int_to_ptr.hbm [resolvable:$true] %s40_s26 }
   0x6   :  { %s16_s23 = sshll.u32 %s10686_s22, 4  ;;  %s10687_s1 = smov [#allocation6]   ;;  %s17_s23 = int_to_ptr.vmem [resolvable:$true] %s16_s23 }
   0x7   :  { %22 = dma.hbm_to_vmem [thread:$0]  %s15_s19, 256, %s17_s23, [#allocation3], %s10684_s20, %s10684_s20, %s10685_s21  }
   0x8   :  { %s42_s27 = sshll.u32 %s10687_s1, 4  ;;  %s43_s27 = int_to_ptr.vmem [resolvable:$true] %s42_s27 }
   0x9   :  { %48 = dma.hbm_to_vmem [thread:$0]  %s41_s26, 21248, %s43_s27, [#allocation5], %s10684_s20, %s10684_s20, %s10685_s21  }
   0xa   :  { %10679 = dma.done.wait [#allocation3], 256  }
   0xb   :  { %10680 = vsyncadd [#allocation3], 4294967040 }
   0xc   :  { %10681 = dma.done.wait [#allocation5], 21504  }
   0xd   :  { %10682 = vsyncadd [#allocation5], 4294945792  ;;  %v68_v0 = vld [vmem:[#allocation6 + $0x18] sm:$0xff]  ;;  %v67_v1 = vld [vmem:[#allocation6 + $0x10] sm:$0xff]  ;;  %vm71_vm0 = vcmask 261120   ;;  %s10688_s0 = smov 96  }
   0xe   :  { %96 = vmatpush.msra.mxu0 %v68_v0  ;;  %v66_v2 = vld [vmem:[#allocation6 + $0x8] sm:$0xff]  ;;  %v65_v3 = vld [vmem:[#allocation6] sm:$0xff]  ;;  %v63_v7 = vld [vmem:[#allocation4] sm:$0xff]  ;;  %s10689_s2 = smov 64   ;;  %s10690_s28 = smov 120   ;;  %vm223_vm1 = vcmask 64512  }
   0xf   :  { %v120_v4 = vld [vmem:[#allocation6 + $0x40] sm:$0xff]  ;;  %v62_v6 = vld [vmem:[#allocation2 + $0x8] sm:$0xff]  ;;  %v64_v8 = vld [vmem:[#allocation4 + $0x8] sm:$0xff]  ;;  %s10691_s29 = smov 88   ;;  %s10692_s30 = smov 56   ;;  %vm1611_vm14 = vcmask 523264  }
  0x10   :  { %97 = vmatpush.msra.mxu0 %v67_v1  ;;  %v61_v5 = vld [vmem:[#allocation2] sm:$0xff]  ;;  %147 = vmatpush.msra.mxu1 %v120_v4  ;;  %v119_v9 = vld [vmem:[#allocation6 + $0x38] sm:$0xff]  ;;  %v118_v10 = vld [vmem:[#allocation6 + $0x30] sm:$0xff]  ;;  %s10693_s4 = smov 112   ;;  %s10694_s5 = smov 80  }
  0x11   :  { %v117_v11 = vld [vmem:[#allocation6 + $0x28] sm:$0xff]  ;;  %v10093_v12 = vld [vmem:[#allocation6 + $0x20] ss:$0 sm:$0xff]  ;;  %v169_v27 = vld [vmem:[#allocation6 + $0x58] sm:$0xff]  ;;  %s10695_s6 = smov 48   ;;  %s10696_s7 = smov 72  }
  0x12   :  { %98 = vmatpush.msra.mxu0 %v66_v2  ;;  %148 = vmatpush.msra.mxu1 %v119_v9  ;;  %v171_v13 = vld [vmem:[#allocation6 + $0x68] sm:$0xff]  ;;  %v170_v26 = vld [vmem:[#allocation6 + $0x60] sm:$0xff]  ;;  %v168_v28 = vld [vmem:[#allocation6 + $0x50] sm:$0xff]  ;;  %s10697_s8 = smov 104   ;;  %s10698_s9 = smov 40  }
  0x13   :  { %203 = vmatpush.msra.mxu2 %v171_v13  ;;  %v10094_v29 = vld [vmem:[#allocation6 + $0x48] ss:$0 sm:$0xff]  ;;  %v10095_v43 = vld [vmem:[#allocation6 + $0x70] ss:$0 sm:$0xff]  ;;  %s10699_s10 = smov 32   ;;  %s10700_s11 = smov 24  }
  0x14   :  { %99 = vmatpush.msra.mxu0 %v65_v3  ;;  %149 = vmatpush.msra.mxu1 %v118_v10  ;;  %s10701_s12 = smov 16  }
  0x15   :  { %9503 = vmatmul.msk.f32.vlgmr.msra.gmra.mxu0 %vm71_vm0, %v61_v5  ;;  %204 = vmatpush.msra.mxu2 %v170_v26 }
  0x16   :  { %150 = vmatpush.msra.mxu1 %v117_v11 }
  0x17   :  { %205 = vmatpush.msra.mxu2 %v169_v27 }
  0x19   :  { %206 = vmatpush.msra.mxu2 %v168_v28 }
  0x1d   :  { %9504 = vmatmul.msk.f32.gmra.mxu0 %vm71_vm0, %v62_v6 }
  0x25   :  { %9505 = vmatmul.msk.f32.gmra.mxu0 %vm71_vm0, %v63_v7 }
  0x2d   :  { %9506 = vmatmul.msk.f32.gmra.mxu0 %vm71_vm0, %v64_v8 }
  0x92   :  { %v101_v14 = vpop.f32.mrf.mxu0 }
  0x93   :  { %v102_v15 = vadd.f32 %v10093_v12, %v101_v14 }
  0x95   :  { %v113_v16 = vmax.f32 %v102_v15, 0.0 }
  0x97   :  { %9507 = vmatmul.msk.f32.vlgmr.msra.gmra.mxu1 %vm71_vm0, %v113_v16 }
  0x9a   :  { %v104_v17 = vpop.f32.mrf.mxu0 }
  0x9b   :  { %v105_v18 = vadd.f32 %v10093_v12, %v104_v17 }
  0x9d   :  { %v114_v19 = vmax.f32 %v105_v18, 0.0 }
  0x9f   :  { %9508 = vmatmul.msk.f32.gmra.mxu1 %vm71_vm0, %v114_v19 }
  0xa2   :  { %v107_v20 = vpop.f32.mrf.mxu0 }
  0xa3   :  { %v108_v21 = vadd.f32 %v10093_v12, %v107_v20 }
  0xa5   :  { %v115_v22 = vmax.f32 %v108_v21, 0.0 }
  0xa7   :  { %9509 = vmatmul.msk.f32.gmra.mxu1 %vm71_vm0, %v115_v22 }
  0xaa   :  { %v110_v23 = vpop.f32.mrf.mxu0 }
  0xab   :  { %v111_v24 = vadd.f32 %v10093_v12, %v110_v23 }
  0xad   :  { %v116_v25 = vmax.f32 %v111_v24, 0.0 }
  0xaf   :  { %9510 = vmatmul.msk.f32.gmra.mxu1 %vm71_vm0, %v116_v25 }
 0x114   :  { %v152_v30 = vpop.f32.mrf.mxu1 }
 0x115   :  { %v153_v31 = vadd.f32 %v10094_v29, %v152_v30 }
 0x117   :  { %v10743_v32 = vmax.f32 %v153_v31, 0.0 }
 0x119   :  { %9511 = vmatmul.msk.f32.vlgmr.msra.gmra.mxu2 %vm71_vm0, %v10743_v32 }
 0x11c   :  { %v155_v33 = vpop.f32.mrf.mxu1 }
 0x11d   :  { %v156_v34 = vadd.f32 %v10094_v29, %v155_v33 }
 0x11f   :  { %v10747_v35 = vmax.f32 %v156_v34, 0.0 }
 0x121   :  { %9512 = vmatmul.msk.f32.gmra.mxu2 %vm71_vm0, %v10747_v35 }
 0x124   :  { %v158_v36 = vpop.f32.mrf.mxu1 }
 0x125   :  { %v159_v37 = vadd.f32 %v10094_v29, %v158_v36 }
 0x127   :  { %v10751_v38 = vmax.f32 %v159_v37, 0.0 }
 0x129   :  { %9513 = vmatmul.msk.f32.gmra.mxu2 %vm71_vm0, %v10751_v38 }
 0x12c   :  { %v161_v39 = vpop.f32.mrf.mxu1 }
 0x12d   :  { %v162_v40 = vadd.f32 %v10094_v29, %v161_v39 }
 0x12f   :  { %v10755_v41 = vmax.f32 %v162_v40, 0.0 }
 0x131   :  { %9514 = vmatmul.msk.f32.gmra.mxu2 %vm71_vm0, %v10755_v41 }
 0x19c   :  { %v208_v42 = vpop.f32.mrf.mxu2 }
 0x19d   :  { %v10767_v49 = vadd.f32 %v10095_v43, %v208_v42 }
 0x1a4   :  { %v211_v44 = vpop.f32.mrf.mxu2 }
 0x1a5   :  { %v10759_v45 = vadd.f32 %v10095_v43, %v211_v44 }
 0x1a7   :  { %249 = vrot.lane.b32.xlu0 %v10759_v45, %s10688_s0 }
 0x1ac   :  { %v214_v46 = vpop.f32.mrf.mxu2 }
 0x1ad   :  { %v10763_v47 = vadd.f32 %v10095_v43, %v214_v46 }
 0x1af   :  { %276 = vrot.lane.b32.xlu0 %v10763_v47, %s10688_s0 }
 0x1b4   :  { %v217_v48 = vpop.f32.mrf.mxu2 }
 0x1b5   :  { %v10769_v50 = vadd.f32 %v10095_v43, %v217_v48 }
 0x1b7   :  { %303 = vrot.lane.b32.xlu1 %v10769_v50, %s10688_s0  ;;  %221 = vrot.lane.b32.xlu0 %v10767_v49, %s10688_s0  ;;  %v9978_v51 = vpack.i.bf16 %v10763_v47, %v10769_v50  ;;  %v9983_v52 = vpack.i.bf16 %v10769_v50, %v10763_v47 }
 0x1bf   :  { %9979 = vrot.lane.b32.xlu0 %v9978_v51, %s10689_s2 }
 0x1c7   :  { %561 = vrot.lane.b32.xlu0 %v10769_v50, %s10690_s28 }
 0x1cf   :  { %535 = vrot.lane.b32.xlu0 %v10763_v47, %s10691_s29 }
 0x1d7   :  { %533 = vrot.lane.b32.xlu0 %v10763_v47, %s10690_s28 }
 0x1df   :  { %9984 = vrot.lane.b32.xlu0 %v9983_v52, %s10692_s30 }
 0x1e7   :  { %819 = vrot.lane.b32.xlu0 %v10767_v49, %s10693_s4 }
 0x219   :  { %v250_v53 = vpop.permute.xlu0 %249 }
 0x21a   :  { %9517 = vmatpush.xpose.msk.msra.mxu3 %vm223_vm1, %v250_v53 }
 0x21d   :  { %9518 = vmatmul.msk.f32.vlgmr.msra.gmra.mxu3 %vm223_vm1, %v10759_v45 }
 0x221   :  { %v277_v54 = vpop.permute.xlu0 %276 }
 0x222   :  { %9519 = vmatpush.xpose.msk.msrb.mxu3 %vm223_vm1, %v277_v54 }
 0x225   :  { %9520 = vmatmul.msk.f32.vlgmr.msrb.gmra.mxu3 %vm223_vm1, %v10763_v47 }
 0x229   :  { %v304_v55 = vpop.permute.xlu1 %303  ;;  %v222_v56 = vpop.permute.xlu0 %221 }
 0x22a   :  { %9515 = vmatpush.xpose.msk.msrb.mxu1 %vm223_vm1, %v222_v56  ;;  %9521 = vmatpush.xpose.msk.msra.mxu3 %vm223_vm1, %v304_v55 }
 0x22d   :  { %9516 = vmatmul.msk.f32.vlgmr.msrb.gmra.mxu1 %vm223_vm1, %v10767_v49  ;;  %9522 = vmatmul.msk.f32.vlgmr.msra.gmra.mxu3 %vm223_vm1, %v10769_v50 }
 0x231   :  { %v9980_v57 = vpop.permute.xlu0 %9979 }
 0x232   :  { %v9982_v58 = vunpack.i.h.bf16 %v9980_v57  ;;  %v9981_v59 = vunpack.i.l.bf16 %v9980_v57 }
 0x234   :  { %446 = vmatpush.msra.mxu1 %v9982_v58  ;;  %472 = vmatpush.msrb.mxu2 %v9981_v59 }
 0x239   :  { %v562_v60 = vpop.permute.xlu0 %561 }
 0x241   :  { %v536_v61 = vpop.permute.xlu0 %535 }
 0x242   :  { %9531 = vmatpush.xpose.msk.msrb.mxu1 %vm223_vm1, %v536_v61 }
 0x249   :  { %v534_v14 = vpop.permute.xlu0 %533 }
 0x251   :  { %v9985_v16 = vpop.permute.xlu0 %9984 }
 0x252   :  { %v9986_v20 = vunpack.i.l.bf16 %v9985_v16  ;;  %v9987_v24 = vunpack.i.h.bf16 %v9985_v16 }
 0x259   :  { %v820_v53 = vpop.permute.xlu0 %819 }
 0x2a0   :  { %v272_v62 = vpop.f32.mrf.mxu3 }
 0x2a1   :  { %v332_v13 = vsel %vm223_vm1, %v272_v62, -inf }
 0x2a8   :  { %v299_v63 = vpop.f32.mrf.mxu3 }
 0x2a9   :  { %v335_v0 = vsel %vm223_vm1, %v299_v63, -inf }
 0x2aa   :  { %336 = vmax.xlane.f32.xlu2 %v335_v0  ;;  %v245_v25 = vpop.f32.mrf.mxu1 }
 0x2ab   :  { %v329_v26 = vsel %vm223_vm1, %v245_v25, -inf }
 0x2b0   :  { %v326_v1 = vpop.f32.mrf.mxu3 }
 0x2b1   :  { %v338_v2 = vsel %vm223_vm1, %v326_v1, -inf }
 0x2b2   :  { %339 = vmax.xlane.f32.xlu1 %v338_v2 }
 0x31d   :  { %v337_v3 = vpop.xlane.xlu2 %336 }
 0x31e   :  { %v343_v4 = vsub.f32 %v299_v63, %v337_v3 }
 0x320   :  { %v349_v5 = vmul.f32 1.442695, %v343_v4 }
 0x322   :  { %10139 = vpow2.f32 %v349_v5 }
 0x325   :  { %v340_v6 = vpop.xlane.xlu1 %339 }
 0x326   :  { %v344_v7 = vsub.f32 %v326_v1, %v340_v6 }
 0x328   :  { %v10140_v8 = vpop.eup %10139  ;;  %v351_v9 = vmul.f32 1.442695, %v344_v7 }
 0x329   :  { %v359_v10 = vsel %vm223_vm1, %v10140_v8, 0.0 }
 0x32a   :  { %10141 = vpow2.f32 %v351_v9  ;;  %360 = vadd.xlane.f32.xlu2 %v359_v10 }
 0x330   :  { %v10142_v11 = vpop.eup %10141 }
 0x331   :  { %v362_v12 = vsel %vm223_vm1, %v10142_v11, 0.0 }
 0x332   :  { %363 = vadd.xlane.f32.xlu2 %v362_v12 }
 0x34a   :  { %563 = vrot.lane.b32.xlu2 %v10769_v50, %s10691_s29 }
 0x373   :  { %333 = vmax.xlane.f32.xlu2 %v332_v13 }
 0x38b   :  { %507 = vrot.lane.b32.xlu2 %v10759_v45, %s10691_s29 }
 0x393   :  { %821 = vrot.lane.b32.xlu2 %v10767_v49, %s10694_s5 }
 0x39b   :  { %849 = vrot.lane.b32.xlu2 %v10759_v45, %s10694_s5 }
 0x39d   :  { %v361_v15 = vpop.xlane.xlu2 %360 }
 0x39e   :  { %10143 = vrcp.f32 %v361_v15 }
 0x3a3   :  { %847 = vrot.lane.b32.xlu2 %v10759_v45, %s10693_s4 }
 0x3a4   :  { %v10144_v17 = vpop.eup %10143 }
 0x3a5   :  { %v371_v18 = vmul.f32 %v10144_v17, %v10140_v8  ;;  %v364_v19 = vpop.xlane.xlu2 %363  ;;  %v10856_v8 = vpack.i.bf16 %v10759_v45, %v10767_v49 }
 0x3a6   :  { %10145 = vrcp.f32 %v364_v19 }
 0x3a7   :  { %9525 = vmatmul.msk.f32.vlgmr.msra.gmra.mxu1 %vm223_vm1, %v371_v18 }
 0x3a8   :  { %706 = vmatpush.msra.mxu1 %v9986_v20 }
 0x3ab   :  { %905 = vrot.lane.b32.xlu2 %v10769_v50, %s10694_s5 }
 0x3ac   :  { %v10146_v21 = vpop.eup %10145 }
 0x3ad   :  { %v564_v22 = vpop.permute.xlu2 %563  ;;  %v372_v23 = vmul.f32 %v10146_v21, %v10142_v11 }
 0x3ae   :  { %9533 = vmatpush.xpose.msk.msra.mxu2 %vm223_vm1, %v564_v22 }
 0x3af   :  { %9526 = vmatmul.msk.f32.vlgmr.msrb.gmra.mxu2 %vm223_vm1, %v372_v23  ;;  %9532 = vmatmul.msk.f32.vlgmr.msrb.gmra.mxu1 %vm223_vm1, %v534_v14 }
 0x3b2   :  { %732 = vmatpush.msrb.mxu2 %v9987_v24 }
 0x3b7   :  { %9534 = vmatmul.msk.f32.vlgmr.msra.gmra.mxu2 %vm223_vm1, %v562_v60 }
 0x3d4   :  { %330 = vmax.xlane.f32.xlu2 %v329_v26 }
 0x3e6   :  { %v334_v27 = vpop.xlane.xlu2 %333 }
 0x3e7   :  { %v342_v28 = vsub.f32 %v272_v62, %v334_v27 }
 0x3e9   :  { %v347_v29 = vmul.f32 1.442695, %v342_v28 }
 0x3eb   :  { %10147 = vpow2.f32 %v347_v29 }
 0x3ee   :  { %v508_v30 = vpop.permute.xlu2 %507 }
 0x3f1   :  { %v10148_v31 = vpop.eup %10147 }
 0x3f2   :  { %v356_v33 = vsel %vm223_vm1, %v10148_v31, 0.0 }
 0x3f3   :  { %357 = vadd.xlane.f32.xlu1 %v356_v33 }
 0x3f6   :  { %v822_v34 = vpop.permute.xlu2 %821 }
 0x3f7   :  { %9547 = vmatpush.xpose.msk.msrb.mxu1 %vm223_vm1, %v822_v34 }
 0x3fe   :  { %v850_v36 = vpop.permute.xlu2 %849 }
 0x3ff   :  { %9549 = vmatpush.xpose.msk.msra.mxu2 %vm223_vm1, %v850_v36 }
 0x406   :  { %v848_v1 = vpop.permute.xlu2 %847 }
 0x40c   :  { %399 = vrot.lane.b32.xlu1 %v10759_v45, %s10689_s2 }
 0x40e   :  { %v906_v2 = vpop.permute.xlu2 %905 }
 0x424   :  { %v10830_v37 = vpop.f32.mrf.mxu1 }
 0x42c   :  { %v558_v39 = vpop.f32.mrf.mxu1 }
 0x42d   :  { %v595_v42 = vsel %vm223_vm1, %v558_v39, -inf }
 0x432   :  { %v10832_v40 = vpop.f32.mrf.mxu2 }
 0x436   :  { %596 = vmax.xlane.f32.xlu1 %v595_v42 }
 0x43a   :  { %v586_v43 = vpop.f32.mrf.mxu2 }
 0x43b   :  { %v598_v44 = vsel %vm223_vm1, %v586_v43, -inf }
 0x43c   :  { %599 = vmax.xlane.f32.xlu0 %v598_v44 }
 0x447   :  { %v331_v3 = vpop.xlane.xlu2 %330 }
 0x448   :  { %v341_v4 = vsub.f32 %v245_v25, %v331_v3 }
 0x44a   :  { %v345_v5 = vmul.f32 1.442695, %v341_v4 }
 0x44f   :  { %505 = vrot.lane.b32.xlu1 %v10759_v45, %s10690_s28 }
 0x450   :  { %877 = vrot.lane.b32.xlu0 %v10763_v47, %s10694_s5 }
 0x466   :  { %v358_v46 = vpop.xlane.xlu1 %357 }
 0x467   :  { %10149 = vrcp.f32 %v358_v46 }
 0x46d   :  { %v10150_v48 = vpop.eup %10149 }
 0x46e   :  { %v370_v52 = vmul.f32 %v10150_v48, %v10148_v31 }
 0x47e   :  { %v400_v51 = vpop.permute.xlu1 %399 }
 0x47f   :  { %420 = vmatpush.msrb.mxu0 %v400_v51 }
 0x480   :  { %9524 = vmatmul.msk.f32.vlgmr.msrb.gmra.mxu0 %vm223_vm1, %v370_v52 }
 0x481   :  { %9529 = vmatpush.xpose.msk.msra.mxu0 %vm223_vm1, %v508_v30 }
 0x4a9   :  { %v597_v54 = vpop.xlane.xlu1 %596 }
 0x4aa   :  { %v603_v55 = vsub.f32 %v558_v39, %v597_v54 }
 0x4ac   :  { %v609_v56 = vmul.f32 1.442695, %v603_v55 }
 0x4ae   :  { %10151 = vpow2.f32 %v609_v56  ;;  %v173_v56 = vld [vmem:[#allocation6 + $0x78] sm:$0xff] }
 0x4af   :  { %v600_v57 = vpop.xlane.xlu0 %599 }
 0x4b0   :  { %v604_v58 = vsub.f32 %v586_v43, %v600_v57 }
 0x4b2   :  { %v611_v59 = vmul.f32 1.442695, %v604_v58 }
 0x4b4   :  { %v10152_v60 = vpop.eup %10151  ;;  %10153 = vpow2.f32 %v611_v59 }
 0x4b5   :  { %v619_v61 = vsel %vm223_vm1, %v10152_v60, 0.0  ;;  %10155 = vpow2.f32 %v345_v5 }
 0x4b6   :  { %620 = vadd.xlane.f32.xlu0 %v619_v61 }
 0x4ba   :  { %v10154_v62 = vpop.eup %10153 }
 0x4bb   :  { %v622_v63 = vsel %vm223_vm1, %v10154_v62, 0.0  ;;  %v10156_v6 = vpop.eup %10155 }
 0x4bc   :  { %623 = vadd.xlane.f32.xlu1 %v622_v63  ;;  %v353_v7 = vsel %vm223_vm1, %v10156_v6, 0.0 }
 0x4c1   :  { %v506_v0 = vpop.permute.xlu1 %505 }
 0x4c2   :  { %9530 = vmatmul.msk.f32.vlgmr.msra.gmra.mxu0 %vm223_vm1, %v506_v0  ;;  %v878_v9 = vpop.permute.xlu0 %877 }
 0x4ca   :  { %903 = vrot.lane.b32.xlu0 %v10769_v50, %s10693_s4 }
 0x4d5   :  { %875 = vrot.lane.b32.xlu1 %v10763_v47, %s10693_s4 }
 0x4dd   :  { %373 = vrot.lane.b32.xlu1 %v10767_v49, %s10689_s2 }
 0x4f4   :  { %354 = vadd.xlane.f32.xlu0 %v353_v7 }
 0x4fd   :  { %v10866_v15 = vpop.f32.mrf.mxu0 }
 0x508   :  { %479 = vrot.lane.b32.xlu0 %v10767_v49, %s10691_s29 }
 0x510   :  { %9989 = vrot.lane.b32.xlu0 %v10856_v8, %s10695_s6 }
 0x518   :  { %1154 = vrot.lane.b32.xlu0 %v10759_v45, %s10696_s7 }
 0x520   :  { %1124 = vrot.lane.b32.xlu0 %v10767_v49, %s10697_s8 }
 0x529   :  { %v621_v10 = vpop.xlane.xlu0 %620 }
 0x52a   :  { %10157 = vrcp.f32 %v621_v10 }
 0x52f   :  { %v624_v11 = vpop.xlane.xlu1 %623 }
 0x530   :  { %v10158_v12 = vpop.eup %10157  ;;  %10159 = vrcp.f32 %v624_v11 }
 0x531   :  { %v631_v13 = vmul.f32 %v10158_v12, %v10152_v60 }
 0x533   :  { %9537 = vmatmul.msk.f32.vlgmr.msra.gmra.mxu1 %vm223_vm1, %v631_v13 }
 0x534   :  { %9551 = vmatpush.xpose.msk.msra.mxu1 %vm223_vm1, %v878_v9 }
 0x536   :  { %v10160_v14 = vpop.eup %10159 }
 0x537   :  { %v632_v16 = vmul.f32 %v10160_v14, %v10154_v62 }
 0x539   :  { %9538 = vmatmul.msk.f32.vlgmr.msrb.gmra.mxu2 %vm223_vm1, %v632_v16 }
 0x53a   :  { %9553 = vmatpush.xpose.msk.msrb.mxu2 %vm223_vm1, %v906_v2 }
 0x53b   :  { %9548 = vmatmul.msk.f32.vlgmr.msrb.gmra.mxu1 %vm223_vm1, %v820_v53 }
 0x53c   :  { %v904_v20 = vpop.permute.xlu0 %903 }
 0x53f   :  { %v530_v17 = vpop.f32.mrf.mxu0 }
 0x540   :  { %v592_v18 = vsel %vm223_vm1, %v530_v17, -inf }
 0x541   :  { %593 = vmax.xlane.f32.xlu1 %v592_v18  ;;  %9550 = vmatmul.msk.f32.vlgmr.msra.gmra.mxu2 %vm223_vm1, %v848_v1 }
 0x547   :  { %v876_v19 = vpop.permute.xlu1 %875 }
 0x548   :  { %9552 = vmatmul.msk.f32.vlgmr.msra.gmra.mxu1 %vm223_vm1, %v876_v19 }
 0x549   :  { %9554 = vmatmul.msk.f32.vlgmr.msrb.gmra.mxu2 %vm223_vm1, %v904_v20 }
 0x54f   :  { %v374_v21 = vpop.permute.xlu1 %373 }
 0x550   :  { %394 = vmatpush.msrb.mxu3 %v374_v21 }
 0x55a   :  { %659 = vrot.lane.b32.xlu1 %v10759_v45, %s10692_s30 }
 0x562   :  { %1027 = vrot.lane.b32.xlu1 %v10763_v47, %s10695_s6 }
 0x567   :  { %v355_v22 = vpop.xlane.xlu0 %354 }
 0x568   :  { %10161 = vrcp.f32 %v355_v22 }
 0x56a   :  { %1182 = vrot.lane.b32.xlu1 %v10763_v47, %s10696_s7 }
 0x56e   :  { %v10162_v23 = vpop.eup %10161 }
 0x56f   :  { %v369_v24 = vmul.f32 %v10162_v23, %v10156_v6 }
 0x571   :  { %9523 = vmatmul.msk.f32.vlgmr.msrb.gmra.mxu3 %vm223_vm1, %v369_v24 }
 0x57a   :  { %v480_v25 = vpop.permute.xlu0 %479 }
 0x57b   :  { %9527 = vmatpush.xpose.msk.msra.mxu3 %vm223_vm1, %v480_v25 }
 0x582   :  { %v9990_v26 = vpop.permute.xlu0 %9989 }
 0x583   :  { %v9992_v27 = vunpack.i.h.bf16 %v9990_v26  ;;  %v9991_v28 = vunpack.i.l.bf16 %v9990_v26 }
 0x585   :  { %996 = vmatpush.msrb.mxu1 %v9991_v28  ;;  %1022 = vmatpush.msra.mxu2 %v9992_v27 }
 0x58a   :  { %v10898_v57 = vpop.permute.xlu0 %1154 }
 0x592   :  { %v1125_v58 = vpop.permute.xlu0 %1124 }
 0x5b0   :  { %v10894_v51 = vpop.f32.mrf.mxu1 }
 0x5b4   :  { %v594_v29 = vpop.xlane.xlu1 %593 }
 0x5b5   :  { %v602_v30 = vsub.f32 %v530_v17, %v594_v29 }
 0x5b7   :  { %v607_v31 = vmul.f32 1.442695, %v602_v30 }
 0x5b8   :  { %v844_v52 = vpop.f32.mrf.mxu1 }
 0x5b9   :  { %10163 = vpow2.f32 %v607_v31  ;;  %v931_v53 = vsel %vm223_vm1, %v844_v52, -inf }
 0x5bc   :  { %v10883_v33 = vpop.f32.mrf.mxu2 }
 0x5bf   :  { %v10164_v34 = vpop.eup %10163 }
 0x5c0   :  { %v616_v36 = vsel %vm223_vm1, %v10164_v34, 0.0 }
 0x5c1   :  { %617 = vadd.xlane.f32.xlu2 %v616_v36 }
 0x5c4   :  { %v872_v39 = vpop.f32.mrf.mxu2 }
 0x5c5   :  { %v934_v42 = vsel %vm223_vm1, %v872_v39, -inf  ;;  %v900_v54 = vpop.f32.mrf.mxu1 }
 0x5c6   :  { %935 = vmax.xlane.f32.xlu0 %v934_v42  ;;  %v937_v55 = vsel %vm223_vm1, %v900_v54, -inf }
 0x5cc   :  { %v660_v43 = vpop.permute.xlu1 %659  ;;  %v928_v44 = vpop.f32.mrf.mxu2 }
 0x5cd   :  { %680 = vmatpush.msrb.mxu0 %v660_v43  ;;  %v940_v46 = vsel %vm223_vm1, %v928_v44, -inf }
 0x5ce   :  { %941 = vmax.xlane.f32.xlu0 %v940_v46 }
 0x5cf   :  { %805 = vmatpush.msra.mxu0 %v173_v56 }
 0x5d4   :  { %v1028_v48 = vpop.permute.xlu1 %1027 }
 0x5d5   :  { %1048 = vmatpush.msra.mxu1 %v1028_v48 }
 0x5d9   :  { %477 = vrot.lane.b32.xlu2 %v10767_v49, %s10690_s28 }
 0x5dc   :  { %v1183_v30 = vpop.permute.xlu1 %1182 }
 0x5e1   :  { %1126 = vrot.lane.b32.xlu2 %v10767_v49, %s10696_s7 }
 0x5e2   :  { %1053 = vrot.lane.b32.xlu0 %v10769_v50, %s10695_s6 }
 0x5f4   :  { %v396_v2 = vpop.f32.mrf.mxu3 }
 0x60a   :  { %932 = vmax.xlane.f32.xlu2 %v931_v53 }
 0x612   :  { %938 = vmax.xlane.f32.xlu2 %v937_v55 }
 0x62a   :  { %1152 = vrot.lane.b32.xlu2 %v10759_v45, %s10697_s8 }
 0x634   :  { %v618_v59 = vpop.xlane.xlu2 %617 }
 0x635   :  { %10165 = vrcp.f32 %v618_v59 }
 0x639   :  { %v936_v62 = vpop.xlane.xlu0 %935 }
 0x63a   :  { %v944_v0 = vsub.f32 %v872_v39, %v936_v62 }
 0x63b   :  { %v10166_v60 = vpop.eup %10165 }
 0x63c   :  { %v630_v61 = vmul.f32 %v10166_v60, %v10164_v34  ;;  %v478_v63 = vpop.permute.xlu2 %477  ;;  %v949_v3 = vmul.f32 1.442695, %v944_v0 }
 0x63d   :  { %9528 = vmatmul.msk.f32.vlgmr.msra.gmra.mxu3 %vm223_vm1, %v478_v63 }
 0x63e   :  { %9536 = vmatmul.msk.f32.vlgmr.msrb.gmra.mxu0 %vm223_vm1, %v630_v61  ;;  %10167 = vpow2.f32 %v949_v3 }
 0x641   :  { %v942_v4 = vpop.xlane.xlu0 %941 }
 0x642   :  { %v946_v45 = vsub.f32 %v928_v44, %v942_v4 }
 0x644   :  { %v1127_v1 = vpop.permute.xlu2 %1126  ;;  %v953_v5 = vmul.f32 1.442695, %v946_v45  ;;  %v10168_v6 = vpop.eup %10167 }
 0x645   :  { %9563 = vmatpush.xpose.msk.msrb.mxu0 %vm223_vm1, %v1127_v1  ;;  %v958_v7 = vsel %vm223_vm1, %v10168_v6, 0.0 }
 0x646   :  { %9543 = vmatmul.msk.f32.vlgmr.msra.gmra.mxu0 %vm223_vm1, %v396_v2  ;;  %10169 = vpow2.f32 %v953_v5 }
 0x64c   :  { %v10170_v10 = vpop.eup %10169 }
 0x64d   :  { %v964_v11 = vsel %vm223_vm1, %v10170_v10, 0.0 }
 0x64e   :  { %9544 = vmatmul.msk.f32.gmra.mxu0 %vm223_vm1, %v10866_v15 }
 0x653   :  { %959 = vadd.xlane.f32.xlu2 %v958_v7 }
 0x654   :  { %v1054_v9 = vpop.permute.xlu0 %1053 }
 0x655   :  { %1074 = vmatpush.msrb.mxu2 %v1054_v9 }
 0x656   :  { %9545 = vmatmul.msk.f32.gmra.mxu0 %vm223_vm1, %v10830_v37 }
 0x65b   :  { %965 = vadd.xlane.f32.xlu2 %v964_v11 }
 0x65e   :  { %9546 = vmatmul.msk.f32.gmra.mxu0 %vm223_vm1, %v10832_v40 }
 0x666   :  { %9564 = vmatmul.msk.f32.vlgmr.msrb.gmra.mxu0 %vm223_vm1, %v1125_v58 }
 0x673   :  { %1210 = vrot.lane.b32.xlu2 %v10769_v50, %s10696_s7 }
 0x67d   :  { %v933_v12 = vpop.xlane.xlu2 %932 }
 0x67e   :  { %v943_v13 = vsub.f32 %v844_v52, %v933_v12 }
 0x680   :  { %v947_v14 = vmul.f32 1.442695, %v943_v13 }
 0x682   :  { %10171 = vpow2.f32 %v947_v14 }
 0x685   :  { %v939_v15 = vpop.xlane.xlu2 %938 }
 0x686   :  { %v945_v16 = vsub.f32 %v900_v54, %v939_v15 }
 0x688   :  { %v10172_v17 = vpop.eup %10171  ;;  %v951_v37 = vmul.f32 1.442695, %v945_v16 }
 0x689   :  { %v955_v18 = vsel %vm223_vm1, %v10172_v17, 0.0 }
 0x68a   :  { %10173 = vpow2.f32 %v951_v37  ;;  %956 = vadd.xlane.f32.xlu0 %v955_v18 }
 0x68d   :  { %v1153_v21 = vpop.permute.xlu2 %1152 }
 0x690   :  { %v10174_v19 = vpop.eup %10173 }
 0x691   :  { %v961_v40 = vsel %vm223_vm1, %v10174_v19, 0.0 }
 0x692   :  { %962 = vadd.xlane.f32.xlu1 %v961_v40 }
 0x69e   :  { %1180 = vrot.lane.b32.xlu0 %v10763_v47, %s10697_s8 }
 0x6ab   :  { %1208 = vrot.lane.b32.xlu1 %v10769_v50, %s10697_s8 }
 0x6bb   :  { %v10923_v20 = vpop.f32.mrf.mxu0 }
 0x6c0   :  { %v502_v23 = vpop.f32.mrf.mxu3 }
 0x6c1   :  { %v589_v25 = vsel %vm223_vm1, %v502_v23, -inf }
 0x6c3   :  { %v10925_v22 = vpop.f32.mrf.mxu0 }
 0x6c6   :  { %v960_v24 = vpop.xlane.xlu2 %959 }
 0x6c7   :  { %10175 = vrcp.f32 %v960_v24 }
 0x6c8   :  { %590 = vmax.xlane.f32.xlu0 %v589_v25 }
 0x6cb   :  { %v10928_v26 = vpop.f32.mrf.mxu0 }
 0x6cd   :  { %v10176_v27 = vpop.eup %10175 }
 0x6ce   :  { %v972_v28 = vmul.f32 %v10176_v27, %v10168_v6  ;;  %v966_v29 = vpop.xlane.xlu2 %965 }
 0x6cf   :  { %10177 = vrcp.f32 %v966_v29 }
 0x6d0   :  { %9556 = vmatmul.msk.f32.vlgmr.msra.gmra.mxu2 %vm223_vm1, %v972_v28 }
 0x6d1   :  { %9567 = vmatpush.xpose.msk.msra.mxu2 %vm223_vm1, %v1183_v30 }
 0x6d3   :  { %v10932_v31 = vpop.f32.mrf.mxu0 }
 0x6d5   :  { %v10178_v34 = vpop.eup %10177 }
 0x6d6   :  { %v974_v36 = vmul.f32 %v10178_v34, %v10170_v10  ;;  %v1211_v39 = vpop.permute.xlu2 %1210 }
 0x6d7   :  { %9569 = vmatpush.xpose.msk.msra.mxu0 %vm223_vm1, %v1211_v39 }
 0x6d8   :  { %9558 = vmatmul.msk.f32.vlgmr.msrb.gmra.mxu2 %vm223_vm1, %v974_v36 }
 0x6db   :  { %v10936_v42 = vpop.f32.mrf.mxu0 }
 0x6e3   :  { %v1149_v43 = vpop.f32.mrf.mxu0 }
 0x6e4   :  { %v1236_v44 = vsel %vm223_vm1, %v1149_v43, -inf }
 0x6e5   :  { %1237 = vmax.xlane.f32.xlu2 %v1236_v44 }
 0x6fd   :  { %v957_v46 = vpop.xlane.xlu0 %956 }
 0x6fe   :  { %10179 = vrcp.f32 %v957_v46 }
 0x704   :  { %v10180_v48 = vpop.eup %10179 }
 0x705   :  { %v971_v52 = vmul.f32 %v10180_v48, %v10172_v17  ;;  %v963_v53 = vpop.xlane.xlu1 %962 }
 0x706   :  { %10181 = vrcp.f32 %v963_v53  ;;  %v174_v53 = vld [vmem:[#allocation6 + $0x80] sm:$0xff] }
 0x707   :  { %9555 = vmatmul.msk.f32.vlgmr.msrb.gmra.mxu1 %vm223_vm1, %v971_v52  ;;  %v176_v52 = vld [vmem:[#allocation6 + $0x90] sm:$0xff] }
 0x708   :  { %9565 = vmatpush.xpose.msk.msrb.mxu1 %vm223_vm1, %v10898_v57 }
 0x70c   :  { %v10182_v54 = vpop.eup %10181 }
 0x70d   :  { %v973_v55 = vmul.f32 %v10182_v54, %v10174_v19 }
 0x70f   :  { %9557 = vmatmul.msk.f32.vlgmr.msra.gmra.mxu1 %vm223_vm1, %v973_v55 }
 0x710   :  { %v1181_v56 = vpop.permute.xlu0 %1180 }
 0x711   :  { %9568 = vmatmul.msk.f32.vlgmr.msra.gmra.mxu2 %vm223_vm1, %v1181_v56 }
 0x717   :  { %9566 = vmatmul.msk.f32.vlgmr.msrb.gmra.mxu1 %vm223_vm1, %v1153_v21 }
 0x71d   :  { %v1209_v58 = vpop.permute.xlu1 %1208 }
 0x71e   :  { %9570 = vmatmul.msk.f32.vlgmr.msra.gmra.mxu0 %vm223_vm1, %v1209_v58 }
 0x73b   :  { %v591_v59 = vpop.xlane.xlu0 %590 }
 0x73c   :  { %v601_v60 = vsub.f32 %v502_v23, %v591_v59 }
 0x73e   :  { %v605_v61 = vmul.f32 1.442695, %v601_v60 }
 0x740   :  { %10183 = vpow2.f32 %v605_v61 }
 0x746   :  { %v10184_v62 = vpop.eup %10183 }
 0x747   :  { %v613_v63 = vsel %vm223_vm1, %v10184_v62, 0.0 }
 0x748   :  { %614 = vadd.xlane.f32.xlu0 %v613_v63 }
 0x753   :  { %v10947_v57 = vpop.f32.mrf.mxu2 }
 0x758   :  { %v1238_v1 = vpop.xlane.xlu2 %1237 }
 0x759   :  { %v1248_v2 = vsub.f32 %v1149_v43, %v1238_v1 }
 0x75b   :  { %v10951_v3 = vpop.f32.mrf.mxu2  ;;  %v1252_v45 = vmul.f32 1.442695, %v1248_v2 }
 0x75d   :  { %10185 = vpow2.f32 %v1252_v45 }
 0x763   :  { %v10186_v10 = vpop.eup %10185 }
 0x764   :  { %v1260_v13 = vsel %vm223_vm1, %v10186_v10, 0.0 }
 0x784   :  { %v10949_v0 = vpop.f32.mrf.mxu1 }
 0x78c   :  { %v10953_v4 = vpop.f32.mrf.mxu1 }
 0x794   :  { %v1177_v5 = vpop.f32.mrf.mxu1  ;;  %v1205_v6 = vpop.f32.mrf.mxu2 }
 0x795   :  { %v1242_v7 = vsel %vm223_vm1, %v1205_v6, -inf  ;;  %v1239_v9 = vsel %vm223_vm1, %v1177_v5, -inf }
 0x796   :  { %1243 = vmax.xlane.f32.xlu2 %v1242_v7  ;;  %1240 = vmax.xlane.f32.xlu1 %v1239_v9 }
 0x79b   :  { %v1233_v11 = vpop.f32.mrf.mxu0 }
 0x79c   :  { %v1245_v12 = vsel %vm223_vm1, %v1233_v11, -inf }
 0x79d   :  { %1246 = vmax.xlane.f32.xlu0 %v1245_v12 }
 0x79e   :  { %1261 = vadd.xlane.f32.xlu2 %v1260_v13 }
 0x7af   :  { %633 = vrot.lane.b32.xlu1 %v10767_v49, %s10692_s30 }
 0x7b6   :  { %9994 = vrot.lane.b32.xlu2 %v10856_v8, %s10698_s9 }
 0x7bb   :  { %v615_v14 = vpop.xlane.xlu0 %614 }
 0x7be   :  { %1358 = vrot.lane.b32.xlu2 %v10769_v50, %s10698_s9 }
 0x809   :  { %v1244_v15 = vpop.xlane.xlu2 %1243  ;;  %v1241_v16 = vpop.xlane.xlu1 %1240 }
 0x80a   :  { %v1249_v17 = vsub.f32 %v1177_v5, %v1241_v16  ;;  %v1250_v37 = vsub.f32 %v1205_v6, %v1244_v15 }
 0x80c   :  { %v1254_v18 = vmul.f32 1.442695, %v1249_v17  ;;  %v1256_v19 = vmul.f32 1.442695, %v1250_v37 }
 0x80e   :  { %10187 = vpow2.f32 %v1254_v18 }
 0x810   :  { %v1247_v40 = vpop.xlane.xlu0 %1246 }
 0x811   :  { %v1251_v21 = vsub.f32 %v1233_v11, %v1247_v40  ;;  %v1262_v23 = vpop.xlane.xlu2 %1261 }
 0x812   :  { %10189 = vrcp.f32 %v1262_v23 }
 0x813   :  { %v1258_v49 = vmul.f32 1.442695, %v1251_v21  ;;  %10191 = vpow2.f32 %v1256_v19 }
 0x814   :  { %v10188_v24 = vpop.eup %10187 }
 0x815   :  { %10193 = vpow2.f32 %v1258_v49  ;;  %v1263_v8 = vsel %vm223_vm1, %v10188_v24, 0.0 }
 0x816   :  { %1264 = vadd.xlane.f32.xlu0 %v1263_v8  ;;  %10195 = vrcp.f32 %v615_v14 }
 0x818   :  { %v10190_v50 = vpop.eup %10189 }
 0x819   :  { %v9995_v25 = vpop.permute.xlu2 %9994  ;;  %v10192_v27 = vpop.eup %10191  ;;  %v1276_v34 = vmul.f32 %v10190_v50, %v10186_v10  ;;  %v10096_v10 = vld [vmem:[#allocation6 + $0x98] ss:$0 sm:$0xff] }
 0x81a   :  { %v9997_v28 = vunpack.i.h.bf16 %v9995_v25  ;;  %v9996_v29 = vunpack.i.l.bf16 %v9995_v25  ;;  %v1266_v43 = vsel %vm223_vm1, %v10192_v27, 0.0 }
 0x81b   :  { %v10194_v30 = vpop.eup %10193 }
 0x81c   :  { %1301 = vmatpush.msra.mxu1 %v9996_v29  ;;  %1327 = vmatpush.msrb.mxu2 %v9997_v28  ;;  %v1269_v36 = vsel %vm223_vm1, %v10194_v30, 0.0  ;;  %v10196_v39 = vpop.eup %10195 }
 0x81d   :  { %9571 = vmatmul.msk.f32.vlgmr.msra.gmra.mxu1 %vm223_vm1, %v1276_v34  ;;  %1270 = vadd.xlane.f32.xlu1 %v1269_v36  ;;  %v629_v44 = vmul.f32 %v10196_v39, %v10184_v62 }
 0x81e   :  { %1267 = vadd.xlane.f32.xlu0 %v1266_v43  ;;  %1411 = vmatpush.msra.mxu2 %v176_v52 }
 0x821   :  { %v1359_v46 = vpop.permute.xlu2 %1358  ;;  %v634_v48 = vpop.permute.xlu1 %633 }
 0x822   :  { %654 = vmatpush.msrb.mxu3 %v634_v48  ;;  %1379 = vmatpush.msrb.mxu1 %v1359_v46 }
 0x823   :  { %9535 = vmatmul.msk.f32.vlgmr.msrb.gmra.mxu3 %vm223_vm1, %v629_v44 }
 0x824   :  { %764 = vmatpush.msra.mxu3 %v174_v53 }
 0x832   :  { %1332 = vrot.lane.b32.xlu0 %v10763_v47, %s10698_s9  ;;  %v175_v47 = vld [vmem:[#allocation6 + $0x88] sm:$0xff] }
 0x833   :  { %1106 = vmatpush.msrb.mxu3 %v175_v47 }
 0x889   :  { %v1265_v54 = vpop.xlane.xlu0 %1264 }
 0x88a   :  { %10197 = vrcp.f32 %v1265_v54 }
 0x890   :  { %v1271_v55 = vpop.xlane.xlu1 %1270  ;;  %v10198_v56 = vpop.eup %10197 }
 0x891   :  { %10199 = vrcp.f32 %v1271_v55  ;;  %v1277_v58 = vmul.f32 %v10198_v56, %v10188_v24  ;;  %v1268_v61 = vpop.xlane.xlu0 %1267  ;;  %v1553_v55 = vld [vmem:[#allocation6 + $0xc8] sm:$0xff]  ;;  %v1552_v56 = vld [vmem:[#allocation6 + $0xc0] sm:$0xff] }
 0x892   :  { %10201 = vrcp.f32 %v1268_v61 }
 0x893   :  { %9572 = vmatmul.msk.f32.vlgmr.msrb.gmra.mxu2 %vm223_vm1, %v1277_v58  ;;  %v1551_v58 = vld [vmem:[#allocation6 + $0xb8] sm:$0xff] }
 0x897   :  { %v10200_v59 = vpop.eup %10199 }
 0x898   :  { %v1279_v60 = vmul.f32 %v10200_v59, %v10194_v30  ;;  %v10202_v63 = vpop.eup %10201 }
 0x899   :  { %v1278_v1 = vmul.f32 %v10202_v63, %v10192_v27 }
 0x89a   :  { %v1303_v62 = vpop.f32.mrf.mxu1  ;;  %9574 = vmatmul.msk.f32.vlgmr.msrb.gmra.mxu1 %vm223_vm1, %v1279_v60  ;;  %v1550_v60 = vld [vmem:[#allocation6 + $0xb0] sm:$0xff] }
 0x89b   :  { %9575 = vmatmul.msk.f32.vlgmr.msra.gmra.mxu2 %vm223_vm1, %v1303_v62 }
 0x8a4   :  { %v1333_v2 = vpop.permute.xlu0 %1332 }
 0x8a5   :  { %1353 = vmatpush.msrb.mxu0 %v1333_v2 }
 0x8a6   :  { %v656_v45 = vpop.f32.mrf.mxu3  ;;  %9573 = vmatmul.msk.f32.vlgmr.msrb.gmra.mxu0 %vm223_vm1, %v1278_v1 }
 0x8a7   :  { %9539 = vmatmul.msk.f32.vlgmr.msra.gmra.mxu3 %vm223_vm1, %v656_v45  ;;  %1589 = vmatpush.msra.mxu0 %v1553_v55 }
 0x8a9   :  { %1590 = vmatpush.msra.mxu0 %v1552_v56 }
 0x8ab   :  { %1591 = vmatpush.msra.mxu0 %v1551_v58 }
 0x8ad   :  { %1592 = vmatpush.msra.mxu0 %v1550_v60  ;;  %v1558_v60 = vld [vmem:[#allocation6 + $0xf0] sm:$0xff] }
 0x8af   :  { %9540 = vmatmul.msk.f32.gmra.mxu3 %vm223_vm1, %v10923_v20 }
 0x8b7   :  { %9541 = vmatmul.msk.f32.gmra.mxu3 %vm223_vm1, %v10894_v51 }
 0x8bf   :  { %9542 = vmatmul.msk.f32.gmra.mxu3 %vm223_vm1, %v10883_v33 }
 0x8c7   :  { %9559 = vmatmul.msk.f32.vlgmr.msrb.gmra.mxu3 %vm223_vm1, %v10949_v0 }
 0x8cf   :  { %9560 = vmatmul.msk.f32.gmra.mxu3 %vm223_vm1, %v10947_v57 }
 0x8d7   :  { %9561 = vmatmul.msk.f32.gmra.mxu3 %vm223_vm1, %v10953_v4 }
 0x8df   :  { %9562 = vmatmul.msk.f32.gmra.mxu3 %vm223_vm1, %v10951_v3 }
 0x916   :  { %v1329_v5 = vpop.f32.mrf.mxu2 }
 0x917   :  { %9576 = vmatmul.msk.f32.gmra.mxu2 %vm223_vm1, %v1329_v5  ;;  %v1381_v33 = vpop.f32.mrf.mxu1 }
 0x91e   :  { %v1413_v11 = vpop.f32.mrf.mxu2 }
 0x923   :  { %v1355_v20 = vpop.f32.mrf.mxu0 }
 0x924   :  { %9577 = vmatmul.msk.f32.gmra.mxu2 %vm223_vm1, %v1355_v20 }
 0x92a   :  { %v766_v51 = vpop.f32.mrf.mxu3 }
 0x92b   :  { %v808_v57 = vadd.f32 %v10925_v22, %v766_v51 }
 0x92c   :  { %9578 = vmatmul.msk.f32.gmra.mxu2 %vm223_vm1, %v1381_v33 }
 0x932   :  { %v769_v0 = vpop.f32.mrf.mxu3 }
 0x933   :  { %v811_v17 = vadd.f32 %v10928_v26, %v769_v0 }
 0x93a   :  { %v772_v6 = vpop.f32.mrf.mxu3 }
 0x93b   :  { %v814_v24 = vadd.f32 %v10932_v31, %v772_v6 }
 0x942   :  { %v775_v7 = vpop.f32.mrf.mxu3 }
 0x943   :  { %v817_v30 = vadd.f32 %v10936_v42, %v775_v7 }
 0x94a   :  { %v1108_v9 = vpop.f32.mrf.mxu3 }
 0x94b   :  { %v1120_v4 = vadd.f32 %v1108_v9, %v808_v57  ;;  %v11031_v57 = vld [vmem:[#allocation6 + $0xa0] ss:$0 sm:$0xff] }
 0x94d   :  { %v1425_v3 = vadd.f32 %v1413_v11, %v1120_v4 }
 0x94f   :  { %v1430_v12 = vadd.f32 %v10096_v10, %v1425_v3 }
 0x951   :  { %v10996_v13 = vadd.f32 %v1430_v12, %v10743_v32 }
 0x952   :  { %v1111_v22 = vpop.f32.mrf.mxu3 }
 0x953   :  { %v1440_v14 = vsel %vm71_vm0, %v10996_v13, 0.0  ;;  %v1456_v15 = vmul.f32 %v10996_v13, %v10996_v13  ;;  %v1121_v37 = vadd.f32 %v1111_v22, %v811_v17 }
 0x954   :  { %1441 = vadd.xlane.f32.xlu2 %v1440_v14 }
 0x955   :  { %v1460_v16 = vsel %vm71_vm0, %v1456_v15, 0.0 }
 0x956   :  { %1461 = vadd.xlane.f32.xlu0 %v1460_v16 }
 0x95a   :  { %v1114_v23 = vpop.f32.mrf.mxu3 }
 0x95b   :  { %v1122_v50 = vadd.f32 %v1114_v23, %v814_v24 }
 0x962   :  { %v1117_v29 = vpop.f32.mrf.mxu3 }
 0x963   :  { %v1123_v36 = vadd.f32 %v1117_v29, %v817_v30 }
 0x99a   :  { %v1416_v18 = vpop.f32.mrf.mxu2 }
 0x99b   :  { %v1426_v19 = vadd.f32 %v1416_v18, %v1121_v37 }
 0x99d   :  { %v1431_v40 = vadd.f32 %v10096_v10, %v1426_v19 }
 0x99f   :  { %v11005_v21 = vadd.f32 %v1431_v40, %v10747_v35 }
 0x9a1   :  { %v1443_v49 = vsel %vm71_vm0, %v11005_v21, 0.0  ;;  %v1457_v8 = vmul.f32 %v11005_v21, %v11005_v21 }
 0x9a2   :  { %1444 = vadd.xlane.f32.xlu1 %v1443_v49 }
 0x9a3   :  { %v1463_v27 = vsel %vm71_vm0, %v1457_v8, 0.0 }
 0x9a7   :  { %v1419_v25 = vpop.f32.mrf.mxu2 }
 0x9a8   :  { %v1427_v26 = vadd.f32 %v1419_v25, %v1122_v50 }
 0x9aa   :  { %v1432_v28 = vadd.f32 %v10096_v10, %v1427_v26  ;;  %1464 = vadd.xlane.f32.xlu1 %v1463_v27 }
 0x9ac   :  { %v11015_v34 = vadd.f32 %v1432_v28, %v10751_v38 }
 0x9ae   :  { %v1458_v31 = vmul.f32 %v11015_v34, %v11015_v34  ;;  %v1446_v46 = vsel %vm71_vm0, %v11015_v34, 0.0 }
 0x9af   :  { %v1422_v39 = vpop.f32.mrf.mxu2 }
 0x9b0   :  { %v1428_v43 = vadd.f32 %v1422_v39, %v1123_v36  ;;  %v1466_v44 = vsel %vm71_vm0, %v1458_v31, 0.0  ;;  %v1562_v39 = vld [vmem:[#allocation6 + $0x110] sm:$0xff] }
 0x9b1   :  { %1467 = vadd.xlane.f32.xlu2 %v1466_v44  ;;  %1632 = vmatpush.msra.mxu3 %v1562_v39 }
 0x9b2   :  { %v1433_v48 = vadd.f32 %v10096_v10, %v1428_v43  ;;  %1447 = vadd.xlane.f32.xlu1 %v1446_v46  ;;  %v11033_v10 = vld [vmem:[#allocation6 + $0xa8] ss:$0 sm:$0xff] }
 0x9b3   :  { %v1561_v43 = vld [vmem:[#allocation6 + $0x108] sm:$0xff] }
 0x9b4   :  { %v11023_v52 = vadd.f32 %v1433_v48, %v10755_v41  ;;  %v1560_v48 = vld [vmem:[#allocation6 + $0x100] sm:$0xff]  ;;  %1633 = vmatpush.msra.mxu3 %v1561_v43 }
 0x9b6   :  { %v1459_v42 = vmul.f32 %v11023_v52, %v11023_v52  ;;  %v1449_v54 = vsel %vm71_vm0, %v11023_v52, 0.0  ;;  %1634 = vmatpush.msra.mxu3 %v1560_v48 }
 0x9b8   :  { %v1469_v53 = vsel %vm71_vm0, %v1459_v42, 0.0 }
 0x9b9   :  { %1470 = vadd.xlane.f32.xlu0 %v1469_v53 }
 0x9ba   :  { %1450 = vadd.xlane.f32.xlu1 %v1449_v54  ;;  %v1559_v54 = vld [vmem:[#allocation6 + $0xf8] sm:$0xff] }
 0x9bb   :  { %1635 = vmatpush.msra.mxu3 %v1559_v54 }
 0x9bd   :  { %1636 = vmatpush.msra.mxu3 %v1558_v60 }
 0x9c7   :  { %v1442_v59 = vpop.xlane.xlu2 %1441 }
 0x9c8   :  { %v1452_v61 = vmul.f32 0.03125, %v1442_v59 }
 0x9c9   :  { %v1462_v62 = vpop.xlane.xlu0 %1461 }
 0x9ca   :  { %v1476_v47 = vmul.f32 %v1452_v61, %v1452_v61  ;;  %v1472_v63 = vmul.f32 0.03125, %v1462_v62  ;;  %v1488_v7 = vsub.f32 %v10996_v13, %v1452_v61 }
 0x9cc   :  { %v1480_v1 = vsub.f32 %v1472_v63, %v1476_v47 }
 0x9ce   :  { %v1484_v2 = vmax.f32 %v1480_v1, 0.0 }
 0x9d0   :  { %v1492_v45 = vadd.f32 1e-05, %v1484_v2 }
 0x9d2   :  { %10203 = vrsqrt.f32 %v1492_v45  ;;  %vm1502_vm3 = vweird.f32 %v1492_v45 }
 0x9d8   :  { %v10204_v5 = vpop.eup %10203 }
 0x9d9   :  { %v1497_v20 = vmul.f32 %v10204_v5, %v1492_v45  ;;  %vm1503_vm2 = vweird.f32 %v10204_v5 }
 0x9da   :  { %vm1504_vm4 = vmor %vm1502_vm3, %vm1503_vm2 }
 0x9db   :  { %v1498_v51 = vmul.f32 %v10204_v5, %v1497_v20 }
 0x9dd   :  { %v1499_v33 = vmul.f32 0.5, %v1498_v51 }
 0x9df   :  { %v1500_v0 = vsub.f32 1.5, %v1499_v33 }
 0x9e1   :  { %v1501_v6 = vmul.f32 %v10204_v5, %v1500_v0 }
 0x9e3   :  { %v1505_v9 = vsel %vm1504_vm4, %v10204_v5, %v1501_v6 }
 0x9e4   :  { %v1536_v4 = vmul.f32 %v1505_v9, %v1488_v7 }
 0x9e6   :  { %v1541_v11 = vmul.f32 %v11031_v57, %v1536_v4 }
 0x9e8   :  { %v11037_v3 = vadd.f32 %v11033_v10, %v1541_v11 }
 0x9ea   :  { %9579 = vmatmul.msk.f32.vlgmr.msra.gmra.mxu0 %vm71_vm0, %v11037_v3 }
 0xa15   :  { %v1445_v12 = vpop.xlane.xlu1 %1444 }
 0xa16   :  { %v1453_v14 = vmul.f32 0.03125, %v1445_v12 }
 0xa18   :  { %v1477_v16 = vmul.f32 %v1453_v14, %v1453_v14  ;;  %v1489_v58 = vsub.f32 %v11005_v21, %v1453_v14  ;;  %v1557_v14 = vld [vmem:[#allocation6 + $0xe8] sm:$0xff] }
 0xa19   :  { %1637 = vmatpush.msra.mxu3 %v1557_v14 }
 0xa1d   :  { %v1465_v15 = vpop.xlane.xlu1 %1464 }
 0xa1e   :  { %v1473_v13 = vmul.f32 0.03125, %v1465_v15 }
 0xa20   :  { %v1481_v22 = vsub.f32 %v1473_v13, %v1477_v16 }
 0xa22   :  { %v1485_v17 = vmax.f32 %v1481_v22, 0.0  ;;  %v1555_v22 = vld [vmem:[#allocation6 + $0xd8] sm:$0xff] }
 0xa24   :  { %v1493_v37 = vadd.f32 1e-05, %v1485_v17  ;;  %v1468_v18 = vpop.xlane.xlu2 %1467 }
 0xa25   :  { %v1448_v19 = vpop.xlane.xlu1 %1447  ;;  %v1474_v23 = vmul.f32 0.03125, %v1468_v18 }
 0xa26   :  { %10205 = vrsqrt.f32 %v1493_v37  ;;  %v1454_v40 = vmul.f32 0.03125, %v1448_v19  ;;  %vm1512_vm6 = vweird.f32 %v1493_v37  ;;  %v10099_v19 = vld [vmem:[#allocation6 + $0xd0] ss:$0 sm:$0xff] }
 0xa28   :  { %v1478_v49 = vmul.f32 %v1454_v40, %v1454_v40  ;;  %v1490_v33 = vsub.f32 %v11015_v34, %v1454_v40  ;;  %v1556_v34 = vld [vmem:[#allocation6 + $0xe0] sm:$0xff] }
 0xa29   :  { %1638 = vmatpush.msra.mxu3 %v1556_v34 }
 0xa2a   :  { %v1482_v24 = vsub.f32 %v1474_v23, %v1478_v49 }
 0xa2b   :  { %1639 = vmatpush.msra.mxu3 %v1555_v22 }
 0xa2c   :  { %v10206_v8 = vpop.eup %10205  ;;  %v1486_v50 = vmax.f32 %v1482_v24, 0.0  ;;  %v1471_v26 = vpop.xlane.xlu0 %1470 }
 0xa2d   :  { %v1507_v25 = vmul.f32 %v10206_v8, %v1493_v37  ;;  %v1451_v27 = vpop.xlane.xlu1 %1450  ;;  %v1475_v36 = vmul.f32 0.03125, %v1471_v26  ;;  %vm1513_vm5 = vweird.f32 %v10206_v8 }
 0xa2e   :  { %v1494_v28 = vadd.f32 1e-05, %v1486_v50  ;;  %v11041_v29 = vmul.f32 0.03125, %v1451_v27  ;;  %vm1514_vm7 = vmor %vm1512_vm6, %vm1513_vm5 }
 0xa2f   :  { %v1508_v30 = vmul.f32 %v10206_v8, %v1507_v25 }
 0xa30   :  { %10207 = vrsqrt.f32 %v1494_v28  ;;  %v1479_v31 = vmul.f32 %v11041_v29, %v11041_v29  ;;  %vm1522_vm9 = vweird.f32 %v1494_v28  ;;  %v1491_v16 = vsub.f32 %v11023_v52, %v11041_v29 }
 0xa31   :  { %v1509_v44 = vmul.f32 0.5, %v1508_v30 }
 0xa32   :  { %v1483_v46 = vsub.f32 %v1475_v36, %v1479_v31 }
 0xa33   :  { %v1510_v42 = vsub.f32 1.5, %v1509_v44 }
 0xa34   :  { %v1487_v53 = vmax.f32 %v1483_v46, 0.0 }
 0xa35   :  { %v1511_v55 = vmul.f32 %v10206_v8, %v1510_v42 }
 0xa36   :  { %v10208_v56 = vpop.eup %10207  ;;  %v1495_v59 = vadd.f32 1e-05, %v1487_v53 }
 0xa37   :  { %v1517_v61 = vmul.f32 %v10208_v56, %v1494_v28  ;;  %v1515_v62 = vsel %vm1514_vm7, %v10206_v8, %v1511_v55  ;;  %vm1523_vm8 = vweird.f32 %v10208_v56  ;;  %v10100_v28 = vld [vmem:[#allocation6 + $0x118] ss:$0 sm:$0xff] }
 0xa38   :  { %10209 = vrsqrt.f32 %v1495_v59  ;;  %v1537_v47 = vmul.f32 %v1515_v62, %v1489_v58  ;;  %vm1524_vm10 = vmor %vm1522_vm9, %vm1523_vm8  ;;  %vm1532_vm12 = vweird.f32 %v1495_v59 }
 0xa39   :  { %v1518_v63 = vmul.f32 %v10208_v56, %v1517_v61 }
 0xa3a   :  { %v1542_v1 = vmul.f32 %v11031_v57, %v1537_v47 }
 0xa3b   :  { %v1519_v2 = vmul.f32 0.5, %v1518_v63 }
 0xa3c   :  { %v11048_v45 = vadd.f32 %v11033_v10, %v1542_v1 }
 0xa3d   :  { %v1520_v5 = vsub.f32 1.5, %v1519_v2 }
 0xa3e   :  { %v10210_v20 = vpop.eup %10209  ;;  %9580 = vmatmul.msk.f32.gmra.mxu0 %vm71_vm0, %v11048_v45 }
 0xa3f   :  { %v1521_v21 = vmul.f32 %v10208_v56, %v1520_v5  ;;  %v1527_v51 = vmul.f32 %v10210_v20, %v1495_v59  ;;  %vm1533_vm11 = vweird.f32 %v10210_v20  ;;  %v1771_v5 = vld [vmem:[#allocation6 + $0x140] sm:$0xff] }
 0xa40   :  { %vm1534_vm13 = vmor %vm1532_vm12, %vm1533_vm11 }
 0xa41   :  { %v1525_v0 = vsel %vm1524_vm10, %v10208_v56, %v1521_v21  ;;  %v1528_v6 = vmul.f32 %v10210_v20, %v1527_v51  ;;  %v1769_v51 = vld [vmem:[#allocation6 + $0x130] sm:$0xff] }
 0xa42   :  { %v1538_v7 = vmul.f32 %v1525_v0, %v1490_v33 }
 0xa43   :  { %v1529_v9 = vmul.f32 0.5, %v1528_v6 }
 0xa44   :  { %v1543_v4 = vmul.f32 %v11031_v57, %v1538_v7 }
 0xa45   :  { %v1530_v11 = vsub.f32 1.5, %v1529_v9 }
 0xa46   :  { %v1548_v12 = vadd.f32 %v11033_v10, %v1543_v4 }
 0xa47   :  { %v1531_v15 = vmul.f32 %v10210_v20, %v1530_v11 }
 0xa48   :  { %9581 = vmatmul.msk.f32.gmra.mxu0 %vm71_vm0, %v1548_v12 }
 0xa49   :  { %v1535_v13 = vsel %vm1534_vm13, %v10210_v20, %v1531_v15  ;;  %v1770_v20 = vld [vmem:[#allocation6 + $0x138] sm:$0xff] }
 0xa4a   :  { %v1539_v17 = vmul.f32 %v1535_v13, %v1491_v16 }
 0xa4c   :  { %v1544_v37 = vmul.f32 %v11031_v57, %v1539_v17  ;;  %v11090_v17 = vld [vmem:[#allocation6 + $0x120] ss:$0 sm:$0xff] }
 0xa4e   :  { %v1549_v18 = vadd.f32 %v11033_v10, %v1544_v37 }
 0xa50   :  { %9582 = vmatmul.msk.f32.gmra.mxu0 %vm71_vm0, %v1549_v18 }
 0xa67   :  { %v1594_v40 = vpop.f32.mrf.mxu0 }
 0xa68   :  { %v1595_v23 = vadd.f32 %v10099_v19, %v1594_v40 }
 0xa6a   :  { %v1606_v52 = vmax.f32 %v1595_v23, 0.0 }
 0xa6c   :  { %9583 = vmatmul.msk.f32.vlgmr.msra.gmra.mxu3 %vm1611_vm14, %v1606_v52 }
 0xabb   :  { %v1597_v49 = vpop.f32.mrf.mxu0 }
 0xabc   :  { %v1598_v24 = vadd.f32 %v10099_v19, %v1597_v49 }
 0xabe   :  { %v1607_v8 = vmax.f32 %v1598_v24, 0.0 }
 0xac0   :  { %9584 = vmatmul.msk.f32.gmra.mxu3 %vm1611_vm14, %v1607_v8 }
 0xac5   :  { %v1600_v50 = vpop.f32.mrf.mxu0 }
 0xac6   :  { %v1601_v25 = vadd.f32 %v10099_v19, %v1600_v50 }
 0xac8   :  { %v1608_v26 = vmax.f32 %v1601_v25, 0.0 }
 0xaca   :  { %9585 = vmatmul.msk.f32.gmra.mxu3 %vm1611_vm14, %v1608_v26 }
 0xacd   :  { %v1603_v57 = vpop.f32.mrf.mxu0 }
 0xace   :  { %v1604_v10 = vadd.f32 %v10099_v19, %v1603_v57  ;;  %v11092_v19 = vld [vmem:[#allocation6 + $0x128] ss:$0 sm:$0xff] }
 0xad0   :  { %v1609_v27 = vmax.f32 %v1604_v10, 0.0 }
 0xad2   :  { %9586 = vmatmul.msk.f32.gmra.mxu3 %vm1611_vm14, %v1609_v27 }
 0xaef   :  { %v1641_v29 = vpop.f32.mrf.mxu3 }
 0xaf0   :  { %v1642_v30 = vadd.f32 %v10100_v28, %v1641_v29 }
 0xaf2   :  { %v1655_v36 = vadd.f32 %v1642_v30, %v11037_v3 }
 0xaf4   :  { %v1659_v31 = vsel %vm71_vm0, %v1655_v36, 0.0  ;;  %v1675_v39 = vmul.f32 %v1655_v36, %v1655_v36 }
 0xaf5   :  { %1660 = vadd.xlane.f32.xlu2 %v1659_v31 }
 0xaf6   :  { %v1679_v43 = vsel %vm71_vm0, %v1675_v39, 0.0 }
 0xaf7   :  { %1680 = vadd.xlane.f32.xlu1 %v1679_v43 }
 0xb43   :  { %v1644_v44 = vpop.f32.mrf.mxu3 }
 0xb44   :  { %v1645_v46 = vadd.f32 %v10100_v28, %v1644_v44 }
 0xb46   :  { %v11069_v48 = vadd.f32 %v1645_v46, %v11048_v45  ;;  %v1772_v45 = vld [vmem:[#allocation6 + $0x148] sm:$0xff] }
 0xb47   :  { %1804 = vmatpush.msra.mxu1 %v1772_v45 }
 0xb48   :  { %v1662_v42 = vsel %vm71_vm0, %v11069_v48, 0.0  ;;  %v1676_v53 = vmul.f32 %v11069_v48, %v11069_v48 }
 0xb49   :  { %1663 = vadd.xlane.f32.xlu0 %v1662_v42  ;;  %1805 = vmatpush.msra.mxu1 %v1771_v5 }
 0xb4a   :  { %v1682_v3 = vsel %vm71_vm0, %v1676_v53, 0.0 }
 0xb4b   :  { %1683 = vadd.xlane.f32.xlu2 %v1682_v3  ;;  %1806 = vmatpush.msra.mxu1 %v1770_v20 }
 0xb4d   :  { %v1647_v54 = vpop.f32.mrf.mxu3  ;;  %1807 = vmatpush.msra.mxu1 %v1769_v51 }
 0xb4e   :  { %v1648_v55 = vadd.f32 %v10100_v28, %v1647_v54 }
 0xb50   :  { %v11076_v56 = vadd.f32 %v1648_v55, %v1548_v12 }
 0xb52   :  { %v1665_v58 = vsel %vm71_vm0, %v11076_v56, 0.0  ;;  %v1677_v59 = vmul.f32 %v11076_v56, %v11076_v56 }
 0xb53   :  { %1666 = vadd.xlane.f32.xlu1 %v1665_v58 }
 0xb54   :  { %v1685_v60 = vsel %vm71_vm0, %v1677_v59, 0.0 }
 0xb55   :  { %1686 = vadd.xlane.f32.xlu0 %v1685_v60  ;;  %v1650_v61 = vpop.f32.mrf.mxu3 }
 0xb56   :  { %v1651_v62 = vadd.f32 %v10100_v28, %v1650_v61 }
 0xb58   :  { %v11083_v47 = vadd.f32 %v1651_v62, %v1549_v18 }
 0xb5a   :  { %v1668_v63 = vsel %vm71_vm0, %v11083_v47, 0.0  ;;  %v1678_v1 = vmul.f32 %v11083_v47, %v11083_v47 }
 0xb5b   :  { %1669 = vadd.xlane.f32.xlu2 %v1668_v63 }
 0xb5c   :  { %v1688_v2 = vsel %vm71_vm0, %v1678_v1, 0.0 }
 0xb5d   :  { %1689 = vadd.xlane.f32.xlu1 %v1688_v2 }
 0xb68   :  { %v1661_v21 = vpop.xlane.xlu2 %1660 }
 0xb69   :  { %v1671_v33 = vmul.f32 0.03125, %v1661_v21 }
 0xb6a   :  { %v1681_v0 = vpop.xlane.xlu1 %1680 }
 0xb6b   :  { %v1695_v6 = vmul.f32 %v1671_v33, %v1671_v33  ;;  %v1691_v7 = vmul.f32 0.03125, %v1681_v0  ;;  %v1707_v22 = vsub.f32 %v1655_v36, %v1671_v33 }
 0xb6d   :  { %v1699_v9 = vsub.f32 %v1691_v7, %v1695_v6 }
 0xb6f   :  { %v1703_v4 = vmax.f32 %v1699_v9, 0.0 }
 0xb71   :  { %v1711_v11 = vadd.f32 1e-05, %v1703_v4 }
 0xb73   :  { %10211 = vrsqrt.f32 %v1711_v11  ;;  %vm1721_vm2 = vweird.f32 %v1711_v11 }
 0xb79   :  { %v10212_v12 = vpop.eup %10211 }
 0xb7a   :  { %v1716_v14 = vmul.f32 %v10212_v12, %v1711_v11  ;;  %vm1722_vm15 = vweird.f32 %v10212_v12 }
 0xb7b   :  { %vm1723_vm3 = vmor %vm1721_vm2, %vm1722_vm15 }
 0xb7c   :  { %v1717_v15 = vmul.f32 %v10212_v12, %v1716_v14 }
 0xb7e   :  { %v1718_v16 = vmul.f32 0.5, %v1717_v15 }
 0xb80   :  { %v1719_v34 = vsub.f32 1.5, %v1718_v16 }
 0xb82   :  { %v1720_v13 = vmul.f32 %v10212_v12, %v1719_v34 }
 0xb84   :  { %v1724_v37 = vsel %vm1723_vm3, %v10212_v12, %v1720_v13 }
 0xb85   :  { %v1755_v18 = vmul.f32 %v1724_v37, %v1707_v22 }
 0xb87   :  { %v1760_v40 = vmul.f32 %v11090_v17, %v1755_v18 }
 0xb89   :  { %v11096_v23 = vadd.f32 %v11092_v19, %v1760_v40 }
 0xb8b   :  { %9587 = vmatmul.msk.f32.vlgmr.msra.gmra.mxu1 %vm71_vm0, %v11096_v23 }
 0xbbc   :  { %v1664_v52 = vpop.xlane.xlu0 %1663 }
 0xbbd   :  { %v1672_v49 = vmul.f32 0.03125, %v1664_v52 }
 0xbbe   :  { %v1684_v24 = vpop.xlane.xlu2 %1683 }
 0xbbf   :  { %v1696_v8 = vmul.f32 %v1672_v49, %v1672_v49  ;;  %v1692_v50 = vmul.f32 0.03125, %v1684_v24  ;;  %v1708_v1 = vsub.f32 %v11069_v48, %v1672_v49  ;;  %v10103_v49 = vld [vmem:[#allocation6 + $0x150] ss:$0 sm:$0xff] }
 0xbc1   :  { %v1700_v25 = vsub.f32 %v1692_v50, %v1696_v8 }
 0xbc3   :  { %v1704_v26 = vmax.f32 %v1700_v25, 0.0 }
 0xbc5   :  { %v1712_v57 = vadd.f32 1e-05, %v1704_v26 }
 0xbc6   :  { %v1667_v10 = vpop.xlane.xlu1 %1666 }
 0xbc7   :  { %10213 = vrsqrt.f32 %v1712_v57  ;;  %v1673_v27 = vmul.f32 0.03125, %v1667_v10  ;;  %vm1731_vm5 = vweird.f32 %v1712_v57 }
 0xbc8   :  { %v1687_v28 = vpop.xlane.xlu0 %1686 }
 0xbc9   :  { %v1697_v29 = vmul.f32 %v1673_v27, %v1673_v27  ;;  %v1693_v30 = vmul.f32 0.03125, %v1687_v28  ;;  %v1709_v9 = vsub.f32 %v11076_v56, %v1673_v27 }
 0xbcb   :  { %v1701_v36 = vsub.f32 %v1693_v30, %v1697_v29 }
 0xbcd   :  { %v10214_v31 = vpop.eup %10213  ;;  %v1705_v39 = vmax.f32 %v1701_v36, 0.0 }
 0xbce   :  { %v1726_v43 = vmul.f32 %v10214_v31, %v1712_v57  ;;  %v1670_v44 = vpop.xlane.xlu2 %1669  ;;  %vm1732_vm4 = vweird.f32 %v10214_v31 }
 0xbcf   :  { %v1713_v46 = vadd.f32 1e-05, %v1705_v39  ;;  %v1674_v42 = vmul.f32 0.03125, %v1670_v44  ;;  %vm1733_vm6 = vmor %vm1731_vm5, %vm1732_vm4 }
 0xbd0   :  { %v1727_v53 = vmul.f32 %v10214_v31, %v1726_v43  ;;  %v1690_v3 = vpop.xlane.xlu1 %1689 }
 0xbd1   :  { %10215 = vrsqrt.f32 %v1713_v46  ;;  %v1698_v54 = vmul.f32 %v1674_v42, %v1674_v42  ;;  %v1694_v58 = vmul.f32 0.03125, %v1690_v3  ;;  %vm1741_vm8 = vweird.f32 %v1713_v46 }
 0xbd2   :  { %v1728_v55 = vmul.f32 0.5, %v1727_v53  ;;  %v1710_v56 = vsub.f32 %v11083_v47, %v1674_v42 }
 0xbd3   :  { %v1702_v60 = vsub.f32 %v1694_v58, %v1698_v54 }
 0xbd4   :  { %v1729_v59 = vsub.f32 1.5, %v1728_v55 }
 0xbd5   :  { %v1706_v61 = vmax.f32 %v1702_v60, 0.0 }
 0xbd6   :  { %v1730_v62 = vmul.f32 %v10214_v31, %v1729_v59 }
 0xbd7   :  { %v10216_v63 = vpop.eup %10215  ;;  %v1714_v45 = vadd.f32 1e-05, %v1706_v61 }
 0xbd8   :  { %v1736_v2 = vmul.f32 %v10216_v63, %v1713_v46  ;;  %v1734_v5 = vsel %vm1733_vm6, %v10214_v31, %v1730_v62  ;;  %vm1742_vm7 = vweird.f32 %v10216_v63 }
 0xbd9   :  { %v1756_v20 = vmul.f32 %v1734_v5, %v1708_v1  ;;  %10217 = vrsqrt.f32 %v1714_v45  ;;  %vm1743_vm9 = vmor %vm1741_vm8, %vm1742_vm7  ;;  %vm1751_vm11 = vweird.f32 %v1714_v45 }
 0xbda   :  { %v1737_v21 = vmul.f32 %v10216_v63, %v1736_v2 }
 0xbdb   :  { %v1761_v51 = vmul.f32 %v11090_v17, %v1756_v20 }
 0xbdc   :  { %v1738_v33 = vmul.f32 0.5, %v1737_v21 }
 0xbdd   :  { %v11103_v0 = vadd.f32 %v11092_v19, %v1761_v51 }
 0xbde   :  { %v1739_v6 = vsub.f32 1.5, %v1738_v33 }
 0xbdf   :  { %9588 = vmatmul.msk.f32.gmra.mxu1 %vm71_vm0, %v11103_v0  ;;  %v10218_v7 = vpop.eup %10217 }
 0xbe0   :  { %v1740_v48 = vmul.f32 %v10216_v63, %v1739_v6  ;;  %v1746_v4 = vmul.f32 %v10218_v7, %v1714_v45  ;;  %vm1752_vm10 = vweird.f32 %v10218_v7 }
 0xbe1   :  { %vm1753_vm12 = vmor %vm1751_vm11, %vm1752_vm10 }
 0xbe2   :  { %v1744_v11 = vsel %vm1743_vm9, %v10216_v63, %v1740_v48  ;;  %v1747_v12 = vmul.f32 %v10218_v7, %v1746_v4 }
 0xbe3   :  { %v1757_v14 = vmul.f32 %v1744_v11, %v1709_v9 }
 0xbe4   :  { %v1748_v15 = vmul.f32 0.5, %v1747_v12 }
 0xbe5   :  { %v1762_v16 = vmul.f32 %v11090_v17, %v1757_v14 }
 0xbe6   :  { %v1749_v34 = vsub.f32 1.5, %v1748_v15 }
 0xbe7   :  { %v11110_v13 = vadd.f32 %v11092_v19, %v1762_v16 }
 0xbe8   :  { %v1750_v22 = vmul.f32 %v10218_v7, %v1749_v34 }
 0xbe9   :  { %9589 = vmatmul.msk.f32.gmra.mxu1 %vm71_vm0, %v11110_v13 }
 0xbea   :  { %v1754_v37 = vsel %vm1753_vm12, %v10218_v7, %v1750_v22 }
 0xbeb   :  { %v1758_v18 = vmul.f32 %v1754_v37, %v1710_v56 }
 0xbed   :  { %v1763_v40 = vmul.f32 %v11090_v17, %v1758_v18 }
 0xbef   :  { %v11117_v52 = vadd.f32 %v11092_v19, %v1763_v40 }
 0xbf1   :  { %9590 = vmatmul.msk.f32.gmra.mxu1 %vm71_vm0, %v11117_v52 }
 0xc08   :  { %v1809_v24 = vpop.f32.mrf.mxu1 }
 0xc09   :  { %v11121_v8 = vadd.f32 %v10103_v49, %v1809_v24 }
 0xc0b   :  { %1822 = vrot.lane.b32.xlu0 %v11121_v8, %s10688_s0 }
 0xc5c   :  { %v1812_v50 = vpop.f32.mrf.mxu1 }
 0xc5d   :  { %v11129_v17 = vadd.f32 %v10103_v49, %v1812_v50 }
 0xc66   :  { %v1815_v47 = vpop.f32.mrf.mxu1 }
 0xc67   :  { %v11125_v25 = vadd.f32 %v10103_v49, %v1815_v47 }
 0xc69   :  { %1876 = vrot.lane.b32.xlu1 %v11125_v25, %s10688_s0 }
 0xc6e   :  { %v1818_v19 = vpop.f32.mrf.mxu1 }
 0xc6f   :  { %v11131_v26 = vadd.f32 %v10103_v49, %v1818_v19 }
 0xc71   :  { %1849 = vrot.lane.b32.xlu1 %v11129_v17, %s10688_s0  ;;  %1903 = vrot.lane.b32.xlu2 %v11131_v26, %s10688_s0  ;;  %v9998_v43 = vpack.i.bf16 %v11125_v25, %v11131_v26  ;;  %v10003_v2 = vpack.i.bf16 %v11131_v26, %v11125_v25 }
 0xc7d   :  { %v1823_v57 = vpop.permute.xlu0 %1822 }
 0xc7e   :  { %9591 = vmatpush.xpose.msk.msrb.mxu2 %vm223_vm1, %v1823_v57 }
 0xc81   :  { %9592 = vmatmul.msk.f32.vlgmr.msrb.gmra.mxu2 %vm223_vm1, %v11121_v8 }
 0xccb   :  { %v1904_v10 = vpop.permute.xlu2 %1903 }
 0xccc   :  { %9597 = vmatpush.xpose.msk.msra.mxu2 %vm223_vm1, %v1904_v10 }
 0xccf   :  { %9598 = vmatmul.msk.f32.vlgmr.msra.gmra.mxu2 %vm223_vm1, %v11131_v26 }
 0xcdb   :  { %v1877_v27 = vpop.permute.xlu1 %1876 }
 0xcdc   :  { %9595 = vmatpush.xpose.msk.msrb.mxu1 %vm223_vm1, %v1877_v27 }
 0xcdf   :  { %9596 = vmatmul.msk.f32.vlgmr.msrb.gmra.mxu1 %vm223_vm1, %v11125_v25 }
 0xce3   :  { %v1850_v28 = vpop.permute.xlu1 %1849 }
 0xce4   :  { %9593 = vmatpush.xpose.msk.msrb.mxu0 %vm223_vm1, %v1850_v28 }
 0xce7   :  { %9594 = vmatmul.msk.f32.vlgmr.msrb.gmra.mxu0 %vm223_vm1, %v11129_v17 }
 0xd04   :  { %v11149_v29 = vpop.f32.mrf.mxu2 }
 0xd52   :  { %v1926_v30 = vpop.f32.mrf.mxu2 }
 0xd53   :  { %v1938_v36 = vsel %vm223_vm1, %v1926_v30, -inf }
 0xd54   :  { %1939 = vmax.xlane.f32.xlu0 %v1938_v36 }
 0xd5c   :  { %v1899_v31 = vpop.f32.mrf.mxu1 }
 0xd5d   :  { %v1935_v39 = vsel %vm223_vm1, %v1899_v31, -inf }
 0xd5e   :  { %1936 = vmax.xlane.f32.xlu2 %v1935_v39 }
 0xd64   :  { %v1872_v45 = vpop.f32.mrf.mxu0 }
 0xd65   :  { %v1932_v5 = vsel %vm223_vm1, %v1872_v45, -inf }
 0xd68   :  { %2163 = vrot.lane.b32.xlu0 %v11131_v26, %s10691_s29 }
 0xd76   :  { %9999 = vrot.lane.b32.xlu2 %v9998_v43, %s10689_s2 }
 0xd7e   :  { %2133 = vrot.lane.b32.xlu2 %v11125_v25, %s10690_s28 }
 0xdc7   :  { %v1940_v44 = vpop.xlane.xlu0 %1939 }
 0xdc8   :  { %v1944_v46 = vsub.f32 %v1926_v30, %v1940_v44 }
 0xdca   :  { %v1951_v42 = vmul.f32 1.442695, %v1944_v46 }
 0xdcc   :  { %10219 = vpow2.f32 %v1951_v42 }
 0xdd1   :  { %v1937_v53 = vpop.xlane.xlu2 %1936 }
 0xdd2   :  { %v1943_v3 = vsub.f32 %v1899_v31, %v1937_v53  ;;  %v10220_v54 = vpop.eup %10219 }
 0xdd3   :  { %v1962_v58 = vsel %vm223_vm1, %v10220_v54, 0.0 }
 0xdd4   :  { %v1949_v55 = vmul.f32 1.442695, %v1943_v3  ;;  %1963 = vadd.xlane.f32.xlu1 %v1962_v58  ;;  %v1929_v58 = vsel %vm223_vm1, %v11149_v29, -inf }
 0xdd6   :  { %10221 = vpow2.f32 %v1949_v55 }
 0xdd9   :  { %v10000_v59 = vpop.permute.xlu2 %9999 }
 0xdda   :  { %v10002_v60 = vunpack.i.h.bf16 %v10000_v59  ;;  %v10001_v61 = vunpack.i.l.bf16 %v10000_v59  ;;  %v2164_v63 = vpop.permute.xlu0 %2163  ;;  %v11220_v59 = vpack.i.bf16 %v11129_v17, %v11121_v8 }
 0xddc   :  { %v10222_v62 = vpop.eup %10221  ;;  %2046 = vmatpush.msra.mxu1 %v10002_v60  ;;  %2072 = vmatpush.msrb.mxu2 %v10001_v61 }
 0xddd   :  { %v1959_v1 = vsel %vm223_vm1, %v10222_v62, 0.0 }
 0xdde   :  { %9609 = vmatpush.xpose.msk.msra.mxu2 %vm223_vm1, %v2164_v63  ;;  %1960 = vadd.xlane.f32.xlu0 %v1959_v1 }
 0xde1   :  { %v2134_v4 = vpop.permute.xlu2 %2133 }
 0xded   :  { %2161 = vrot.lane.b32.xlu1 %v11131_v26, %s10690_s28 }
 0xdf2   :  { %2135 = vrot.lane.b32.xlu0 %v11125_v25, %s10691_s29 }
 0xdf5   :  { %2105 = vrot.lane.b32.xlu1 %v11129_v17, %s10690_s28 }
 0xdfd   :  { %10004 = vrot.lane.b32.xlu1 %v10003_v2, %s10692_s30 }
 0xe1c   :  { %1933 = vmax.xlane.f32.xlu0 %v1932_v5 }
 0xe47   :  { %v1964_v20 = vpop.xlane.xlu1 %1963 }
 0xe48   :  { %10223 = vrcp.f32 %v1964_v20 }
 0xe4e   :  { %v10224_v21 = vpop.eup %10223 }
 0xe4f   :  { %v1972_v51 = vmul.f32 %v10224_v21, %v10220_v54 }
 0xe51   :  { %v1961_v33 = vpop.xlane.xlu0 %1960  ;;  %9602 = vmatmul.msk.f32.vlgmr.msrb.gmra.mxu2 %vm223_vm1, %v1972_v51 }
 0xe52   :  { %10225 = vrcp.f32 %v1961_v33 }
 0xe58   :  { %v10226_v6 = vpop.eup %10225 }
 0xe59   :  { %v1971_v7 = vmul.f32 %v10226_v6, %v10222_v62 }
 0xe5b   :  { %9601 = vmatmul.msk.f32.vlgmr.msra.gmra.mxu1 %vm223_vm1, %v1971_v7 }
 0xe5f   :  { %v2162_v48 = vpop.permute.xlu1 %2161 }
 0xe60   :  { %9610 = vmatmul.msk.f32.vlgmr.msra.gmra.mxu2 %vm223_vm1, %v2162_v48 }
 0xe64   :  { %v2136_v9 = vpop.permute.xlu0 %2135 }
 0xe65   :  { %9607 = vmatpush.xpose.msk.msrb.mxu1 %vm223_vm1, %v2136_v9 }
 0xe67   :  { %v2106_v11 = vpop.permute.xlu1 %2105 }
 0xe68   :  { %9608 = vmatmul.msk.f32.vlgmr.msrb.gmra.mxu1 %vm223_vm1, %v2134_v4 }
 0xe6f   :  { %v10005_v12 = vpop.permute.xlu1 %10004 }
 0xe70   :  { %v10007_v14 = vunpack.i.h.bf16 %v10005_v12  ;;  %v10006_v15 = vunpack.i.l.bf16 %v10005_v12 }
 0xe72   :  { %2306 = vmatpush.msra.mxu1 %v10006_v15  ;;  %2332 = vmatpush.msrb.mxu2 %v10007_v14 }
 0xe8f   :  { %v1934_v16 = vpop.xlane.xlu0 %1933 }
 0xe90   :  { %v1942_v34 = vsub.f32 %v1872_v45, %v1934_v16 }
 0xe92   :  { %v1947_v22 = vmul.f32 1.442695, %v1942_v34 }
 0xe94   :  { %10227 = vpow2.f32 %v1947_v22 }
 0xe9a   :  { %v10228_v56 = vpop.eup %10227 }
 0xe9b   :  { %v1956_v37 = vsel %vm223_vm1, %v10228_v56, 0.0 }
 0xe9c   :  { %1957 = vadd.xlane.f32.xlu0 %v1956_v37 }
 0xeb0   :  { %2107 = vrot.lane.b32.xlu0 %v11129_v17, %s10691_s29 }
 0xed4   :  { %v11181_v18 = vpop.f32.mrf.mxu2 }
 0xed8   :  { %v11183_v40 = vpop.f32.mrf.mxu1 }
 0xee3   :  { %v2186_v49 = vpop.f32.mrf.mxu2 }
 0xee4   :  { %v2198_v50 = vsel %vm223_vm1, %v2186_v49, -inf }
 0xee5   :  { %v2158_v24 = vpop.f32.mrf.mxu1  ;;  %2199 = vmax.xlane.f32.xlu1 %v2198_v50 }
 0xee6   :  { %v2195_v47 = vsel %vm223_vm1, %v2158_v24, -inf }
 0xee7   :  { %2196 = vmax.xlane.f32.xlu2 %v2195_v47 }
 0xefe   :  { %2421 = vrot.lane.b32.xlu1 %v11121_v8, %s10694_s5 }
 0xeff   :  { %1999 = vrot.lane.b32.xlu2 %v11129_v17, %s10689_s2 }
 0xf06   :  { %2449 = vrot.lane.b32.xlu1 %v11129_v17, %s10694_s5 }
 0xf0e   :  { %2419 = vrot.lane.b32.xlu1 %v11121_v8, %s10693_s4 }
 0xf0f   :  { %v1958_v19 = vpop.xlane.xlu0 %1957 }
 0xf10   :  { %10229 = vrcp.f32 %v1958_v19 }
 0xf16   :  { %2447 = vrot.lane.b32.xlu1 %v11129_v17, %s10693_s4  ;;  %v10230_v31 = vpop.eup %10229 }
 0xf17   :  { %v1970_v39 = vmul.f32 %v10230_v31, %v10228_v56 }
 0xf1e   :  { %2475 = vrot.lane.b32.xlu1 %v11125_v25, %s10693_s4 }
 0xf22   :  { %v2108_v46 = vpop.permute.xlu0 %2107 }
 0xf26   :  { %2503 = vrot.lane.b32.xlu1 %v11131_v26, %s10693_s4 }
 0xf58   :  { %v2200_v57 = vpop.xlane.xlu1 %2199 }
 0xf59   :  { %v2204_v10 = vsub.f32 %v2186_v49, %v2200_v57 }
 0xf5a   :  { %v2197_v27 = vpop.xlane.xlu2 %2196 }
 0xf5b   :  { %v2203_v28 = vsub.f32 %v2158_v24, %v2197_v27  ;;  %v2211_v30 = vmul.f32 1.442695, %v2204_v10 }
 0xf5d   :  { %v2209_v36 = vmul.f32 1.442695, %v2203_v28  ;;  %10231 = vpow2.f32 %v2211_v30 }
 0xf5f   :  { %10233 = vpow2.f32 %v2209_v36 }
 0xf62   :  { %v2000_v43 = vpop.permute.xlu2 %1999 }
 0xf63   :  { %2020 = vmatpush.msra.mxu0 %v2000_v43  ;;  %v10232_v44 = vpop.eup %10231 }
 0xf64   :  { %9600 = vmatmul.msk.f32.vlgmr.msra.gmra.mxu0 %vm223_vm1, %v1970_v39  ;;  %v2222_v53 = vsel %vm223_vm1, %v10232_v44, 0.0 }
 0xf65   :  { %v10234_v42 = vpop.eup %10233  ;;  %9605 = vmatpush.xpose.msk.msrb.mxu0 %vm223_vm1, %v2108_v46  ;;  %2223 = vadd.xlane.f32.xlu0 %v2222_v53 }
 0xf66   :  { %v2219_v3 = vsel %vm223_vm1, %v10234_v42, 0.0 }
 0xf67   :  { %2220 = vadd.xlane.f32.xlu2 %v2219_v3 }
 0xf6c   :  { %9606 = vmatmul.msk.f32.vlgmr.msrb.gmra.mxu0 %vm223_vm1, %v2106_v11 }
 0xf70   :  { %v2422_v54 = vpop.permute.xlu1 %2421 }
 0xf71   :  { %9623 = vmatpush.xpose.msk.msrb.mxu1 %vm223_vm1, %v2422_v54 }
 0xf78   :  { %v2450_v55 = vpop.permute.xlu1 %2449 }
 0xf79   :  { %2505 = vrot.lane.b32.xlu0 %v11131_v26, %s10694_s5  ;;  %9625 = vmatpush.xpose.msk.msra.mxu2 %vm223_vm1, %v2450_v55 }
 0xf7f   :  { %2477 = vrot.lane.b32.xlu2 %v11125_v25, %s10694_s5 }
 0xf80   :  { %v2420_v60 = vpop.permute.xlu1 %2419 }
 0xf87   :  { %1973 = vrot.lane.b32.xlu2 %v11121_v8, %s10689_s2 }
 0xf88   :  { %v2448_v63 = vpop.permute.xlu1 %2447 }
 0xf90   :  { %v2476_v51 = vpop.permute.xlu1 %2475 }
 0xf98   :  { %v2504_v9 = vpop.permute.xlu1 %2503 }
 0xfa3   :  { %1930 = vmax.xlane.f32.xlu0 %v1929_v58 }
 0xfb7   :  { %2077 = vrot.lane.b32.xlu0 %v11121_v8, %s10690_s28 }
 0xfbf   :  { %10009 = vrot.lane.b32.xlu0 %v11220_v59, %s10695_s6 }
 0xfc7   :  { %2754 = vrot.lane.b32.xlu0 %v11129_v17, %s10696_s7 }
 0xfd8   :  { %v2224_v61 = vpop.xlane.xlu0 %2223 }
 0xfd9   :  { %10235 = vrcp.f32 %v2224_v61 }
 0xfda   :  { %v2221_v62 = vpop.xlane.xlu2 %2220 }
 0xfdb   :  { %10237 = vrcp.f32 %v2221_v62 }
 0xfdf   :  { %v10236_v1 = vpop.eup %10235 }
 0xfe0   :  { %v2232_v45 = vmul.f32 %v10236_v1, %v10232_v44 }
 0xfe1   :  { %v10238_v2 = vpop.eup %10237  ;;  %v11226_v5 = vpop.f32.mrf.mxu0 }
 0xfe2   :  { %v2231_v20 = vmul.f32 %v10238_v2, %v10234_v42  ;;  %v2478_v21 = vpop.permute.xlu2 %2477  ;;  %9614 = vmatmul.msk.f32.vlgmr.msrb.gmra.mxu2 %vm223_vm1, %v2232_v45 }
 0xfe4   :  { %9613 = vmatmul.msk.f32.vlgmr.msra.gmra.mxu1 %vm223_vm1, %v2231_v20 }
 0xfe5   :  { %9627 = vmatpush.xpose.msk.msra.mxu1 %vm223_vm1, %v2478_v21 }
 0xfe9   :  { %v2130_v33 = vpop.f32.mrf.mxu0 }
 0xfea   :  { %v1974_v6 = vpop.permute.xlu2 %1973  ;;  %v2192_v7 = vsel %vm223_vm1, %v2130_v33, -inf  ;;  %9626 = vmatmul.msk.f32.vlgmr.msra.gmra.mxu2 %vm223_vm1, %v2448_v63 }
 0xfeb   :  { %1994 = vmatpush.msrb.mxu3 %v1974_v6  ;;  %2193 = vmax.xlane.f32.xlu2 %v2192_v7  ;;  %v2506_v48 = vpop.permute.xlu0 %2505 }
 0xfec   :  { %9624 = vmatmul.msk.f32.vlgmr.msrb.gmra.mxu1 %vm223_vm1, %v2420_v60  ;;  %9629 = vmatpush.xpose.msk.msrb.mxu2 %vm223_vm1, %v2506_v48 }
 0xff2   :  { %9630 = vmatmul.msk.f32.vlgmr.msrb.gmra.mxu2 %vm223_vm1, %v2504_v9 }
 0xff4   :  { %9628 = vmatmul.msk.f32.vlgmr.msra.gmra.mxu1 %vm223_vm1, %v2476_v51  ;;  %v1774_v51 = vld [vmem:[#allocation6 + $0x158] sm:$0xff] }
0x1003   :  { %2079 = vrot.lane.b32.xlu2 %v11121_v8, %s10691_s29 }
0x100b   :  { %2726 = vrot.lane.b32.xlu2 %v11121_v8, %s10696_s7 }
0x1016   :  { %v1931_v4 = vpop.xlane.xlu0 %1930 }
0x1017   :  { %v1941_v11 = vsub.f32 %v11149_v29, %v1931_v4 }
0x1019   :  { %v1945_v12 = vmul.f32 1.442695, %v1941_v11 }
0x101b   :  { %10239 = vpow2.f32 %v1945_v12 }
0x1021   :  { %v10240_v14 = vpop.eup %10239 }
0x1022   :  { %v1953_v15 = vsel %vm223_vm1, %v10240_v14, 0.0 }
0x1023   :  { %1954 = vadd.xlane.f32.xlu1 %v1953_v15 }
0x1029   :  { %v2078_v16 = vpop.permute.xlu0 %2077 }
0x1031   :  { %v10010_v34 = vpop.permute.xlu0 %10009 }
0x1032   :  { %v10012_v22 = vunpack.i.h.bf16 %v10010_v34  ;;  %v10011_v56 = vunpack.i.l.bf16 %v10010_v34 }
0x1034   :  { %2596 = vmatpush.msrb.mxu1 %v10011_v56  ;;  %2622 = vmatpush.msra.mxu2 %v10012_v22 }
0x105e   :  { %v2194_v37 = vpop.xlane.xlu2 %2193 }
0x105f   :  { %v2202_v49 = vsub.f32 %v2130_v33, %v2194_v37 }
0x1061   :  { %v11243_v24 = vpop.f32.mrf.mxu1  ;;  %v2207_v50 = vmul.f32 1.442695, %v2202_v49 }
0x1063   :  { %10241 = vpow2.f32 %v2207_v50 }
0x1065   :  { %v11245_v47 = vpop.f32.mrf.mxu2 }
0x1066   :  { %v2080_v29 = vpop.permute.xlu2 %2079 }
0x1067   :  { %9603 = vmatpush.xpose.msk.msra.mxu3 %vm223_vm1, %v2080_v29 }
0x1069   :  { %v2444_v19 = vpop.f32.mrf.mxu1  ;;  %v10242_v57 = vpop.eup %10241 }
0x106a   :  { %v2531_v10 = vsel %vm223_vm1, %v2444_v19, -inf  ;;  %v2216_v27 = vsel %vm223_vm1, %v10242_v57, 0.0 }
0x106b   :  { %2532 = vmax.xlane.f32.xlu0 %v2531_v10  ;;  %2217 = vadd.xlane.f32.xlu1 %v2216_v27 }
0x106d   :  { %v2472_v28 = vpop.f32.mrf.mxu2 }
0x106e   :  { %v2534_v42 = vsel %vm223_vm1, %v2472_v28, -inf  ;;  %v2727_v53 = vpop.permute.xlu2 %2726 }
0x1071   :  { %v2500_v30 = vpop.f32.mrf.mxu1 }
0x1072   :  { %v2537_v36 = vsel %vm223_vm1, %v2500_v30, -inf }
0x1073   :  { %2538 = vmax.xlane.f32.xlu2 %v2537_v36 }
0x1075   :  { %v2528_v31 = vpop.f32.mrf.mxu2 }
0x1076   :  { %v2540_v39 = vsel %vm223_vm1, %v2528_v31, -inf }
0x1077   :  { %2541 = vmax.xlane.f32.xlu0 %v2540_v39 }
0x1084   :  { %2259 = vrot.lane.b32.xlu1 %v11129_v17, %s10692_s30 }
0x108b   :  { %2752 = vrot.lane.b32.xlu2 %v11129_v17, %s10697_s8  ;;  %2724 = vrot.lane.b32.xlu0 %v11121_v8, %s10697_s8  ;;  %v11265_v17 = vpop.permute.xlu0 %2754 }
0x108c   :  { %2627 = vrot.lane.b32.xlu1 %v11125_v25, %s10695_s6 }
0x1096   :  { %v1955_v43 = vpop.xlane.xlu1 %1954 }
0x1097   :  { %10243 = vrcp.f32 %v1955_v43 }
0x109d   :  { %v10244_v44 = vpop.eup %10243 }
0x109e   :  { %v1969_v46 = vmul.f32 %v10244_v44, %v10240_v14 }
0x10a0   :  { %9599 = vmatmul.msk.f32.vlgmr.msrb.gmra.mxu3 %vm223_vm1, %v1969_v46 }
0x10a8   :  { %9604 = vmatmul.msk.f32.vlgmr.msra.gmra.mxu3 %vm223_vm1, %v2078_v16 }
0x10b6   :  { %2535 = vmax.xlane.f32.xlu1 %v2534_v42 }
0x10cf   :  { %2653 = vrot.lane.b32.xlu1 %v11131_v26, %s10695_s6 }
0x10de   :  { %v2533_v3 = vpop.xlane.xlu0 %2532  ;;  %v2218_v63 = vpop.xlane.xlu1 %2217 }
0x10df   :  { %v2543_v54 = vsub.f32 %v2444_v19, %v2533_v3 }
0x10e1   :  { %v2547_v55 = vmul.f32 1.442695, %v2543_v54 }
0x10e3   :  { %10245 = vpow2.f32 %v2547_v55 }
0x10e4   :  { %10247 = vrcp.f32 %v2218_v63 }
0x10e6   :  { %v2539_v58 = vpop.xlane.xlu2 %2538 }
0x10e7   :  { %v2545_v60 = vsub.f32 %v2500_v30, %v2539_v58 }
0x10e9   :  { %v10246_v61 = vpop.eup %10245  ;;  %v2551_v1 = vmul.f32 1.442695, %v2545_v60 }
0x10ea   :  { %v2555_v62 = vsel %vm223_vm1, %v10246_v61, 0.0  ;;  %v10248_v2 = vpop.eup %10247  ;;  %v2542_v48 = vpop.xlane.xlu0 %2541 }
0x10eb   :  { %2556 = vadd.xlane.f32.xlu0 %v2555_v62  ;;  %10249 = vpow2.f32 %v2551_v1  ;;  %v2230_v20 = vmul.f32 %v10248_v2, %v10242_v57  ;;  %v2546_v11 = vsub.f32 %v2528_v31, %v2542_v48 }
0x10ed   :  { %v2553_v14 = vmul.f32 1.442695, %v2546_v11 }
0x10ee   :  { %v2753_v10 = vpop.permute.xlu2 %2752 }
0x10f1   :  { %v10250_v45 = vpop.eup %10249 }
0x10f2   :  { %v2561_v33 = vsel %vm223_vm1, %v10250_v45, 0.0 }
0x10f6   :  { %v2260_v21 = vpop.permute.xlu1 %2259 }
0x10f7   :  { %2280 = vmatpush.msra.mxu0 %v2260_v21 }
0x10f8   :  { %9612 = vmatmul.msk.f32.vlgmr.msra.gmra.mxu0 %vm223_vm1, %v2230_v20 }
0x10f9   :  { %2405 = vmatpush.msrb.mxu0 %v1774_v51  ;;  %2562 = vadd.xlane.f32.xlu1 %v2561_v33 }
0x10fb   :  { %9639 = vmatpush.xpose.msk.msra.mxu0 %vm223_vm1, %v2727_v53 }
0x10fd   :  { %v2725_v49 = vpop.permute.xlu0 %2724 }
0x10fe   :  { %v2628_v6 = vpop.permute.xlu1 %2627 }
0x10ff   :  { %2782 = vrot.lane.b32.xlu0 %v11125_v25, %s10696_s7  ;;  %2648 = vmatpush.msra.mxu1 %v2628_v6 }
0x1107   :  { %2808 = vrot.lane.b32.xlu0 %v11131_v26, %s10697_s8 }
0x1112   :  { %2780 = vrot.lane.b32.xlu1 %v11125_v25, %s10697_s8 }
0x1123   :  { %v1996_v7 = vpop.f32.mrf.mxu3 }
0x1124   :  { %9619 = vmatmul.msk.f32.vlgmr.msrb.gmra.mxu0 %vm223_vm1, %v1996_v7 }
0x1129   :  { %v2536_v9 = vpop.xlane.xlu1 %2535 }
0x112a   :  { %v2544_v4 = vsub.f32 %v2472_v28, %v2536_v9 }
0x112b   :  { %v2102_v34 = vpop.f32.mrf.mxu3 }
0x112c   :  { %v2549_v12 = vmul.f32 1.442695, %v2544_v4  ;;  %9620 = vmatmul.msk.f32.gmra.mxu0 %vm223_vm1, %v11226_v5  ;;  %v2189_v56 = vsel %vm223_vm1, %v2102_v34, -inf }
0x112e   :  { %10251 = vpow2.f32 %v2549_v12 }
0x112f   :  { %10253 = vpow2.f32 %v2553_v14 }
0x1134   :  { %v10252_v15 = vpop.eup %10251  ;;  %9621 = vmatmul.msk.f32.gmra.mxu0 %vm223_vm1, %v11183_v40 }
0x1135   :  { %v2558_v16 = vsel %vm223_vm1, %v10252_v15, 0.0  ;;  %v10254_v22 = vpop.eup %10253 }
0x1136   :  { %2559 = vadd.xlane.f32.xlu2 %v2558_v16  ;;  %v2564_v5 = vsel %vm223_vm1, %v10254_v22, 0.0 }
0x113c   :  { %9622 = vmatmul.msk.f32.gmra.mxu0 %vm223_vm1, %v11181_v18  ;;  %2190 = vmax.xlane.f32.xlu1 %v2189_v56 }
0x113e   :  { %2565 = vadd.xlane.f32.xlu2 %v2564_v5 }
0x1141   :  { %v2654_v37 = vpop.permute.xlu1 %2653 }
0x1142   :  { %2674 = vmatpush.msrb.mxu2 %v2654_v37 }
0x1144   :  { %9640 = vmatmul.msk.f32.vlgmr.msra.gmra.mxu0 %vm223_vm1, %v2725_v49 }
0x1156   :  { %2810 = vrot.lane.b32.xlu2 %v11131_v26, %s10696_s7 }
0x115e   :  { %v2557_v40 = vpop.xlane.xlu0 %2556 }
0x115f   :  { %10255 = vrcp.f32 %v2557_v40 }
0x1165   :  { %v10256_v50 = vpop.eup %10255 }
0x1166   :  { %v2571_v29 = vmul.f32 %v10256_v50, %v10246_v61 }
0x1168   :  { %9631 = vmatmul.msk.f32.vlgmr.msrb.gmra.mxu1 %vm223_vm1, %v2571_v29 }
0x1169   :  { %9641 = vmatpush.xpose.msk.msrb.mxu1 %vm223_vm1, %v11265_v17 }
0x116c   :  { %v2563_v18 = vpop.xlane.xlu1 %2562 }
0x116d   :  { %10257 = vrcp.f32 %v2563_v18 }
0x1171   :  { %v2783_v53 = vpop.permute.xlu0 %2782 }
0x1173   :  { %v10258_v19 = vpop.eup %10257 }
0x1174   :  { %v2573_v57 = vmul.f32 %v10258_v19, %v10250_v45 }
0x1175   :  { %v11295_v27 = vpop.f32.mrf.mxu0 }
0x1176   :  { %9633 = vmatmul.msk.f32.vlgmr.msra.gmra.mxu1 %vm223_vm1, %v2573_v57 }
0x1179   :  { %v2809_v63 = vpop.permute.xlu0 %2808 }
0x117e   :  { %9642 = vmatmul.msk.f32.vlgmr.msrb.gmra.mxu1 %vm223_vm1, %v2753_v10 }
0x1184   :  { %v2781_v30 = vpop.permute.xlu1 %2780 }
0x11a1   :  { %v11297_v28 = vpop.f32.mrf.mxu0 }
0x11a9   :  { %v11299_v36 = vpop.f32.mrf.mxu0  ;;  %v2560_v31 = vpop.xlane.xlu2 %2559 }
0x11aa   :  { %10259 = vrcp.f32 %v2560_v31 }
0x11af   :  { %v2191_v39 = vpop.xlane.xlu1 %2190 }
0x11b0   :  { %v10260_v43 = vpop.eup %10259  ;;  %v2201_v44 = vsub.f32 %v2102_v34, %v2191_v39 }
0x11b1   :  { %v2572_v46 = vmul.f32 %v10260_v43, %v10252_v15  ;;  %v11301_v42 = vpop.f32.mrf.mxu0  ;;  %v2566_v17 = vpop.xlane.xlu2 %2565 }
0x11b2   :  { %v2205_v3 = vmul.f32 1.442695, %v2201_v44  ;;  %10261 = vrcp.f32 %v2566_v17 }
0x11b3   :  { %9632 = vmatmul.msk.f32.vlgmr.msra.gmra.mxu2 %vm223_vm1, %v2572_v46 }
0x11b4   :  { %10263 = vpow2.f32 %v2205_v3  ;;  %9643 = vmatpush.xpose.msk.msra.mxu2 %vm223_vm1, %v2783_v53 }
0x11b8   :  { %v10262_v54 = vpop.eup %10261 }
0x11b9   :  { %v2574_v55 = vmul.f32 %v10262_v54, %v10254_v22  ;;  %v11305_v58 = vpop.f32.mrf.mxu0  ;;  %v2811_v60 = vpop.permute.xlu2 %2810 }
0x11ba   :  { %v10264_v61 = vpop.eup %10263  ;;  %9645 = vmatpush.xpose.msk.msrb.mxu0 %vm223_vm1, %v2811_v60 }
0x11bb   :  { %9634 = vmatmul.msk.f32.vlgmr.msrb.gmra.mxu2 %vm223_vm1, %v2574_v55  ;;  %v2213_v62 = vsel %vm223_vm1, %v10264_v61, 0.0  ;;  %v1775_v55 = vld [vmem:[#allocation6 + $0x160] sm:$0xff] }
0x11bc   :  { %2214 = vadd.xlane.f32.xlu1 %v2213_v62 }
0x11bd   :  { %9646 = vmatmul.msk.f32.vlgmr.msrb.gmra.mxu0 %vm223_vm1, %v2809_v63  ;;  %v1776_v63 = vld [vmem:[#allocation6 + $0x168] sm:$0xff] }
0x11c1   :  { %v2749_v1 = vpop.f32.mrf.mxu0 }
0x11c2   :  { %v2836_v2 = vsel %vm223_vm1, %v2749_v1, -inf }
0x11c3   :  { %2837 = vmax.xlane.f32.xlu2 %v2836_v2  ;;  %9644 = vmatmul.msk.f32.vlgmr.msra.gmra.mxu2 %vm223_vm1, %v2781_v30 }
0x11e5   :  { %v11313_v45 = vpop.f32.mrf.mxu1 }
0x11f3   :  { %v11315_v20 = vpop.f32.mrf.mxu1 }
0x11fb   :  { %v2777_v21 = vpop.f32.mrf.mxu1 }
0x11fc   :  { %v2839_v51 = vsel %vm223_vm1, %v2777_v21, -inf }
0x11fd   :  { %2840 = vmax.xlane.f32.xlu0 %v2839_v51 }
0x1211   :  { %2233 = vrot.lane.b32.xlu0 %v11121_v8, %s10692_s30 }
0x122f   :  { %v2215_v56 = vpop.xlane.xlu1 %2214 }
0x1236   :  { %v11320_v33 = vpop.f32.mrf.mxu2  ;;  %v2838_v7 = vpop.xlane.xlu2 %2837 }
0x1237   :  { %v2848_v9 = vsub.f32 %v2749_v1, %v2838_v7 }
0x1239   :  { %v2852_v11 = vmul.f32 1.442695, %v2848_v9  ;;  %v3418_v9 = vld [vmem:[#allocation6 + $0x250] sm:$0xff] }
0x123a   :  { %v2833_v6 = vpop.f32.mrf.mxu0 }
0x123b   :  { %v2845_v48 = vsel %vm223_vm1, %v2833_v6, -inf  ;;  %10265 = vpow2.f32 %v2852_v11  ;;  %v3417_v11 = vld [vmem:[#allocation6 + $0x248] sm:$0xff] }
0x123c   :  { %2846 = vmax.xlane.f32.xlu1 %v2845_v48 }
0x123e   :  { %v11323_v4 = vpop.f32.mrf.mxu2 }
0x1241   :  { %v10266_v15 = vpop.eup %10265 }
0x1242   :  { %v2860_v16 = vsel %vm223_vm1, %v10266_v15, 0.0 }
0x1246   :  { %v2805_v12 = vpop.f32.mrf.mxu2 }
0x1247   :  { %v2842_v14 = vsel %vm223_vm1, %v2805_v12, -inf }
0x1248   :  { %2843 = vmax.xlane.f32.xlu2 %v2842_v14 }
0x1250   :  { %2861 = vadd.xlane.f32.xlu2 %v2860_v16 }
0x1268   :  { %10014 = vrot.lane.b32.xlu2 %v11220_v59, %s10698_s9 }
0x1270   :  { %v2841_v8 = vpop.xlane.xlu0 %2840  ;;  %2958 = vrot.lane.b32.xlu2 %v11131_v26, %s10698_s9 }
0x1271   :  { %v2849_v34 = vsub.f32 %v2777_v21, %v2841_v8 }
0x1273   :  { %v2854_v22 = vmul.f32 1.442695, %v2849_v34  ;;  %v11359_v34 = vld [vmem:[#allocation6 + $0x178] ss:$0 sm:$0xff] }
0x1275   :  { %10267 = vpow2.f32 %v2854_v22 }
0x1276   :  { %10269 = vrcp.f32 %v2215_v56 }
0x127b   :  { %v10268_v5 = vpop.eup %10267 }
0x127c   :  { %v2863_v37 = vsel %vm223_vm1, %v10268_v5, 0.0  ;;  %v10270_v49 = vpop.eup %10269 }
0x127d   :  { %2864 = vadd.xlane.f32.xlu1 %v2863_v37  ;;  %v2229_v40 = vmul.f32 %v10270_v49, %v10264_v61 }
0x1283   :  { %v2234_v50 = vpop.permute.xlu0 %2233 }
0x1284   :  { %2254 = vmatpush.msrb.mxu3 %v2234_v50 }
0x1285   :  { %9611 = vmatmul.msk.f32.vlgmr.msrb.gmra.mxu3 %vm223_vm1, %v2229_v40 }
0x1286   :  { %2364 = vmatpush.msra.mxu3 %v1775_v55 }
0x1288   :  { %2706 = vmatpush.msrb.mxu3 %v1776_v63 }
0x12af   :  { %v2847_v59 = vpop.xlane.xlu1 %2846 }
0x12b0   :  { %v2851_v29 = vsub.f32 %v2833_v6, %v2847_v59 }
0x12b2   :  { %v2858_v18 = vmul.f32 1.442695, %v2851_v29 }
0x12b4   :  { %10271 = vpow2.f32 %v2858_v18 }
0x12ba   :  { %v10272_v26 = vpop.eup %10271 }
0x12bb   :  { %v2844_v19 = vpop.xlane.xlu2 %2843  ;;  %v2869_v57 = vsel %vm223_vm1, %v10272_v26, 0.0 }
0x12bc   :  { %v2850_v10 = vsub.f32 %v2805_v12, %v2844_v19  ;;  %2870 = vadd.xlane.f32.xlu0 %v2869_v57  ;;  %v3415_v12 = vld [vmem:[#allocation6 + $0x238] sm:$0xff] }
0x12be   :  { %v2856_v30 = vmul.f32 1.442695, %v2850_v10 }
0x12c0   :  { %10273 = vpow2.f32 %v2856_v30 }
0x12c3   :  { %v2862_v31 = vpop.xlane.xlu2 %2861 }
0x12c4   :  { %10275 = vrcp.f32 %v2862_v31 }
0x12c6   :  { %v10274_v39 = vpop.eup %10273 }
0x12c7   :  { %v2866_v43 = vsel %vm223_vm1, %v10274_v39, 0.0 }
0x12c8   :  { %2867 = vadd.xlane.f32.xlu1 %v2866_v43  ;;  %v3153_v43 = vld [vmem:[#allocation6 + $0x1a8] sm:$0xff] }
0x12ca   :  { %v10276_v44 = vpop.eup %10275 }
0x12cb   :  { %v10015_v46 = vpop.permute.xlu2 %10014  ;;  %v2876_v3 = vmul.f32 %v10276_v44, %v10266_v15  ;;  %v3151_v44 = vld [vmem:[#allocation6 + $0x198] sm:$0xff] }
0x12cc   :  { %v10017_v17 = vunpack.i.h.bf16 %v10015_v46  ;;  %v10016_v53 = vunpack.i.l.bf16 %v10015_v46 }
0x12ce   :  { %2901 = vmatpush.msra.mxu1 %v10016_v53  ;;  %2927 = vmatpush.msrb.mxu2 %v10017_v17  ;;  %v3150_v17 = vld [vmem:[#allocation6 + $0x190] sm:$0xff] }
0x12cf   :  { %9647 = vmatmul.msk.f32.vlgmr.msra.gmra.mxu1 %vm223_vm1, %v2876_v3 }
0x12d3   :  { %v2959_v54 = vpop.permute.xlu2 %2958 }
0x12d4   :  { %2979 = vmatpush.msrb.mxu1 %v2959_v54 }
0x12e1   :  { %2932 = vrot.lane.b32.xlu1 %v11125_v25, %s10698_s9  ;;  %v1777_v25 = vld [vmem:[#allocation6 + $0x170] sm:$0xff] }
0x12e2   :  { %3011 = vmatpush.msra.mxu2 %v1777_v25 }
0x12f0   :  { %v2865_v60 = vpop.xlane.xlu1 %2864 }
0x12f1   :  { %10277 = vrcp.f32 %v2865_v60 }
0x12f7   :  { %v10278_v61 = vpop.eup %10277 }
0x12f8   :  { %v2877_v62 = vmul.f32 %v10278_v61, %v10268_v5 }
0x12fa   :  { %9648 = vmatmul.msk.f32.vlgmr.msrb.gmra.mxu2 %vm223_vm1, %v2877_v62 }
0x12fb   :  { %3438 = vmatpush.msrb.mxu2 %v3418_v9 }
0x12fd   :  { %3439 = vmatpush.msrb.mxu2 %v3417_v11 }
0x1308   :  { %v2256_v1 = vpop.f32.mrf.mxu3 }
0x1309   :  { %9615 = vmatmul.msk.f32.vlgmr.msra.gmra.mxu3 %vm223_vm1, %v2256_v1 }
0x1311   :  { %9616 = vmatmul.msk.f32.gmra.mxu3 %vm223_vm1, %v11295_v27 }
0x1319   :  { %9617 = vmatmul.msk.f32.gmra.mxu3 %vm223_vm1, %v11243_v24 }
0x1321   :  { %9618 = vmatmul.msk.f32.gmra.mxu3 %vm223_vm1, %v11245_v47 }
0x1329   :  { %9635 = vmatmul.msk.f32.vlgmr.msrb.gmra.mxu3 %vm223_vm1, %v11313_v45 }
0x132f   :  { %v2871_v2 = vpop.xlane.xlu0 %2870 }
0x1330   :  { %10279 = vrcp.f32 %v2871_v2 }
0x1331   :  { %9636 = vmatmul.msk.f32.gmra.mxu3 %vm223_vm1, %v11320_v33 }
0x1336   :  { %v10280_v21 = vpop.eup %10279 }
0x1337   :  { %v2879_v51 = vmul.f32 %v10280_v21, %v10272_v26 }
0x1339   :  { %9637 = vmatmul.msk.f32.gmra.mxu3 %vm223_vm1, %v11315_v20  ;;  %9650 = vmatmul.msk.f32.vlgmr.msrb.gmra.mxu1 %vm223_vm1, %v2879_v51 }
0x133b   :  { %v2868_v24 = vpop.xlane.xlu1 %2867 }
0x133c   :  { %10281 = vrcp.f32 %v2868_v24 }
0x1341   :  { %9638 = vmatmul.msk.f32.gmra.mxu3 %vm223_vm1, %v11323_v4  ;;  %v3416_v4 = vld [vmem:[#allocation6 + $0x240] sm:$0xff] }
0x1342   :  { %v10282_v27 = vpop.eup %10281  ;;  %3440 = vmatpush.msrb.mxu2 %v3416_v4 }
0x1343   :  { %v2878_v45 = vmul.f32 %v10282_v27, %v10274_v39 }
0x1344   :  { %3441 = vmatpush.msrb.mxu2 %v3415_v12 }
0x134c   :  { %v2903_v47 = vpop.f32.mrf.mxu1 }
0x134d   :  { %9651 = vmatmul.msk.f32.vlgmr.msra.gmra.mxu2 %vm223_vm1, %v2903_v47 }
0x1353   :  { %v2933_v6 = vpop.permute.xlu1 %2932 }
0x1354   :  { %2953 = vmatpush.msra.mxu0 %v2933_v6 }
0x1355   :  { %9649 = vmatmul.msk.f32.vlgmr.msra.gmra.mxu0 %vm223_vm1, %v2878_v45 }
0x1356   :  { %3189 = vmatpush.msrb.mxu0 %v3153_v43 }
0x137d   :  { %v2929_v33 = vpop.f32.mrf.mxu2 }
0x137e   :  { %9652 = vmatmul.msk.f32.gmra.mxu2 %vm223_vm1, %v2929_v33 }
0x138c   :  { %v2366_v20 = vpop.f32.mrf.mxu3 }
0x138d   :  { %v2408_v16 = vadd.f32 %v11297_v28, %v2366_v20 }
0x1394   :  { %v2369_v7 = vpop.f32.mrf.mxu3 }
0x1395   :  { %v2411_v29 = vadd.f32 %v11299_v36, %v2369_v7  ;;  %v3152_v36 = vld [vmem:[#allocation6 + $0x1a0] sm:$0xff] }
0x1396   :  { %3190 = vmatpush.msrb.mxu0 %v3152_v36 }
0x1398   :  { %3191 = vmatpush.msrb.mxu0 %v3151_v44 }
0x139a   :  { %3192 = vmatpush.msrb.mxu0 %v3150_v17 }
0x139c   :  { %v2372_v48 = vpop.f32.mrf.mxu3 }
0x139d   :  { %v2414_v62 = vadd.f32 %v11301_v42, %v2372_v48 }
0x13a4   :  { %v2375_v14 = vpop.f32.mrf.mxu3 }
0x13a5   :  { %v2417_v24 = vadd.f32 %v11305_v58, %v2375_v14 }
0x13ac   :  { %v2708_v15 = vpop.f32.mrf.mxu3 }
0x13ad   :  { %v2720_v8 = vadd.f32 %v2708_v15, %v2408_v16 }
0x13b6   :  { %v2981_v59 = vpop.f32.mrf.mxu1 }
0x13d0   :  { %v3013_v22 = vpop.f32.mrf.mxu2 }
0x13d1   :  { %v3025_v56 = vadd.f32 %v3013_v22, %v2720_v8  ;;  %v11410_v8 = vld [vmem:[#allocation6 + $0x180] ss:$0 sm:$0xff] }
0x13d2   :  { %v2955_v5 = vpop.f32.mrf.mxu0 }
0x13d3   :  { %v3030_v37 = vadd.f32 %v11359_v34, %v3025_v56  ;;  %9653 = vmatmul.msk.f32.gmra.mxu2 %vm223_vm1, %v2955_v5  ;;  %v11413_v5 = vld [vmem:[#allocation6 + $0x188] ss:$0 sm:$0xff] }
0x13d5   :  { %v11364_v49 = vadd.f32 %v3030_v37, %v11096_v23  ;;  %v2711_v23 = vpop.f32.mrf.mxu3 }
0x13d6   :  { %v2721_v18 = vadd.f32 %v2711_v23, %v2411_v29 }
0x13d7   :  { %v3040_v40 = vsel %vm71_vm0, %v11364_v49, 0.0  ;;  %v3056_v50 = vmul.f32 %v11364_v49, %v11364_v49 }
0x13d8   :  { %3041 = vadd.xlane.f32.xlu2 %v3040_v40 }
0x13d9   :  { %v3060_v28 = vsel %vm71_vm0, %v3056_v50, 0.0  ;;  %v11423_v50 = vld [vmem:[#allocation6 + $0x258] ss:$0 sm:$0xff] }
0x13da   :  { %3061 = vadd.xlane.f32.xlu1 %v3060_v28 }
0x13db   :  { %9654 = vmatmul.msk.f32.gmra.mxu2 %vm223_vm1, %v2981_v59 }
0x13dd   :  { %v2714_v55 = vpop.f32.mrf.mxu3 }
0x13de   :  { %v2722_v1 = vadd.f32 %v2714_v55, %v2414_v62  ;;  %v3162_v62 = vld [vmem:[#allocation6 + $0x1f0] sm:$0xff] }
0x13df   :  { %3231 = vmatpush.msra.mxu3 %v3162_v62 }
0x13e3   :  { %9667 = vmatmul.msk.f32.vlgmr.msrb.gmra.mxu2 %vm71_vm0, %v10751_v38 }
0x13e5   :  { %v2717_v51 = vpop.f32.mrf.mxu3 }
0x13e6   :  { %v2723_v45 = vadd.f32 %v2717_v51, %v2417_v24  ;;  %v3155_v51 = vld [vmem:[#allocation6 + $0x1b8] sm:$0xff] }
0x13eb   :  { %9668 = vmatmul.msk.f32.gmra.mxu2 %vm71_vm0, %v10755_v41 }
0x13f3   :  { %9669 = vmatmul.msk.f32.gmra.mxu2 %vm71_vm0, %v10743_v32 }
0x13fb   :  { %9670 = vmatmul.msk.f32.gmra.mxu2 %vm71_vm0, %v10747_v35 }
0x1401   :  { %v3016_v26 = vpop.f32.mrf.mxu2 }
0x1402   :  { %v3026_v19 = vadd.f32 %v3016_v26, %v2721_v18 }
0x1404   :  { %v3031_v57 = vadd.f32 %v11359_v34, %v3026_v19 }
0x1406   :  { %v11383_v10 = vadd.f32 %v3031_v57, %v11103_v0 }
0x1408   :  { %v3043_v30 = vsel %vm71_vm0, %v11383_v10, 0.0  ;;  %v3057_v31 = vmul.f32 %v11383_v10, %v11383_v10 }
0x1409   :  { %3044 = vadd.xlane.f32.xlu0 %v3043_v30 }
0x140a   :  { %v3063_v39 = vsel %vm71_vm0, %v3057_v31, 0.0 }
0x1411   :  { %3064 = vadd.xlane.f32.xlu0 %v3063_v39 }
0x144b   :  { %v3042_v46 = vpop.xlane.xlu2 %3041 }
0x144c   :  { %v3052_v53 = vmul.f32 0.03125, %v3042_v46 }
0x144d   :  { %v3062_v0 = vpop.xlane.xlu1 %3061 }
0x144e   :  { %v3076_v3 = vmul.f32 %v3052_v53, %v3052_v53  ;;  %v3072_v54 = vmul.f32 0.03125, %v3062_v0  ;;  %v3088_v16 = vsub.f32 %v11364_v49, %v3052_v53 }
0x1450   :  { %v3080_v60 = vsub.f32 %v3072_v54, %v3076_v3 }
0x1452   :  { %v3084_v61 = vmax.f32 %v3080_v60, 0.0 }
0x1454   :  { %v3092_v63 = vadd.f32 1e-05, %v3084_v61 }
0x1456   :  { %10283 = vrsqrt.f32 %v3092_v63  ;;  %v3019_v25 = vpop.f32.mrf.mxu2  ;;  %vm3102_vm15 = vweird.f32 %v3092_v63 }
0x1457   :  { %v3027_v2 = vadd.f32 %v3019_v25, %v2722_v1  ;;  %v3160_v1 = vld [vmem:[#allocation6 + $0x1e0] sm:$0xff]  ;;  %v3159_v25 = vld [vmem:[#allocation6 + $0x1d8] sm:$0xff] }
0x1459   :  { %v3032_v21 = vadd.f32 %v11359_v34, %v3027_v2  ;;  %v3157_v2 = vld [vmem:[#allocation6 + $0x1c8] sm:$0xff] }
0x145b   :  { %v11394_v47 = vadd.f32 %v3032_v21, %v11110_v13  ;;  %v3156_v21 = vld [vmem:[#allocation6 + $0x1c0] sm:$0xff] }
0x145c   :  { %v10284_v27 = vpop.eup %10283 }
0x145d   :  { %v3097_v6 = vmul.f32 %v10284_v27, %v3092_v63  ;;  %v3046_v33 = vsel %vm71_vm0, %v11394_v47, 0.0  ;;  %v3058_v11 = vmul.f32 %v11394_v47, %v11394_v47  ;;  %vm3103_vm13 = vweird.f32 %v10284_v27  ;;  %v3161_v63 = vld [vmem:[#allocation6 + $0x1e8] sm:$0xff] }
0x145e   :  { %3047 = vadd.xlane.f32.xlu0 %v3046_v33  ;;  %v3022_v42 = vpop.f32.mrf.mxu2  ;;  %vm3104_vm2 = vmor %vm3102_vm15, %vm3103_vm13  ;;  %3232 = vmatpush.msra.mxu3 %v3161_v63 }
0x145f   :  { %v3098_v20 = vmul.f32 %v10284_v27, %v3097_v6  ;;  %v3028_v7 = vadd.f32 %v3022_v42, %v2723_v45  ;;  %v3066_v12 = vsel %vm71_vm0, %v3058_v11, 0.0 }
0x1460   :  { %3233 = vmatpush.msra.mxu3 %v3160_v1 }
0x1461   :  { %v3099_v48 = vmul.f32 0.5, %v3098_v20  ;;  %v3033_v9 = vadd.f32 %v11359_v34, %v3028_v7 }
0x1462   :  { %3234 = vmatpush.msra.mxu3 %v3159_v25 }
0x1463   :  { %v3100_v58 = vsub.f32 1.5, %v3099_v48  ;;  %v11402_v13 = vadd.f32 %v3033_v9, %v11117_v52 }
0x1465   :  { %v3101_v4 = vmul.f32 %v10284_v27, %v3100_v58  ;;  %v3049_v14 = vsel %vm71_vm0, %v11402_v13, 0.0  ;;  %v3059_v15 = vmul.f32 %v11402_v13, %v11402_v13 }
0x1466   :  { %3067 = vadd.xlane.f32.xlu0 %v3066_v12  ;;  %v3443_v34 = vpop.f32.mrf.mxu2  ;;  %3050 = vadd.xlane.f32.xlu2 %v3049_v14 }
0x1467   :  { %v3105_v52 = vsel %vm3104_vm2, %v10284_v27, %v3101_v4  ;;  %v3069_v22 = vsel %vm71_vm0, %v3059_v15, 0.0  ;;  %v11428_v59 = vadd.f32 %v11423_v50, %v3443_v34  ;;  %v10108_v34 = vld [vmem:[#allocation6 + $0x1b0] ss:$0 sm:$0xff] }
0x1468   :  { %v3136_v56 = vmul.f32 %v3105_v52, %v3088_v16  ;;  %3070 = vadd.xlane.f32.xlu1 %v3069_v22 }
0x146a   :  { %v3141_v37 = vmul.f32 %v11410_v8, %v3136_v56 }
0x146c   :  { %v11417_v40 = vadd.f32 %v11413_v5, %v3141_v37 }
0x146e   :  { %9655 = vmatmul.msk.f32.vlgmr.msrb.gmra.mxu0 %vm71_vm0, %v11417_v40  ;;  %v11421_v49 = vpop.f32.mrf.mxu2 }
0x1476   :  { %v11425_v28 = vpop.f32.mrf.mxu2 }
0x147a   :  { %3456 = vrot.lane.b32.xlu0 %v11428_v59, %s10688_s0 }
0x147c   :  { %v3045_v23 = vpop.xlane.xlu0 %3044 }
0x147d   :  { %v3053_v26 = vmul.f32 0.03125, %v3045_v23 }
0x147e   :  { %v3452_v29 = vpop.f32.mrf.mxu2 }
0x147f   :  { %v11433_v18 = vadd.f32 %v11423_v50, %v3452_v29  ;;  %v3077_v57 = vmul.f32 %v3053_v26, %v3053_v26  ;;  %v3089_v3 = vsub.f32 %v11383_v10, %v3053_v26  ;;  %v3158_v10 = vld [vmem:[#allocation6 + $0x1d0] sm:$0xff] }
0x1480   :  { %3235 = vmatpush.msra.mxu3 %v3158_v10  ;;  %v11466_v10 = vld [vmem:[#allocation6 + $0x1f8] ss:$0 sm:$0xff] }
0x1481   :  { %3537 = vrot.lane.b32.xlu2 %v11433_v18, %s10688_s0 }
0x1482   :  { %3236 = vmatpush.msra.mxu3 %v3157_v2 }
0x1484   :  { %v3065_v19 = vpop.xlane.xlu0 %3064  ;;  %3237 = vmatpush.msra.mxu3 %v3156_v21 }
0x1485   :  { %v3073_v30 = vmul.f32 0.03125, %v3065_v19 }
0x1486   :  { %3238 = vmatpush.msra.mxu3 %v3155_v51 }
0x1487   :  { %v3081_v31 = vsub.f32 %v3073_v30, %v3077_v57 }
0x1489   :  { %v3085_v39 = vmax.f32 %v3081_v31, 0.0 }
0x148b   :  { %v3093_v43 = vadd.f32 1e-05, %v3085_v39 }
0x148d   :  { %10285 = vrsqrt.f32 %v3093_v43  ;;  %vm3112_vm4 = vweird.f32 %v3093_v43 }
0x1493   :  { %v10286_v36 = vpop.eup %10285 }
0x1494   :  { %v3107_v44 = vmul.f32 %v10286_v36, %v3093_v43  ;;  %vm3113_vm3 = vweird.f32 %v10286_v36 }
0x1495   :  { %vm3114_vm5 = vmor %vm3112_vm4, %vm3113_vm3 }
0x1496   :  { %v3108_v46 = vmul.f32 %v10286_v36, %v3107_v44 }
0x1498   :  { %v3109_v17 = vmul.f32 0.5, %v3108_v46 }
0x149a   :  { %v3110_v53 = vsub.f32 1.5, %v3109_v17 }
0x149c   :  { %v3111_v0 = vmul.f32 %v10286_v36, %v3110_v53 }
0x149e   :  { %v3115_v54 = vsel %vm3114_vm5, %v10286_v36, %v3111_v0 }
0x149f   :  { %v3137_v55 = vmul.f32 %v3115_v54, %v3089_v3 }
0x14a1   :  { %v3142_v60 = vmul.f32 %v11410_v8, %v3137_v55 }
0x14a3   :  { %v11440_v61 = vadd.f32 %v11413_v5, %v3142_v60 }
0x14a5   :  { %9656 = vmatmul.msk.f32.gmra.mxu0 %vm71_vm0, %v11440_v61 }
0x14d1   :  { %v3048_v24 = vpop.xlane.xlu0 %3047 }
0x14d2   :  { %v3054_v27 = vmul.f32 0.03125, %v3048_v24 }
0x14d4   :  { %v3078_v33 = vmul.f32 %v3054_v27, %v3054_v27  ;;  %v3090_v46 = vsub.f32 %v11394_v47, %v3054_v27 }
0x14d9   :  { %v3068_v45 = vpop.xlane.xlu0 %3067  ;;  %v3051_v6 = vpop.xlane.xlu2 %3050 }
0x14da   :  { %v3074_v42 = vmul.f32 0.03125, %v3068_v45  ;;  %v3055_v20 = vmul.f32 0.03125, %v3051_v6 }
0x14db   :  { %v3071_v7 = vpop.xlane.xlu1 %3070 }
0x14dc   :  { %v3082_v48 = vsub.f32 %v3074_v42, %v3078_v33  ;;  %v3079_v9 = vmul.f32 %v3055_v20, %v3055_v20  ;;  %v3075_v11 = vmul.f32 0.03125, %v3071_v7  ;;  %v3091_v54 = vsub.f32 %v11402_v13, %v3055_v20 }
0x14de   :  { %v3086_v58 = vmax.f32 %v3082_v48, 0.0  ;;  %v3083_v4 = vsub.f32 %v3075_v11, %v3079_v9  ;;  %v11483_v11 = vadd.f32 %v11423_v50, %v11421_v49 }
0x14e0   :  { %v3094_v12 = vadd.f32 1e-05, %v3086_v58  ;;  %v3087_v14 = vmax.f32 %v3083_v4, 0.0 }
0x14e1   :  { %v3538_v30 = vpop.permute.xlu2 %3537 }
0x14e2   :  { %10287 = vrsqrt.f32 %v3094_v12  ;;  %v3095_v15 = vadd.f32 1e-05, %v3087_v14  ;;  %vm3122_vm7 = vweird.f32 %v3094_v12  ;;  %v11495_v14 = vadd.f32 %v11423_v50, %v11425_v28  ;;  %v3368_v50 = vld [vmem:[#allocation6 + $0x210] sm:$0xff] }
0x14e4   :  { %10289 = vrsqrt.f32 %v3095_v15  ;;  %vm3132_vm10 = vweird.f32 %v3095_v15 }
0x14e8   :  { %v10288_v16 = vpop.eup %10287 }
0x14e9   :  { %v3117_v52 = vmul.f32 %v10288_v16, %v3094_v12  ;;  %vm3123_vm6 = vweird.f32 %v10288_v16 }
0x14ea   :  { %v10290_v22 = vpop.eup %10289  ;;  %vm3124_vm9 = vmor %vm3122_vm7, %vm3123_vm6 }
0x14eb   :  { %v3118_v56 = vmul.f32 %v10288_v16, %v3117_v52  ;;  %v3127_v37 = vmul.f32 %v10290_v22, %v3095_v15  ;;  %v3194_v23 = vpop.f32.mrf.mxu0  ;;  %vm3133_vm8 = vweird.f32 %v10290_v22  ;;  %v3369_v52 = vld [vmem:[#allocation6 + $0x218] sm:$0xff] }
0x14ec   :  { %v3195_v29 = vadd.f32 %v10108_v34, %v3194_v23  ;;  %v3457_v26 = vpop.permute.xlu0 %3456  ;;  %vm3134_vm11 = vmor %vm3132_vm10, %vm3133_vm8 }
0x14ed   :  { %v3119_v19 = vmul.f32 0.5, %v3118_v56  ;;  %v3128_v57 = vmul.f32 %v10290_v22, %v3127_v37  ;;  %9671 = vmatpush.xpose.msk.msra.mxu0 %vm223_vm1, %v3457_v26 }
0x14ee   :  { %v3206_v31 = vmax.f32 %v3195_v29, 0.0 }
0x14ef   :  { %v3120_v39 = vsub.f32 1.5, %v3119_v19  ;;  %v3129_v43 = vmul.f32 0.5, %v3128_v57 }
0x14f0   :  { %9659 = vmatmul.msk.f32.vlgmr.msra.gmra.mxu3 %vm1611_vm14, %v3206_v31 }
0x14f1   :  { %9677 = vmatpush.xpose.msk.msrb.mxu0 %vm223_vm1, %v3538_v30  ;;  %v3121_v36 = vmul.f32 %v10288_v16, %v3120_v39  ;;  %v3130_v44 = vsub.f32 1.5, %v3129_v43 }
0x14f3   :  { %v3131_v17 = vmul.f32 %v10290_v22, %v3130_v44  ;;  %v3125_v53 = vsel %vm3124_vm9, %v10288_v16, %v3121_v36 }
0x14f4   :  { %v3138_v0 = vmul.f32 %v3125_v53, %v3090_v46 }
0x14f5   :  { %v3135_v3 = vsel %vm3134_vm11, %v10290_v22, %v3131_v17 }
0x14f6   :  { %v3143_v55 = vmul.f32 %v11410_v8, %v3138_v0  ;;  %v3139_v62 = vmul.f32 %v3135_v3, %v3091_v54 }
0x14f8   :  { %v11451_v60 = vadd.f32 %v11413_v5, %v3143_v55  ;;  %v3144_v47 = vmul.f32 %v11410_v8, %v3139_v62 }
0x14fa   :  { %9657 = vmatmul.msk.f32.gmra.mxu0 %vm71_vm0, %v11451_v60  ;;  %v11457_v63 = vadd.f32 %v11413_v5, %v3144_v47 }
0x1502   :  { %9658 = vmatmul.msk.f32.gmra.mxu0 %vm71_vm0, %v11457_v63 }
0x150a   :  { %9672 = vmatmul.msk.f32.vlgmr.msra.gmra.mxu0 %vm223_vm1, %v11428_v59 }
0x1512   :  { %9678 = vmatmul.msk.f32.vlgmr.msrb.gmra.mxu0 %vm223_vm1, %v11433_v18 }
0x1522   :  { %v3197_v13 = vpop.f32.mrf.mxu0 }
0x1523   :  { %v3198_v1 = vadd.f32 %v10108_v34, %v3197_v13 }
0x1525   :  { %v3207_v25 = vmax.f32 %v3198_v1, 0.0 }
0x1527   :  { %9660 = vmatmul.msk.f32.gmra.mxu3 %vm1611_vm14, %v3207_v25 }
0x1573   :  { %v3240_v8 = vpop.f32.mrf.mxu3 }
0x1574   :  { %v3241_v5 = vadd.f32 %v11466_v10, %v3240_v8 }
0x1576   :  { %v11470_v2 = vadd.f32 %v3241_v5, %v11417_v40 }
0x1577   :  { %v3200_v21 = vpop.f32.mrf.mxu0 }
0x1578   :  { %v3201_v51 = vadd.f32 %v10108_v34, %v3200_v21  ;;  %v3258_v24 = vsel %vm71_vm0, %v11470_v2, 0.0  ;;  %v3274_v45 = vmul.f32 %v11470_v2, %v11470_v2 }
0x1579   :  { %3259 = vadd.xlane.f32.xlu1 %v3258_v24 }
0x157a   :  { %v3208_v27 = vmax.f32 %v3201_v51, 0.0  ;;  %v3278_v42 = vsel %vm71_vm0, %v3274_v45, 0.0  ;;  %v11525_v45 = vld [vmem:[#allocation6 + $0x200] ss:$0 sm:$0xff] }
0x157c   :  { %9661 = vmatmul.msk.f32.gmra.mxu3 %vm1611_vm14, %v3208_v27 }
0x157f   :  { %v3203_v6 = vpop.f32.mrf.mxu0 }
0x1580   :  { %v3204_v33 = vadd.f32 %v10108_v34, %v3203_v6  ;;  %v3371_v34 = vld [vmem:[#allocation6 + $0x228] sm:$0xff] }
0x1581   :  { %3279 = vadd.xlane.f32.xlu1 %v3278_v42  ;;  %3398 = vmatpush.msra.mxu1 %v3371_v34 }
0x1582   :  { %v3209_v20 = vmax.f32 %v3204_v33, 0.0  ;;  %v11528_v33 = vld [vmem:[#allocation6 + $0x208] ss:$0 sm:$0xff] }
0x1584   :  { %9662 = vmatmul.msk.f32.gmra.mxu3 %vm1611_vm14, %v3209_v20 }
0x1587   :  { %v3479_v40 = vpop.f32.mrf.mxu0 }
0x1588   :  { %v3563_v7 = vsel %vm223_vm1, %v3479_v40, -inf }
0x1589   :  { %3564 = vmax.xlane.f32.xlu2 %v3563_v7 }
0x158f   :  { %v3560_v48 = vpop.f32.mrf.mxu0 }
0x1590   :  { %v3572_v9 = vsel %vm223_vm1, %v3560_v48, -inf }
0x1591   :  { %3573 = vmax.xlane.f32.xlu1 %v3572_v9 }
0x15a1   :  { %3483 = vrot.lane.b32.xlu2 %v11483_v11, %s10688_s0 }
0x15a9   :  { %3797 = vrot.lane.b32.xlu2 %v11433_v18, %s10691_s29 }
0x15aa   :  { %v3243_v58 = vpop.f32.mrf.mxu3 }
0x15ab   :  { %v3244_v4 = vadd.f32 %v11466_v10, %v3243_v58 }
0x15ad   :  { %v11491_v12 = vadd.f32 %v3244_v4, %v11440_v61  ;;  %v3370_v61 = vld [vmem:[#allocation6 + $0x220] sm:$0xff] }
0x15ae   :  { %3399 = vmatpush.msra.mxu1 %v3370_v61 }
0x15af   :  { %v3261_v49 = vsel %vm71_vm0, %v11491_v12, 0.0  ;;  %v3275_v15 = vmul.f32 %v11491_v12, %v11491_v12 }
0x15b0   :  { %3262 = vadd.xlane.f32.xlu0 %v3261_v49  ;;  %3400 = vmatpush.msra.mxu1 %v3369_v52 }
0x15b1   :  { %3769 = vrot.lane.b32.xlu2 %v11495_v14, %s10691_s29  ;;  %v3281_v16 = vsel %vm71_vm0, %v3275_v15, 0.0 }
0x15b2   :  { %3282 = vadd.xlane.f32.xlu1 %v3281_v16  ;;  %3401 = vmatpush.msra.mxu1 %v3368_v50 }
0x15ec   :  { %v3260_v28 = vpop.xlane.xlu1 %3259 }
0x15ed   :  { %v3270_v22 = vmul.f32 0.03125, %v3260_v28 }
0x15ef   :  { %v3294_v37 = vmul.f32 %v3270_v22, %v3270_v22  ;;  %v3306_v27 = vsub.f32 %v11470_v2, %v3270_v22 }
0x15f4   :  { %v3280_v56 = vpop.xlane.xlu1 %3279 }
0x15f5   :  { %v3290_v23 = vmul.f32 0.03125, %v3280_v56 }
0x15f7   :  { %v3298_v29 = vsub.f32 %v3290_v23, %v3294_v37 }
0x15f9   :  { %v3302_v26 = vmax.f32 %v3298_v29, 0.0 }
0x15fb   :  { %v3310_v19 = vadd.f32 1e-05, %v3302_v26 }
0x15fc   :  { %v3565_v57 = vpop.xlane.xlu2 %3564 }
0x15fd   :  { %10291 = vrsqrt.f32 %v3310_v19  ;;  %v3575_v30 = vsub.f32 %v3479_v40, %v3565_v57  ;;  %vm3320_vm13 = vweird.f32 %v3310_v19 }
0x15ff   :  { %v3579_v31 = vmul.f32 1.442695, %v3575_v30  ;;  %v3246_v39 = vpop.f32.mrf.mxu3 }
0x1600   :  { %v3247_v43 = vadd.f32 %v11466_v10, %v3246_v39 }
0x1601   :  { %10293 = vpow2.f32 %v3579_v31 }
0x1602   :  { %v11506_v36 = vadd.f32 %v3247_v43, %v11451_v60 }
0x1603   :  { %v10292_v44 = vpop.eup %10291 }
0x1604   :  { %v3315_v46 = vmul.f32 %v10292_v44, %v3310_v19  ;;  %v3574_v17 = vpop.xlane.xlu1 %3573  ;;  %v3484_v53 = vpop.permute.xlu2 %3483  ;;  %v3264_v0 = vsel %vm71_vm0, %v11506_v36, 0.0  ;;  %v3276_v1 = vmul.f32 %v11506_v36, %v11506_v36  ;;  %vm3321_vm12 = vweird.f32 %v10292_v44 }
0x1605   :  { %3265 = vadd.xlane.f32.xlu1 %v3264_v0  ;;  %9673 = vmatpush.xpose.msk.msrb.mxu1 %vm223_vm1, %v3484_v53  ;;  %v3578_v55 = vsub.f32 %v3560_v48, %v3574_v17  ;;  %vm3322_vm15 = vmor %vm3320_vm13, %vm3321_vm12 }
0x1606   :  { %v3316_v3 = vmul.f32 %v10292_v44, %v3315_v46  ;;  %v3284_v24 = vsel %vm71_vm0, %v3276_v1, 0.0 }
0x1607   :  { %v11511_v54 = vpop.eup %10293  ;;  %v3249_v62 = vpop.f32.mrf.mxu3  ;;  %v3585_v5 = vmul.f32 1.442695, %v3578_v55 }
0x1608   :  { %v3317_v47 = vmul.f32 0.5, %v3316_v3  ;;  %v3250_v13 = vadd.f32 %v11466_v10, %v3249_v62  ;;  %v3587_v60 = vsel %vm223_vm1, %v11511_v54, 0.0 }
0x1609   :  { %3588 = vadd.xlane.f32.xlu0 %v3587_v60  ;;  %10295 = vpow2.f32 %v3585_v5 }
0x160a   :  { %v3318_v25 = vsub.f32 1.5, %v3317_v47  ;;  %v11519_v8 = vadd.f32 %v3250_v13, %v11457_v63 }
0x160c   :  { %v3319_v21 = vmul.f32 %v10292_v44, %v3318_v25  ;;  %v3798_v51 = vpop.permute.xlu2 %3797  ;;  %v3277_v10 = vmul.f32 %v11519_v8, %v11519_v8  ;;  %v3267_v2 = vsel %vm71_vm0, %v11519_v8, 0.0 }
0x160d   :  { %3285 = vadd.xlane.f32.xlu1 %v3284_v24  ;;  %9689 = vmatpush.xpose.msk.msra.mxu2 %vm223_vm1, %v3798_v51 }
0x160e   :  { %v3323_v6 = vsel %vm3322_vm15, %v10292_v44, %v3319_v21  ;;  %v3287_v42 = vsel %vm71_vm0, %v3277_v10, 0.0 }
0x160f   :  { %v3354_v63 = vmul.f32 %v3323_v6, %v3306_v27  ;;  %v11535_v7 = vpop.eup %10295 }
0x1610   :  { %v3596_v48 = vsel %vm223_vm1, %v11535_v7, 0.0 }
0x1611   :  { %v3359_v20 = vmul.f32 %v11525_v45, %v3354_v63  ;;  %3288 = vadd.xlane.f32.xlu0 %v3287_v42 }
0x1613   :  { %v3364_v40 = vadd.f32 %v11528_v33, %v3359_v20 }
0x1615   :  { %9663 = vmatmul.msk.f32.vlgmr.msra.gmra.mxu1 %vm71_vm0, %v3364_v40  ;;  %3268 = vadd.xlane.f32.xlu1 %v3267_v2 }
0x1619   :  { %3597 = vadd.xlane.f32.xlu0 %v3596_v48 }
0x1623   :  { %v3263_v9 = vpop.xlane.xlu0 %3262 }
0x1624   :  { %v3271_v58 = vmul.f32 0.03125, %v3263_v9 }
0x1625   :  { %v3283_v4 = vpop.xlane.xlu1 %3282 }
0x1626   :  { %v3295_v49 = vmul.f32 %v3271_v58, %v3271_v58  ;;  %v3291_v15 = vmul.f32 0.03125, %v3283_v4  ;;  %v3307_v23 = vsub.f32 %v11491_v12, %v3271_v58 }
0x1628   :  { %v3299_v16 = vsub.f32 %v3291_v15, %v3295_v49 }
0x162a   :  { %v3303_v34 = vmax.f32 %v3299_v16, 0.0 }
0x162c   :  { %v3311_v61 = vadd.f32 1e-05, %v3303_v34 }
0x162d   :  { %3607 = vrot.lane.b32.xlu0 %v11428_v59, %s10689_s2 }
0x162e   :  { %10297 = vrsqrt.f32 %v3311_v61  ;;  %3510 = vrot.lane.b32.xlu1 %v11495_v14, %s10688_s0  ;;  %vm3330_vm3 = vweird.f32 %v3311_v61 }
0x1634   :  { %v10298_v52 = vpop.eup %10297 }
0x1635   :  { %v3325_v50 = vmul.f32 %v10298_v52, %v3311_v61  ;;  %vm3331_vm2 = vweird.f32 %v10298_v52 }
0x1636   :  { %3685 = vrot.lane.b32.xlu1 %v11433_v18, %s10689_s2  ;;  %vm3332_vm4 = vmor %vm3330_vm3, %vm3331_vm2 }
0x1637   :  { %v3326_v28 = vmul.f32 %v10298_v52, %v3325_v50 }
0x1639   :  { %v3327_v22 = vmul.f32 0.5, %v3326_v28 }
0x163b   :  { %v3328_v56 = vsub.f32 1.5, %v3327_v22 }
0x163d   :  { %v3329_v37 = vmul.f32 %v10298_v52, %v3328_v56 }
0x163e   :  { %3795 = vrot.lane.b32.xlu1 %v11433_v18, %s10690_s28 }
0x163f   :  { %v3333_v29 = vsel %vm3332_vm4, %v10298_v52, %v3329_v37  ;;  %v3770_v37 = vpop.permute.xlu2 %3769 }
0x1640   :  { %v3355_v26 = vmul.f32 %v3333_v29, %v3307_v23 }
0x1642   :  { %v3360_v19 = vmul.f32 %v11525_v45, %v3355_v26 }
0x1644   :  { %v3365_v57 = vadd.f32 %v11528_v33, %v3360_v19 }
0x1646   :  { %3767 = vrot.lane.b32.xlu1 %v11495_v14, %s10690_s28  ;;  %9664 = vmatmul.msk.f32.gmra.mxu1 %vm71_vm0, %v3365_v57 }
0x1678   :  { %v3266_v30 = vpop.xlane.xlu1 %3265 }
0x1679   :  { %v3272_v31 = vmul.f32 0.03125, %v3266_v30 }
0x167b   :  { %v3296_v12 = vmul.f32 %v3272_v31, %v3272_v31  ;;  %v3308_v63 = vsub.f32 %v11506_v36, %v3272_v31 }
0x167c   :  { %v3589_v39 = vpop.xlane.xlu0 %3588 }
0x1680   :  { %v3286_v43 = vpop.xlane.xlu1 %3285 }
0x1681   :  { %v3292_v44 = vmul.f32 0.03125, %v3286_v43 }
0x1683   :  { %v3300_v46 = vsub.f32 %v3292_v44, %v3296_v12 }
0x1684   :  { %v3289_v0 = vpop.xlane.xlu0 %3288 }
0x1685   :  { %v3304_v17 = vmax.f32 %v3300_v46, 0.0  ;;  %v3293_v62 = vmul.f32 0.03125, %v3289_v0 }
0x1687   :  { %v3312_v53 = vadd.f32 1e-05, %v3304_v17  ;;  %v10018_v17 = vpack.i.bf16 %v11433_v18, %v11495_v14 }
0x1688   :  { %v3269_v3 = vpop.xlane.xlu1 %3268 }
0x1689   :  { %10299 = vrsqrt.f32 %v3312_v53  ;;  %v3273_v55 = vmul.f32 0.03125, %v3269_v3  ;;  %vm3340_vm6 = vweird.f32 %v3312_v53 }
0x168b   :  { %v3297_v47 = vmul.f32 %v3273_v55, %v3273_v55  ;;  %v3309_v16 = vsub.f32 %v11519_v8, %v3273_v55 }
0x168c   :  { %v3598_v10 = vpop.xlane.xlu0 %3597 }
0x168d   :  { %v3301_v13 = vsub.f32 %v3293_v62, %v3297_v47 }
0x168f   :  { %v10300_v60 = vpop.eup %10299  ;;  %v3305_v1 = vmax.f32 %v3301_v13, 0.0 }
0x1690   :  { %v3335_v25 = vmul.f32 %v10300_v60, %v3312_v53  ;;  %vm3341_vm5 = vweird.f32 %v10300_v60 }
0x1691   :  { %v3313_v5 = vadd.f32 1e-05, %v3305_v1  ;;  %vm3342_vm7 = vmor %vm3340_vm6, %vm3341_vm5 }
0x1692   :  { %v3336_v21 = vmul.f32 %v10300_v60, %v3335_v25  ;;  %v11574_v29 = vpop.f32.mrf.mxu1 }
0x1693   :  { %10301 = vrsqrt.f32 %v3313_v5  ;;  %vm3350_vm9 = vweird.f32 %v3313_v5 }
0x1694   :  { %v3337_v51 = vmul.f32 0.5, %v3336_v21  ;;  %10303 = vrcp.f32 %v3589_v39 }
0x1695   :  { %10305 = vrcp.f32 %v3598_v10 }
0x1696   :  { %v3338_v24 = vsub.f32 1.5, %v3337_v51 }
0x1698   :  { %v3339_v27 = vmul.f32 %v10300_v60, %v3338_v24 }
0x1699   :  { %v10302_v6 = vpop.eup %10301 }
0x169a   :  { %v3345_v42 = vmul.f32 %v10302_v6, %v3313_v5  ;;  %v3343_v20 = vsel %vm3342_vm7, %v10300_v60, %v3339_v27  ;;  %vm3351_vm8 = vweird.f32 %v10302_v6  ;;  %v10304_v8 = vpop.eup %10303 }
0x169b   :  { %v3356_v40 = vmul.f32 %v3343_v20, %v3308_v63  ;;  %vm3352_vm10 = vmor %vm3350_vm9, %vm3351_vm8  ;;  %v3603_v56 = vmul.f32 %v10304_v8, %v11511_v54 }
0x169c   :  { %v3346_v2 = vmul.f32 %v10302_v6, %v3345_v42 }
0x169d   :  { %v3361_v48 = vmul.f32 %v11525_v45, %v3356_v40 }
0x169e   :  { %v3347_v9 = vmul.f32 0.5, %v3346_v2 }
0x169f   :  { %v3608_v58 = vpop.permute.xlu0 %3607  ;;  %v3366_v4 = vadd.f32 %v11528_v33, %v3361_v48 }
0x16a0   :  { %v3348_v49 = vsub.f32 1.5, %v3347_v9  ;;  %v3511_v15 = vpop.permute.xlu1 %3510  ;;  %3628 = vmatpush.msra.mxu1 %v3608_v58 }
0x16a1   :  { %9665 = vmatmul.msk.f32.gmra.mxu1 %vm71_vm0, %v3366_v4  ;;  %9675 = vmatpush.xpose.msk.msrb.mxu3 %vm223_vm1, %v3511_v15 }
0x16a2   :  { %v3349_v36 = vmul.f32 %v10302_v6, %v3348_v49 }
0x16a4   :  { %v3353_v34 = vsel %vm3352_vm10, %v10302_v6, %v3349_v36  ;;  %9676 = vmatmul.msk.f32.vlgmr.msrb.gmra.mxu3 %vm223_vm1, %v11495_v14 }
0x16a5   :  { %v3357_v61 = vmul.f32 %v3353_v34, %v3309_v16 }
0x16a7   :  { %v3362_v52 = vmul.f32 %v11525_v45, %v3357_v61  ;;  %v10306_v45 = vpop.eup %10305 }
0x16a8   :  { %v3686_v50 = vpop.permute.xlu1 %3685 }
0x16a9   :  { %v3367_v28 = vadd.f32 %v11528_v33, %v3362_v52  ;;  %v3606_v33 = vmul.f32 %v10306_v45, %v11535_v7 }
0x16ab   :  { %9666 = vmatmul.msk.f32.gmra.mxu1 %vm71_vm0, %v3367_v28 }
0x16b0   :  { %v3796_v22 = vpop.permute.xlu1 %3795 }
0x16b1   :  { %9690 = vmatmul.msk.f32.vlgmr.msra.gmra.mxu2 %vm223_vm1, %v3796_v22 }
0x16b3   :  { %9674 = vmatmul.msk.f32.vlgmr.msrb.gmra.mxu1 %vm223_vm1, %v11483_v11 }
0x16b4   :  { %3706 = vmatpush.msrb.mxu1 %v3686_v50 }
0x16b8   :  { %v3768_v23 = vpop.permute.xlu1 %3767 }
0x16bb   :  { %9679 = vmatmul.msk.f32.vlgmr.msra.gmra.mxu1 %vm223_vm1, %v3603_v56 }
0x16bc   :  { %9687 = vmatpush.xpose.msk.msra.mxu1 %vm223_vm1, %v3770_v37 }
0x16c3   :  { %9682 = vmatmul.msk.f32.vlgmr.msrb.gmra.mxu1 %vm223_vm1, %v3606_v33  ;;  %v11576_v26 = vpop.f32.mrf.mxu1 }
0x16cb   :  { %9688 = vmatmul.msk.f32.vlgmr.msra.gmra.mxu1 %vm223_vm1, %v3768_v23 }
0x171e   :  { %v11578_v19 = vpop.f32.mrf.mxu1 }
0x1727   :  { %v3533_v54 = vpop.f32.mrf.mxu3 }
0x1728   :  { %v11580_v57 = vpop.f32.mrf.mxu1  ;;  %v3569_v30 = vsel %vm223_vm1, %v3533_v54, -inf }
0x1729   :  { %3570 = vmax.xlane.f32.xlu2 %v3569_v30 }
0x1730   :  { %v11583_v31 = vpop.f32.mrf.mxu1 }
0x1731   :  { %v3566_v48 = vsel %vm223_vm1, %v11583_v31, -inf }
0x1734   :  { %v3820_v7 = vpop.f32.mrf.mxu2 }
0x1735   :  { %v3832_v39 = vsel %vm223_vm1, %v3820_v7, -inf }
0x1736   :  { %3833 = vmax.xlane.f32.xlu1 %v3832_v39 }
0x1738   :  { %v11586_v43 = vpop.f32.mrf.mxu1 }
0x1740   :  { %v11588_v12 = vpop.f32.mrf.mxu1 }
0x1748   :  { %v3792_v44 = vpop.f32.mrf.mxu1 }
0x1749   :  { %v3829_v46 = vsel %vm223_vm1, %v3792_v44, -inf }
0x174a   :  { %3830 = vmax.xlane.f32.xlu0 %v3829_v46 }
0x174f   :  { %3741 = vrot.lane.b32.xlu1 %v11483_v11, %s10691_s29 }
0x1757   :  { %10019 = vrot.lane.b32.xlu1 %v10018_v17, %s10692_s30 }
0x175e   :  { %3659 = vrot.lane.b32.xlu0 %v11495_v14, %s10689_s2 }
0x175f   :  { %4055 = vrot.lane.b32.xlu1 %v11428_v59, %s10694_s5 }
0x1767   :  { %4083 = vrot.lane.b32.xlu1 %v11483_v11, %s10694_s5 }
0x176f   :  { %4053 = vrot.lane.b32.xlu1 %v11428_v59, %s10693_s4 }
0x1777   :  { %4111 = vrot.lane.b32.xlu1 %v11495_v14, %s10694_s5 }
0x177f   :  { %4139 = vrot.lane.b32.xlu1 %v11433_v18, %s10694_s5 }
0x1787   :  { %4137 = vrot.lane.b32.xlu1 %v11433_v18, %s10693_s4 }
0x179c   :  { %v3571_v53 = vpop.xlane.xlu2 %3570 }
0x179d   :  { %v3577_v0 = vsub.f32 %v3533_v54, %v3571_v53 }
0x179f   :  { %v3583_v3 = vmul.f32 1.442695, %v3577_v0 }
0x17a1   :  { %10307 = vpow2.f32 %v3583_v3 }
0x17a7   :  { %v10308_v55 = vpop.eup %10307 }
0x17a8   :  { %v3593_v62 = vsel %vm223_vm1, %v10308_v55, 0.0 }
0x17a9   :  { %3594 = vadd.xlane.f32.xlu2 %v3593_v62  ;;  %v3834_v47 = vpop.xlane.xlu1 %3833 }
0x17aa   :  { %v3838_v63 = vsub.f32 %v3820_v7, %v3834_v47 }
0x17ac   :  { %v3845_v20 = vmul.f32 1.442695, %v3838_v63 }
0x17bd   :  { %v3831_v13 = vpop.xlane.xlu0 %3830 }
0x17be   :  { %v3837_v60 = vsub.f32 %v3792_v44, %v3831_v13 }
0x17c0   :  { %v3843_v1 = vmul.f32 1.442695, %v3837_v60 }
0x17c1   :  { %v3742_v25 = vpop.permute.xlu1 %3741  ;;  %3739 = vrot.lane.b32.xlu2 %v11483_v11, %s10690_s28 }
0x17c2   :  { %10309 = vpow2.f32 %v3843_v1 }
0x17c3   :  { %10311 = vpow2.f32 %v3845_v20 }
0x17c8   :  { %v10310_v5 = vpop.eup %10309 }
0x17c9   :  { %v10020_v21 = vpop.permute.xlu1 %10019  ;;  %v3853_v51 = vsel %vm223_vm1, %v10310_v5, 0.0  ;;  %v10312_v40 = vpop.eup %10311 }
0x17ca   :  { %v10022_v24 = vunpack.i.h.bf16 %v10020_v21  ;;  %v10021_v10 = vunpack.i.l.bf16 %v10020_v21  ;;  %3854 = vadd.xlane.f32.xlu0 %v3853_v51  ;;  %v3856_v2 = vsel %vm223_vm1, %v10312_v40, 0.0 }
0x17cc   :  { %3940 = vmatpush.msrb.mxu1 %v10021_v10  ;;  %3966 = vmatpush.msrb.mxu2 %v10022_v24 }
0x17d0   :  { %v3660_v27 = vpop.permute.xlu0 %3659 }
0x17d1   :  { %v4056_v6 = vpop.permute.xlu1 %4055  ;;  %3680 = vmatpush.msra.mxu0 %v3660_v27 }
0x17d2   :  { %9703 = vmatpush.xpose.msk.msra.mxu1 %vm223_vm1, %v4056_v6 }
0x17d3   :  { %9685 = vmatpush.xpose.msk.msrb.mxu0 %vm223_vm1, %v3742_v25 }
0x17d9   :  { %v4084_v42 = vpop.permute.xlu1 %4083 }
0x17da   :  { %9705 = vmatpush.xpose.msk.msra.mxu2 %vm223_vm1, %v4084_v42 }
0x17de   :  { %4081 = vrot.lane.b32.xlu0 %v11483_v11, %s10693_s4 }
0x17e1   :  { %v4054_v15 = vpop.permute.xlu1 %4053 }
0x17e9   :  { %v4112_v61 = vpop.permute.xlu1 %4111 }
0x17ea   :  { %3857 = vadd.xlane.f32.xlu2 %v3856_v2 }
0x17f1   :  { %v4140_v8 = vpop.permute.xlu1 %4139 }
0x17f9   :  { %v4138_v45 = vpop.permute.xlu1 %4137 }
0x1802   :  { %4109 = vrot.lane.b32.xlu2 %v11495_v14, %s10693_s4 }
0x1808   :  { %3567 = vmax.xlane.f32.xlu0 %v3566_v48 }
0x180a   :  { %3633 = vrot.lane.b32.xlu2 %v11483_v11, %s10689_s2 }
0x181c   :  { %3893 = vrot.lane.b32.xlu0 %v11483_v11, %s10692_s30  ;;  %v3595_v9 = vpop.xlane.xlu2 %3594 }
0x181d   :  { %10313 = vrcp.f32 %v3595_v9 }
0x1823   :  { %v10314_v58 = vpop.eup %10313 }
0x1824   :  { %v3605_v4 = vmul.f32 %v10314_v58, %v10308_v55  ;;  %v3740_v49 = vpop.permute.xlu2 %3739 }
0x1826   :  { %9681 = vmatmul.msk.f32.vlgmr.msra.gmra.mxu0 %vm223_vm1, %v3605_v4 }
0x182e   :  { %9686 = vmatmul.msk.f32.vlgmr.msrb.gmra.mxu0 %vm223_vm1, %v3740_v49 }
0x183d   :  { %v3855_v36 = vpop.xlane.xlu0 %3854 }
0x183e   :  { %10315 = vrcp.f32 %v3855_v36 }
0x1844   :  { %v10316_v16 = vpop.eup %10315 }
0x1845   :  { %v3865_v34 = vmul.f32 %v10316_v16, %v10310_v5 }
0x1847   :  { %9693 = vmatmul.msk.f32.vlgmr.msrb.gmra.mxu1 %vm223_vm1, %v3865_v34 }
0x1848   :  { %9707 = vmatpush.xpose.msk.msrb.mxu1 %vm223_vm1, %v4112_v61 }
0x184f   :  { %9704 = vmatmul.msk.f32.vlgmr.msra.gmra.mxu1 %vm223_vm1, %v4054_v15 }
0x1850   :  { %v4082_v37 = vpop.permute.xlu0 %4081 }
0x185d   :  { %v3858_v52 = vpop.xlane.xlu2 %3857 }
0x185e   :  { %10317 = vrcp.f32 %v3858_v52 }
0x1864   :  { %v10318_v50 = vpop.eup %10317 }
0x1865   :  { %v3866_v28 = vmul.f32 %v10318_v50, %v10312_v40  ;;  %v4110_v22 = vpop.permute.xlu2 %4109  ;;  %v11667_v40 = vpack.i.bf16 %v11483_v11, %v11428_v59 }
0x1866   :  { %9708 = vmatmul.msk.f32.vlgmr.msrb.gmra.mxu1 %vm223_vm1, %v4110_v22 }
0x1867   :  { %9694 = vmatmul.msk.f32.vlgmr.msrb.gmra.mxu2 %vm223_vm1, %v3866_v28 }
0x1868   :  { %9709 = vmatpush.xpose.msk.msrb.mxu2 %vm223_vm1, %v4140_v8  ;;  %v3420_v8 = vld [vmem:[#allocation6 + $0x260] sm:$0xff] }
0x186d   :  { %v3634_v56 = vpop.permute.xlu2 %3633 }
0x186e   :  { %3654 = vmatpush.msra.mxu3 %v3634_v56 }
0x186f   :  { %9706 = vmatmul.msk.f32.vlgmr.msra.gmra.mxu2 %vm223_vm1, %v4082_v37 }
0x1877   :  { %9710 = vmatmul.msk.f32.vlgmr.msrb.gmra.mxu2 %vm223_vm1, %v4138_v45 }
0x187b   :  { %v3568_v33 = vpop.xlane.xlu0 %3567 }
0x187c   :  { %v3576_v23 = vsub.f32 %v11583_v31, %v3568_v33 }
0x187e   :  { %v3581_v54 = vmul.f32 1.442695, %v3576_v23 }
0x1880   :  { %10319 = vpow2.f32 %v3581_v54 }
0x1886   :  { %v10320_v30 = vpop.eup %10319 }
0x1887   :  { %v3590_v7 = vsel %vm223_vm1, %v10320_v30, 0.0 }
0x1888   :  { %3591 = vadd.xlane.f32.xlu1 %v3590_v7 }
0x188e   :  { %v3894_v39 = vpop.permute.xlu0 %3893 }
0x188f   :  { %3914 = vmatpush.msra.mxu0 %v3894_v39 }
0x1891   :  { %4039 = vmatpush.msrb.mxu0 %v3420_v8 }
0x18a3   :  { %v11640_v44 = vpop.f32.mrf.mxu0 }
0x18ab   :  { %v3764_v46 = vpop.f32.mrf.mxu0 }
0x18ac   :  { %v3826_v17 = vsel %vm223_vm1, %v3764_v46, -inf }
0x18ad   :  { %3827 = vmax.xlane.f32.xlu2 %v3826_v17 }
0x18c4   :  { %v11679_v9 = vpop.f32.mrf.mxu1 }
0x18c5   :  { %3713 = vrot.lane.b32.xlu2 %v11428_v59, %s10691_s29 }
0x18cc   :  { %v4078_v49 = vpop.f32.mrf.mxu1 }
0x18cd   :  { %v4165_v15 = vsel %vm223_vm1, %v4078_v49, -inf }
0x18e3   :  { %v4134_v36 = vpop.f32.mrf.mxu1 }
0x18e4   :  { %v4171_v16 = vsel %vm223_vm1, %v4134_v36, -inf }
0x18ea   :  { %v11645_v53 = vpop.f32.mrf.mxu2 }
0x18f2   :  { %v4106_v31 = vpop.f32.mrf.mxu2 }
0x18f3   :  { %v4168_v0 = vsel %vm223_vm1, %v4106_v31, -inf }
0x18f4   :  { %4169 = vmax.xlane.f32.xlu1 %v4168_v0 }
0x18fa   :  { %v4162_v3 = vpop.f32.mrf.mxu2 }
0x18fb   :  { %v3592_v55 = vpop.xlane.xlu1 %3591  ;;  %v4174_v62 = vsel %vm223_vm1, %v4162_v3, -inf }
0x18fc   :  { %10321 = vrcp.f32 %v3592_v55  ;;  %4175 = vmax.xlane.f32.xlu1 %v4174_v62 }
0x1902   :  { %v10322_v47 = vpop.eup %10321 }
0x1903   :  { %v3604_v13 = vmul.f32 %v10322_v47, %v10320_v30 }
0x1905   :  { %9680 = vmatmul.msk.f32.vlgmr.msra.gmra.mxu3 %vm223_vm1, %v3604_v13 }
0x1915   :  { %3711 = vrot.lane.b32.xlu1 %v11428_v59, %s10690_s28 }
0x191d   :  { %4261 = vrot.lane.b32.xlu1 %v11495_v14, %s10695_s6 }
0x1920   :  { %v3828_v60 = vpop.xlane.xlu2 %3827 }
0x1921   :  { %v3836_v2 = vsub.f32 %v3764_v46, %v3828_v60 }
0x1923   :  { %v3841_v48 = vmul.f32 1.442695, %v3836_v2 }
0x1925   :  { %4358 = vrot.lane.b32.xlu1 %v11428_v59, %s10697_s8 }
0x1928   :  { %v3714_v1 = vpop.permute.xlu2 %3713 }
0x1929   :  { %9683 = vmatpush.xpose.msk.msrb.mxu3 %vm223_vm1, %v3714_v1 }
0x192d   :  { %4416 = vrot.lane.b32.xlu1 %v11495_v14, %s10696_s7 }
0x1967   :  { %v4170_v25 = vpop.xlane.xlu1 %4169 }
0x1968   :  { %v4178_v5 = vsub.f32 %v4106_v31, %v4170_v25 }
0x196a   :  { %v4183_v21 = vmul.f32 1.442695, %v4178_v5 }
0x196c   :  { %10323 = vpow2.f32 %v4183_v21 }
0x196f   :  { %v4176_v51 = vpop.xlane.xlu1 %4175 }
0x1970   :  { %v4180_v24 = vsub.f32 %v4162_v3, %v4176_v51 }
0x1972   :  { %v10324_v10 = vpop.eup %10323  ;;  %v4187_v27 = vmul.f32 1.442695, %v4180_v24 }
0x1973   :  { %v4192_v6 = vsel %vm223_vm1, %v10324_v10, 0.0 }
0x1974   :  { %10325 = vpow2.f32 %v4187_v27  ;;  %4193 = vadd.xlane.f32.xlu2 %v4192_v6 }
0x1975   :  { %10327 = vpow2.f32 %v3841_v48 }
0x197a   :  { %v11660_v63 = vpop.eup %10325 }
0x197b   :  { %v4198_v42 = vsel %vm223_vm1, %v11660_v63, 0.0  ;;  %v10328_v58 = vpop.eup %10327 }
0x197c   :  { %4199 = vadd.xlane.f32.xlu0 %v4198_v42  ;;  %v3850_v4 = vsel %vm223_vm1, %v10328_v58, 0.0 }
0x1987   :  { %v3712_v20 = vpop.permute.xlu1 %3711 }
0x1988   :  { %9684 = vmatmul.msk.f32.vlgmr.msrb.gmra.mxu3 %vm223_vm1, %v3712_v20  ;;  %v3656_v47 = vpop.f32.mrf.mxu3 }
0x198c   :  { %10024 = vrot.lane.b32.xlu2 %v11667_v40, %s10695_s6 }
0x198f   :  { %v4262_v22 = vpop.permute.xlu1 %4261 }
0x1990   :  { %4360 = vrot.lane.b32.xlu0 %v11428_v59, %s10696_s7 }
0x1994   :  { %4388 = vrot.lane.b32.xlu2 %v11483_v11, %s10696_s7 }
0x1997   :  { %v4359_v60 = vpop.permute.xlu1 %4358 }
0x199c   :  { %4386 = vrot.lane.b32.xlu2 %v11483_v11, %s10697_s8 }
0x199f   :  { %v4417_v21 = vpop.permute.xlu1 %4416 }
0x19a4   :  { %4444 = vrot.lane.b32.xlu2 %v11433_v18, %s10696_s7 }
0x19ba   :  { %3851 = vadd.xlane.f32.xlu0 %v3850_v4 }
0x19c2   :  { %4166 = vmax.xlane.f32.xlu0 %v4165_v15 }
0x19ca   :  { %4172 = vmax.xlane.f32.xlu0 %v4171_v16 }
0x19de   :  { %4287 = vrot.lane.b32.xlu0 %v11433_v18, %s10695_s6 }
0x19e7   :  { %v4194_v11 = vpop.xlane.xlu2 %4193 }
0x19e8   :  { %10329 = vrcp.f32 %v4194_v11 }
0x19ee   :  { %v10330_v34 = vpop.eup %10329 }
0x19ef   :  { %v10025_v61 = vpop.permute.xlu2 %10024  ;;  %v4206_v28 = vmul.f32 %v10330_v34, %v10324_v10  ;;  %v4200_v56 = vpop.xlane.xlu0 %4199 }
0x19f0   :  { %v10027_v52 = vunpack.i.h.bf16 %v10025_v61  ;;  %v10026_v50 = vunpack.i.l.bf16 %v10025_v61 }
0x19f2   :  { %4230 = vmatpush.msra.mxu1 %v10026_v50  ;;  %4256 = vmatpush.msra.mxu2 %v10027_v52 }
0x19f3   :  { %9712 = vmatmul.msk.f32.vlgmr.msra.gmra.mxu2 %vm223_vm1, %v4206_v28 }
0x19f4   :  { %4282 = vmatpush.msrb.mxu1 %v4262_v22 }
0x19f7   :  { %v4389_v45 = vpop.permute.xlu2 %4388 }
0x19ff   :  { %v4387_v54 = vpop.permute.xlu2 %4386 }
0x1a02   :  { %v4361_v37 = vpop.permute.xlu0 %4360 }
0x1a07   :  { %v4445_v0 = vpop.permute.xlu2 %4444 }
0x1a2d   :  { %v3852_v33 = vpop.xlane.xlu0 %3851 }
0x1a2e   :  { %10331 = vrcp.f32 %v3852_v33 }
0x1a34   :  { %v10332_v23 = vpop.eup %10331 }
0x1a35   :  { %v3864_v30 = vmul.f32 %v10332_v23, %v10328_v58  ;;  %v4167_v7 = vpop.xlane.xlu0 %4166 }
0x1a36   :  { %v4177_v39 = vsub.f32 %v4078_v49, %v4167_v7 }
0x1a37   :  { %9692 = vmatmul.msk.f32.vlgmr.msra.gmra.mxu0 %vm223_vm1, %v3864_v30 }
0x1a38   :  { %v4181_v46 = vmul.f32 1.442695, %v4177_v39  ;;  %9719 = vmatpush.xpose.msk.msra.mxu0 %vm223_vm1, %v4361_v37 }
0x1a3a   :  { %10333 = vpow2.f32 %v4181_v46 }
0x1a3d   :  { %v4173_v17 = vpop.xlane.xlu0 %4172 }
0x1a3e   :  { %v4179_v31 = vsub.f32 %v4134_v36, %v4173_v17 }
0x1a3f   :  { %9699 = vmatmul.msk.f32.vlgmr.msrb.gmra.mxu0 %vm223_vm1, %v11586_v43 }
0x1a40   :  { %v10334_v3 = vpop.eup %10333  ;;  %v4185_v55 = vmul.f32 1.442695, %v4179_v31  ;;  %9725 = vmatpush.xpose.msk.msrb.mxu0 %vm223_vm1, %v4445_v0 }
0x1a41   :  { %v4189_v62 = vsel %vm223_vm1, %v10334_v3, 0.0 }
0x1a42   :  { %10335 = vpow2.f32 %v4185_v55  ;;  %4190 = vadd.xlane.f32.xlu0 %v4189_v62 }
0x1a43   :  { %10337 = vrcp.f32 %v4200_v56 }
0x1a47   :  { %9700 = vmatmul.msk.f32.gmra.mxu0 %vm223_vm1, %v3656_v47 }
0x1a48   :  { %v10336_v13 = vpop.eup %10335 }
0x1a49   :  { %v4195_v1 = vsel %vm223_vm1, %v10336_v13, 0.0  ;;  %v10338_v25 = vpop.eup %10337 }
0x1a4a   :  { %4196 = vadd.xlane.f32.xlu1 %v4195_v1  ;;  %v4208_v43 = vmul.f32 %v10338_v25, %v11660_v63 }
0x1a4f   :  { %9701 = vmatmul.msk.f32.gmra.mxu0 %vm223_vm1, %v11640_v44  ;;  %v3736_v44 = vpop.f32.mrf.mxu3 }
0x1a50   :  { %v4288_v5 = vpop.permute.xlu0 %4287  ;;  %v3823_v51 = vsel %vm223_vm1, %v3736_v44, -inf }
0x1a51   :  { %4308 = vmatpush.msrb.mxu2 %v4288_v5 }
0x1a52   :  { %9714 = vmatmul.msk.f32.vlgmr.msrb.gmra.mxu2 %vm223_vm1, %v4208_v43 }
0x1a53   :  { %9723 = vmatpush.xpose.msk.msra.mxu2 %vm223_vm1, %v4417_v21 }
0x1a56   :  { %4414 = vrot.lane.b32.xlu0 %v11495_v14, %s10697_s8 }
0x1a57   :  { %9702 = vmatmul.msk.f32.gmra.mxu0 %vm223_vm1, %v11588_v12 }
0x1a5f   :  { %9720 = vmatmul.msk.f32.vlgmr.msra.gmra.mxu0 %vm223_vm1, %v4359_v60 }
0x1a63   :  { %4442 = vrot.lane.b32.xlu1 %v11433_v18, %s10697_s8 }
0x1a76   :  { %v11726_v50 = vpop.f32.mrf.mxu2 }
0x1a80   :  { %3824 = vmax.xlane.f32.xlu0 %v3823_v51 }
0x1ab4   :  { %v11708_v24 = vpop.f32.mrf.mxu0 }
0x1ab5   :  { %v4191_v10 = vpop.xlane.xlu0 %4190 }
0x1ab6   :  { %10339 = vrcp.f32 %v4191_v10 }
0x1abc   :  { %v10340_v27 = vpop.eup %10339  ;;  %v11710_v6 = vpop.f32.mrf.mxu0 }
0x1abd   :  { %v4205_v63 = vmul.f32 %v10340_v27, %v10334_v3  ;;  %v4197_v42 = vpop.xlane.xlu1 %4196 }
0x1abe   :  { %10341 = vrcp.f32 %v4197_v42 }
0x1abf   :  { %9711 = vmatmul.msk.f32.vlgmr.msra.gmra.mxu1 %vm223_vm1, %v4205_v63 }
0x1ac0   :  { %9721 = vmatpush.xpose.msk.msra.mxu1 %vm223_vm1, %v4389_v45 }
0x1ac4   :  { %v10342_v12 = vpop.eup %10341  ;;  %v11714_v20 = vpop.f32.mrf.mxu0 }
0x1ac5   :  { %v4207_v2 = vmul.f32 %v10342_v12, %v10336_v13 }
0x1ac7   :  { %9713 = vmatmul.msk.f32.vlgmr.msrb.gmra.mxu1 %vm223_vm1, %v4207_v2 }
0x1ac8   :  { %v4415_v48 = vpop.permute.xlu0 %4414 }
0x1ac9   :  { %9724 = vmatmul.msk.f32.vlgmr.msra.gmra.mxu2 %vm223_vm1, %v4415_v48 }
0x1acc   :  { %v11718_v58 = vpop.f32.mrf.mxu0 }
0x1acf   :  { %9722 = vmatmul.msk.f32.vlgmr.msra.gmra.mxu1 %vm223_vm1, %v4387_v54 }
0x1ad4   :  { %v11721_v4 = vpop.f32.mrf.mxu0 }
0x1ad5   :  { %v4443_v49 = vpop.permute.xlu1 %4442  ;;  %v11730_v22 = vpop.f32.mrf.mxu2 }
0x1ad6   :  { %9726 = vmatmul.msk.f32.vlgmr.msrb.gmra.mxu0 %vm223_vm1, %v4443_v49 }
0x1adc   :  { %v4383_v15 = vpop.f32.mrf.mxu0 }
0x1add   :  { %v4470_v36 = vsel %vm223_vm1, %v4383_v15, -inf }
0x1ade   :  { %4471 = vmax.xlane.f32.xlu2 %v4470_v36  ;;  %v3422_v36 = vld [vmem:[#allocation6 + $0x270] sm:$0xff] }
0x1af3   :  { %v3825_v16 = vpop.xlane.xlu0 %3824 }
0x1af4   :  { %v3835_v11 = vsub.f32 %v3736_v44, %v3825_v16  ;;  %v3423_v16 = vld [vmem:[#allocation6 + $0x278] sm:$0xff] }
0x1af6   :  { %v3839_v34 = vmul.f32 1.442695, %v3835_v11 }
0x1af8   :  { %10343 = vpow2.f32 %v3839_v34 }
0x1afe   :  { %v10344_v61 = vpop.eup %10343 }
0x1aff   :  { %v3847_v52 = vsel %vm223_vm1, %v10344_v61, 0.0 }
0x1b00   :  { %3848 = vadd.xlane.f32.xlu0 %v3847_v52 }
0x1b3c   :  { %v11728_v28 = vpop.f32.mrf.mxu1 }
0x1b44   :  { %v11732_v8 = vpop.f32.mrf.mxu1 }
0x1b4c   :  { %v4411_v56 = vpop.f32.mrf.mxu1  ;;  %v4439_v37 = vpop.f32.mrf.mxu2 }
0x1b4d   :  { %v4476_v45 = vsel %vm223_vm1, %v4439_v37, -inf  ;;  %v4473_v33 = vsel %vm223_vm1, %v4411_v56, -inf }
0x1b4e   :  { %4477 = vmax.xlane.f32.xlu2 %v4476_v45  ;;  %4474 = vmax.xlane.f32.xlu1 %v4473_v33 }
0x1b51   :  { %v4472_v23 = vpop.xlane.xlu2 %4471 }
0x1b52   :  { %v4482_v54 = vsub.f32 %v4383_v15, %v4472_v23  ;;  %v3421_v15 = vld [vmem:[#allocation6 + $0x268] sm:$0xff] }
0x1b53   :  { %v4467_v30 = vpop.f32.mrf.mxu0 }
0x1b54   :  { %v4486_v7 = vmul.f32 1.442695, %v4482_v54  ;;  %v4479_v39 = vsel %vm223_vm1, %v4467_v30, -inf }
0x1b55   :  { %4480 = vmax.xlane.f32.xlu0 %v4479_v39 }
0x1b56   :  { %10345 = vpow2.f32 %v4486_v7 }
0x1b5c   :  { %v10346_v46 = vpop.eup %10345 }
0x1b5d   :  { %v4494_v17 = vsel %vm223_vm1, %v10346_v46, 0.0 }
0x1b5e   :  { %4495 = vadd.xlane.f32.xlu2 %v4494_v17 }
0x1b67   :  { %3867 = vrot.lane.b32.xlu1 %v11428_v59, %s10692_s30 }
0x1b6f   :  { %4566 = vrot.lane.b32.xlu1 %v11495_v14, %s10698_s9 }
0x1b73   :  { %v3849_v31 = vpop.xlane.xlu0 %3848 }
0x1b76   :  { %10029 = vrot.lane.b32.xlu2 %v11667_v40, %s10698_s9 }
0x1bc1   :  { %v4478_v0 = vpop.xlane.xlu2 %4477  ;;  %v4475_v47 = vpop.xlane.xlu1 %4474 }
0x1bc2   :  { %v4484_v3 = vsub.f32 %v4439_v37, %v4478_v0  ;;  %v4483_v25 = vsub.f32 %v4411_v56, %v4475_v47  ;;  %v10113_v0 = vld [vmem:[#allocation6 + $0x280] ss:$0 sm:$0xff] }
0x1bc4   :  { %v4490_v55 = vmul.f32 1.442695, %v4484_v3  ;;  %v4488_v14 = vmul.f32 1.442695, %v4483_v25 }
0x1bc6   :  { %10347 = vpow2.f32 %v4490_v55 }
0x1bc8   :  { %v4481_v62 = vpop.xlane.xlu0 %4480 }
0x1bc9   :  { %v4485_v13 = vsub.f32 %v4467_v30, %v4481_v62 }
0x1bcb   :  { %v4492_v60 = vmul.f32 1.442695, %v4485_v13 }
0x1bcc   :  { %v10348_v1 = vpop.eup %10347 }
0x1bcd   :  { %10349 = vpow2.f32 %v4492_v60  ;;  %v4500_v59 = vsel %vm223_vm1, %v10348_v1, 0.0 }
0x1bce   :  { %4501 = vadd.xlane.f32.xlu0 %v4500_v59  ;;  %10351 = vrcp.f32 %v3849_v31 }
0x1bd1   :  { %v4496_v43 = vpop.xlane.xlu2 %4495 }
0x1bd2   :  { %10353 = vrcp.f32 %v4496_v43 }
0x1bd3   :  { %v10350_v40 = vpop.eup %10349  ;;  %10355 = vpow2.f32 %v4488_v14 }
0x1bd4   :  { %v4503_v5 = vsel %vm223_vm1, %v10350_v40, 0.0  ;;  %v10352_v21 = vpop.eup %10351 }
0x1bd5   :  { %v3863_v51 = vmul.f32 %v10352_v21, %v10344_v61 }
0x1bd6   :  { %4504 = vadd.xlane.f32.xlu0 %v4503_v5 }
0x1bd8   :  { %v10354_v44 = vpop.eup %10353 }
0x1bd9   :  { %v10030_v10 = vpop.permute.xlu2 %10029  ;;  %v3868_v27 = vpop.permute.xlu1 %3867  ;;  %v4510_v2 = vmul.f32 %v10354_v44, %v10346_v46 }
0x1bda   :  { %v10356_v63 = vpop.eup %10355  ;;  %v10032_v42 = vunpack.i.h.bf16 %v10030_v10  ;;  %v10031_v12 = vunpack.i.l.bf16 %v10030_v10  ;;  %3888 = vmatpush.msra.mxu3 %v3868_v27 }
0x1bdb   :  { %9691 = vmatmul.msk.f32.vlgmr.msra.gmra.mxu3 %vm223_vm1, %v3863_v51  ;;  %v4497_v48 = vsel %vm223_vm1, %v10356_v63, 0.0 }
0x1bdc   :  { %4535 = vmatpush.msrb.mxu1 %v10031_v12  ;;  %4561 = vmatpush.msrb.mxu2 %v10032_v42 }
0x1bdd   :  { %9727 = vmatmul.msk.f32.vlgmr.msrb.gmra.mxu1 %vm223_vm1, %v4510_v2  ;;  %3998 = vmatpush.msrb.mxu3 %v3421_v15 }
0x1bde   :  { %4498 = vadd.xlane.f32.xlu0 %v4497_v48  ;;  %4645 = vmatpush.msra.mxu2 %v3423_v16 }
0x1bdf   :  { %4340 = vmatpush.msra.mxu3 %v3422_v36 }
0x1be1   :  { %v4567_v49 = vpop.permute.xlu1 %4566 }
0x1be2   :  { %4587 = vmatpush.msra.mxu0 %v4567_v49 }
0x1bf2   :  { %4592 = vrot.lane.b32.xlu0 %v11433_v18, %s10698_s9  ;;  %v10112_v18 = vld [vmem:[#allocation6 + $0x230] ss:$0 sm:$0xff] }
0x1bf3   :  { %v11754_v33 = vadd.f32 %v10112_v18, %v11576_v26  ;;  %v11761_v46 = vadd.f32 %v10112_v18, %v11574_v29  ;;  %v11764_v17 = vadd.f32 %v10112_v18, %v11578_v19  ;;  %v11778_v29 = vadd.f32 %v10112_v18, %v11580_v57 }
0x1c41   :  { %v4502_v11 = vpop.xlane.xlu0 %4501 }
0x1c42   :  { %10357 = vrcp.f32 %v4502_v11 }
0x1c48   :  { %v10358_v34 = vpop.eup %10357 }
0x1c49   :  { %v4512_v61 = vmul.f32 %v10358_v34, %v10348_v1  ;;  %v4505_v52 = vpop.xlane.xlu0 %4504 }
0x1c4b   :  { %9729 = vmatmul.msk.f32.vlgmr.msra.gmra.mxu0 %vm223_vm1, %v4512_v61  ;;  %v4787_v61 = vld [vmem:[#allocation6 + $0x2b0] sm:$0xff] }
0x1c4c   :  { %4814 = vmatpush.msrb.mxu0 %v4787_v61 }
0x1c51   :  { %v4499_v56 = vpop.xlane.xlu0 %4498 }
0x1c52   :  { %10359 = vrcp.f32 %v4499_v56  ;;  %v4785_v56 = vld [vmem:[#allocation6 + $0x2a0] sm:$0xff] }
0x1c53   :  { %10361 = vrcp.f32 %v4505_v52  ;;  %v4786_v52 = vld [vmem:[#allocation6 + $0x2a8] sm:$0xff] }
0x1c54   :  { %4815 = vmatpush.msrb.mxu0 %v4786_v52 }
0x1c56   :  { %4816 = vmatpush.msrb.mxu0 %v4785_v56 }
0x1c58   :  { %v10360_v37 = vpop.eup %10359 }
0x1c59   :  { %v4511_v45 = vmul.f32 %v10360_v37, %v10356_v63  ;;  %v10362_v54 = vpop.eup %10361  ;;  %v4784_v37 = vld [vmem:[#allocation6 + $0x298] sm:$0xff] }
0x1c5a   :  { %v4537_v30 = vpop.f32.mrf.mxu1  ;;  %v4513_v7 = vmul.f32 %v10362_v54, %v10350_v40  ;;  %4817 = vmatpush.msrb.mxu0 %v4784_v37 }
0x1c5b   :  { %9728 = vmatmul.msk.f32.vlgmr.msrb.gmra.mxu2 %vm223_vm1, %v4511_v45 }
0x1c5e   :  { %v3890_v23 = vpop.f32.mrf.mxu3 }
0x1c5f   :  { %9695 = vmatmul.msk.f32.vlgmr.msrb.gmra.mxu3 %vm223_vm1, %v3890_v23 }
0x1c60   :  { %9741 = vmatpush.xpose.msk.msrb.mxu3 %vm223_vm1, %v11754_v33 }
0x1c63   :  { %9731 = vmatmul.msk.f32.vlgmr.msra.gmra.mxu2 %vm223_vm1, %v4537_v30 }
0x1c64   :  { %v4593_v39 = vpop.permute.xlu0 %4592 }
0x1c65   :  { %4613 = vmatpush.msra.mxu1 %v4593_v39 }
0x1c66   :  { %9730 = vmatmul.msk.f32.vlgmr.msra.gmra.mxu1 %vm223_vm1, %v4513_v7 }
0x1c67   :  { %9739 = vmatpush.xpose.msk.msrb.mxu1 %vm223_vm1, %v11761_v46  ;;  %9696 = vmatmul.msk.f32.gmra.mxu3 %vm223_vm1, %v11708_v24 }
0x1c6b   :  { %9743 = vmatpush.xpose.msk.msra.mxu1 %vm223_vm1, %v11764_v17 }
0x1c6f   :  { %9697 = vmatmul.msk.f32.gmra.mxu3 %vm223_vm1, %v11679_v9 }
0x1c77   :  { %9698 = vmatmul.msk.f32.gmra.mxu3 %vm223_vm1, %v11645_v53 }
0x1c7f   :  { %9715 = vmatmul.msk.f32.vlgmr.msra.gmra.mxu3 %vm223_vm1, %v11728_v28 }
0x1c80   :  { %9745 = vmatpush.xpose.msk.msra.mxu3 %vm223_vm1, %v11778_v29 }
0x1c87   :  { %9716 = vmatmul.msk.f32.gmra.mxu3 %vm223_vm1, %v11726_v50 }
0x1c8f   :  { %9717 = vmatmul.msk.f32.gmra.mxu3 %vm223_vm1, %v11732_v8 }
0x1c97   :  { %9718 = vmatmul.msk.f32.gmra.mxu3 %vm223_vm1, %v11730_v22 }
0x1cc8   :  { %v4589_v57 = vpop.f32.mrf.mxu0 }
0x1cde   :  { %v4563_v26 = vpop.f32.mrf.mxu2 }
0x1cdf   :  { %9732 = vmatmul.msk.f32.gmra.mxu2 %vm223_vm1, %v4563_v26 }
0x1ce2   :  { %v4000_v19 = vpop.f32.mrf.mxu3 }
0x1ce3   :  { %v4615_v9 = vpop.f32.mrf.mxu1  ;;  %v4042_v50 = vadd.f32 %v11710_v6, %v4000_v19 }
0x1ce6   :  { %v4647_v3 = vpop.f32.mrf.mxu2 }
0x1ce7   :  { %9733 = vmatmul.msk.f32.gmra.mxu2 %vm223_vm1, %v4589_v57 }
0x1cea   :  { %v4003_v53 = vpop.f32.mrf.mxu3 }
0x1ceb   :  { %v4045_v1 = vadd.f32 %v11714_v20, %v4003_v53 }
0x1cef   :  { %9734 = vmatmul.msk.f32.gmra.mxu2 %vm223_vm1, %v4615_v9 }
0x1cf2   :  { %v4006_v24 = vpop.f32.mrf.mxu3 }
0x1cfa   :  { %v4009_v28 = vpop.f32.mrf.mxu3 }
0x1d02   :  { %v4342_v31 = vpop.f32.mrf.mxu3 }
0x1d03   :  { %v4354_v8 = vadd.f32 %v4342_v31, %v4042_v50  ;;  %v11832_v50 = vld [vmem:[#allocation6 + $0x288] ss:$0 sm:$0xff] }
0x1d05   :  { %v4659_v22 = vadd.f32 %v4647_v3, %v4354_v8 }
0x1d07   :  { %v4664_v55 = vadd.f32 %v10113_v0, %v4659_v22 }
0x1d09   :  { %v11795_v62 = vadd.f32 %v4664_v55, %v10751_v38  ;;  %v4048_v38 = vadd.f32 %v11718_v58, %v4006_v24  ;;  %v4051_v58 = vadd.f32 %v11721_v4, %v4009_v28 }
0x1d0a   :  { %v4345_v6 = vpop.f32.mrf.mxu3 }
0x1d0b   :  { %v4674_v47 = vsel %vm71_vm0, %v11795_v62, 0.0  ;;  %v4690_v13 = vmul.f32 %v11795_v62, %v11795_v62  ;;  %v4355_v25 = vadd.f32 %v4345_v6, %v4045_v1 }
0x1d0c   :  { %4675 = vadd.xlane.f32.xlu1 %v4674_v47 }
0x1d0d   :  { %v4694_v60 = vsel %vm71_vm0, %v4690_v13, 0.0 }
0x1d0e   :  { %4695 = vadd.xlane.f32.xlu2 %v4694_v60 }
0x1d12   :  { %v4348_v43 = vpop.f32.mrf.mxu3 }
0x1d13   :  { %v4356_v21 = vadd.f32 %v4348_v43, %v4048_v38 }
0x1d1a   :  { %v4351_v42 = vpop.f32.mrf.mxu3 }
0x1d1b   :  { %v4357_v12 = vadd.f32 %v4351_v42, %v4051_v58 }
0x1d62   :  { %v4650_v59 = vpop.f32.mrf.mxu2 }
0x1d63   :  { %v4660_v14 = vadd.f32 %v4650_v59, %v4355_v25 }
0x1d65   :  { %v4665_v40 = vadd.f32 %v10113_v0, %v4660_v14 }
0x1d67   :  { %v11805_v5 = vadd.f32 %v4665_v40, %v10755_v41 }
0x1d69   :  { %v4677_v44 = vsel %vm71_vm0, %v11805_v5, 0.0  ;;  %v4691_v51 = vmul.f32 %v11805_v5, %v11805_v5 }
0x1d6a   :  { %4678 = vadd.xlane.f32.xlu0 %v4677_v44  ;;  %v4653_v10 = vpop.f32.mrf.mxu2 }
0x1d6b   :  { %v4661_v20 = vadd.f32 %v4653_v10, %v4356_v21  ;;  %v4697_v27 = vsel %vm71_vm0, %v4691_v51, 0.0 }
0x1d6c   :  { %4698 = vadd.xlane.f32.xlu1 %v4697_v27 }
0x1d6d   :  { %v4666_v63 = vadd.f32 %v10113_v0, %v4661_v20 }
0x1d6f   :  { %v11814_v41 = vadd.f32 %v4666_v63, %v10743_v32 }
0x1d71   :  { %v4680_v2 = vsel %vm71_vm0, %v11814_v41, 0.0  ;;  %v4692_v48 = vmul.f32 %v11814_v41, %v11814_v41 }
0x1d72   :  { %4681 = vadd.xlane.f32.xlu2 %v4680_v2  ;;  %v4656_v49 = vpop.f32.mrf.mxu2 }
0x1d73   :  { %v4662_v15 = vadd.f32 %v4656_v49, %v4357_v12  ;;  %v4700_v36 = vsel %vm71_vm0, %v4692_v48, 0.0 }
0x1d74   :  { %4701 = vadd.xlane.f32.xlu1 %v4700_v36 }
0x1d75   :  { %v4667_v16 = vadd.f32 %v10113_v0, %v4662_v15  ;;  %v11834_v0 = vld [vmem:[#allocation6 + $0x290] ss:$0 sm:$0xff] }
0x1d77   :  { %v11822_v11 = vadd.f32 %v4667_v16, %v10747_v35 }
0x1d79   :  { %v4683_v32 = vsel %vm71_vm0, %v11822_v11, 0.0  ;;  %v4693_v4 = vmul.f32 %v11822_v11, %v11822_v11 }
0x1d7a   :  { %4684 = vadd.xlane.f32.xlu2 %v4683_v32 }
0x1d7b   :  { %v4703_v34 = vsel %vm71_vm0, %v4693_v4, 0.0 }
0x1d7c   :  { %4704 = vadd.xlane.f32.xlu1 %v4703_v34 }
0x1d7e   :  { %5036 = vrot.lane.b32.xlu0 %v11764_v17, %s10688_s0 }
0x1d7f   :  { %v4676_v35 = vpop.xlane.xlu1 %4675 }
0x1d80   :  { %v4686_v45 = vmul.f32 0.03125, %v4676_v35 }
0x1d81   :  { %v4696_v18 = vpop.xlane.xlu2 %4695 }
0x1d82   :  { %v4710_v23 = vmul.f32 %v4686_v45, %v4686_v45  ;;  %v4706_v54 = vmul.f32 0.03125, %v4696_v18  ;;  %v4722_v28 = vsub.f32 %v11795_v62, %v4686_v45 }
0x1d84   :  { %v4714_v30 = vsub.f32 %v4706_v54, %v4710_v23 }
0x1d86   :  { %v4718_v7 = vmax.f32 %v4714_v30, 0.0 }
0x1d88   :  { %v4726_v39 = vadd.f32 1e-05, %v4718_v7 }
0x1d8a   :  { %10363 = vrsqrt.f32 %v4726_v39  ;;  %vm4736_vm12 = vweird.f32 %v4726_v39 }
0x1d90   :  { %v10364_v26 = vpop.eup %10363 }
0x1d91   :  { %v4731_v19 = vmul.f32 %v10364_v26, %v4726_v39  ;;  %vm4737_vm11 = vweird.f32 %v10364_v26 }
0x1d92   :  { %vm4738_vm13 = vmor %vm4736_vm12, %vm4737_vm11 }
0x1d93   :  { %v4732_v57 = vmul.f32 %v10364_v26, %v4731_v19 }
0x1d95   :  { %v4733_v53 = vmul.f32 0.5, %v4732_v57 }
0x1d97   :  { %v4734_v9 = vsub.f32 1.5, %v4733_v53 }
0x1d99   :  { %v4735_v24 = vmul.f32 %v10364_v26, %v4734_v9 }
0x1d9b   :  { %v4739_v31 = vsel %vm4738_vm13, %v10364_v26, %v4735_v24 }
0x1d9c   :  { %v4770_v8 = vmul.f32 %v4739_v31, %v4722_v28 }
0x1d9e   :  { %v4775_v3 = vmul.f32 %v11832_v50, %v4770_v8 }
0x1da0   :  { %v11838_v22 = vadd.f32 %v11834_v0, %v4775_v3 }
0x1da2   :  { %9735 = vmatmul.msk.f32.vlgmr.msrb.gmra.mxu0 %vm71_vm0, %v11838_v22 }
0x1ddd   :  { %v4679_v55 = vpop.xlane.xlu0 %4678 }
0x1dde   :  { %v4687_v47 = vmul.f32 0.03125, %v4679_v55 }
0x1ddf   :  { %v4699_v13 = vpop.xlane.xlu1 %4698 }
0x1de0   :  { %v4711_v60 = vmul.f32 %v4687_v47, %v4687_v47  ;;  %v4707_v62 = vmul.f32 0.03125, %v4699_v13  ;;  %v4723_v34 = vsub.f32 %v11805_v5, %v4687_v47  ;;  %v10116_v47 = vld [vmem:[#allocation6 + $0x2b8] ss:$0 sm:$0xff] }
0x1de2   :  { %v4715_v6 = vsub.f32 %v4707_v62, %v4711_v60 }
0x1de4   :  { %v4719_v1 = vmax.f32 %v4715_v6, 0.0 }
0x1de5   :  { %v4682_v25 = vpop.xlane.xlu2 %4681 }
0x1de6   :  { %v4727_v59 = vadd.f32 1e-05, %v4719_v1  ;;  %v4688_v14 = vmul.f32 0.03125, %v4682_v25 }
0x1de7   :  { %v4702_v43 = vpop.xlane.xlu1 %4701 }
0x1de8   :  { %10365 = vrsqrt.f32 %v4727_v59  ;;  %v4712_v40 = vmul.f32 %v4688_v14, %v4688_v14  ;;  %v4708_v38 = vmul.f32 0.03125, %v4702_v43  ;;  %vm4746_vm2 = vweird.f32 %v4727_v59 }
0x1de9   :  { %v4724_v5 = vsub.f32 %v11814_v41, %v4688_v14 }
0x1dea   :  { %v4716_v21 = vsub.f32 %v4708_v38, %v4712_v40 }
0x1dec   :  { %v4720_v44 = vmax.f32 %v4716_v21, 0.0 }
0x1ded   :  { %v4685_v51 = vpop.xlane.xlu2 %4684 }
0x1dee   :  { %v10366_v10 = vpop.eup %10365  ;;  %v4689_v20 = vmul.f32 0.03125, %v4685_v51  ;;  %v4728_v63 = vadd.f32 1e-05, %v4720_v44 }
0x1def   :  { %v4741_v27 = vmul.f32 %v10366_v10, %v4727_v59  ;;  %v4705_v42 = vpop.xlane.xlu1 %4704  ;;  %vm4747_vm15 = vweird.f32 %v10366_v10 }
0x1df0   :  { %v4713_v58 = vmul.f32 %v4689_v20, %v4689_v20  ;;  %v4709_v12 = vmul.f32 0.03125, %v4705_v42  ;;  %10367 = vrsqrt.f32 %v4728_v63  ;;  %vm4748_vm3 = vmor %vm4746_vm2, %vm4747_vm15  ;;  %vm4756_vm5 = vweird.f32 %v4728_v63 }
0x1df1   :  { %v4742_v2 = vmul.f32 %v10366_v10, %v4741_v27  ;;  %v4725_v31 = vsub.f32 %v11822_v11, %v4689_v20 }
0x1df2   :  { %v4717_v48 = vsub.f32 %v4709_v12, %v4713_v58 }
0x1df3   :  { %v4743_v49 = vmul.f32 0.5, %v4742_v2  ;;  %v5037_v2 = vpop.permute.xlu0 %5036 }
0x1df4   :  { %v4721_v15 = vmax.f32 %v4717_v48, 0.0 }
0x1df5   :  { %v4744_v36 = vsub.f32 1.5, %v4743_v49 }
0x1df6   :  { %v4729_v16 = vadd.f32 1e-05, %v4721_v15  ;;  %v10368_v32 = vpop.eup %10367 }
0x1df7   :  { %v4745_v4 = vmul.f32 %v10366_v10, %v4744_v36  ;;  %v4751_v61 = vmul.f32 %v10368_v32, %v4728_v63  ;;  %vm4757_vm4 = vweird.f32 %v10368_v32  ;;  %v11889_v63 = vpack.i.bf16 %v11778_v29, %v11761_v46 }
0x1df8   :  { %10369 = vrsqrt.f32 %v4729_v16  ;;  %vm4758_vm6 = vmor %vm4756_vm5, %vm4757_vm4  ;;  %vm4766_vm8 = vweird.f32 %v4729_v16 }
0x1df9   :  { %v4749_v52 = vsel %vm4748_vm3, %v10366_v10, %v4745_v4  ;;  %v4752_v56 = vmul.f32 %v10368_v32, %v4751_v61 }
0x1dfa   :  { %v4771_v35 = vmul.f32 %v4749_v52, %v4723_v34 }
0x1dfb   :  { %v4753_v37 = vmul.f32 0.5, %v4752_v56 }
0x1dfc   :  { %v4776_v45 = vmul.f32 %v11832_v50, %v4771_v35 }
0x1dfd   :  { %v4754_v23 = vsub.f32 1.5, %v4753_v37 }
0x1dfe   :  { %v10370_v18 = vpop.eup %10369  ;;  %v11845_v54 = vadd.f32 %v11834_v0, %v4776_v45 }
0x1dff   :  { %v4761_v30 = vmul.f32 %v10370_v18, %v4729_v16  ;;  %v4755_v7 = vmul.f32 %v10368_v32, %v4754_v23  ;;  %vm4767_vm7 = vweird.f32 %v10370_v18 }
0x1e00   :  { %9736 = vmatmul.msk.f32.gmra.mxu0 %vm71_vm0, %v11845_v54  ;;  %vm4768_vm9 = vmor %vm4766_vm8, %vm4767_vm7 }
0x1e01   :  { %v4762_v39 = vmul.f32 %v10370_v18, %v4761_v30  ;;  %v4759_v26 = vsel %vm4758_vm6, %v10368_v32, %v4755_v7 }
0x1e02   :  { %v4772_v57 = vmul.f32 %v4759_v26, %v4724_v5 }
0x1e03   :  { %v4763_v19 = vmul.f32 0.5, %v4762_v39 }
0x1e04   :  { %v4777_v9 = vmul.f32 %v11832_v50, %v4772_v57 }
0x1e05   :  { %v4764_v53 = vsub.f32 1.5, %v4763_v19 }
0x1e06   :  { %v11852_v28 = vadd.f32 %v11834_v0, %v4777_v9 }
0x1e07   :  { %v4765_v24 = vmul.f32 %v10370_v18, %v4764_v53 }
0x1e08   :  { %9737 = vmatmul.msk.f32.gmra.mxu0 %vm71_vm0, %v11852_v28 }
0x1e09   :  { %v4769_v41 = vsel %vm4768_vm9, %v10370_v18, %v4765_v24 }
0x1e0a   :  { %v4773_v8 = vmul.f32 %v4769_v41, %v4725_v31 }
0x1e0c   :  { %v4778_v3 = vmul.f32 %v11832_v50, %v4773_v8 }
0x1e0e   :  { %v11859_v55 = vadd.f32 %v11834_v0, %v4778_v3 }
0x1e10   :  { %9738 = vmatmul.msk.f32.gmra.mxu0 %vm71_vm0, %v11859_v55 }
0x1e1f   :  { %v4819_v13 = vpop.f32.mrf.mxu0 }
0x1e20   :  { %v11863_v60 = vadd.f32 %v10116_v47, %v4819_v13 }
0x1e22   :  { %9740 = vmatmul.msk.f32.vlgmr.msrb.gmra.mxu1 %vm223_vm1, %v11863_v60 }
0x1e7d   :  { %v4822_v11 = vpop.f32.mrf.mxu0 }
0x1e7e   :  { %v11867_v62 = vadd.f32 %v10116_v47, %v4822_v11  ;;  %v11928_v11 = vpack.i.bf16 %v11778_v29, %v11764_v17 }
0x1e80   :  { %9742 = vmatmul.msk.f32.vlgmr.msrb.gmra.mxu3 %vm223_vm1, %v11867_v62 }
0x1e85   :  { %v4825_v50 = vpop.f32.mrf.mxu0 }
0x1e86   :  { %v11871_v6 = vadd.f32 %v10116_v47, %v4825_v50 }
0x1e88   :  { %9744 = vmatmul.msk.f32.vlgmr.msra.gmra.mxu1 %vm223_vm1, %v11871_v6 }
0x1e8d   :  { %v4828_v0 = vpop.f32.mrf.mxu0 }
0x1e8e   :  { %v11875_v1 = vadd.f32 %v10116_v47, %v4828_v0 }
0x1e90   :  { %9746 = vmatmul.msk.f32.vlgmr.msra.gmra.mxu3 %vm223_vm1, %v11875_v1 }
0x1e9f   :  { %v4859_v25 = vpop.f32.mrf.mxu1 }
0x1ea0   :  { %v4940_v59 = vsel %vm223_vm1, %v4859_v25, -inf }
0x1ea1   :  { %4941 = vmax.xlane.f32.xlu2 %v4940_v59 }
0x1f03   :  { %v11881_v40 = vpop.f32.mrf.mxu3 }
0x1f05   :  { %v4911_v14 = vpop.f32.mrf.mxu1 }
0x1f06   :  { %v4946_v43 = vsel %vm223_vm1, %v4911_v14, -inf }
0x1f07   :  { %4947 = vmax.xlane.f32.xlu1 %v4946_v43 }
0x1f13   :  { %v4937_v38 = vpop.f32.mrf.mxu3 }
0x1f14   :  { %v4942_v21 = vpop.xlane.xlu2 %4941  ;;  %v4949_v51 = vsel %vm223_vm1, %v4937_v38, -inf }
0x1f15   :  { %v4952_v44 = vsub.f32 %v4859_v25, %v4942_v21  ;;  %4950 = vmax.xlane.f32.xlu0 %v4949_v51 }
0x1f17   :  { %v4956_v10 = vmul.f32 1.442695, %v4952_v44 }
0x1f19   :  { %10371 = vpow2.f32 %v4956_v10 }
0x1f1f   :  { %v10372_v20 = vpop.eup %10371 }
0x1f20   :  { %v4964_v27 = vsel %vm223_vm1, %v10372_v20, 0.0 }
0x1f21   :  { %4965 = vadd.xlane.f32.xlu2 %v4964_v27 }
0x1f29   :  { %5172 = vrot.lane.b32.xlu0 %v11875_v1, %s10690_s28 }
0x1f39   :  { %10034 = vrot.lane.b32.xlu2 %v11889_v63, %s10688_s0 }
0x1f41   :  { %5146 = vrot.lane.b32.xlu2 %v11764_v17, %s10690_s28 }
0x1f49   :  { %5432 = vrot.lane.b32.xlu2 %v11761_v46, %s10693_s4 }
0x1f7a   :  { %v4948_v42 = vpop.xlane.xlu1 %4947 }
0x1f7b   :  { %v4954_v58 = vsub.f32 %v4911_v14, %v4948_v42 }
0x1f7d   :  { %v4960_v12 = vmul.f32 1.442695, %v4954_v58 }
0x1f7f   :  { %10373 = vpow2.f32 %v4960_v12 }
0x1f85   :  { %v10374_v48 = vpop.eup %10373 }
0x1f86   :  { %v4970_v49 = vsel %vm223_vm1, %v10374_v48, 0.0 }
0x1f87   :  { %4971 = vadd.xlane.f32.xlu1 %v4970_v49  ;;  %v11957_v49 = vpack.i.bf16 %v11754_v33, %v11761_v46 }
0x1f88   :  { %v4951_v15 = vpop.xlane.xlu0 %4950 }
0x1f89   :  { %v4955_v36 = vsub.f32 %v4937_v38, %v4951_v15 }
0x1f8b   :  { %v4962_v16 = vmul.f32 1.442695, %v4955_v36 }
0x1f8d   :  { %10375 = vpow2.f32 %v4962_v16 }
0x1f93   :  { %v10376_v32 = vpop.eup %10375 }
0x1f94   :  { %v4966_v4 = vpop.xlane.xlu2 %4965  ;;  %v4973_v34 = vsel %vm223_vm1, %v10376_v32, 0.0 }
0x1f95   :  { %10377 = vrcp.f32 %v4966_v4  ;;  %4974 = vadd.xlane.f32.xlu0 %v4973_v34 }
0x1f9b   :  { %v10378_v61 = vpop.eup %10377  ;;  %v5173_v23 = vpop.permute.xlu0 %5172 }
0x1f9c   :  { %v10035_v52 = vpop.permute.xlu2 %10034  ;;  %v4980_v37 = vmul.f32 %v10378_v61, %v10372_v20 }
0x1f9d   :  { %v10037_v56 = vunpack.i.h.bf16 %v10035_v52  ;;  %v10036_v35 = vunpack.i.l.bf16 %v10035_v52 }
0x1f9f   :  { %5005 = vmatpush.msrb.mxu1 %v10036_v35  ;;  %5083 = vmatpush.msrb.mxu2 %v10037_v56 }
0x1fa0   :  { %9747 = vmatmul.msk.f32.vlgmr.msrb.gmra.mxu1 %vm223_vm1, %v4980_v37  ;;  %5174 = vrot.lane.b32.xlu1 %v11778_v29, %s10690_s28 }
0x1fa1   :  { %5057 = vmatpush.msra.mxu1 %v5037_v2  ;;  %v4943_v2 = vsel %vm223_vm1, %v11881_v40, -inf }
0x1fa4   :  { %v5147_v45 = vpop.permute.xlu2 %5146 }
0x1fa5   :  { %9755 = vmatpush.xpose.msk.msrb.mxu1 %vm223_vm1, %v5147_v45 }
0x1fa9   :  { %5144 = vrot.lane.b32.xlu0 %v11871_v6, %s10690_s28 }
0x1fac   :  { %v5433_v50 = vpop.permute.xlu2 %5432 }
0x1fb1   :  { %5118 = vrot.lane.b32.xlu0 %v11754_v33, %s10690_s28 }
0x1fb9   :  { %5116 = vrot.lane.b32.xlu0 %v11867_v62, %s10690_s28 }
0x1fc1   :  { %5460 = vrot.lane.b32.xlu0 %v11754_v33, %s10693_s4 }
0x1ffa   :  { %v4972_v18 = vpop.xlane.xlu1 %4971 }
0x1ffb   :  { %10379 = vrcp.f32 %v4972_v18 }
0x2001   :  { %v10380_v30 = vpop.eup %10379 }
0x2002   :  { %v4982_v7 = vmul.f32 %v10380_v30, %v10374_v48 }
0x2004   :  { %9749 = vmatmul.msk.f32.vlgmr.msra.gmra.mxu1 %vm223_vm1, %v4982_v7 }
0x2008   :  { %v4975_v5 = vpop.xlane.xlu0 %4974 }
0x2009   :  { %10381 = vrcp.f32 %v4975_v5 }
0x200f   :  { %v10382_v39 = vpop.eup %10381 }
0x2010   :  { %v4983_v26 = vmul.f32 %v10382_v39, %v10376_v32 }
0x2012   :  { %9750 = vmatmul.msk.f32.vlgmr.msrb.gmra.mxu2 %vm223_vm1, %v4983_v26  ;;  %v5175_v19 = vpop.permute.xlu1 %5174 }
0x2013   :  { %9757 = vmatpush.xpose.msk.msra.mxu2 %vm223_vm1, %v5175_v19 }
0x201a   :  { %9758 = vmatmul.msk.f32.vlgmr.msra.gmra.mxu2 %vm223_vm1, %v5173_v23 }
0x201b   :  { %v5145_v57 = vpop.permute.xlu0 %5144 }
0x201c   :  { %9756 = vmatmul.msk.f32.vlgmr.msrb.gmra.mxu1 %vm223_vm1, %v5145_v57 }
0x201d   :  { %v11918_v24 = vpop.f32.mrf.mxu1 }
0x2023   :  { %v5119_v53 = vpop.permute.xlu0 %5118 }
0x2024   :  { %9753 = vmatpush.xpose.msk.msra.mxu0 %vm223_vm1, %v5119_v53 }
0x202b   :  { %v5117_v9 = vpop.permute.xlu0 %5116 }
0x202c   :  { %9754 = vmatmul.msk.f32.vlgmr.msra.gmra.mxu0 %vm223_vm1, %v5117_v9 }
0x2033   :  { %v5461_v58 = vpop.permute.xlu0 %5460 }
0x2081   :  { %v11920_v31 = vpop.f32.mrf.mxu1 }
0x2095   :  { %v11922_v41 = vpop.f32.mrf.mxu2 }
0x2099   :  { %v5169_v8 = vpop.f32.mrf.mxu1 }
0x209a   :  { %v5206_v3 = vsel %vm223_vm1, %v5169_v8, -inf }
0x209b   :  { %5207 = vmax.xlane.f32.xlu1 %v5206_v3 }
0x209d   :  { %v5197_v47 = vpop.f32.mrf.mxu2 }
0x209e   :  { %v5209_v13 = vsel %vm223_vm1, %v5197_v47, -inf }
0x209f   :  { %5210 = vmax.xlane.f32.xlu2 %v5209_v13 }
0x20a9   :  { %v5141_v12 = vpop.f32.mrf.mxu0 }
0x20aa   :  { %v5203_v48 = vsel %vm223_vm1, %v5141_v12, -inf }
0x20b4   :  { %10039 = vrot.lane.b32.xlu1 %v11928_v11, %s10691_s29 }
0x20b7   :  { %5458 = vrot.lane.b32.xlu2 %v11867_v62, %s10693_s4 }
0x20bc   :  { %5430 = vrot.lane.b32.xlu1 %v11863_v60, %s10693_s4 }
0x20c4   :  { %5488 = vrot.lane.b32.xlu1 %v11764_v17, %s10693_s4 }
0x20cc   :  { %5486 = vrot.lane.b32.xlu1 %v11871_v6, %s10693_s4 }
0x210e   :  { %v5208_v0 = vpop.xlane.xlu1 %5207 }
0x210f   :  { %v5214_v25 = vsub.f32 %v5169_v8, %v5208_v0 }
0x2111   :  { %v5220_v59 = vmul.f32 1.442695, %v5214_v25 }
0x2112   :  { %v5211_v14 = vpop.xlane.xlu2 %5210 }
0x2113   :  { %10383 = vpow2.f32 %v5220_v59  ;;  %v5215_v43 = vsub.f32 %v5197_v47, %v5211_v14 }
0x2115   :  { %v5222_v38 = vmul.f32 1.442695, %v5215_v43 }
0x2117   :  { %10385 = vpow2.f32 %v5222_v38 }
0x2119   :  { %v10384_v21 = vpop.eup %10383 }
0x211a   :  { %v5230_v44 = vsel %vm223_vm1, %v10384_v21, 0.0  ;;  %v5459_v15 = vpop.permute.xlu2 %5458 }
0x211b   :  { %5231 = vadd.xlane.f32.xlu0 %v5230_v44 }
0x211d   :  { %v10386_v51 = vpop.eup %10385 }
0x211e   :  { %v5233_v10 = vsel %vm223_vm1, %v10386_v51, 0.0 }
0x211f   :  { %5234 = vadd.xlane.f32.xlu2 %v5233_v10 }
0x2126   :  { %v10040_v20 = vpop.permute.xlu1 %10039 }
0x2127   :  { %v10042_v27 = vunpack.i.h.bf16 %v10040_v20  ;;  %v10041_v42 = vunpack.i.l.bf16 %v10040_v20 }
0x2129   :  { %5317 = vmatpush.msra.mxu1 %v10041_v42  ;;  %5343 = vmatpush.msrb.mxu2 %v10042_v27 }
0x212b   :  { %9771 = vmatpush.xpose.msk.msrb.mxu1 %vm223_vm1, %v5433_v50  ;;  %9773 = vmatpush.xpose.msk.msra.mxu2 %vm223_vm1, %v5461_v58 }
0x212e   :  { %v5431_v36 = vpop.permute.xlu1 %5430 }
0x212f   :  { %5514 = vrot.lane.b32.xlu0 %v11875_v1, %s10693_s4 }
0x2136   :  { %v5489_v61 = vpop.permute.xlu1 %5488 }
0x2137   :  { %5516 = vrot.lane.b32.xlu2 %v11778_v29, %s10693_s4  ;;  %5010 = vrot.lane.b32.xlu0 %v11754_v33, %s10688_s0 }
0x213e   :  { %v5487_v45 = vpop.permute.xlu1 %5486 }
0x2160   :  { %4944 = vmax.xlane.f32.xlu2 %v4943_v2 }
0x2161   :  { %5204 = vmax.xlane.f32.xlu0 %v5203_v48 }
0x2178   :  { %5090 = vrot.lane.b32.xlu2 %v11761_v46, %s10690_s28 }
0x2180   :  { %10044 = vrot.lane.b32.xlu2 %v11957_v49, %s10694_s5 }
0x218e   :  { %v5232_v16 = vpop.xlane.xlu0 %5231 }
0x218f   :  { %10387 = vrcp.f32 %v5232_v16 }
0x2192   :  { %v5235_v32 = vpop.xlane.xlu2 %5234 }
0x2193   :  { %10389 = vrcp.f32 %v5235_v32 }
0x2195   :  { %v10388_v4 = vpop.eup %10387 }
0x2196   :  { %v5242_v34 = vmul.f32 %v10388_v4, %v10384_v21 }
0x2198   :  { %9761 = vmatmul.msk.f32.vlgmr.msra.gmra.mxu1 %vm223_vm1, %v5242_v34 }
0x2199   :  { %v10390_v52 = vpop.eup %10389  ;;  %9775 = vmatpush.xpose.msk.msra.mxu1 %vm223_vm1, %v5489_v61 }
0x219a   :  { %v5243_v56 = vmul.f32 %v10390_v52, %v10386_v51  ;;  %v5517_v35 = vpop.permute.xlu2 %5516 }
0x219c   :  { %9762 = vmatmul.msk.f32.vlgmr.msrb.gmra.mxu2 %vm223_vm1, %v5243_v56 }
0x219d   :  { %9777 = vmatpush.xpose.msk.msrb.mxu2 %vm223_vm1, %v5517_v35 }
0x21a0   :  { %9772 = vmatmul.msk.f32.vlgmr.msrb.gmra.mxu1 %vm223_vm1, %v5431_v36 }
0x21a1   :  { %v5515_v37 = vpop.permute.xlu0 %5514 }
0x21a4   :  { %9774 = vmatmul.msk.f32.vlgmr.msra.gmra.mxu2 %vm223_vm1, %v5459_v15 }
0x21a8   :  { %9776 = vmatmul.msk.f32.vlgmr.msra.gmra.mxu1 %vm223_vm1, %v5487_v45 }
0x21a9   :  { %v5011_v18 = vpop.permute.xlu0 %5010 }
0x21aa   :  { %5031 = vmatpush.msrb.mxu3 %v5011_v18 }
0x21ac   :  { %9778 = vmatmul.msk.f32.vlgmr.msrb.gmra.mxu2 %vm223_vm1, %v5515_v37 }
0x21d3   :  { %v4945_v23 = vpop.xlane.xlu2 %4944 }
0x21d4   :  { %v4953_v30 = vsub.f32 %v11881_v40, %v4945_v23  ;;  %v5205_v7 = vpop.xlane.xlu0 %5204 }
0x21d5   :  { %v5213_v5 = vsub.f32 %v5141_v12, %v5205_v7  ;;  %v4831_v12 = vld [vmem:[#allocation6 + $0x2c0] sm:$0xff] }
0x21d6   :  { %v4958_v39 = vmul.f32 1.442695, %v4953_v30 }
0x21d7   :  { %v5218_v26 = vmul.f32 1.442695, %v5213_v5 }
0x21d8   :  { %10391 = vpow2.f32 %v4958_v39 }
0x21d9   :  { %10393 = vpow2.f32 %v5218_v26 }
0x21db   :  { %v5091_v19 = vpop.permute.xlu2 %5090 }
0x21dc   :  { %9751 = vmatpush.xpose.msk.msra.mxu3 %vm223_vm1, %v5091_v19 }
0x21de   :  { %v10392_v57 = vpop.eup %10391 }
0x21df   :  { %v10394_v53 = vpop.eup %10393  ;;  %v4967_v9 = vsel %vm223_vm1, %v10392_v57, 0.0 }
0x21e0   :  { %4968 = vadd.xlane.f32.xlu1 %v4967_v9  ;;  %v5227_v8 = vsel %vm223_vm1, %v10394_v53, 0.0 }
0x21e1   :  { %5228 = vadd.xlane.f32.xlu0 %v5227_v8 }
0x21e3   :  { %v10045_v3 = vpop.permute.xlu2 %10044 }
0x21e4   :  { %v10047_v47 = vunpack.i.h.bf16 %v10045_v3  ;;  %v10046_v40 = vunpack.i.l.bf16 %v10045_v3 }
0x21e6   :  { %5607 = vmatpush.msrb.mxu1 %v10046_v40  ;;  %5633 = vmatpush.msra.mxu2 %v10047_v47 }
0x21f5   :  { %5270 = vrot.lane.b32.xlu0 %v11754_v33, %s10691_s29 }
0x21f9   :  { %5088 = vrot.lane.b32.xlu1 %v11863_v60, %s10690_s28 }
0x21fd   :  { %5737 = vrot.lane.b32.xlu0 %v11761_v46, %s10697_s8 }
0x2201   :  { %5638 = vrot.lane.b32.xlu1 %v11764_v17, %s10694_s5 }
0x2205   :  { %5735 = vrot.lane.b32.xlu0 %v11863_v60, %s10697_s8 }
0x220d   :  { %5793 = vrot.lane.b32.xlu0 %v11764_v17, %s10697_s8 }
0x2215   :  { %v11985_v13 = vpop.f32.mrf.mxu1 }
0x221d   :  { %v5455_v50 = vpop.f32.mrf.mxu1 }
0x221e   :  { %v5542_v0 = vsel %vm223_vm1, %v5455_v50, -inf }
0x221f   :  { %v11988_v25 = vpop.f32.mrf.mxu2  ;;  %5543 = vmax.xlane.f32.xlu2 %v5542_v0 }
0x2225   :  { %v5511_v59 = vpop.f32.mrf.mxu1 }
0x2226   :  { %v5548_v14 = vsel %vm223_vm1, %v5511_v59, -inf }
0x2227   :  { %v5483_v43 = vpop.f32.mrf.mxu2  ;;  %5549 = vmax.xlane.f32.xlu2 %v5548_v14 }
0x2228   :  { %v5545_v38 = vsel %vm223_vm1, %v5483_v43, -inf }
0x222b   :  { %5546 = vmax.xlane.f32.xlu1 %v5545_v38 }
0x222f   :  { %v5539_v60 = vpop.f32.mrf.mxu2 }
0x2230   :  { %v5551_v21 = vsel %vm223_vm1, %v5539_v60, -inf }
0x2233   :  { %5552 = vmax.xlane.f32.xlu1 %v5551_v21 }
0x223f   :  { %5765 = vrot.lane.b32.xlu2 %v11754_v33, %s10697_s8 }
0x224c   :  { %5664 = vrot.lane.b32.xlu1 %v11778_v29, %s10694_s5 }
0x2253   :  { %v4969_v44 = vpop.xlane.xlu1 %4968 }
0x2254   :  { %10395 = vrcp.f32 %v4969_v44  ;;  %v5229_v20 = vpop.xlane.xlu0 %5228 }
0x2255   :  { %10397 = vrcp.f32 %v5229_v20 }
0x225a   :  { %v10396_v51 = vpop.eup %10395 }
0x225b   :  { %v4981_v10 = vmul.f32 %v10396_v51, %v10392_v57  ;;  %v10398_v27 = vpop.eup %10397 }
0x225c   :  { %v5241_v42 = vmul.f32 %v10398_v27, %v10394_v53 }
0x225d   :  { %9748 = vmatmul.msk.f32.vlgmr.msrb.gmra.mxu3 %vm223_vm1, %v4981_v10 }
0x2267   :  { %v5271_v58 = vpop.permute.xlu0 %5270 }
0x2268   :  { %5291 = vmatpush.msrb.mxu0 %v5271_v58 }
0x2269   :  { %9760 = vmatmul.msk.f32.vlgmr.msrb.gmra.mxu0 %vm223_vm1, %v5241_v42 }
0x226a   :  { %5416 = vmatpush.msra.mxu0 %v4831_v12 }
0x226b   :  { %v5089_v2 = vpop.permute.xlu1 %5088 }
0x226c   :  { %9752 = vmatmul.msk.f32.vlgmr.msra.gmra.mxu3 %vm223_vm1, %v5089_v2 }
0x226f   :  { %v5738_v48 = vpop.permute.xlu0 %5737 }
0x2270   :  { %9787 = vmatpush.xpose.msk.msrb.mxu0 %vm223_vm1, %v5738_v48 }
0x2271   :  { %9767 = vmatmul.msk.f32.vlgmr.msra.gmra.mxu0 %vm223_vm1, %v11918_v24 }
0x2273   :  { %v5639_v15 = vpop.permute.xlu1 %5638 }
0x2274   :  { %5659 = vmatpush.msra.mxu1 %v5639_v15 }
0x2277   :  { %v5736_v8 = vpop.permute.xlu0 %5735 }
0x2292   :  { %v5544_v36 = vpop.xlane.xlu2 %5543 }
0x2293   :  { %v5554_v16 = vsub.f32 %v5455_v50, %v5544_v36 }
0x2295   :  { %v5558_v32 = vmul.f32 1.442695, %v5554_v16 }
0x2297   :  { %10399 = vpow2.f32 %v5558_v32 }
0x229a   :  { %v5550_v4 = vpop.xlane.xlu2 %5549 }
0x229b   :  { %v5556_v34 = vsub.f32 %v5511_v59, %v5550_v4 }
0x229d   :  { %v10400_v61 = vpop.eup %10399  ;;  %v5562_v52 = vmul.f32 1.442695, %v5556_v34 }
0x229e   :  { %v5547_v56 = vpop.xlane.xlu1 %5546  ;;  %v5566_v35 = vsel %vm223_vm1, %v10400_v61, 0.0 }
0x229f   :  { %10401 = vpow2.f32 %v5562_v52  ;;  %v5555_v37 = vsub.f32 %v5483_v43, %v5547_v56  ;;  %5567 = vadd.xlane.f32.xlu2 %v5566_v35 }
0x22a1   :  { %v5560_v45 = vmul.f32 1.442695, %v5555_v37 }
0x22a3   :  { %10403 = vpow2.f32 %v5560_v45 }
0x22a5   :  { %v10402_v18 = vpop.eup %10401 }
0x22a6   :  { %v5553_v24 = vpop.xlane.xlu1 %5552  ;;  %v5572_v23 = vsel %vm223_vm1, %v10402_v18, 0.0 }
0x22a7   :  { %v5557_v30 = vsub.f32 %v5539_v60, %v5553_v24  ;;  %5573 = vadd.xlane.f32.xlu1 %v5572_v23 }
0x22a9   :  { %v10404_v7 = vpop.eup %10403  ;;  %v5564_v5 = vmul.f32 1.442695, %v5557_v30 }
0x22aa   :  { %v5569_v39 = vsel %vm223_vm1, %v10404_v7, 0.0 }
0x22ab   :  { %10405 = vpow2.f32 %v5564_v5  ;;  %5570 = vadd.xlane.f32.xlu0 %v5569_v39 }
0x22b1   :  { %v10406_v26 = vpop.eup %10405 }
0x22b2   :  { %v5575_v19 = vsel %vm223_vm1, %v10406_v26, 0.0 }
0x22b3   :  { %5576 = vadd.xlane.f32.xlu0 %v5575_v19 }
0x22b7   :  { %5763 = vrot.lane.b32.xlu2 %v11867_v62, %s10697_s8 }
0x22be   :  { %v5665_v57 = vpop.permute.xlu1 %5664 }
0x22bf   :  { %5685 = vmatpush.msrb.mxu2 %v5665_v57  ;;  %5821 = vrot.lane.b32.xlu2 %v11778_v29, %s10697_s8 }
0x22c0   :  { %5791 = vrot.lane.b32.xlu1 %v11871_v6, %s10697_s8  ;;  %v5766_v6 = vpop.permute.xlu2 %5765 }
0x22c7   :  { %5819 = vrot.lane.b32.xlu0 %v11875_v1, %s10697_s8  ;;  %v5794_v1 = vpop.permute.xlu0 %5793 }
0x22e0   :  { %v5033_v53 = vpop.f32.mrf.mxu3 }
0x22e1   :  { %9768 = vmatmul.msk.f32.gmra.mxu0 %vm223_vm1, %v5033_v53 }
0x22e6   :  { %v12032_v20 = vpop.f32.mrf.mxu0 }
0x22e9   :  { %9769 = vmatmul.msk.f32.gmra.mxu0 %vm223_vm1, %v11920_v31 }
0x22ee   :  { %v12034_v27 = vpop.f32.mrf.mxu0 }
0x22ef   :  { %v5113_v9 = vpop.f32.mrf.mxu3 }
0x22f0   :  { %v5200_v62 = vsel %vm223_vm1, %v5113_v9, -inf }
0x22f1   :  { %9770 = vmatmul.msk.f32.gmra.mxu0 %vm223_vm1, %v11922_v41  ;;  %5201 = vmax.xlane.f32.xlu1 %v5200_v62 }
0x22f9   :  { %9788 = vmatmul.msk.f32.vlgmr.msrb.gmra.mxu0 %vm223_vm1, %v5736_v8 }
0x2312   :  { %v5568_v3 = vpop.xlane.xlu2 %5567 }
0x2313   :  { %10407 = vrcp.f32 %v5568_v3 }
0x2319   :  { %v10408_v47 = vpop.eup %10407 }
0x231a   :  { %v5582_v40 = vmul.f32 %v10408_v47, %v10400_v61  ;;  %v5574_v50 = vpop.xlane.xlu1 %5573  ;;  %v5764_v0 = vpop.permute.xlu2 %5763 }
0x231b   :  { %10409 = vrcp.f32 %v5574_v50 }
0x231c   :  { %9779 = vmatmul.msk.f32.vlgmr.msrb.gmra.mxu1 %vm223_vm1, %v5582_v40 }
0x231d   :  { %9789 = vmatpush.xpose.msk.msrb.mxu1 %vm223_vm1, %v5766_v6 }
0x231e   :  { %v5571_v31 = vpop.xlane.xlu0 %5570 }
0x231f   :  { %10411 = vrcp.f32 %v5571_v31 }
0x2321   :  { %v10410_v41 = vpop.eup %10409 }
0x2322   :  { %v5584_v59 = vmul.f32 %v10410_v41, %v10402_v18  ;;  %v5822_v14 = vpop.permute.xlu2 %5821 }
0x2323   :  { %9793 = vmatpush.xpose.msk.msra.mxu0 %vm223_vm1, %v5822_v14 }
0x2324   :  { %9781 = vmatmul.msk.f32.vlgmr.msra.gmra.mxu1 %vm223_vm1, %v5584_v59 }
0x2325   :  { %v10412_v43 = vpop.eup %10411 }
0x2326   :  { %v5583_v38 = vmul.f32 %v10412_v43, %v10404_v7  ;;  %v5577_v60 = vpop.xlane.xlu0 %5576 }
0x2327   :  { %10413 = vrcp.f32 %v5577_v60 }
0x2328   :  { %9780 = vmatmul.msk.f32.vlgmr.msra.gmra.mxu2 %vm223_vm1, %v5583_v38 }
0x2329   :  { %9791 = vmatpush.xpose.msk.msra.mxu2 %vm223_vm1, %v5794_v1 }
0x232c   :  { %9790 = vmatmul.msk.f32.vlgmr.msrb.gmra.mxu1 %vm223_vm1, %v5764_v0 }
0x232d   :  { %v10414_v21 = vpop.eup %10413 }
0x232e   :  { %v5585_v44 = vmul.f32 %v10414_v21, %v10406_v26 }
0x2330   :  { %9782 = vmatmul.msk.f32.vlgmr.msrb.gmra.mxu2 %vm223_vm1, %v5585_v44 }
0x2332   :  { %v5792_v51 = vpop.permute.xlu1 %5791 }
0x2338   :  { %9792 = vmatmul.msk.f32.vlgmr.msra.gmra.mxu2 %vm223_vm1, %v5792_v51 }
0x2339   :  { %v5820_v10 = vpop.permute.xlu0 %5819 }
0x233a   :  { %9794 = vmatmul.msk.f32.vlgmr.msra.gmra.mxu0 %vm223_vm1, %v5820_v10 }
0x235e   :  { %v12036_v42 = vpop.f32.mrf.mxu0 }
0x2364   :  { %v5202_v58 = vpop.xlane.xlu1 %5201 }
0x2365   :  { %v5212_v12 = vsub.f32 %v5113_v9, %v5202_v58 }
0x2366   :  { %v12038_v2 = vpop.f32.mrf.mxu0 }
0x2367   :  { %v5216_v48 = vmul.f32 1.442695, %v5212_v12 }
0x2369   :  { %10415 = vpow2.f32 %v5216_v48  ;;  %v4832_v48 = vld [vmem:[#allocation6 + $0x2c8] sm:$0xff] }
0x236e   :  { %v12040_v15 = vpop.f32.mrf.mxu0 }
0x236f   :  { %v10416_v36 = vpop.eup %10415 }
0x2370   :  { %v5224_v16 = vsel %vm223_vm1, %v10416_v36, 0.0 }
0x2371   :  { %5225 = vadd.xlane.f32.xlu1 %v5224_v16 }
0x2376   :  { %v5760_v32 = vpop.f32.mrf.mxu0 }
0x2377   :  { %v5847_v4 = vsel %vm223_vm1, %v5760_v32, -inf }
0x2378   :  { %5848 = vmax.xlane.f32.xlu2 %v5847_v4 }
0x2399   :  { %v12044_v34 = vpop.f32.mrf.mxu1 }
0x23a1   :  { %v12046_v61 = vpop.f32.mrf.mxu1 }
0x23a9   :  { %v5788_v52 = vpop.f32.mrf.mxu1 }
0x23aa   :  { %v5850_v56 = vsel %vm223_vm1, %v5788_v52, -inf }
0x23ab   :  { %v12049_v35 = vpop.f32.mrf.mxu2  ;;  %5851 = vmax.xlane.f32.xlu0 %v5850_v56 }
0x23b3   :  { %v12051_v37 = vpop.f32.mrf.mxu2 }
0x23b7   :  { %v5844_v45 = vpop.f32.mrf.mxu0 }
0x23b8   :  { %v5856_v18 = vsel %vm223_vm1, %v5844_v45, -inf }
0x23b9   :  { %5857 = vmax.xlane.f32.xlu1 %v5856_v18 }
0x23bb   :  { %v5816_v24 = vpop.f32.mrf.mxu2 }
0x23bc   :  { %v5853_v23 = vsel %vm223_vm1, %v5816_v24, -inf }
0x23bd   :  { %5854 = vmax.xlane.f32.xlu2 %v5853_v23 }
0x23bf   :  { %5244 = vrot.lane.b32.xlu0 %v11761_v46, %s10691_s29 }
0x23e4   :  { %v5226_v9 = vpop.xlane.xlu1 %5225 }
0x23eb   :  { %v5849_v30 = vpop.xlane.xlu2 %5848 }
0x23ec   :  { %v5859_v7 = vsub.f32 %v5760_v32, %v5849_v30 }
0x23ee   :  { %v5863_v5 = vmul.f32 1.442695, %v5859_v7 }
0x23f0   :  { %10417 = vpow2.f32 %v5863_v5  ;;  %v4834_v5 = vld [vmem:[#allocation6 + $0x2d8] sm:$0xff] }
0x23f6   :  { %v10418_v39 = vpop.eup %10417 }
0x23f7   :  { %v5871_v26 = vsel %vm223_vm1, %v10418_v39, 0.0 }
0x23f8   :  { %5872 = vadd.xlane.f32.xlu2 %v5871_v26 }
0x2410   :  { %10049 = vrot.lane.b32.xlu2 %v11957_v49, %s10696_s7 }
0x2418   :  { %5969 = vrot.lane.b32.xlu2 %v11778_v29, %s10696_s7 }
0x241e   :  { %v5852_v19 = vpop.xlane.xlu0 %5851 }
0x241f   :  { %v5860_v57 = vsub.f32 %v5788_v52, %v5852_v19  ;;  %v4833_v52 = vld [vmem:[#allocation6 + $0x2d0] sm:$0xff] }
0x2421   :  { %v5865_v53 = vmul.f32 1.442695, %v5860_v57 }
0x2423   :  { %10419 = vpow2.f32 %v5865_v53  ;;  %v10117_v53 = vld [vmem:[#allocation6 + $0x2e0] ss:$0 sm:$0xff] }
0x2424   :  { %10421 = vrcp.f32 %v5226_v9 }
0x2429   :  { %v10420_v62 = vpop.eup %10419 }
0x242a   :  { %v5874_v8 = vsel %vm223_vm1, %v10420_v62, 0.0  ;;  %v10422_v1 = vpop.eup %10421 }
0x242b   :  { %5875 = vadd.xlane.f32.xlu1 %v5874_v8  ;;  %v5240_v50 = vmul.f32 %v10422_v1, %v10416_v36 }
0x242c   :  { %v5858_v6 = vpop.xlane.xlu1 %5857 }
0x242d   :  { %v5862_v3 = vsub.f32 %v5844_v45, %v5858_v6 }
0x242f   :  { %v5869_v47 = vmul.f32 1.442695, %v5862_v3 }
0x2430   :  { %v5855_v40 = vpop.xlane.xlu2 %5854 }
0x2431   :  { %10423 = vpow2.f32 %v5869_v47  ;;  %v5861_v0 = vsub.f32 %v5816_v24, %v5855_v40  ;;  %v5245_v31 = vpop.permute.xlu0 %5244 }
0x2432   :  { %5265 = vmatpush.msrb.mxu3 %v5245_v31 }
0x2433   :  { %v5867_v41 = vmul.f32 1.442695, %v5861_v0  ;;  %9759 = vmatmul.msk.f32.vlgmr.msrb.gmra.mxu3 %vm223_vm1, %v5240_v50 }
0x2434   :  { %5375 = vmatpush.msra.mxu3 %v4832_v48 }
0x2435   :  { %10425 = vpow2.f32 %v5867_v41 }
0x2436   :  { %5717 = vmatpush.msrb.mxu3 %v4833_v52 }
0x2437   :  { %v10424_v59 = vpop.eup %10423 }
0x2438   :  { %v5880_v14 = vsel %vm223_vm1, %v10424_v59, 0.0 }
0x2439   :  { %5881 = vadd.xlane.f32.xlu0 %v5880_v14 }
0x243b   :  { %v10426_v43 = vpop.eup %10425 }
0x243c   :  { %v5877_v38 = vsel %vm223_vm1, %v10426_v43, 0.0 }
0x243d   :  { %5878 = vadd.xlane.f32.xlu1 %v5877_v38 }
0x2456   :  { %5943 = vrot.lane.b32.xlu1 %v11764_v17, %s10696_s7 }
0x246b   :  { %v5873_v60 = vpop.xlane.xlu2 %5872 }
0x246c   :  { %10427 = vrcp.f32 %v5873_v60 }
0x2472   :  { %v10428_v21 = vpop.eup %10427 }
0x2473   :  { %v10050_v44 = vpop.permute.xlu2 %10049  ;;  %v5887_v58 = vmul.f32 %v10428_v21, %v10418_v39 }
0x2474   :  { %v10052_v51 = vunpack.i.h.bf16 %v10050_v44  ;;  %v10051_v10 = vunpack.i.l.bf16 %v10050_v44 }
0x2476   :  { %5912 = vmatpush.msra.mxu1 %v10051_v10  ;;  %5938 = vmatpush.msrb.mxu2 %v10052_v51 }
0x2477   :  { %9795 = vmatmul.msk.f32.vlgmr.msra.gmra.mxu1 %vm223_vm1, %v5887_v58 }
0x2478   :  { %6022 = vmatpush.msra.mxu2 %v4834_v5 }
0x247b   :  { %v5970_v12 = vpop.permute.xlu2 %5969 }
0x247c   :  { %5990 = vmatpush.msrb.mxu1 %v5970_v12 }
0x249e   :  { %v5876_v36 = vpop.xlane.xlu1 %5875 }
0x249f   :  { %10429 = vrcp.f32 %v5876_v36 }
0x24a5   :  { %v10430_v16 = vpop.eup %10429 }
0x24a6   :  { %v5888_v32 = vmul.f32 %v10430_v16, %v10420_v62 }
0x24a8   :  { %9796 = vmatmul.msk.f32.vlgmr.msrb.gmra.mxu2 %vm223_vm1, %v5888_v32 }
0x24ac   :  { %v5882_v4 = vpop.xlane.xlu0 %5881 }
0x24ad   :  { %10431 = vrcp.f32 %v5882_v4 }
0x24b0   :  { %v5879_v24 = vpop.xlane.xlu1 %5878 }
0x24b1   :  { %10433 = vrcp.f32 %v5879_v24  ;;  %v6162_v24 = vld [vmem:[#allocation6 + $0x300] sm:$0xff] }
0x24b3   :  { %v10432_v56 = vpop.eup %10431 }
0x24b4   :  { %v5890_v45 = vmul.f32 %v10432_v56, %v10424_v59 }
0x24b6   :  { %v5267_v18 = vpop.f32.mrf.mxu3  ;;  %9798 = vmatmul.msk.f32.vlgmr.msrb.gmra.mxu1 %vm223_vm1, %v5890_v45  ;;  %v6164_v45 = vld [vmem:[#allocation6 + $0x310] sm:$0xff] }
0x24b7   :  { %9763 = vmatmul.msk.f32.vlgmr.msra.gmra.mxu3 %vm223_vm1, %v5267_v18  ;;  %v10434_v23 = vpop.eup %10433  ;;  %v6163_v18 = vld [vmem:[#allocation6 + $0x308] sm:$0xff] }
0x24b8   :  { %v5889_v30 = vmul.f32 %v10434_v23, %v10426_v43 }
0x24bf   :  { %9764 = vmatmul.msk.f32.gmra.mxu3 %vm223_vm1, %v12032_v20 }
0x24c7   :  { %9765 = vmatmul.msk.f32.gmra.mxu3 %vm223_vm1, %v11985_v13 }
0x24c8   :  { %v5944_v7 = vpop.permute.xlu1 %5943 }
0x24c9   :  { %5964 = vmatpush.msrb.mxu0 %v5944_v7 }
0x24ca   :  { %9797 = vmatmul.msk.f32.vlgmr.msrb.gmra.mxu0 %vm223_vm1, %v5889_v30  ;;  %v6161_v30 = vld [vmem:[#allocation6 + $0x2f8] sm:$0xff] }
0x24cb   :  { %6200 = vmatpush.msra.mxu0 %v6164_v45 }
0x24cd   :  { %6201 = vmatpush.msra.mxu0 %v6163_v18 }
0x24cf   :  { %9766 = vmatmul.msk.f32.gmra.mxu3 %vm223_vm1, %v11988_v25  ;;  %6202 = vmatpush.msra.mxu0 %v6162_v24 }
0x24d1   :  { %6203 = vmatpush.msra.mxu0 %v6161_v30  ;;  %v6172_v30 = vld [vmem:[#allocation6 + $0x350] sm:$0xff] }
0x24d7   :  { %9783 = vmatmul.msk.f32.vlgmr.msrb.gmra.mxu3 %vm223_vm1, %v12044_v34 }
0x24df   :  { %9784 = vmatmul.msk.f32.gmra.mxu3 %vm223_vm1, %v12049_v35 }
0x24e7   :  { %9785 = vmatmul.msk.f32.gmra.mxu3 %vm223_vm1, %v12046_v61 }
0x24ef   :  { %9786 = vmatmul.msk.f32.gmra.mxu3 %vm223_vm1, %v12051_v37 }
0x24f4   :  { %v5914_v13 = vpop.f32.mrf.mxu1 }
0x24f5   :  { %9799 = vmatmul.msk.f32.vlgmr.msra.gmra.mxu2 %vm223_vm1, %v5914_v13 }
0x252b   :  { %v5940_v20 = vpop.f32.mrf.mxu2 }
0x252c   :  { %9800 = vmatmul.msk.f32.gmra.mxu2 %vm223_vm1, %v5940_v20 }
0x2533   :  { %v5992_v34 = vpop.f32.mrf.mxu1 }
0x253a   :  { %v5377_v39 = vpop.f32.mrf.mxu3 }
0x253b   :  { %v5419_v57 = vadd.f32 %v12034_v27, %v5377_v39 }
0x2542   :  { %v5380_v35 = vpop.f32.mrf.mxu3 }
0x2543   :  { %v5422_v27 = vadd.f32 %v12036_v42, %v5380_v35 }
0x2547   :  { %v5966_v25 = vpop.f32.mrf.mxu0 }
0x2548   :  { %9801 = vmatmul.msk.f32.gmra.mxu2 %vm223_vm1, %v5966_v25 }
0x254a   :  { %v5383_v26 = vpop.f32.mrf.mxu3 }
0x254b   :  { %v5425_v42 = vadd.f32 %v12038_v2, %v5383_v26 }
0x2550   :  { %9802 = vmatmul.msk.f32.gmra.mxu2 %vm223_vm1, %v5992_v34 }
0x2552   :  { %v5386_v19 = vpop.f32.mrf.mxu3 }
0x255a   :  { %v5719_v61 = vpop.f32.mrf.mxu3 }
0x255b   :  { %v5731_v37 = vadd.f32 %v5719_v61, %v5419_v57 }
0x2562   :  { %v5722_v40 = vpop.f32.mrf.mxu3 }
0x2563   :  { %v5732_v50 = vadd.f32 %v5722_v40, %v5422_v27 }
0x256a   :  { %v5725_v38 = vpop.f32.mrf.mxu3 }
0x256b   :  { %v5733_v60 = vadd.f32 %v5725_v38, %v5425_v42 }
0x2572   :  { %v5728_v10 = vpop.f32.mrf.mxu3 }
0x2578   :  { %v6024_v9 = vpop.f32.mrf.mxu2 }
0x2579   :  { %v6036_v62 = vadd.f32 %v6024_v9, %v5731_v37 }
0x257b   :  { %v6041_v8 = vadd.f32 %v10117_v53, %v6036_v62 }
0x257d   :  { %v12093_v6 = vadd.f32 %v6041_v8, %v11838_v22  ;;  %v12130_v8 = vld [vmem:[#allocation6 + $0x2f0] ss:$0 sm:$0xff] }
0x257f   :  { %v6051_v3 = vsel %vm71_vm0, %v12093_v6, 0.0  ;;  %v6067_v1 = vmul.f32 %v12093_v6, %v12093_v6 }
0x2580   :  { %6052 = vadd.xlane.f32.xlu2 %v6051_v3 }
0x2581   :  { %v6071_v47 = vsel %vm71_vm0, %v6067_v1, 0.0 }
0x2582   :  { %6072 = vadd.xlane.f32.xlu1 %v6071_v47 }
0x25af   :  { %v6027_v0 = vpop.f32.mrf.mxu2 }
0x25b0   :  { %v6037_v31 = vadd.f32 %v6027_v0, %v5732_v50 }
0x25b2   :  { %v6042_v41 = vadd.f32 %v10117_v53, %v6037_v31 }
0x25b4   :  { %v12102_v22 = vadd.f32 %v6042_v41, %v11845_v54  ;;  %v5428_v54 = vadd.f32 %v12040_v15, %v5386_v19 }
0x25b6   :  { %v6054_v59 = vsel %vm71_vm0, %v12102_v22, 0.0  ;;  %v6068_v14 = vmul.f32 %v12102_v22, %v12102_v22  ;;  %v5734_v12 = vadd.f32 %v5728_v10, %v5428_v54 }
0x25b7   :  { %6055 = vadd.xlane.f32.xlu0 %v6054_v59 }
0x25b8   :  { %v6074_v43 = vsel %vm71_vm0, %v6068_v14, 0.0 }
0x25bf   :  { %6075 = vadd.xlane.f32.xlu0 %v6074_v43 }
0x25cb   :  { %v6030_v21 = vpop.f32.mrf.mxu2 }
0x25cc   :  { %v6038_v44 = vadd.f32 %v6030_v21, %v5733_v60 }
0x25ce   :  { %v6043_v51 = vadd.f32 %v10117_v53, %v6038_v44 }
0x25d0   :  { %v12112_v58 = vadd.f32 %v6043_v51, %v11852_v28 }
0x25d2   :  { %v6057_v48 = vsel %vm71_vm0, %v12112_v58, 0.0  ;;  %v6069_v36 = vmul.f32 %v12112_v58, %v12112_v58 }
0x25d3   :  { %6058 = vadd.xlane.f32.xlu0 %v6057_v48  ;;  %v6033_v16 = vpop.f32.mrf.mxu2 }
0x25d4   :  { %v6039_v2 = vadd.f32 %v6033_v16, %v5734_v12  ;;  %v6077_v32 = vsel %vm71_vm0, %v6069_v36, 0.0 }
0x25d5   :  { %6078 = vadd.xlane.f32.xlu2 %v6077_v32 }
0x25d6   :  { %v6044_v4 = vadd.f32 %v10117_v53, %v6039_v2  ;;  %v12128_v53 = vld [vmem:[#allocation6 + $0x2e8] ss:$0 sm:$0xff] }
0x25d8   :  { %v12120_v52 = vadd.f32 %v6044_v4, %v11859_v55 }
0x25da   :  { %v6060_v28 = vsel %vm71_vm0, %v12120_v52, 0.0  ;;  %v6070_v15 = vmul.f32 %v12120_v52, %v12120_v52 }
0x25db   :  { %6061 = vadd.xlane.f32.xlu0 %v6060_v28 }
0x25dc   :  { %v6080_v56 = vsel %vm71_vm0, %v6070_v15, 0.0 }
0x25dd   :  { %6081 = vadd.xlane.f32.xlu2 %v6080_v56 }
0x25f3   :  { %v6053_v23 = vpop.xlane.xlu2 %6052 }
0x25f4   :  { %v6063_v7 = vmul.f32 0.03125, %v6053_v23  ;;  %v6173_v23 = vld [vmem:[#allocation6 + $0x358] sm:$0xff] }
0x25f5   :  { %v6073_v55 = vpop.xlane.xlu1 %6072  ;;  %6242 = vmatpush.msra.mxu3 %v6173_v23 }
0x25f6   :  { %v6087_v5 = vmul.f32 %v6063_v7, %v6063_v7  ;;  %v6083_v13 = vmul.f32 0.03125, %v6073_v55  ;;  %v6099_v37 = vsub.f32 %v12093_v6, %v6063_v7  ;;  %v6171_v7 = vld [vmem:[#allocation6 + $0x348] sm:$0xff] }
0x25f7   :  { %6243 = vmatpush.msra.mxu3 %v6172_v30 }
0x25f8   :  { %v6091_v20 = vsub.f32 %v6083_v13, %v6087_v5  ;;  %v6170_v5 = vld [vmem:[#allocation6 + $0x340] sm:$0xff] }
0x25f9   :  { %6244 = vmatpush.msra.mxu3 %v6171_v7 }
0x25fa   :  { %v6095_v25 = vmax.f32 %v6091_v20, 0.0 }
0x25fb   :  { %6245 = vmatpush.msra.mxu3 %v6170_v5 }
0x25fc   :  { %v6103_v39 = vadd.f32 1e-05, %v6095_v25 }
0x25fe   :  { %10435 = vrsqrt.f32 %v6103_v39  ;;  %vm6113_vm11 = vweird.f32 %v6103_v39 }
0x2604   :  { %v10436_v34 = vpop.eup %10435 }
0x2605   :  { %v6108_v35 = vmul.f32 %v10436_v34, %v6103_v39  ;;  %vm6114_vm10 = vweird.f32 %v10436_v34  ;;  %v6169_v39 = vld [vmem:[#allocation6 + $0x338] sm:$0xff] }
0x2606   :  { %vm6115_vm12 = vmor %vm6113_vm11, %vm6114_vm10  ;;  %6246 = vmatpush.msra.mxu3 %v6169_v39 }
0x2607   :  { %v6109_v26 = vmul.f32 %v10436_v34, %v6108_v35 }
0x2609   :  { %v6110_v19 = vmul.f32 0.5, %v6109_v26 }
0x260b   :  { %v6111_v61 = vsub.f32 1.5, %v6110_v19 }
0x260d   :  { %v6112_v57 = vmul.f32 %v10436_v34, %v6111_v61 }
0x260f   :  { %v6116_v9 = vsel %vm6115_vm12, %v10436_v34, %v6112_v57 }
0x2610   :  { %v6147_v62 = vmul.f32 %v6116_v9, %v6099_v37 }
0x2612   :  { %v6152_v3 = vmul.f32 %v12128_v53, %v6147_v62 }
0x2614   :  { %v12134_v1 = vadd.f32 %v12130_v8, %v6152_v3 }
0x2616   :  { %9803 = vmatmul.msk.f32.vlgmr.msra.gmra.mxu0 %vm71_vm0, %v12134_v1 }
0x262a   :  { %v6056_v47 = vpop.xlane.xlu0 %6055 }
0x262b   :  { %v6064_v40 = vmul.f32 0.03125, %v6056_v47 }
0x262d   :  { %v6088_v50 = vmul.f32 %v6064_v40, %v6064_v40  ;;  %v6100_v12 = vsub.f32 %v12102_v22, %v6064_v40 }
0x2632   :  { %v6076_v27 = vpop.xlane.xlu0 %6075 }
0x2633   :  { %v6084_v6 = vmul.f32 0.03125, %v6076_v27 }
0x2635   :  { %v6092_v0 = vsub.f32 %v6084_v6, %v6088_v50 }
0x2637   :  { %v6096_v31 = vmax.f32 %v6092_v0, 0.0 }
0x2639   :  { %v6104_v41 = vadd.f32 1e-05, %v6096_v31 }
0x263b   :  { %10437 = vrsqrt.f32 %v6104_v41  ;;  %vm6123_vm15 = vweird.f32 %v6104_v41 }
0x2641   :  { %v10438_v59 = vpop.eup %10437 }
0x2642   :  { %v6118_v14 = vmul.f32 %v10438_v59, %v6104_v41  ;;  %vm6124_vm13 = vweird.f32 %v10438_v59 }
0x2643   :  { %vm6125_vm2 = vmor %vm6123_vm15, %vm6124_vm13 }
0x2644   :  { %v6119_v43 = vmul.f32 %v10438_v59, %v6118_v14  ;;  %v6168_v14 = vld [vmem:[#allocation6 + $0x330] sm:$0xff] }
0x2645   :  { %6247 = vmatpush.msra.mxu3 %v6168_v14 }
0x2646   :  { %v6120_v38 = vmul.f32 0.5, %v6119_v43  ;;  %v6059_v42 = vpop.xlane.xlu0 %6058  ;;  %v6167_v43 = vld [vmem:[#allocation6 + $0x328] sm:$0xff] }
0x2647   :  { %v6065_v60 = vmul.f32 0.03125, %v6059_v42  ;;  %6248 = vmatpush.msra.mxu3 %v6167_v43  ;;  %v10120_v42 = vld [vmem:[#allocation6 + $0x318] ss:$0 sm:$0xff] }
0x2648   :  { %v6121_v21 = vsub.f32 1.5, %v6120_v38  ;;  %v6079_v44 = vpop.xlane.xlu2 %6078  ;;  %v6166_v38 = vld [vmem:[#allocation6 + $0x320] sm:$0xff] }
0x2649   :  { %v6089_v51 = vmul.f32 %v6065_v60, %v6065_v60  ;;  %v6085_v10 = vmul.f32 0.03125, %v6079_v44  ;;  %v6101_v57 = vsub.f32 %v12112_v58, %v6065_v60  ;;  %6249 = vmatpush.msra.mxu3 %v6166_v38 }
0x264a   :  { %v6122_v54 = vmul.f32 %v10438_v59, %v6121_v21 }
0x264b   :  { %v6093_v48 = vsub.f32 %v6085_v10, %v6089_v51 }
0x264c   :  { %v6126_v36 = vsel %vm6125_vm2, %v10438_v59, %v6122_v54 }
0x264d   :  { %v6097_v16 = vmax.f32 %v6093_v48, 0.0  ;;  %v6148_v2 = vmul.f32 %v6126_v36, %v6100_v12 }
0x264e   :  { %v6062_v32 = vpop.xlane.xlu0 %6061 }
0x264f   :  { %v6105_v4 = vadd.f32 1e-05, %v6097_v16  ;;  %v6066_v28 = vmul.f32 0.03125, %v6062_v32  ;;  %v6153_v15 = vmul.f32 %v12128_v53, %v6148_v2  ;;  %v10121_v16 = vld [vmem:[#allocation6 + $0x360] ss:$0 sm:$0xff] }
0x2650   :  { %v6082_v56 = vpop.xlane.xlu2 %6081 }
0x2651   :  { %10439 = vrsqrt.f32 %v6105_v4  ;;  %v6090_v45 = vmul.f32 %v6066_v28, %v6066_v28  ;;  %v6086_v18 = vmul.f32 0.03125, %v6082_v56  ;;  %v12141_v24 = vadd.f32 %v12130_v8, %v6153_v15 }
0x2652   :  { %vm6133_vm4 = vweird.f32 %v6105_v4  ;;  %v6102_v0 = vsub.f32 %v12120_v52, %v6066_v28 }
0x2653   :  { %v6094_v22 = vsub.f32 %v6086_v18, %v6090_v45  ;;  %9804 = vmatmul.msk.f32.gmra.mxu0 %vm71_vm0, %v12141_v24 }
0x2655   :  { %v6098_v55 = vmax.f32 %v6094_v22, 0.0 }
0x2657   :  { %v10440_v13 = vpop.eup %10439  ;;  %v6106_v25 = vadd.f32 1e-05, %v6098_v55 }
0x2658   :  { %v6128_v20 = vmul.f32 %v10440_v13, %v6105_v4  ;;  %vm6134_vm3 = vweird.f32 %v10440_v13 }
0x2659   :  { %10441 = vrsqrt.f32 %v6106_v25  ;;  %vm6135_vm5 = vmor %vm6133_vm4, %vm6134_vm3  ;;  %vm6143_vm7 = vweird.f32 %v6106_v25 }
0x265a   :  { %v6129_v34 = vmul.f32 %v10440_v13, %v6128_v20 }
0x265c   :  { %v6130_v35 = vmul.f32 0.5, %v6129_v34 }
0x265e   :  { %v6131_v26 = vsub.f32 1.5, %v6130_v35 }
0x265f   :  { %v10442_v19 = vpop.eup %10441 }
0x2660   :  { %v6132_v61 = vmul.f32 %v10440_v13, %v6131_v26  ;;  %v6138_v37 = vmul.f32 %v10442_v19, %v6106_v25  ;;  %vm6144_vm6 = vweird.f32 %v10442_v19 }
0x2661   :  { %vm6145_vm8 = vmor %vm6143_vm7, %vm6144_vm6 }
0x2662   :  { %v6136_v9 = vsel %vm6135_vm5, %v10440_v13, %v6132_v61  ;;  %v6139_v62 = vmul.f32 %v10442_v19, %v6138_v37  ;;  %v6382_v61 = vld [vmem:[#allocation6 + $0x390] sm:$0xff]  ;;  %v6380_v37 = vld [vmem:[#allocation6 + $0x380] sm:$0xff] }
0x2663   :  { %v6149_v3 = vmul.f32 %v6136_v9, %v6101_v57  ;;  %6414 = vmatpush.msra.mxu1 %v6382_v61  ;;  %v6381_v57 = vld [vmem:[#allocation6 + $0x388] sm:$0xff] }
0x2664   :  { %v6140_v47 = vmul.f32 0.5, %v6139_v62  ;;  %v6379_v62 = vld [vmem:[#allocation6 + $0x378] sm:$0xff] }
0x2665   :  { %v6154_v40 = vmul.f32 %v12128_v53, %v6149_v3  ;;  %6415 = vmatpush.msra.mxu1 %v6381_v57 }
0x2666   :  { %v6141_v27 = vsub.f32 1.5, %v6140_v47 }
0x2667   :  { %v6159_v50 = vadd.f32 %v12130_v8, %v6154_v40  ;;  %6416 = vmatpush.msra.mxu1 %v6380_v37 }
0x2668   :  { %v6142_v6 = vmul.f32 %v10442_v19, %v6141_v27 }
0x2669   :  { %9805 = vmatmul.msk.f32.gmra.mxu0 %vm71_vm0, %v6159_v50  ;;  %6417 = vmatpush.msra.mxu1 %v6379_v62 }
0x266a   :  { %v6146_v58 = vsel %vm6145_vm8, %v10442_v19, %v6142_v6 }
0x266b   :  { %v6150_v31 = vmul.f32 %v6146_v58, %v6102_v0 }
0x266d   :  { %v6155_v41 = vmul.f32 %v12128_v53, %v6150_v31 }
0x266f   :  { %v6160_v59 = vadd.f32 %v12130_v8, %v6155_v41 }
0x2671   :  { %9806 = vmatmul.msk.f32.gmra.mxu0 %vm71_vm0, %v6160_v59 }
0x2693   :  { %v6205_v60 = vpop.f32.mrf.mxu0 }
0x2694   :  { %v6206_v21 = vadd.f32 %v10120_v42, %v6205_v60 }
0x2696   :  { %v6217_v44 = vmax.f32 %v6206_v21, 0.0 }
0x2698   :  { %9807 = vmatmul.msk.f32.vlgmr.msra.gmra.mxu3 %vm1611_vm14, %v6217_v44  ;;  %v12184_v44 = vld [vmem:[#allocation6 + $0x370] ss:$0 sm:$0xff] }
0x26d0   :  { %v6208_v52 = vpop.f32.mrf.mxu0 }
0x26d1   :  { %v6209_v51 = vadd.f32 %v10120_v42, %v6208_v52 }
0x26d3   :  { %v6218_v10 = vmax.f32 %v6209_v51, 0.0 }
0x26d5   :  { %9808 = vmatmul.msk.f32.gmra.mxu3 %vm1611_vm14, %v6218_v10 }
0x26e6   :  { %v6211_v53 = vpop.f32.mrf.mxu0 }
0x26e7   :  { %v6212_v8 = vadd.f32 %v10120_v42, %v6211_v53 }
0x26e9   :  { %v6219_v54 = vmax.f32 %v6212_v8, 0.0 }
0x26eb   :  { %9809 = vmatmul.msk.f32.gmra.mxu3 %vm1611_vm14, %v6219_v54 }
0x26ee   :  { %v6214_v12 = vpop.f32.mrf.mxu0 }
0x26ef   :  { %v6215_v48 = vadd.f32 %v10120_v42, %v6214_v12  ;;  %v12182_v42 = vld [vmem:[#allocation6 + $0x368] ss:$0 sm:$0xff] }
0x26f1   :  { %v6220_v36 = vmax.f32 %v6215_v48, 0.0 }
0x26f3   :  { %9810 = vmatmul.msk.f32.gmra.mxu3 %vm1611_vm14, %v6220_v36 }
0x271b   :  { %v6251_v2 = vpop.f32.mrf.mxu3 }
0x271c   :  { %v6252_v32 = vadd.f32 %v10121_v16, %v6251_v2 }
0x271e   :  { %v6265_v4 = vadd.f32 %v6252_v32, %v12134_v1 }
0x2720   :  { %v6269_v28 = vsel %vm71_vm0, %v6265_v4, 0.0  ;;  %v6285_v15 = vmul.f32 %v6265_v4, %v6265_v4 }
0x2721   :  { %6270 = vadd.xlane.f32.xlu1 %v6269_v28 }
0x2722   :  { %v6289_v56 = vsel %vm71_vm0, %v6285_v15, 0.0 }
0x2723   :  { %6290 = vadd.xlane.f32.xlu0 %v6289_v56 }
0x2758   :  { %v6254_v45 = vpop.f32.mrf.mxu3 }
0x2759   :  { %v6255_v18 = vadd.f32 %v10121_v16, %v6254_v45 }
0x275b   :  { %v12161_v23 = vadd.f32 %v6255_v18, %v12141_v24 }
0x275d   :  { %v6272_v30 = vsel %vm71_vm0, %v12161_v23, 0.0  ;;  %v6286_v22 = vmul.f32 %v12161_v23, %v12161_v23 }
0x275e   :  { %6273 = vadd.xlane.f32.xlu2 %v6272_v30 }
0x275f   :  { %v6292_v1 = vsel %vm71_vm0, %v6286_v22, 0.0 }
0x2760   :  { %6293 = vadd.xlane.f32.xlu1 %v6292_v1 }
0x276e   :  { %v6257_v7 = vpop.f32.mrf.mxu3 }
0x276f   :  { %v6258_v55 = vadd.f32 %v10121_v16, %v6257_v7 }
0x2771   :  { %v12168_v5 = vadd.f32 %v6258_v55, %v6159_v50 }
0x2773   :  { %v6275_v13 = vsel %vm71_vm0, %v12168_v5, 0.0  ;;  %v6287_v24 = vmul.f32 %v12168_v5, %v12168_v5 }
0x2774   :  { %6276 = vadd.xlane.f32.xlu0 %v6275_v13 }
0x2775   :  { %v6295_v20 = vsel %vm71_vm0, %v6287_v24, 0.0 }
0x2776   :  { %6296 = vadd.xlane.f32.xlu2 %v6295_v20  ;;  %v6260_v25 = vpop.f32.mrf.mxu3 }
0x2777   :  { %v6261_v39 = vadd.f32 %v10121_v16, %v6260_v25 }
0x2779   :  { %v12175_v34 = vadd.f32 %v6261_v39, %v6160_v59 }
0x277b   :  { %v6278_v35 = vsel %vm71_vm0, %v12175_v34, 0.0  ;;  %v6288_v26 = vmul.f32 %v12175_v34, %v12175_v34 }
0x277c   :  { %6279 = vadd.xlane.f32.xlu1 %v6278_v35 }
0x277d   :  { %v6298_v19 = vsel %vm71_vm0, %v6288_v26, 0.0 }
0x277e   :  { %6299 = vadd.xlane.f32.xlu0 %v6298_v19 }
0x2794   :  { %v6271_v9 = vpop.xlane.xlu1 %6270 }
0x2795   :  { %v6281_v3 = vmul.f32 0.03125, %v6271_v9 }
0x2796   :  { %v6291_v47 = vpop.xlane.xlu0 %6290 }
0x2797   :  { %v6305_v40 = vmul.f32 %v6281_v3, %v6281_v3  ;;  %v6301_v27 = vmul.f32 0.03125, %v6291_v47  ;;  %v6317_v38 = vsub.f32 %v6265_v4, %v6281_v3 }
0x2799   :  { %v6309_v50 = vsub.f32 %v6301_v27, %v6305_v40 }
0x279b   :  { %v6313_v6 = vmax.f32 %v6309_v50, 0.0 }
0x279d   :  { %v6321_v0 = vadd.f32 1e-05, %v6313_v6 }
0x279f   :  { %10443 = vrsqrt.f32 %v6321_v0  ;;  %vm6331_vm10 = vweird.f32 %v6321_v0 }
0x27a5   :  { %v10444_v58 = vpop.eup %10443 }
0x27a6   :  { %v6326_v31 = vmul.f32 %v10444_v58, %v6321_v0  ;;  %vm6332_vm9 = vweird.f32 %v10444_v58 }
0x27a7   :  { %vm6333_vm11 = vmor %vm6331_vm10, %vm6332_vm9 }
0x27a8   :  { %v6327_v41 = vmul.f32 %v10444_v58, %v6326_v31 }
0x27aa   :  { %v6328_v59 = vmul.f32 0.5, %v6327_v41 }
0x27ac   :  { %v6329_v14 = vsub.f32 1.5, %v6328_v59 }
0x27ae   :  { %v6330_v43 = vmul.f32 %v10444_v58, %v6329_v14 }
0x27b0   :  { %v6334_v60 = vsel %vm6333_vm11, %v10444_v58, %v6330_v43 }
0x27b1   :  { %v6365_v21 = vmul.f32 %v6334_v60, %v6317_v38 }
0x27b3   :  { %v6370_v52 = vmul.f32 %v12182_v42, %v6365_v21 }
0x27b5   :  { %v12188_v51 = vadd.f32 %v12184_v44, %v6370_v52 }
0x27b7   :  { %9811 = vmatmul.msk.f32.vlgmr.msra.gmra.mxu1 %vm71_vm0, %v12188_v51 }
0x27d1   :  { %v6274_v10 = vpop.xlane.xlu2 %6273 }
0x27d2   :  { %v6282_v53 = vmul.f32 0.03125, %v6274_v10 }
0x27d3   :  { %v6294_v8 = vpop.xlane.xlu1 %6293 }
0x27d4   :  { %v6306_v54 = vmul.f32 %v6282_v53, %v6282_v53  ;;  %v6302_v12 = vmul.f32 0.03125, %v6294_v8  ;;  %v6318_v55 = vsub.f32 %v12161_v23, %v6282_v53 }
0x27d6   :  { %v6310_v48 = vsub.f32 %v6302_v12, %v6306_v54  ;;  %v10124_v12 = vld [vmem:[#allocation6 + $0x398] ss:$0 sm:$0xff] }
0x27d8   :  { %v6314_v36 = vmax.f32 %v6310_v48, 0.0 }
0x27da   :  { %v6322_v16 = vadd.f32 1e-05, %v6314_v36 }
0x27dc   :  { %10445 = vrsqrt.f32 %v6322_v16  ;;  %vm6341_vm13 = vweird.f32 %v6322_v16 }
0x27e2   :  { %v10446_v2 = vpop.eup %10445 }
0x27e3   :  { %v6336_v32 = vmul.f32 %v10446_v2, %v6322_v16  ;;  %vm6342_vm12 = vweird.f32 %v10446_v2 }
0x27e4   :  { %vm6343_vm15 = vmor %vm6341_vm13, %vm6342_vm12 }
0x27e5   :  { %v6337_v4 = vmul.f32 %v10446_v2, %v6336_v32 }
0x27e7   :  { %v6277_v28 = vpop.xlane.xlu0 %6276  ;;  %v6338_v15 = vmul.f32 0.5, %v6337_v4 }
0x27e8   :  { %v6283_v56 = vmul.f32 0.03125, %v6277_v28 }
0x27e9   :  { %v6297_v45 = vpop.xlane.xlu2 %6296  ;;  %v6339_v18 = vsub.f32 1.5, %v6338_v15 }
0x27ea   :  { %v6307_v30 = vmul.f32 %v6283_v56, %v6283_v56  ;;  %v6303_v22 = vmul.f32 0.03125, %v6297_v45  ;;  %v6319_v58 = vsub.f32 %v12168_v5, %v6283_v56 }
0x27eb   :  { %v6340_v1 = vmul.f32 %v10446_v2, %v6339_v18 }
0x27ec   :  { %v6311_v7 = vsub.f32 %v6303_v22, %v6307_v30 }
0x27ed   :  { %v6344_v24 = vsel %vm6343_vm15, %v10446_v2, %v6340_v1 }
0x27ee   :  { %v6315_v13 = vmax.f32 %v6311_v7, 0.0  ;;  %v6366_v20 = vmul.f32 %v6344_v24, %v6318_v55 }
0x27ef   :  { %v6280_v39 = vpop.xlane.xlu1 %6279 }
0x27f0   :  { %v6323_v25 = vadd.f32 1e-05, %v6315_v13  ;;  %v6284_v35 = vmul.f32 0.03125, %v6280_v39  ;;  %v6371_v26 = vmul.f32 %v12182_v42, %v6366_v20 }
0x27f1   :  { %v6300_v19 = vpop.xlane.xlu0 %6299 }
0x27f2   :  { %10447 = vrsqrt.f32 %v6323_v25  ;;  %v6308_v61 = vmul.f32 %v6284_v35, %v6284_v35  ;;  %v6304_v57 = vmul.f32 0.03125, %v6300_v19  ;;  %v12195_v37 = vadd.f32 %v12184_v44, %v6371_v26 }
0x27f3   :  { %vm6351_vm3 = vweird.f32 %v6323_v25  ;;  %v6320_v5 = vsub.f32 %v12175_v34, %v6284_v35 }
0x27f4   :  { %v6312_v9 = vsub.f32 %v6304_v57, %v6308_v61  ;;  %9812 = vmatmul.msk.f32.gmra.mxu1 %vm71_vm0, %v12195_v37 }
0x27f6   :  { %v6316_v23 = vmax.f32 %v6312_v9, 0.0 }
0x27f8   :  { %v10448_v62 = vpop.eup %10447  ;;  %v6324_v47 = vadd.f32 1e-05, %v6316_v23 }
0x27f9   :  { %v6346_v3 = vmul.f32 %v10448_v62, %v6323_v25  ;;  %vm6352_vm2 = vweird.f32 %v10448_v62 }
0x27fa   :  { %10449 = vrsqrt.f32 %v6324_v47  ;;  %vm6353_vm4 = vmor %vm6351_vm3, %vm6352_vm2  ;;  %vm6361_vm6 = vweird.f32 %v6324_v47 }
0x27fb   :  { %v6347_v40 = vmul.f32 %v10448_v62, %v6346_v3 }
0x27fd   :  { %v6348_v27 = vmul.f32 0.5, %v6347_v40 }
0x27ff   :  { %v6349_v50 = vsub.f32 1.5, %v6348_v27 }
0x2800   :  { %v10450_v6 = vpop.eup %10449 }
0x2801   :  { %v6350_v0 = vmul.f32 %v10448_v62, %v6349_v50  ;;  %v6356_v31 = vmul.f32 %v10450_v6, %v6324_v47  ;;  %vm6362_vm5 = vweird.f32 %v10450_v6 }
0x2802   :  { %vm6363_vm7 = vmor %vm6361_vm6, %vm6362_vm5 }
0x2803   :  { %v6354_v41 = vsel %vm6353_vm4, %v10448_v62, %v6350_v0  ;;  %v6357_v59 = vmul.f32 %v10450_v6, %v6356_v31 }
0x2804   :  { %v6367_v14 = vmul.f32 %v6354_v41, %v6319_v58 }
0x2805   :  { %v6358_v43 = vmul.f32 0.5, %v6357_v59 }
0x2806   :  { %v6372_v38 = vmul.f32 %v12182_v42, %v6367_v14 }
0x2807   :  { %v6359_v60 = vsub.f32 1.5, %v6358_v43 }
0x2808   :  { %v12202_v21 = vadd.f32 %v12184_v44, %v6372_v38 }
0x2809   :  { %v6360_v52 = vmul.f32 %v10450_v6, %v6359_v60 }
0x280a   :  { %9813 = vmatmul.msk.f32.gmra.mxu1 %vm71_vm0, %v12202_v21 }
0x280b   :  { %v6364_v10 = vsel %vm6363_vm7, %v10450_v6, %v6360_v52 }
0x280c   :  { %v6368_v53 = vmul.f32 %v6364_v10, %v6320_v5 }
0x280e   :  { %v6373_v8 = vmul.f32 %v12182_v42, %v6368_v53 }
0x2810   :  { %v12209_v54 = vadd.f32 %v12184_v44, %v6373_v8 }
0x2812   :  { %9814 = vmatmul.msk.f32.gmra.mxu1 %vm71_vm0, %v12209_v54 }
0x2834   :  { %v6419_v48 = vpop.f32.mrf.mxu1 }
0x2835   :  { %v12213_v36 = vadd.f32 %v10124_v12, %v6419_v48 }
0x2837   :  { %6432 = vrot.lane.b32.xlu2 %v12213_v36, %s10688_s0 }
0x2871   :  { %v6422_v16 = vpop.f32.mrf.mxu1 }
0x2872   :  { %v12228_v4 = vadd.f32 %v10124_v12, %v6422_v16 }
0x2887   :  { %v6425_v34 = vpop.f32.mrf.mxu1 }
0x2888   :  { %v12217_v2 = vadd.f32 %v10124_v12, %v6425_v34 }
0x288a   :  { %6486 = vrot.lane.b32.xlu0 %v12217_v2, %s10688_s0 }
0x288f   :  { %v6428_v42 = vpop.f32.mrf.mxu1 }
0x2890   :  { %v12221_v44 = vadd.f32 %v10124_v12, %v6428_v42 }
0x2891   :  { %v6433_v32 = vpop.permute.xlu2 %6432 }
0x2892   :  { %9815 = vmatpush.xpose.msk.msrb.mxu2 %vm223_vm1, %v6433_v32  ;;  %6513 = vrot.lane.b32.xlu1 %v12221_v44, %s10688_s0  ;;  %v10053_v7 = vpack.i.bf16 %v12217_v2, %v12221_v44  ;;  %v10058_v5 = vpack.i.bf16 %v12221_v44, %v12217_v2 }
0x2895   :  { %9816 = vmatmul.msk.f32.vlgmr.msrb.gmra.mxu2 %vm223_vm1, %v12213_v36 }
0x289a   :  { %6459 = vrot.lane.b32.xlu1 %v12228_v4, %s10688_s0 }
0x28fc   :  { %v6487_v28 = vpop.permute.xlu0 %6486 }
0x28fd   :  { %9819 = vmatpush.xpose.msk.msrb.mxu1 %vm223_vm1, %v6487_v28 }
0x2900   :  { %9820 = vmatmul.msk.f32.vlgmr.msrb.gmra.mxu1 %vm223_vm1, %v12217_v2 }
0x2904   :  { %v6514_v15 = vpop.permute.xlu1 %6513 }
0x2905   :  { %9821 = vmatpush.xpose.msk.msra.mxu2 %vm223_vm1, %v6514_v15 }
0x2908   :  { %9822 = vmatmul.msk.f32.vlgmr.msra.gmra.mxu2 %vm223_vm1, %v12221_v44 }
0x290c   :  { %v6460_v56 = vpop.permute.xlu1 %6459 }
0x290d   :  { %9817 = vmatpush.xpose.msk.msrb.mxu0 %vm223_vm1, %v6460_v56 }
0x2910   :  { %9818 = vmatmul.msk.f32.vlgmr.msrb.gmra.mxu0 %vm223_vm1, %v12228_v4 }
0x2918   :  { %v12242_v30 = vpop.f32.mrf.mxu2 }
0x297d   :  { %v6509_v45 = vpop.f32.mrf.mxu1 }
0x297e   :  { %v6545_v18 = vsel %vm223_vm1, %v6509_v45, -inf }
0x297f   :  { %6546 = vmax.xlane.f32.xlu2 %v6545_v18 }
0x298b   :  { %v6536_v22 = vpop.f32.mrf.mxu2 }
0x298c   :  { %v6548_v1 = vsel %vm223_vm1, %v6536_v22, -inf }
0x298d   :  { %6549 = vmax.xlane.f32.xlu0 %v6548_v1  ;;  %v6482_v3 = vpop.f32.mrf.mxu0 }
0x298e   :  { %v6542_v47 = vsel %vm223_vm1, %v6482_v3, -inf }
0x29a1   :  { %10054 = vrot.lane.b32.xlu0 %v10053_v7, %s10689_s2 }
0x29a9   :  { %6745 = vrot.lane.b32.xlu0 %v12217_v2, %s10691_s29 }
0x29b1   :  { %6743 = vrot.lane.b32.xlu0 %v12217_v2, %s10690_s28 }
0x29f2   :  { %v6547_v55 = vpop.xlane.xlu2 %6546 }
0x29f3   :  { %v6553_v13 = vsub.f32 %v6509_v45, %v6547_v55 }
0x29f5   :  { %v6559_v24 = vmul.f32 1.442695, %v6553_v13 }
0x29f7   :  { %10451 = vpow2.f32 %v6559_v24 }
0x29fd   :  { %v10452_v20 = vpop.eup %10451 }
0x29fe   :  { %v6569_v25 = vsel %vm223_vm1, %v10452_v20, 0.0 }
0x29ff   :  { %6570 = vadd.xlane.f32.xlu2 %v6569_v25 }
0x2a00   :  { %v6550_v39 = vpop.xlane.xlu0 %6549 }
0x2a01   :  { %v6554_v35 = vsub.f32 %v6536_v22, %v6550_v39 }
0x2a03   :  { %v6561_v26 = vmul.f32 1.442695, %v6554_v35 }
0x2a05   :  { %10453 = vpow2.f32 %v6561_v26 }
0x2a0b   :  { %v10454_v19 = vpop.eup %10453 }
0x2a0c   :  { %v6572_v61 = vsel %vm223_vm1, %v10454_v19, 0.0 }
0x2a0d   :  { %6573 = vadd.xlane.f32.xlu1 %v6572_v61 }
0x2a13   :  { %v10055_v57 = vpop.permute.xlu0 %10054 }
0x2a14   :  { %v10057_v9 = vunpack.i.h.bf16 %v10055_v57  ;;  %v10056_v23 = vunpack.i.l.bf16 %v10055_v57  ;;  %v6539_v57 = vsel %vm223_vm1, %v12242_v30, -inf }
0x2a16   :  { %6656 = vmatpush.msra.mxu1 %v10057_v9  ;;  %6682 = vmatpush.msrb.mxu2 %v10056_v23  ;;  %v12312_v9 = vpack.i.bf16 %v12228_v4, %v12213_v36 }
0x2a17   :  { %6773 = vrot.lane.b32.xlu2 %v12221_v44, %s10691_s29 }
0x2a1b   :  { %v6746_v62 = vpop.permute.xlu0 %6745 }
0x2a1c   :  { %9831 = vmatpush.xpose.msk.msrb.mxu1 %vm223_vm1, %v6746_v62 }
0x2a23   :  { %v6744_v58 = vpop.permute.xlu0 %6743 }
0x2a26   :  { %6771 = vrot.lane.b32.xlu1 %v12221_v44, %s10690_s28 }
0x2a40   :  { %6543 = vmax.xlane.f32.xlu2 %v6542_v47 }
0x2a72   :  { %v6571_v40 = vpop.xlane.xlu2 %6570 }
0x2a73   :  { %10455 = vrcp.f32 %v6571_v40 }
0x2a79   :  { %v10456_v27 = vpop.eup %10455 }
0x2a7a   :  { %v6581_v50 = vmul.f32 %v10456_v27, %v10452_v20  ;;  %v6774_v6 = vpop.permute.xlu2 %6773 }
0x2a7b   :  { %9833 = vmatpush.xpose.msk.msra.mxu2 %vm223_vm1, %v6774_v6 }
0x2a7c   :  { %9825 = vmatmul.msk.f32.vlgmr.msra.gmra.mxu1 %vm223_vm1, %v6581_v50 }
0x2a80   :  { %v6574_v0 = vpop.xlane.xlu1 %6573 }
0x2a81   :  { %10457 = vrcp.f32 %v6574_v0 }
0x2a84   :  { %9832 = vmatmul.msk.f32.vlgmr.msrb.gmra.mxu1 %vm223_vm1, %v6744_v58 }
0x2a87   :  { %v10458_v31 = vpop.eup %10457 }
0x2a88   :  { %v6582_v41 = vmul.f32 %v10458_v31, %v10454_v19 }
0x2a8a   :  { %9826 = vmatmul.msk.f32.vlgmr.msrb.gmra.mxu2 %vm223_vm1, %v6582_v41 }
0x2a98   :  { %v6772_v59 = vpop.permute.xlu1 %6771 }
0x2a99   :  { %9834 = vmatmul.msk.f32.vlgmr.msra.gmra.mxu2 %vm223_vm1, %v6772_v59 }
0x2ab3   :  { %v6544_v14 = vpop.xlane.xlu2 %6543 }
0x2ab4   :  { %v6552_v43 = vsub.f32 %v6482_v3, %v6544_v14 }
0x2ab6   :  { %v6557_v38 = vmul.f32 1.442695, %v6552_v43 }
0x2ab8   :  { %10459 = vpow2.f32 %v6557_v38 }
0x2abe   :  { %v10460_v60 = vpop.eup %10459 }
0x2abf   :  { %v6566_v52 = vsel %vm223_vm1, %v10460_v60, 0.0 }
0x2ac0   :  { %6567 = vadd.xlane.f32.xlu2 %v6566_v52 }
0x2ad8   :  { %6715 = vrot.lane.b32.xlu2 %v12228_v4, %s10690_s28 }
0x2ae0   :  { %10059 = vrot.lane.b32.xlu2 %v10058_v5, %s10692_s30 }
0x2ae8   :  { %7031 = vrot.lane.b32.xlu2 %v12213_v36, %s10694_s5 }
0x2af0   :  { %7059 = vrot.lane.b32.xlu2 %v12228_v4, %s10694_s5 }
0x2af8   :  { %7029 = vrot.lane.b32.xlu2 %v12213_v36, %s10693_s4 }
0x2af9   :  { %v12277_v10 = vpop.f32.mrf.mxu1 }
0x2b00   :  { %7057 = vrot.lane.b32.xlu2 %v12228_v4, %s10693_s4 }
0x2b01   :  { %v6768_v53 = vpop.f32.mrf.mxu1 }
0x2b02   :  { %v6805_v8 = vsel %vm223_vm1, %v6768_v53, -inf }
0x2b03   :  { %6806 = vmax.xlane.f32.xlu1 %v6805_v8 }
0x2b08   :  { %7085 = vrot.lane.b32.xlu2 %v12217_v2, %s10693_s4 }
0x2b0d   :  { %v12286_v12 = vpop.f32.mrf.mxu2 }
0x2b10   :  { %7113 = vrot.lane.b32.xlu2 %v12221_v44, %s10693_s4 }
0x2b1c   :  { %6609 = vrot.lane.b32.xlu1 %v12228_v4, %s10689_s2  ;;  %v6796_v48 = vpop.f32.mrf.mxu2 }
0x2b1d   :  { %v6808_v16 = vsel %vm223_vm1, %v6796_v48, -inf }
0x2b1e   :  { %6809 = vmax.xlane.f32.xlu0 %v6808_v16 }
0x2b32   :  { %6717 = vrot.lane.b32.xlu0 %v12228_v4, %s10691_s29 }
0x2b33   :  { %v6568_v34 = vpop.xlane.xlu2 %6567 }
0x2b3b   :  { %v6716_v42 = vpop.permute.xlu2 %6715 }
0x2b43   :  { %v10060_v32 = vpop.permute.xlu2 %10059 }
0x2b44   :  { %v10062_v28 = vunpack.i.h.bf16 %v10060_v32  ;;  %v10061_v15 = vunpack.i.l.bf16 %v10060_v32 }
0x2b46   :  { %6916 = vmatpush.msra.mxu1 %v10061_v15  ;;  %6942 = vmatpush.msrb.mxu2 %v10062_v28 }
0x2b4b   :  { %v7032_v56 = vpop.permute.xlu2 %7031 }
0x2b4c   :  { %9847 = vmatpush.xpose.msk.msrb.mxu1 %vm223_vm1, %v7032_v56 }
0x2b53   :  { %v7060_v45 = vpop.permute.xlu2 %7059 }
0x2b54   :  { %9849 = vmatpush.xpose.msk.msra.mxu2 %vm223_vm1, %v7060_v45 }
0x2b5b   :  { %v7030_v62 = vpop.permute.xlu2 %7029 }
0x2b63   :  { %v7058_v40 = vpop.permute.xlu2 %7057 }
0x2b6b   :  { %v7086_v50 = vpop.permute.xlu2 %7085 }
0x2b73   :  { %v7114_v43 = vpop.permute.xlu2 %7113 }
0x2b76   :  { %v6807_v18 = vpop.xlane.xlu1 %6806 }
0x2b77   :  { %v6813_v22 = vsub.f32 %v6768_v53, %v6807_v18 }
0x2b79   :  { %v6819_v1 = vmul.f32 1.442695, %v6813_v22 }
0x2b7b   :  { %10461 = vpow2.f32 %v6819_v1 }
0x2b7c   :  { %10463 = vrcp.f32 %v6568_v34 }
0x2b81   :  { %v10462_v7 = vpop.eup %10461 }
0x2b82   :  { %v6829_v55 = vsel %vm223_vm1, %v10462_v7, 0.0  ;;  %v10464_v13 = vpop.eup %10463 }
0x2b83   :  { %6830 = vadd.xlane.f32.xlu0 %v6829_v55  ;;  %v6580_v24 = vmul.f32 %v10464_v13, %v10460_v60 }
0x2b8e   :  { %v6610_v20 = vpop.permute.xlu1 %6609 }
0x2b8f   :  { %6630 = vmatpush.msra.mxu0 %v6610_v20 }
0x2b90   :  { %9824 = vmatmul.msk.f32.vlgmr.msra.gmra.mxu0 %vm223_vm1, %v6580_v24 }
0x2b91   :  { %v6810_v25 = vpop.xlane.xlu0 %6809 }
0x2b92   :  { %v6814_v39 = vsub.f32 %v6796_v48, %v6810_v25 }
0x2b94   :  { %v6821_v35 = vmul.f32 1.442695, %v6814_v39 }
0x2b96   :  { %10465 = vpow2.f32 %v6821_v35 }
0x2b97   :  { %7087 = vrot.lane.b32.xlu0 %v12217_v2, %s10694_s5 }
0x2b9c   :  { %v10466_v26 = vpop.eup %10465 }
0x2b9d   :  { %v6832_v19 = vsel %vm223_vm1, %v10466_v26, 0.0 }
0x2b9e   :  { %6833 = vadd.xlane.f32.xlu1 %v6832_v19 }
0x2ba4   :  { %v6718_v61 = vpop.permute.xlu0 %6717 }
0x2ba5   :  { %9829 = vmatpush.xpose.msk.msrb.mxu0 %vm223_vm1, %v6718_v61 }
0x2ba8   :  { %9830 = vmatmul.msk.f32.vlgmr.msrb.gmra.mxu0 %vm223_vm1, %v6716_v42 }
0x2bb7   :  { %7115 = vrot.lane.b32.xlu1 %v12221_v44, %s10694_s5 }
0x2bbf   :  { %6583 = vrot.lane.b32.xlu1 %v12213_v36, %s10689_s2 }
0x2bc1   :  { %6540 = vmax.xlane.f32.xlu0 %v6539_v57 }
0x2bd5   :  { %6689 = vrot.lane.b32.xlu0 %v12213_v36, %s10691_s29 }
0x2bdd   :  { %10064 = vrot.lane.b32.xlu0 %v12312_v9, %s10695_s6 }
0x2be5   :  { %7364 = vrot.lane.b32.xlu0 %v12228_v4, %s10696_s7 }
0x2bf6   :  { %v6831_v23 = vpop.xlane.xlu0 %6830 }
0x2bf7   :  { %10467 = vrcp.f32 %v6831_v23 }
0x2bfd   :  { %v10468_v3 = vpop.eup %10467 }
0x2bfe   :  { %v6841_v47 = vmul.f32 %v10468_v3, %v10462_v7 }
0x2c00   :  { %9837 = vmatmul.msk.f32.vlgmr.msra.gmra.mxu1 %vm223_vm1, %v6841_v47 }
0x2c08   :  { %9848 = vmatmul.msk.f32.vlgmr.msrb.gmra.mxu1 %vm223_vm1, %v7030_v62 }
0x2c09   :  { %v7088_v27 = vpop.permute.xlu0 %7087 }
0x2c0a   :  { %9851 = vmatpush.xpose.msk.msra.mxu1 %vm223_vm1, %v7088_v27 }
0x2c0d   :  { %v12323_v31 = vpop.f32.mrf.mxu0 }
0x2c10   :  { %9852 = vmatmul.msk.f32.vlgmr.msra.gmra.mxu1 %vm223_vm1, %v7086_v50  ;;  %v6384_v50 = vld [vmem:[#allocation6 + $0x3a0] sm:$0xff] }
0x2c11   :  { %v6834_v6 = vpop.xlane.xlu1 %6833 }
0x2c12   :  { %10469 = vrcp.f32 %v6834_v6 }
0x2c18   :  { %v10470_v0 = vpop.eup %10469 }
0x2c19   :  { %v6842_v58 = vmul.f32 %v10470_v0, %v10466_v26 }
0x2c1b   :  { %9838 = vmatmul.msk.f32.vlgmr.msrb.gmra.mxu2 %vm223_vm1, %v6842_v58 }
0x2c23   :  { %9850 = vmatmul.msk.f32.vlgmr.msra.gmra.mxu2 %vm223_vm1, %v7058_v40 }
0x2c25   :  { %v6740_v41 = vpop.f32.mrf.mxu0 }
0x2c26   :  { %v6802_v59 = vsel %vm223_vm1, %v6740_v41, -inf }
0x2c27   :  { %6803 = vmax.xlane.f32.xlu1 %v6802_v59 }
0x2c29   :  { %v7116_v14 = vpop.permute.xlu1 %7115 }
0x2c2a   :  { %9853 = vmatpush.xpose.msk.msrb.mxu2 %vm223_vm1, %v7116_v14 }
0x2c2d   :  { %9854 = vmatmul.msk.f32.vlgmr.msrb.gmra.mxu2 %vm223_vm1, %v7114_v43 }
0x2c31   :  { %v6584_v38 = vpop.permute.xlu1 %6583 }
0x2c32   :  { %6604 = vmatpush.msrb.mxu3 %v6584_v38 }
0x2c34   :  { %v6541_v60 = vpop.xlane.xlu0 %6540 }
0x2c35   :  { %v6551_v52 = vsub.f32 %v12242_v30, %v6541_v60 }
0x2c37   :  { %v6555_v5 = vmul.f32 1.442695, %v6551_v52 }
0x2c39   :  { %10471 = vpow2.f32 %v6555_v5 }
0x2c3f   :  { %v10472_v53 = vpop.eup %10471 }
0x2c40   :  { %v6563_v8 = vsel %vm223_vm1, %v10472_v53, 0.0  ;;  %6687 = vrot.lane.b32.xlu1 %v12213_v36, %s10690_s28 }
0x2c41   :  { %6564 = vadd.xlane.f32.xlu2 %v6563_v8 }
0x2c47   :  { %v6690_v48 = vpop.permute.xlu0 %6689 }
0x2c48   :  { %9827 = vmatpush.xpose.msk.msra.mxu3 %vm223_vm1, %v6690_v48  ;;  %7336 = vrot.lane.b32.xlu1 %v12213_v36, %s10696_s7 }
0x2c4f   :  { %v10065_v16 = vpop.permute.xlu0 %10064 }
0x2c50   :  { %v10067_v34 = vunpack.i.h.bf16 %v10065_v16  ;;  %v10066_v42 = vunpack.i.l.bf16 %v10065_v16  ;;  %7392 = vrot.lane.b32.xlu1 %v12217_v2, %s10696_s7 }
0x2c52   :  { %7206 = vmatpush.msrb.mxu1 %v10066_v42  ;;  %7232 = vmatpush.msra.mxu2 %v10067_v34 }
0x2c57   :  { %v12357_v61 = vpop.permute.xlu0 %7364 }
0x2c7d   :  { %v12351_v25 = vpop.f32.mrf.mxu1 }
0x2c85   :  { %v7054_v39 = vpop.f32.mrf.mxu1 }
0x2c86   :  { %v7141_v35 = vsel %vm223_vm1, %v7054_v39, -inf }
0x2c8d   :  { %v7110_v26 = vpop.f32.mrf.mxu1 }
0x2c8e   :  { %v7147_v19 = vsel %vm223_vm1, %v7110_v26, -inf }
0x2c9a   :  { %v6804_v30 = vpop.xlane.xlu1 %6803 }
0x2c9b   :  { %v6812_v32 = vsub.f32 %v6740_v41, %v6804_v30 }
0x2c9d   :  { %v6817_v28 = vmul.f32 1.442695, %v6812_v32 }
0x2c9e   :  { %v12338_v15 = vpop.f32.mrf.mxu2 }
0x2c9f   :  { %10473 = vpow2.f32 %v6817_v28 }
0x2ca5   :  { %v10474_v56 = vpop.eup %10473 }
0x2ca6   :  { %v7082_v45 = vpop.f32.mrf.mxu2  ;;  %v6826_v18 = vsel %vm223_vm1, %v10474_v56, 0.0 }
0x2ca7   :  { %6827 = vadd.xlane.f32.xlu2 %v6826_v18  ;;  %v7144_v22 = vsel %vm223_vm1, %v7082_v45, -inf }
0x2ca8   :  { %7145 = vmax.xlane.f32.xlu0 %v7144_v22 }
0x2cb0   :  { %v7138_v1 = vpop.f32.mrf.mxu2 }
0x2cb1   :  { %v7150_v7 = vsel %vm223_vm1, %v7138_v1, -inf }
0x2cb2   :  { %7151 = vmax.xlane.f32.xlu0 %v7150_v7  ;;  %v6688_v20 = vpop.permute.xlu1 %6687 }
0x2cb4   :  { %v6565_v55 = vpop.xlane.xlu2 %6564 }
0x2cb5   :  { %10475 = vrcp.f32 %v6565_v55 }
0x2cba   :  { %v7337_v6 = vpop.permute.xlu1 %7336 }
0x2cbb   :  { %v10476_v13 = vpop.eup %10475 }
0x2cbc   :  { %v6579_v24 = vmul.f32 %v10476_v13, %v10472_v53 }
0x2cbe   :  { %9823 = vmatmul.msk.f32.vlgmr.msrb.gmra.mxu3 %vm223_vm1, %v6579_v24 }
0x2cbf   :  { %6869 = vrot.lane.b32.xlu2 %v12228_v4, %s10692_s30 }
0x2cc2   :  { %v7393_v28 = vpop.permute.xlu1 %7392 }
0x2cc6   :  { %9828 = vmatmul.msk.f32.vlgmr.msra.gmra.mxu3 %vm223_vm1, %v6688_v20  ;;  %7334 = vrot.lane.b32.xlu0 %v12213_v36, %s10697_s8 }
0x2cc7   :  { %7237 = vrot.lane.b32.xlu2 %v12217_v2, %s10695_s6 }
0x2cf0   :  { %7142 = vmax.xlane.f32.xlu2 %v7141_v35 }
0x2cf8   :  { %7148 = vmax.xlane.f32.xlu2 %v7147_v19 }
0x2d10   :  { %7263 = vrot.lane.b32.xlu2 %v12221_v44, %s10695_s6 }
0x2d1a   :  { %v6828_v57 = vpop.xlane.xlu2 %6827 }
0x2d1b   :  { %10477 = vrcp.f32 %v6828_v57  ;;  %v7146_v23 = vpop.xlane.xlu0 %7145 }
0x2d1c   :  { %v7154_v62 = vsub.f32 %v7082_v45, %v7146_v23 }
0x2d1e   :  { %v7159_v3 = vmul.f32 1.442695, %v7154_v62 }
0x2d20   :  { %10479 = vpow2.f32 %v7159_v3 }
0x2d21   :  { %v10478_v47 = vpop.eup %10477 }
0x2d22   :  { %v6840_v40 = vmul.f32 %v10478_v47, %v10474_v56  ;;  %v6870_v27 = vpop.permute.xlu2 %6869 }
0x2d23   :  { %6890 = vmatpush.msra.mxu0 %v6870_v27 }
0x2d24   :  { %9836 = vmatmul.msk.f32.vlgmr.msra.gmra.mxu0 %vm223_vm1, %v6840_v40 }
0x2d25   :  { %7015 = vmatpush.msrb.mxu0 %v6384_v50  ;;  %v7152_v0 = vpop.xlane.xlu0 %7151 }
0x2d26   :  { %v10480_v58 = vpop.eup %10479  ;;  %v7156_v41 = vsub.f32 %v7138_v1, %v7152_v0 }
0x2d27   :  { %9863 = vmatpush.xpose.msk.msra.mxu0 %vm223_vm1, %v7337_v6  ;;  %v7168_v59 = vsel %vm223_vm1, %v10480_v58, 0.0 }
0x2d28   :  { %v7163_v14 = vmul.f32 1.442695, %v7156_v41  ;;  %7169 = vadd.xlane.f32.xlu1 %v7168_v59 }
0x2d2a   :  { %10481 = vpow2.f32 %v7163_v14  ;;  %v7238_v43 = vpop.permute.xlu2 %7237 }
0x2d2b   :  { %7258 = vmatpush.msra.mxu1 %v7238_v43 }
0x2d30   :  { %v10482_v38 = vpop.eup %10481 }
0x2d31   :  { %v7174_v60 = vsel %vm223_vm1, %v10482_v38, 0.0 }
0x2d32   :  { %7175 = vadd.xlane.f32.xlu1 %v7174_v60 }
0x2d38   :  { %v7335_v5 = vpop.permute.xlu0 %7334 }
0x2d41   :  { %v6606_v52 = vpop.f32.mrf.mxu3 }
0x2d42   :  { %9843 = vmatmul.msk.f32.vlgmr.msrb.gmra.mxu0 %vm223_vm1, %v6606_v52 }
0x2d4a   :  { %9844 = vmatmul.msk.f32.gmra.mxu0 %vm223_vm1, %v12323_v31 }
0x2d4b   :  { %7418 = vrot.lane.b32.xlu1 %v12221_v44, %s10697_s8 }
0x2d52   :  { %9845 = vmatmul.msk.f32.gmra.mxu0 %vm223_vm1, %v12277_v10 }
0x2d5a   :  { %9846 = vmatmul.msk.f32.gmra.mxu0 %vm223_vm1, %v12286_v12 }
0x2d62   :  { %9864 = vmatmul.msk.f32.vlgmr.msra.gmra.mxu0 %vm223_vm1, %v7335_v5 }
0x2d63   :  { %v7143_v53 = vpop.xlane.xlu2 %7142 }
0x2d64   :  { %v7153_v8 = vsub.f32 %v7054_v39, %v7143_v53 }
0x2d66   :  { %v7157_v48 = vmul.f32 1.442695, %v7153_v8 }
0x2d68   :  { %10483 = vpow2.f32 %v7157_v48 }
0x2d6b   :  { %v7149_v16 = vpop.xlane.xlu2 %7148 }
0x2d6c   :  { %v7155_v34 = vsub.f32 %v7110_v26, %v7149_v16 }
0x2d6e   :  { %v10484_v42 = vpop.eup %10483  ;;  %v7161_v31 = vmul.f32 1.442695, %v7155_v34 }
0x2d6f   :  { %v7165_v30 = vsel %vm223_vm1, %v10484_v42, 0.0 }
0x2d70   :  { %10485 = vpow2.f32 %v7161_v31  ;;  %7166 = vadd.xlane.f32.xlu0 %v7165_v30 }
0x2d73   :  { %v7264_v32 = vpop.permute.xlu2 %7263 }
0x2d74   :  { %7284 = vmatpush.msrb.mxu2 %v7264_v32 }
0x2d76   :  { %v10486_v10 = vpop.eup %10485 }
0x2d77   :  { %v7171_v12 = vsel %vm223_vm1, %v10486_v10, 0.0 }
0x2d78   :  { %7172 = vadd.xlane.f32.xlu2 %v7171_v12 }
0x2d84   :  { %7362 = vrot.lane.b32.xlu0 %v12228_v4, %s10697_s8  ;;  %v6712_v4 = vpop.f32.mrf.mxu3 }
0x2d85   :  { %v6799_v13 = vsel %vm223_vm1, %v6712_v4, -inf }
0x2d8c   :  { %7420 = vrot.lane.b32.xlu0 %v12221_v44, %s10696_s7 }
0x2d90   :  { %7390 = vrot.lane.b32.xlu2 %v12217_v2, %s10697_s8 }
0x2d9b   :  { %v7170_v56 = vpop.xlane.xlu1 %7169 }
0x2d9c   :  { %10487 = vrcp.f32 %v7170_v56 }
0x2da1   :  { %v12384_v55 = vpop.f32.mrf.mxu0 }
0x2da2   :  { %v10488_v45 = vpop.eup %10487 }
0x2da3   :  { %v7182_v18 = vmul.f32 %v10488_v45, %v10480_v58 }
0x2da5   :  { %v7176_v22 = vpop.xlane.xlu1 %7175  ;;  %9856 = vmatmul.msk.f32.vlgmr.msra.gmra.mxu2 %vm223_vm1, %v7182_v18 }
0x2da6   :  { %10489 = vrcp.f32 %v7176_v22  ;;  %9867 = vmatpush.xpose.msk.msra.mxu2 %vm223_vm1, %v7393_v28 }
0x2dac   :  { %v10490_v1 = vpop.eup %10489 }
0x2dad   :  { %v7184_v7 = vmul.f32 %v10490_v1, %v10482_v38 }
0x2daf   :  { %9858 = vmatmul.msk.f32.vlgmr.msrb.gmra.mxu2 %vm223_vm1, %v7184_v7 }
0x2db9   :  { %6800 = vmax.xlane.f32.xlu2 %v6799_v13 }
0x2dbd   :  { %v7419_v0 = vpop.permute.xlu1 %7418 }
0x2dbf   :  { %v12387_v24 = vpop.f32.mrf.mxu0 }
0x2dc7   :  { %v12389_v20 = vpop.f32.mrf.mxu0 }
0x2dcf   :  { %v12391_v39 = vpop.f32.mrf.mxu0 }
0x2dd7   :  { %v12393_v35 = vpop.f32.mrf.mxu0 }
0x2ddf   :  { %v7359_v26 = vpop.f32.mrf.mxu0 }
0x2de0   :  { %v7446_v19 = vsel %vm223_vm1, %v7359_v26, -inf }
0x2de1   :  { %7447 = vmax.xlane.f32.xlu0 %v7446_v19 }
0x2de3   :  { %v7167_v57 = vpop.xlane.xlu0 %7166 }
0x2de4   :  { %10491 = vrcp.f32 %v7167_v57 }
0x2dea   :  { %v10492_v23 = vpop.eup %10491 }
0x2deb   :  { %v7181_v62 = vmul.f32 %v10492_v23, %v10484_v42  ;;  %v7173_v3 = vpop.xlane.xlu2 %7172 }
0x2dec   :  { %10493 = vrcp.f32 %v7173_v3 }
0x2ded   :  { %9855 = vmatmul.msk.f32.vlgmr.msrb.gmra.mxu1 %vm223_vm1, %v7181_v62 }
0x2dee   :  { %9865 = vmatpush.xpose.msk.msrb.mxu1 %vm223_vm1, %v12357_v61 }
0x2df2   :  { %v10494_v47 = vpop.eup %10493 }
0x2df3   :  { %v7183_v40 = vmul.f32 %v10494_v47, %v10486_v10  ;;  %v7391_v27 = vpop.permute.xlu2 %7390 }
0x2df4   :  { %9868 = vmatmul.msk.f32.vlgmr.msra.gmra.mxu2 %vm223_vm1, %v7391_v27 }
0x2df5   :  { %9857 = vmatmul.msk.f32.vlgmr.msra.gmra.mxu1 %vm223_vm1, %v7183_v40 }
0x2df6   :  { %v7363_v50 = vpop.permute.xlu0 %7362 }
0x2dfd   :  { %9866 = vmatmul.msk.f32.vlgmr.msrb.gmra.mxu1 %vm223_vm1, %v7363_v50 }
0x2dfe   :  { %v7421_v6 = vpop.permute.xlu0 %7420 }
0x2dff   :  { %9869 = vmatpush.xpose.msk.msrb.mxu0 %vm223_vm1, %v7421_v6 }
0x2e02   :  { %9870 = vmatmul.msk.f32.vlgmr.msrb.gmra.mxu0 %vm223_vm1, %v7419_v0 }
0x2e28   :  { %v12405_v43 = vpop.f32.mrf.mxu2 }
0x2e2c   :  { %v6801_v58 = vpop.xlane.xlu2 %6800 }
0x2e2d   :  { %v6811_v41 = vsub.f32 %v6712_v4, %v6801_v58 }
0x2e2f   :  { %v6815_v59 = vmul.f32 1.442695, %v6811_v41  ;;  %v6387_v41 = vld [vmem:[#allocation6 + $0x3b8] sm:$0xff] }
0x2e31   :  { %10495 = vpow2.f32 %v6815_v59  ;;  %v6385_v59 = vld [vmem:[#allocation6 + $0x3a8] sm:$0xff] }
0x2e32   :  { %v12409_v52 = vpop.f32.mrf.mxu2 }
0x2e37   :  { %v10496_v61 = vpop.eup %10495 }
0x2e38   :  { %v6823_v14 = vsel %vm223_vm1, %v10496_v61, 0.0 }
0x2e39   :  { %6824 = vadd.xlane.f32.xlu2 %v6823_v14 }
0x2e54   :  { %v7448_v60 = vpop.xlane.xlu0 %7447 }
0x2e55   :  { %v7458_v5 = vsub.f32 %v7359_v26, %v7448_v60 }
0x2e57   :  { %v7462_v8 = vmul.f32 1.442695, %v7458_v5 }
0x2e59   :  { %10497 = vpow2.f32 %v7462_v8 }
0x2e5f   :  { %v10498_v31 = vpop.eup %10497 }
0x2e60   :  { %v7470_v10 = vsel %vm223_vm1, %v10498_v31, 0.0 }
0x2e6a   :  { %v12407_v38 = vpop.f32.mrf.mxu1 }
0x2e72   :  { %v12411_v53 = vpop.f32.mrf.mxu1 }
0x2e77   :  { %v7415_v48 = vpop.f32.mrf.mxu2 }
0x2e78   :  { %v7452_v16 = vsel %vm223_vm1, %v7415_v48, -inf }
0x2e79   :  { %7453 = vmax.xlane.f32.xlu0 %v7452_v16 }
0x2e7a   :  { %v7387_v34 = vpop.f32.mrf.mxu1 }
0x2e7b   :  { %v7449_v42 = vsel %vm223_vm1, %v7387_v34, -inf }
0x2e7c   :  { %7450 = vmax.xlane.f32.xlu1 %v7449_v42 }
0x2e7f   :  { %v7443_v30 = vpop.f32.mrf.mxu0 }
0x2e80   :  { %v7455_v32 = vsel %vm223_vm1, %v7443_v30, -inf }
0x2e81   :  { %7456 = vmax.xlane.f32.xlu2 %v7455_v32  ;;  %7471 = vadd.xlane.f32.xlu0 %v7470_v10 }
0x2e95   :  { %10069 = vrot.lane.b32.xlu0 %v12312_v9, %s10698_s9  ;;  %6843 = vrot.lane.b32.xlu1 %v12213_v36, %s10692_s30 }
0x2e9d   :  { %7568 = vrot.lane.b32.xlu0 %v12221_v44, %s10698_s9 }
0x2eac   :  { %v6825_v12 = vpop.xlane.xlu2 %6824 }
0x2eec   :  { %v7454_v28 = vpop.xlane.xlu0 %7453 }
0x2eed   :  { %v7460_v18 = vsub.f32 %v7415_v48, %v7454_v28 }
0x2eef   :  { %v7451_v56 = vpop.xlane.xlu1 %7450  ;;  %v7466_v4 = vmul.f32 1.442695, %v7460_v18 }
0x2ef0   :  { %v7459_v45 = vsub.f32 %v7387_v34, %v7451_v56 }
0x2ef2   :  { %v7464_v22 = vmul.f32 1.442695, %v7459_v45  ;;  %v10125_v45 = vld [vmem:[#allocation6 + $0x3c0] ss:$0 sm:$0xff] }
0x2ef4   :  { %10499 = vpow2.f32 %v7464_v22  ;;  %v7457_v1 = vpop.xlane.xlu2 %7456  ;;  %v7472_v36 = vpop.xlane.xlu0 %7471 }
0x2ef5   :  { %v7461_v7 = vsub.f32 %v7443_v30, %v7457_v1 }
0x2ef7   :  { %v7468_v13 = vmul.f32 1.442695, %v7461_v7 }
0x2ef9   :  { %10501 = vpow2.f32 %v7468_v13 }
0x2efa   :  { %v10500_v26 = vpop.eup %10499  ;;  %10503 = vpow2.f32 %v7466_v4 }
0x2efb   :  { %v7473_v9 = vsel %vm223_vm1, %v10500_v26, 0.0  ;;  %10505 = vrcp.f32 %v6825_v12 }
0x2efc   :  { %7474 = vadd.xlane.f32.xlu2 %v7473_v9  ;;  %10507 = vrcp.f32 %v7472_v36 }
0x2eff   :  { %v10502_v44 = vpop.eup %10501 }
0x2f00   :  { %v10504_v19 = vpop.eup %10503  ;;  %v7479_v57 = vsel %vm223_vm1, %v10502_v44, 0.0 }
0x2f01   :  { %7480 = vadd.xlane.f32.xlu1 %v7479_v57  ;;  %v7476_v23 = vsel %vm223_vm1, %v10504_v19, 0.0  ;;  %v10506_v62 = vpop.eup %10505 }
0x2f02   :  { %v10508_v3 = vpop.eup %10507  ;;  %v6839_v47 = vmul.f32 %v10506_v62, %v10496_v61 }
0x2f03   :  { %v7486_v0 = vmul.f32 %v10508_v3, %v10498_v31  ;;  %v6386_v31 = vld [vmem:[#allocation6 + $0x3b0] sm:$0xff] }
0x2f04   :  { %7477 = vadd.xlane.f32.xlu2 %v7476_v23 }
0x2f07   :  { %v10070_v40 = vpop.permute.xlu0 %10069  ;;  %v6844_v27 = vpop.permute.xlu1 %6843 }
0x2f08   :  { %v10072_v50 = vunpack.i.h.bf16 %v10070_v40  ;;  %v10071_v6 = vunpack.i.l.bf16 %v10070_v40  ;;  %6864 = vmatpush.msrb.mxu3 %v6844_v27 }
0x2f09   :  { %9835 = vmatmul.msk.f32.vlgmr.msrb.gmra.mxu3 %vm223_vm1, %v6839_v47 }
0x2f0a   :  { %7511 = vmatpush.msra.mxu1 %v10071_v6  ;;  %7537 = vmatpush.msrb.mxu2 %v10072_v50 }
0x2f0b   :  { %9871 = vmatmul.msk.f32.vlgmr.msra.gmra.mxu1 %vm223_vm1, %v7486_v0  ;;  %6974 = vmatpush.msra.mxu3 %v6385_v59 }
0x2f0c   :  { %7621 = vmatpush.msra.mxu2 %v6387_v41 }
0x2f0d   :  { %7316 = vmatpush.msrb.mxu3 %v6386_v31 }
0x2f0f   :  { %v7569_v58 = vpop.permute.xlu0 %7568 }
0x2f10   :  { %7589 = vmatpush.msrb.mxu1 %v7569_v58 }
0x2f1c   :  { %7542 = vrot.lane.b32.xlu2 %v12217_v2, %s10698_s9 }
0x2f6f   :  { %v7475_v61 = vpop.xlane.xlu2 %7474 }
0x2f70   :  { %10509 = vrcp.f32 %v7475_v61 }
0x2f74   :  { %v7481_v14 = vpop.xlane.xlu1 %7480 }
0x2f75   :  { %10511 = vrcp.f32 %v7481_v14 }
0x2f76   :  { %v10510_v60 = vpop.eup %10509 }
0x2f77   :  { %v7487_v5 = vmul.f32 %v10510_v60, %v10500_v26  ;;  %v7478_v8 = vpop.xlane.xlu2 %7477 }
0x2f78   :  { %10513 = vrcp.f32 %v7478_v8 }
0x2f79   :  { %9872 = vmatmul.msk.f32.vlgmr.msrb.gmra.mxu2 %vm223_vm1, %v7487_v5 }
0x2f7b   :  { %v10512_v48 = vpop.eup %10511 }
0x2f7c   :  { %v7489_v16 = vmul.f32 %v10512_v48, %v10502_v44  ;;  %v7763_v48 = vld [vmem:[#allocation6 + $0x3f0] sm:$0xff] }
0x2f7e   :  { %v10514_v34 = vpop.eup %10513  ;;  %9874 = vmatmul.msk.f32.vlgmr.msrb.gmra.mxu1 %vm223_vm1, %v7489_v16  ;;  %v7762_v16 = vld [vmem:[#allocation6 + $0x3e8] sm:$0xff] }
0x2f7f   :  { %v7488_v2 = vmul.f32 %v10514_v34, %v10504_v19  ;;  %v7543_v42 = vpop.permute.xlu2 %7542  ;;  %v7761_v34 = vld [vmem:[#allocation6 + $0x3e0] sm:$0xff] }
0x2f80   :  { %7563 = vmatpush.msra.mxu0 %v7543_v42  ;;  %v7760_v42 = vld [vmem:[#allocation6 + $0x3d8] sm:$0xff] }
0x2f81   :  { %9873 = vmatmul.msk.f32.vlgmr.msra.gmra.mxu0 %vm223_vm1, %v7488_v2 }
0x2f82   :  { %7790 = vmatpush.msrb.mxu0 %v7763_v48 }
0x2f84   :  { %7791 = vmatpush.msrb.mxu0 %v7762_v16 }
0x2f86   :  { %7792 = vmatpush.msrb.mxu0 %v7761_v34 }
0x2f88   :  { %v7513_v30 = vpop.f32.mrf.mxu1  ;;  %7793 = vmatpush.msrb.mxu0 %v7760_v42 }
0x2f89   :  { %9875 = vmatmul.msk.f32.vlgmr.msra.gmra.mxu2 %vm223_vm1, %v7513_v30 }
0x2f8c   :  { %v6866_v32 = vpop.f32.mrf.mxu3 }
0x2f8d   :  { %9839 = vmatmul.msk.f32.vlgmr.msra.gmra.mxu3 %vm223_vm1, %v6866_v32 }
0x2f95   :  { %9840 = vmatmul.msk.f32.gmra.mxu3 %vm223_vm1, %v12384_v55 }
0x2f9d   :  { %9841 = vmatmul.msk.f32.gmra.mxu3 %vm223_vm1, %v12351_v25 }
0x2fa5   :  { %9842 = vmatmul.msk.f32.gmra.mxu3 %vm223_vm1, %v12338_v15 }
0x2fad   :  { %9859 = vmatmul.msk.f32.vlgmr.msrb.gmra.mxu3 %vm223_vm1, %v12407_v38 }
0x2fb5   :  { %9860 = vmatmul.msk.f32.gmra.mxu3 %vm223_vm1, %v12405_v43 }
0x2fbd   :  { %9861 = vmatmul.msk.f32.gmra.mxu3 %vm223_vm1, %v12411_v53 }
0x2fc5   :  { %9862 = vmatmul.msk.f32.gmra.mxu3 %vm223_vm1, %v12409_v52 }
0x2ffb   :  { %v7591_v25 = vpop.f32.mrf.mxu1 }
0x2ffc   :  { %v7539_v10 = vpop.f32.mrf.mxu2 }
0x2ffd   :  { %9876 = vmatmul.msk.f32.gmra.mxu2 %vm223_vm1, %v7539_v10 }
0x2ffe   :  { %v7565_v55 = vpop.f32.mrf.mxu0 }
0x3005   :  { %9877 = vmatmul.msk.f32.gmra.mxu2 %vm223_vm1, %v7565_v55 }
0x300c   :  { %v7623_v18 = vpop.f32.mrf.mxu2 }
0x300d   :  { %9878 = vmatmul.msk.f32.gmra.mxu2 %vm223_vm1, %v7591_v25 }
0x3010   :  { %v6976_v15 = vpop.f32.mrf.mxu3 }
0x3011   :  { %v7018_v43 = vadd.f32 %v12387_v24, %v6976_v15 }
0x3018   :  { %v6979_v38 = vpop.f32.mrf.mxu3 }
0x3020   :  { %v6982_v12 = vpop.f32.mrf.mxu3 }
0x3021   :  { %v7024_v57 = vadd.f32 %v12391_v39, %v6982_v12 }
0x3028   :  { %v6985_v28 = vpop.f32.mrf.mxu3 }
0x3029   :  { %v7027_v6 = vadd.f32 %v12393_v35, %v6985_v28 }
0x3030   :  { %v7318_v56 = vpop.f32.mrf.mxu3 }
0x3031   :  { %v7330_v53 = vadd.f32 %v7318_v56, %v7018_v43 }
0x3033   :  { %v7635_v52 = vadd.f32 %v7623_v18, %v7330_v53  ;;  %v12498_v18 = vld [vmem:[#allocation6 + $0x3c8] ss:$0 sm:$0xff] }
0x3035   :  { %v7640_v22 = vadd.f32 %v10125_v45, %v7635_v52 }
0x3037   :  { %v12454_v1 = vadd.f32 %v7640_v22, %v12188_v51  ;;  %v7021_v51 = vadd.f32 %v12389_v20, %v6979_v38  ;;  %v12500_v22 = vld [vmem:[#allocation6 + $0x3d0] ss:$0 sm:$0xff] }
0x3038   :  { %v7321_v24 = vpop.f32.mrf.mxu3 }
0x3039   :  { %v7650_v7 = vsel %vm71_vm0, %v12454_v1, 0.0  ;;  %v7666_v4 = vmul.f32 %v12454_v1, %v12454_v1  ;;  %v7331_v26 = vadd.f32 %v7321_v24, %v7021_v51 }
0x303a   :  { %7651 = vadd.xlane.f32.xlu0 %v7650_v7 }
0x303b   :  { %v7670_v13 = vsel %vm71_vm0, %v7666_v4, 0.0 }
0x303c   :  { %7671 = vadd.xlane.f32.xlu2 %v7670_v13 }
0x3040   :  { %v7324_v44 = vpop.f32.mrf.mxu3 }
0x3041   :  { %v7332_v62 = vadd.f32 %v7324_v44, %v7024_v57 }
0x3048   :  { %v7327_v50 = vpop.f32.mrf.mxu3 }
0x3049   :  { %v7333_v39 = vadd.f32 %v7327_v50, %v7027_v6 }
0x3054   :  { %7839 = vrot.lane.b32.xlu2 %v11754_v33, %s10689_s2 }
0x305c   :  { %7866 = vrot.lane.b32.xlu2 %v11764_v17, %s10689_s2 }
0x3080   :  { %v7626_v9 = vpop.f32.mrf.mxu2 }
0x3081   :  { %v7636_v36 = vadd.f32 %v7626_v9, %v7331_v26 }
0x3083   :  { %v7641_v19 = vadd.f32 %v10125_v45, %v7636_v36 }
0x3085   :  { %v12468_v23 = vadd.f32 %v7641_v19, %v12195_v37 }
0x3087   :  { %v7653_v3 = vsel %vm71_vm0, %v12468_v23, 0.0  ;;  %v7667_v20 = vmul.f32 %v12468_v23, %v12468_v23 }
0x3088   :  { %v7629_v47 = vpop.f32.mrf.mxu2  ;;  %7654 = vadd.xlane.f32.xlu1 %v7653_v3 }
0x3089   :  { %v7637_v40 = vadd.f32 %v7629_v47, %v7332_v62  ;;  %v7673_v37 = vsel %vm71_vm0, %v7667_v20, 0.0 }
0x308b   :  { %v7642_v27 = vadd.f32 %v10125_v45, %v7637_v40 }
0x308d   :  { %v12476_v0 = vadd.f32 %v7642_v27, %v12202_v21 }
0x308f   :  { %v7656_v58 = vsel %vm71_vm0, %v12476_v0, 0.0  ;;  %v7668_v14 = vmul.f32 %v12476_v0, %v12476_v0 }
0x3090   :  { %7674 = vadd.xlane.f32.xlu1 %v7673_v37  ;;  %7657 = vadd.xlane.f32.xlu0 %v7656_v58  ;;  %v7632_v41 = vpop.f32.mrf.mxu2 }
0x3091   :  { %v7638_v59 = vadd.f32 %v7632_v41, %v7333_v39  ;;  %v7676_v21 = vsel %vm71_vm0, %v7668_v14, 0.0 }
0x3093   :  { %v7643_v61 = vadd.f32 %v10125_v45, %v7638_v59 }
0x3095   :  { %v12484_v60 = vadd.f32 %v7643_v61, %v12209_v54 }
0x3097   :  { %v7659_v35 = vsel %vm71_vm0, %v12484_v60, 0.0  ;;  %v7669_v5 = vmul.f32 %v12484_v60, %v12484_v60 }
0x3098   :  { %7677 = vadd.xlane.f32.xlu1 %v7676_v21  ;;  %7660 = vadd.xlane.f32.xlu0 %v7659_v35 }
0x3099   :  { %v7679_v8 = vsel %vm71_vm0, %v7669_v5, 0.0 }
0x30a0   :  { %7680 = vadd.xlane.f32.xlu1 %v7679_v8 }
0x30ac   :  { %7893 = vrot.lane.b32.xlu0 %v11778_v29, %s10689_s2 }
0x30ad   :  { %v7652_v54 = vpop.xlane.xlu0 %7651 }
0x30ae   :  { %v7662_v2 = vmul.f32 0.03125, %v7652_v54 }
0x30af   :  { %v7672_v31 = vpop.xlane.xlu2 %7671 }
0x30b0   :  { %v7686_v30 = vmul.f32 %v7662_v2, %v7662_v2  ;;  %v7682_v32 = vmul.f32 0.03125, %v7672_v31  ;;  %v7698_v45 = vsub.f32 %v12454_v1, %v7662_v2 }
0x30b2   :  { %v7690_v10 = vsub.f32 %v7682_v32, %v7686_v30 }
0x30b4   :  { %v7694_v55 = vmax.f32 %v7690_v10, 0.0 }
0x30b6   :  { %v7702_v25 = vadd.f32 1e-05, %v7694_v55 }
0x30b7   :  { %v7840_v15 = vpop.permute.xlu2 %7839 }
0x30b8   :  { %10515 = vrsqrt.f32 %v7702_v25  ;;  %9885 = vmatpush.xpose.msk.msra.mxu3 %vm223_vm1, %v7840_v15  ;;  %vm7712_vm9 = vweird.f32 %v7702_v25 }
0x30b9   :  { %7812 = vrot.lane.b32.xlu1 %v11761_v46, %s10689_s2 }
0x30be   :  { %v10516_v38 = vpop.eup %10515 }
0x30bf   :  { %v7707_v12 = vmul.f32 %v10516_v38, %v7702_v25  ;;  %vm7713_vm8 = vweird.f32 %v10516_v38 }
0x30c0   :  { %vm7714_vm10 = vmor %vm7712_vm9, %vm7713_vm8 }
0x30c1   :  { %v7708_v28 = vmul.f32 %v10516_v38, %v7707_v12 }
0x30c3   :  { %v7709_v43 = vmul.f32 0.5, %v7708_v28 }
0x30c5   :  { %v7710_v56 = vsub.f32 1.5, %v7709_v43 }
0x30c7   :  { %v7711_v53 = vmul.f32 %v10516_v38, %v7710_v56 }
0x30c9   :  { %v7715_v52 = vsel %vm7714_vm10, %v10516_v38, %v7711_v53 }
0x30ca   :  { %v7746_v7 = vmul.f32 %v7715_v52, %v7698_v45 }
0x30cc   :  { %v7751_v4 = vmul.f32 %v12498_v18, %v7746_v7 }
0x30ce   :  { %v12504_v13 = vadd.f32 %v12500_v22, %v7751_v4 }
0x30d0   :  { %9879 = vmatmul.msk.f32.vlgmr.msrb.gmra.mxu0 %vm71_vm0, %v12504_v13 }
0x30fb   :  { %v7655_v24 = vpop.xlane.xlu1 %7654 }
0x30fc   :  { %v7663_v51 = vmul.f32 0.03125, %v7655_v24 }
0x30fe   :  { %v7687_v1 = vmul.f32 %v7663_v51, %v7663_v51  ;;  %v7699_v2 = vsub.f32 %v12468_v23, %v7663_v51 }
0x3103   :  { %v7658_v26 = vpop.xlane.xlu0 %7657  ;;  %v7675_v9 = vpop.xlane.xlu1 %7674 }
0x3104   :  { %v7683_v36 = vmul.f32 0.03125, %v7675_v9  ;;  %v7664_v19 = vmul.f32 0.03125, %v7658_v26  ;;  %v7867_v26 = vpop.permute.xlu2 %7866 }
0x3106   :  { %v7691_v44 = vsub.f32 %v7683_v36, %v7687_v1  ;;  %v7688_v47 = vmul.f32 %v7664_v19, %v7664_v19  ;;  %v7700_v28 = vsub.f32 %v12476_v0, %v7664_v19  ;;  %v10128_v19 = vld [vmem:[#allocation6 + $0x3f8] ss:$0 sm:$0xff] }
0x3108   :  { %v7695_v57 = vmax.f32 %v7691_v44, 0.0 }
0x310a   :  { %v7703_v62 = vadd.f32 1e-05, %v7695_v57 }
0x310b   :  { %v7678_v3 = vpop.xlane.xlu1 %7677  ;;  %v7661_v27 = vpop.xlane.xlu0 %7660 }
0x310c   :  { %10517 = vrsqrt.f32 %v7703_v62  ;;  %v7684_v40 = vmul.f32 0.03125, %v7678_v3  ;;  %v7665_v50 = vmul.f32 0.03125, %v7661_v27  ;;  %vm7722_vm12 = vweird.f32 %v7703_v62 }
0x310e   :  { %v7692_v20 = vsub.f32 %v7684_v40, %v7688_v47  ;;  %v7689_v59 = vmul.f32 %v7665_v50, %v7665_v50  ;;  %v7701_v0 = vsub.f32 %v12484_v60, %v7665_v50 }
0x3110   :  { %v7696_v6 = vmax.f32 %v7692_v20, 0.0 }
0x3112   :  { %v10518_v39 = vpop.eup %10517  ;;  %v7704_v37 = vadd.f32 1e-05, %v7696_v6 }
0x3113   :  { %v7717_v58 = vmul.f32 %v10518_v39, %v7703_v62  ;;  %v7681_v41 = vpop.xlane.xlu1 %7680  ;;  %vm7723_vm11 = vweird.f32 %v10518_v39 }
0x3114   :  { %10519 = vrsqrt.f32 %v7704_v37  ;;  %v7685_v61 = vmul.f32 0.03125, %v7681_v41  ;;  %vm7724_vm13 = vmor %vm7722_vm12, %vm7723_vm11  ;;  %vm7732_vm2 = vweird.f32 %v7704_v37 }
0x3115   :  { %v7718_v14 = vmul.f32 %v10518_v39, %v7717_v58 }
0x3116   :  { %v7693_v21 = vsub.f32 %v7685_v61, %v7689_v59 }
0x3117   :  { %v7719_v35 = vmul.f32 0.5, %v7718_v14 }
0x3118   :  { %v7697_v5 = vmax.f32 %v7693_v21, 0.0 }
0x3119   :  { %v7720_v8 = vsub.f32 1.5, %v7719_v35 }
0x311a   :  { %v10520_v48 = vpop.eup %10519  ;;  %v7705_v16 = vadd.f32 1e-05, %v7697_v5 }
0x311b   :  { %v7721_v54 = vmul.f32 %v10518_v39, %v7720_v8  ;;  %v7727_v34 = vmul.f32 %v10520_v48, %v7704_v37  ;;  %vm7733_vm15 = vweird.f32 %v10520_v48 }
0x311c   :  { %10521 = vrsqrt.f32 %v7705_v16  ;;  %vm7734_vm3 = vmor %vm7732_vm2, %vm7733_vm15  ;;  %vm7742_vm5 = vweird.f32 %v7705_v16 }
0x311d   :  { %v7725_v42 = vsel %vm7724_vm13, %v10518_v39, %v7721_v54  ;;  %v7728_v31 = vmul.f32 %v10520_v48, %v7727_v34 }
0x311e   :  { %v7894_v30 = vpop.permute.xlu0 %7893  ;;  %v7747_v32 = vmul.f32 %v7725_v42, %v7699_v2 }
0x311f   :  { %v7729_v10 = vmul.f32 0.5, %v7728_v31  ;;  %9889 = vmatpush.xpose.msk.msrb.mxu3 %vm223_vm1, %v7894_v30 }
0x3120   :  { %v7752_v55 = vmul.f32 %v12498_v18, %v7747_v32 }
0x3121   :  { %v7730_v25 = vsub.f32 1.5, %v7729_v10 }
0x3122   :  { %v10522_v15 = vpop.eup %10521  ;;  %v12512_v38 = vadd.f32 %v12500_v22, %v7752_v55 }
0x3123   :  { %v7731_v12 = vmul.f32 %v10520_v48, %v7730_v25  ;;  %v7737_v23 = vmul.f32 %v10522_v15, %v7705_v16  ;;  %vm7743_vm4 = vweird.f32 %v10522_v15 }
0x3124   :  { %9880 = vmatmul.msk.f32.gmra.mxu0 %vm71_vm0, %v12512_v38  ;;  %vm7744_vm6 = vmor %vm7742_vm5, %vm7743_vm4 }
0x3125   :  { %v7735_v43 = vsel %vm7734_vm3, %v10520_v48, %v7731_v12  ;;  %v7738_v56 = vmul.f32 %v10522_v15, %v7737_v23 }
0x3126   :  { %v7748_v53 = vmul.f32 %v7735_v43, %v7700_v28 }
0x3127   :  { %v7739_v45 = vmul.f32 0.5, %v7738_v56 }
0x3128   :  { %v7753_v52 = vmul.f32 %v12498_v18, %v7748_v53 }
0x3129   :  { %v7740_v7 = vsub.f32 1.5, %v7739_v45 }
0x312a   :  { %v12519_v4 = vadd.f32 %v12500_v22, %v7753_v52 }
0x312b   :  { %v7741_v24 = vmul.f32 %v10522_v15, %v7740_v7  ;;  %v7813_v51 = vpop.permute.xlu1 %7812 }
0x312c   :  { %9881 = vmatmul.msk.f32.gmra.mxu0 %vm71_vm0, %v12519_v4  ;;  %9883 = vmatpush.xpose.msk.msra.mxu1 %vm223_vm1, %v7813_v51 }
0x312d   :  { %v7745_v9 = vsel %vm7744_vm6, %v10522_v15, %v7741_v24 }
0x312e   :  { %v7749_v1 = vmul.f32 %v7745_v9, %v7701_v0 }
0x3130   :  { %9887 = vmatpush.xpose.msk.msrb.mxu1 %vm223_vm1, %v7867_v26  ;;  %v7754_v36 = vmul.f32 %v12498_v18, %v7749_v1 }
0x3132   :  { %v12528_v44 = vadd.f32 %v12500_v22, %v7754_v36 }
0x3134   :  { %9882 = vmatmul.msk.f32.gmra.mxu0 %vm71_vm0, %v12528_v44 }
0x314d   :  { %v7795_v60 = vpop.f32.mrf.mxu0 }
0x314e   :  { %v12532_v57 = vadd.f32 %v10128_v19, %v7795_v60 }
0x3150   :  { %9884 = vmatmul.msk.f32.vlgmr.msra.gmra.mxu1 %vm223_vm1, %v12532_v57 }
0x31a1   :  { %v7798_v62 = vpop.f32.mrf.mxu0 }
0x31a2   :  { %v12536_v3 = vadd.f32 %v10128_v19, %v7798_v62 }
0x31a4   :  { %9886 = vmatmul.msk.f32.vlgmr.msra.gmra.mxu3 %vm223_vm1, %v12536_v3 }
0x31a9   :  { %v7801_v18 = vpop.f32.mrf.mxu0 }
0x31aa   :  { %v12540_v47 = vadd.f32 %v10128_v19, %v7801_v18 }
0x31ac   :  { %9888 = vmatmul.msk.f32.vlgmr.msrb.gmra.mxu1 %vm223_vm1, %v12540_v47 }
0x31b1   :  { %v7804_v22 = vpop.f32.mrf.mxu0 }
0x31b2   :  { %v12544_v40 = vadd.f32 %v10128_v19, %v7804_v22 }
0x31b4   :  { %9890 = vmatmul.msk.f32.vlgmr.msrb.gmra.mxu3 %vm223_vm1, %v12544_v40 }
0x31cd   :  { %v7836_v27 = vpop.f32.mrf.mxu1 }
0x31ce   :  { %v7920_v20 = vsel %vm223_vm1, %v7836_v27, -inf }
0x31cf   :  { %7921 = vmax.xlane.f32.xlu0 %v7920_v20 }
0x3227   :  { %v12550_v39 = vpop.f32.mrf.mxu3 }
0x3229   :  { %v7890_v50 = vpop.f32.mrf.mxu1 }
0x322a   :  { %v7926_v6 = vsel %vm223_vm1, %v7890_v50, -inf }
0x322b   :  { %7927 = vmax.xlane.f32.xlu1 %v7926_v6 }
0x3237   :  { %v7917_v37 = vpop.f32.mrf.mxu3 }
0x3238   :  { %v7929_v58 = vsel %vm223_vm1, %v7917_v37, -inf }
0x3239   :  { %7930 = vmax.xlane.f32.xlu2 %v7929_v58 }
0x3242   :  { %v7922_v41 = vpop.xlane.xlu0 %7921 }
0x3243   :  { %v7932_v59 = vsub.f32 %v7836_v27, %v7922_v41 }
0x3245   :  { %v7936_v61 = vmul.f32 1.442695, %v7932_v59 }
0x3247   :  { %10523 = vpow2.f32 %v7936_v61 }
0x324d   :  { %v10524_v14 = vpop.eup %10523 }
0x324e   :  { %v7944_v21 = vsel %vm223_vm1, %v10524_v14, 0.0 }
0x324f   :  { %7945 = vadd.xlane.f32.xlu0 %v7944_v21 }
0x3251   :  { %8016 = vrot.lane.b32.xlu2 %v11764_v17, %s10699_s10 }
0x3263   :  { %10074 = vrot.lane.b32.xlu0 %v11889_v63, %s10699_s10 }
0x326b   :  { %8152 = vrot.lane.b32.xlu0 %v12544_v40, %s10690_s28 }
0x3273   :  { %8124 = vrot.lane.b32.xlu0 %v12540_v47, %s10690_s28 }
0x327b   :  { %8098 = vrot.lane.b32.xlu0 %v11754_v33, %s10692_s30 }
0x3283   :  { %8096 = vrot.lane.b32.xlu0 %v12536_v3, %s10690_s28 }
0x328b   :  { %8440 = vrot.lane.b32.xlu0 %v11754_v33, %s10695_s6 }
0x329e   :  { %v7928_v35 = vpop.xlane.xlu1 %7927 }
0x329f   :  { %v7934_v5 = vsub.f32 %v7890_v50, %v7928_v35 }
0x32a1   :  { %v7940_v8 = vmul.f32 1.442695, %v7934_v5 }
0x32a3   :  { %10525 = vpow2.f32 %v7940_v8 }
0x32a9   :  { %v10526_v63 = vpop.eup %10525 }
0x32aa   :  { %v7950_v48 = vsel %vm223_vm1, %v10526_v63, 0.0 }
0x32ab   :  { %7951 = vadd.xlane.f32.xlu1 %v7950_v48 }
0x32ac   :  { %v7931_v16 = vpop.xlane.xlu2 %7930 }
0x32ad   :  { %v7935_v54 = vsub.f32 %v7917_v37, %v7931_v16 }
0x32af   :  { %v7942_v34 = vmul.f32 1.442695, %v7935_v54 }
0x32b1   :  { %10527 = vpow2.f32 %v7942_v34  ;;  %v7923_v34 = vsel %vm223_vm1, %v12550_v39, -inf }
0x32b4   :  { %v8017_v15 = vpop.permute.xlu2 %8016 }
0x32b7   :  { %v10528_v2 = vpop.eup %10527 }
0x32b8   :  { %v7953_v42 = vsel %vm223_vm1, %v10528_v2, 0.0 }
0x32b9   :  { %7954 = vadd.xlane.f32.xlu2 %v7953_v42 }
0x32c2   :  { %v7946_v31 = vpop.xlane.xlu0 %7945 }
0x32c3   :  { %10529 = vrcp.f32 %v7946_v31 }
0x32c4   :  { %8154 = vrot.lane.b32.xlu1 %v11778_v29, %s10692_s30 }
0x32c9   :  { %v10530_v30 = vpop.eup %10529 }
0x32ca   :  { %v7960_v25 = vmul.f32 %v10530_v30, %v10524_v14 }
0x32d1   :  { %8126 = vrot.lane.b32.xlu2 %v11764_v17, %s10692_s30 }
0x32d5   :  { %v10075_v32 = vpop.permute.xlu0 %10074 }
0x32d6   :  { %v10077_v10 = vunpack.i.h.bf16 %v10075_v32  ;;  %v10076_v55 = vunpack.i.l.bf16 %v10075_v32 }
0x32d8   :  { %7985 = vmatpush.msra.mxu1 %v10076_v55  ;;  %8063 = vmatpush.msrb.mxu2 %v10077_v10 }
0x32d9   :  { %9891 = vmatmul.msk.f32.vlgmr.msra.gmra.mxu1 %vm223_vm1, %v7960_v25 }
0x32da   :  { %8037 = vmatpush.msrb.mxu1 %v8017_v15 }
0x32dd   :  { %v8153_v12 = vpop.permute.xlu0 %8152 }
0x32e5   :  { %v8125_v23 = vpop.permute.xlu0 %8124 }
0x32ed   :  { %v8099_v28 = vpop.permute.xlu0 %8098 }
0x32ee   :  { %9897 = vmatpush.xpose.msk.msra.mxu0 %vm223_vm1, %v8099_v28 }
0x32f5   :  { %v8097_v43 = vpop.permute.xlu0 %8096 }
0x32f6   :  { %9898 = vmatmul.msk.f32.vlgmr.msra.gmra.mxu0 %vm223_vm1, %v8097_v43 }
0x32fd   :  { %v8441_v35 = vpop.permute.xlu0 %8440 }
0x331e   :  { %v7952_v56 = vpop.xlane.xlu1 %7951 }
0x331f   :  { %10531 = vrcp.f32 %v7952_v56 }
0x3325   :  { %v10532_v53 = vpop.eup %10531 }
0x3326   :  { %v7962_v45 = vmul.f32 %v10532_v53, %v10526_v63 }
0x3328   :  { %9893 = vmatmul.msk.f32.vlgmr.msrb.gmra.mxu1 %vm223_vm1, %v7962_v45 }
0x332c   :  { %v7955_v52 = vpop.xlane.xlu2 %7954 }
0x332d   :  { %10533 = vrcp.f32 %v7955_v52 }
0x3333   :  { %v10534_v7 = vpop.eup %10533 }
0x3334   :  { %v7963_v24 = vmul.f32 %v10534_v7, %v10528_v2  ;;  %v8127_v51 = vpop.permute.xlu2 %8126 }
0x3335   :  { %9899 = vmatpush.xpose.msk.msra.mxu1 %vm223_vm1, %v8127_v51 }
0x3336   :  { %9894 = vmatmul.msk.f32.vlgmr.msrb.gmra.mxu2 %vm223_vm1, %v7963_v24  ;;  %v8155_v26 = vpop.permute.xlu1 %8154 }
0x3337   :  { %9901 = vmatpush.xpose.msk.msra.mxu2 %vm223_vm1, %v8155_v26 }
0x3338   :  { %9900 = vmatmul.msk.f32.vlgmr.msra.gmra.mxu1 %vm223_vm1, %v8125_v23 }
0x333e   :  { %9902 = vmatmul.msk.f32.vlgmr.msra.gmra.mxu2 %vm223_vm1, %v8153_v12 }
0x3356   :  { %v12583_v0 = vpop.f32.mrf.mxu1 }
0x3373   :  { %v8121_v18 = vpop.f32.mrf.mxu0 }
0x3374   :  { %v8183_v22 = vsel %vm223_vm1, %v8121_v18, -inf }
0x33a5   :  { %v12585_v9 = vpop.f32.mrf.mxu1 }
0x33b5   :  { %v8149_v1 = vpop.f32.mrf.mxu1 }
0x33b6   :  { %v8186_v36 = vsel %vm223_vm1, %v8149_v1, -inf }
0x33b7   :  { %8187 = vmax.xlane.f32.xlu1 %v8186_v36 }
0x33b9   :  { %v12588_v19 = vpop.f32.mrf.mxu2 }
0x33c1   :  { %v8177_v60 = vpop.f32.mrf.mxu2 }
0x33c2   :  { %v8189_v62 = vsel %vm223_vm1, %v8177_v60, -inf }
0x33c3   :  { %8190 = vmax.xlane.f32.xlu2 %v8189_v62  ;;  %v7807_v62 = vld [vmem:[#allocation6 + $0x400] sm:$0xff] }
0x33d0   :  { %8412 = vrot.lane.b32.xlu1 %v11761_v46, %s10695_s6 }
0x33d8   :  { %8438 = vrot.lane.b32.xlu1 %v12536_v3, %s10693_s4 }
0x33db   :  { %10079 = vrot.lane.b32.xlu2 %v11928_v11, %s10700_s11 }
0x33e3   :  { %8410 = vrot.lane.b32.xlu2 %v12532_v57, %s10693_s4 }
0x33eb   :  { %8468 = vrot.lane.b32.xlu2 %v11764_v17, %s10695_s6 }
0x33f3   :  { %8494 = vrot.lane.b32.xlu2 %v12544_v40, %s10693_s4 }
0x33fb   :  { %7990 = vrot.lane.b32.xlu2 %v11754_v33, %s10699_s10 }
0x3424   :  { %8184 = vmax.xlane.f32.xlu2 %v8183_v22 }
0x342a   :  { %v8188_v27 = vpop.xlane.xlu1 %8187 }
0x342b   :  { %v8194_v20 = vsub.f32 %v8149_v1, %v8188_v27 }
0x342d   :  { %v8200_v50 = vmul.f32 1.442695, %v8194_v20 }
0x342f   :  { %10535 = vpow2.f32 %v8200_v50 }
0x3435   :  { %v10536_v11 = vpop.eup %10535 }
0x3436   :  { %v8191_v6 = vpop.xlane.xlu2 %8190  ;;  %v8210_v37 = vsel %vm223_vm1, %v10536_v11, 0.0 }
0x3437   :  { %v8195_v58 = vsub.f32 %v8177_v60, %v8191_v6  ;;  %8211 = vadd.xlane.f32.xlu0 %v8210_v37 }
0x3439   :  { %v8202_v41 = vmul.f32 1.442695, %v8195_v58 }
0x343b   :  { %10537 = vpow2.f32 %v8202_v41 }
0x343e   :  { %v10080_v59 = vpop.permute.xlu2 %10079 }
0x343f   :  { %v10082_v61 = vunpack.i.h.bf16 %v10080_v59  ;;  %v10081_v14 = vunpack.i.l.bf16 %v10080_v59 }
0x3441   :  { %v10538_v21 = vpop.eup %10537  ;;  %8297 = vmatpush.msrb.mxu1 %v10081_v14  ;;  %8323 = vmatpush.msrb.mxu2 %v10082_v61 }
0x3442   :  { %v8413_v5 = vpop.permute.xlu1 %8412  ;;  %v8213_v8 = vsel %vm223_vm1, %v10538_v21, 0.0 }
0x3443   :  { %9917 = vmatpush.xpose.msk.msra.mxu2 %vm223_vm1, %v8441_v35  ;;  %8214 = vadd.xlane.f32.xlu1 %v8213_v8 }
0x3444   :  { %9915 = vmatpush.xpose.msk.msra.mxu1 %vm223_vm1, %v8413_v5 }
0x3446   :  { %v8411_v63 = vpop.permute.xlu2 %8410 }
0x344a   :  { %v8439_v55 = vpop.permute.xlu1 %8438 }
0x344b   :  { %8466 = vrot.lane.b32.xlu0 %v12540_v47, %s10693_s4 }
0x344e   :  { %v8469_v48 = vpop.permute.xlu2 %8468 }
0x3456   :  { %v8495_v16 = vpop.permute.xlu2 %8494 }
0x345c   :  { %8496 = vrot.lane.b32.xlu1 %v11778_v29, %s10695_s6 }
0x345e   :  { %v7991_v54 = vpop.permute.xlu2 %7990 }
0x345f   :  { %8011 = vmatpush.msra.mxu3 %v7991_v54 }
0x3486   :  { %7924 = vmax.xlane.f32.xlu1 %v7923_v34 }
0x3497   :  { %v8185_v2 = vpop.xlane.xlu2 %8184 }
0x3498   :  { %v8193_v42 = vsub.f32 %v8121_v18, %v8185_v2 }
0x349a   :  { %v8198_v31 = vmul.f32 1.442695, %v8193_v42 }
0x349c   :  { %10539 = vpow2.f32 %v8198_v31 }
0x349f   :  { %8070 = vrot.lane.b32.xlu1 %v11761_v46, %s10692_s30 }
0x34a2   :  { %v10540_v30 = vpop.eup %10539 }
0x34a3   :  { %v8207_v32 = vsel %vm223_vm1, %v10540_v30, 0.0 }
0x34a4   :  { %8208 = vadd.xlane.f32.xlu2 %v8207_v32 }
0x34aa   :  { %v8212_v10 = vpop.xlane.xlu0 %8211 }
0x34ab   :  { %10541 = vrcp.f32 %v8212_v10 }
0x34b1   :  { %v10542_v25 = vpop.eup %10541 }
0x34b2   :  { %v8222_v15 = vmul.f32 %v10542_v25, %v10536_v11 }
0x34b4   :  { %9905 = vmatmul.msk.f32.vlgmr.msrb.gmra.mxu1 %vm223_vm1, %v8222_v15 }
0x34b5   :  { %9919 = vmatpush.xpose.msk.msrb.mxu1 %vm223_vm1, %v8469_v48 }
0x34b6   :  { %v8215_v12 = vpop.xlane.xlu1 %8214 }
0x34b7   :  { %10543 = vrcp.f32 %v8215_v12 }
0x34bc   :  { %8250 = vrot.lane.b32.xlu2 %v11754_v33, %s10700_s11  ;;  %9916 = vmatmul.msk.f32.vlgmr.msra.gmra.mxu1 %vm223_vm1, %v8411_v63 }
0x34bd   :  { %v10544_v23 = vpop.eup %10543  ;;  %v8467_v43 = vpop.permute.xlu0 %8466 }
0x34be   :  { %v8223_v28 = vmul.f32 %v10544_v23, %v10538_v21 }
0x34c0   :  { %9906 = vmatmul.msk.f32.vlgmr.msrb.gmra.mxu2 %vm223_vm1, %v8223_v28 }
0x34c4   :  { %8618 = vrot.lane.b32.xlu2 %v11764_v17, %s10701_s12  ;;  %9920 = vmatmul.msk.f32.vlgmr.msrb.gmra.mxu1 %vm223_vm1, %v8467_v43 }
0x34c8   :  { %9918 = vmatmul.msk.f32.vlgmr.msra.gmra.mxu2 %vm223_vm1, %v8439_v55 }
0x34cc   :  { %8644 = vrot.lane.b32.xlu2 %v11778_v29, %s10701_s12 }
0x34ce   :  { %v8497_v56 = vpop.permute.xlu1 %8496 }
0x34cf   :  { %9921 = vmatpush.xpose.msk.msrb.mxu2 %vm223_vm1, %v8497_v56 }
0x34d2   :  { %9922 = vmatmul.msk.f32.vlgmr.msrb.gmra.mxu2 %vm223_vm1, %v8495_v16 }
0x34d4   :  { %8773 = vrot.lane.b32.xlu2 %v11764_v17, %s10698_s9 }
0x34f9   :  { %v7925_v53 = vpop.xlane.xlu1 %7924 }
0x34fa   :  { %v7933_v45 = vsub.f32 %v12550_v39, %v7925_v53 }
0x34fc   :  { %v7938_v52 = vmul.f32 1.442695, %v7933_v45 }
0x34fe   :  { %10545 = vpow2.f32 %v7938_v52 }
0x3504   :  { %v10546_v7 = vpop.eup %10545 }
0x3505   :  { %v7947_v24 = vsel %vm223_vm1, %v10546_v7, 0.0 }
0x3506   :  { %7948 = vadd.xlane.f32.xlu0 %v7947_v24 }
0x3511   :  { %v8071_v51 = vpop.permute.xlu1 %8070 }
0x3512   :  { %9895 = vmatpush.xpose.msk.msrb.mxu3 %vm223_vm1, %v8071_v51 }
0x3517   :  { %v8209_v26 = vpop.xlane.xlu2 %8208 }
0x3518   :  { %10547 = vrcp.f32 %v8209_v26 }
0x351a   :  { %8068 = vrot.lane.b32.xlu0 %v12532_v57, %s10690_s28 }
0x351e   :  { %v10548_v1 = vpop.eup %10547 }
0x351f   :  { %v8221_v36 = vmul.f32 %v10548_v1, %v10540_v30  ;;  %v8251_v60 = vpop.permute.xlu2 %8250 }
0x3520   :  { %8271 = vmatpush.msrb.mxu0 %v8251_v60 }
0x3521   :  { %9904 = vmatmul.msk.f32.vlgmr.msrb.gmra.mxu0 %vm223_vm1, %v8221_v36 }
0x3522   :  { %10084 = vrot.lane.b32.xlu0 %v11957_v49, %s10701_s12  ;;  %8396 = vmatpush.msra.mxu0 %v7807_v62 }
0x3527   :  { %v8619_v61 = vpop.permute.xlu2 %8618 }
0x3529   :  { %9911 = vmatmul.msk.f32.vlgmr.msra.gmra.mxu0 %vm223_vm1, %v12583_v0 }
0x352a   :  { %8745 = vrot.lane.b32.xlu0 %v11754_v33, %s10698_s9 }
0x352f   :  { %v8645_v5 = vpop.permute.xlu2 %8644 }
0x3531   :  { %v12644_v39 = vpop.f32.mrf.mxu1 }
0x3539   :  { %v8435_v18 = vpop.f32.mrf.mxu1 }
0x353a   :  { %v8522_v22 = vsel %vm223_vm1, %v8435_v18, -inf }
0x353b   :  { %8523 = vmax.xlane.f32.xlu1 %v8522_v22 }
0x3541   :  { %v8491_v27 = vpop.f32.mrf.mxu1 }
0x3542   :  { %v8528_v20 = vsel %vm223_vm1, %v8491_v27, -inf }
0x3543   :  { %8529 = vmax.xlane.f32.xlu1 %v8528_v20  ;;  %v12648_v50 = vpop.f32.mrf.mxu2 }
0x354b   :  { %v8463_v11 = vpop.f32.mrf.mxu2 }
0x354c   :  { %v8525_v6 = vsel %vm223_vm1, %v8463_v11, -inf }
0x3554   :  { %8526 = vmax.xlane.f32.xlu0 %v8525_v6 }
0x3555   :  { %v8519_v0 = vpop.f32.mrf.mxu2 }
0x3556   :  { %v8531_v37 = vsel %vm223_vm1, %v8519_v0, -inf }
0x355c   :  { %8717 = vrot.lane.b32.xlu1 %v11761_v46, %s10698_s9  ;;  %8532 = vmax.xlane.f32.xlu0 %v8531_v37 }
0x3570   :  { %8715 = vrot.lane.b32.xlu0 %v12532_v57, %s10697_s8 }
0x3579   :  { %v7949_v33 = vpop.xlane.xlu0 %7948 }
0x357a   :  { %10549 = vrcp.f32 %v7949_v33 }
0x3580   :  { %v10550_v58 = vpop.eup %10549 }
0x3581   :  { %v7961_v41 = vmul.f32 %v10550_v58, %v10546_v7 }
0x3583   :  { %9892 = vmatmul.msk.f32.vlgmr.msra.gmra.mxu3 %vm223_vm1, %v7961_v41 }
0x358c   :  { %v8069_v59 = vpop.permute.xlu0 %8068 }
0x358d   :  { %9896 = vmatmul.msk.f32.vlgmr.msrb.gmra.mxu3 %vm223_vm1, %v8069_v59 }
0x3594   :  { %v10085_v14 = vpop.permute.xlu0 %10084 }
0x3595   :  { %v10087_v21 = vunpack.i.h.bf16 %v10085_v14  ;;  %v10086_v35 = vunpack.i.l.bf16 %v10085_v14 }
0x3597   :  { %8587 = vmatpush.msra.mxu1 %v10086_v35  ;;  %8613 = vmatpush.msra.mxu2 %v10087_v21 }
0x3599   :  { %8639 = vmatpush.msrb.mxu1 %v8619_v61  ;;  %8665 = vmatpush.msrb.mxu2 %v8645_v5 }
0x359c   :  { %v8746_v42 = vpop.permute.xlu0 %8745 }
0x35ae   :  { %v8524_v8 = vpop.xlane.xlu1 %8523 }
0x35af   :  { %v8534_v57 = vsub.f32 %v8435_v18, %v8524_v8 }
0x35b1   :  { %v8538_v63 = vmul.f32 1.442695, %v8534_v57 }
0x35b3   :  { %10551 = vpow2.f32 %v8538_v63 }
0x35b6   :  { %v8530_v48 = vpop.xlane.xlu1 %8529 }
0x35b7   :  { %v8536_v16 = vsub.f32 %v8491_v27, %v8530_v48 }
0x35b9   :  { %v10552_v54 = vpop.eup %10551  ;;  %v8542_v34 = vmul.f32 1.442695, %v8536_v16 }
0x35ba   :  { %v8546_v2 = vsel %vm223_vm1, %v10552_v54, 0.0 }
0x35bb   :  { %10553 = vpow2.f32 %v8542_v34  ;;  %8547 = vadd.xlane.f32.xlu0 %v8546_v2 }
0x35c1   :  { %v10554_v31 = vpop.eup %10553 }
0x35c2   :  { %v8552_v30 = vsel %vm223_vm1, %v10554_v31, 0.0 }
0x35c3   :  { %8553 = vadd.xlane.f32.xlu2 %v8552_v30 }
0x35c7   :  { %v8527_v32 = vpop.xlane.xlu0 %8526 }
0x35c8   :  { %v8535_v10 = vsub.f32 %v8463_v11, %v8527_v32 }
0x35ca   :  { %v8540_v55 = vmul.f32 1.442695, %v8535_v10 }
0x35cc   :  { %10555 = vpow2.f32 %v8540_v55 }
0x35ce   :  { %v8718_v25 = vpop.permute.xlu1 %8717 }
0x35cf   :  { %v8533_v15 = vpop.xlane.xlu0 %8532  ;;  %8743 = vrot.lane.b32.xlu0 %v12536_v3, %s10697_s8  ;;  %9931 = vmatpush.xpose.msk.msrb.mxu0 %vm223_vm1, %v8718_v25 }
0x35d0   :  { %v8537_v12 = vsub.f32 %v8519_v0, %v8533_v15  ;;  %v12688_v0 = vpop.f32.mrf.mxu0 }
0x35d2   :  { %v10556_v23 = vpop.eup %10555  ;;  %v8544_v28 = vmul.f32 1.442695, %v8537_v12 }
0x35d3   :  { %v8549_v43 = vsel %vm223_vm1, %v10556_v23, 0.0 }
0x35d4   :  { %10557 = vpow2.f32 %v8544_v28  ;;  %8550 = vadd.xlane.f32.xlu1 %v8549_v43 }
0x35d7   :  { %8801 = vrot.lane.b32.xlu0 %v11778_v29, %s10698_s9 }
0x35d8   :  { %v12690_v37 = vpop.f32.mrf.mxu0 }
0x35da   :  { %v10558_v56 = vpop.eup %10557 }
0x35db   :  { %8799 = vrot.lane.b32.xlu2 %v12544_v40, %s10697_s8  ;;  %v8555_v53 = vsel %vm223_vm1, %v10558_v56, 0.0  ;;  %v8774_v40 = vpop.permute.xlu2 %8773 }
0x35dc   :  { %8556 = vadd.xlane.f32.xlu1 %v8555_v53 }
0x35e2   :  { %v8716_v52 = vpop.permute.xlu0 %8715 }
0x35f5   :  { %8771 = vrot.lane.b32.xlu1 %v12540_v47, %s10697_s8 }
0x3606   :  { %v8013_v3 = vpop.f32.mrf.mxu3 }
0x3607   :  { %9912 = vmatmul.msk.f32.gmra.mxu0 %vm223_vm1, %v8013_v3 }
0x360f   :  { %9913 = vmatmul.msk.f32.gmra.mxu0 %vm223_vm1, %v12585_v9 }
0x3610   :  { %v8093_v45 = vpop.f32.mrf.mxu3 }
0x3611   :  { %v8180_v7 = vsel %vm223_vm1, %v8093_v45, -inf }
0x3617   :  { %9914 = vmatmul.msk.f32.gmra.mxu0 %vm223_vm1, %v12588_v19 }
0x361f   :  { %8181 = vmax.xlane.f32.xlu1 %v8180_v7  ;;  %9932 = vmatmul.msk.f32.vlgmr.msrb.gmra.mxu0 %vm223_vm1, %v8716_v52 }
0x362e   :  { %v8548_v24 = vpop.xlane.xlu0 %8547 }
0x362f   :  { %10559 = vrcp.f32 %v8548_v24 }
0x3635   :  { %v10560_v47 = vpop.eup %10559 }
0x3636   :  { %v8562_v51 = vmul.f32 %v10560_v47, %v10552_v54  ;;  %v8554_v26 = vpop.xlane.xlu2 %8553 }
0x3637   :  { %10561 = vrcp.f32 %v8554_v26 }
0x3638   :  { %9923 = vmatmul.msk.f32.vlgmr.msra.gmra.mxu1 %vm223_vm1, %v8562_v51 }
0x3639   :  { %9933 = vmatpush.xpose.msk.msra.mxu1 %vm223_vm1, %v8746_v42 }
0x363d   :  { %v10562_v9 = vpop.eup %10561 }
0x363e   :  { %v8564_v19 = vmul.f32 %v10562_v9, %v10554_v31  ;;  %v8800_v62 = vpop.permute.xlu2 %8799 }
0x3640   :  { %9925 = vmatmul.msk.f32.vlgmr.msrb.gmra.mxu1 %vm223_vm1, %v8564_v19  ;;  %v7808_v19 = vld [vmem:[#allocation6 + $0x408] sm:$0xff] }
0x3641   :  { %v8744_v1 = vpop.permute.xlu0 %8743 }
0x3647   :  { %v8551_v36 = vpop.xlane.xlu1 %8550 }
0x3648   :  { %10563 = vrcp.f32 %v8551_v36  ;;  %9934 = vmatmul.msk.f32.vlgmr.msra.gmra.mxu1 %vm223_vm1, %v8744_v1 }
0x3649   :  { %v8802_v60 = vpop.permute.xlu0 %8801 }
0x364a   :  { %9937 = vmatpush.xpose.msk.msra.mxu0 %vm223_vm1, %v8802_v60 }
0x364d   :  { %9938 = vmatmul.msk.f32.vlgmr.msra.gmra.mxu0 %vm223_vm1, %v8800_v62 }
0x364e   :  { %v10564_v18 = vpop.eup %10563 }
0x364f   :  { %v8563_v22 = vmul.f32 %v10564_v18, %v10556_v23  ;;  %v8557_v27 = vpop.xlane.xlu1 %8556 }
0x3650   :  { %10565 = vrcp.f32 %v8557_v27 }
0x3651   :  { %9924 = vmatmul.msk.f32.vlgmr.msra.gmra.mxu2 %vm223_vm1, %v8563_v22 }
0x3652   :  { %9935 = vmatpush.xpose.msk.msra.mxu2 %vm223_vm1, %v8774_v40 }
0x3656   :  { %v10566_v20 = vpop.eup %10565 }
0x3657   :  { %v8565_v11 = vmul.f32 %v10566_v20, %v10558_v56  ;;  %v7809_v20 = vld [vmem:[#allocation6 + $0x410] sm:$0xff] }
0x3659   :  { %9926 = vmatmul.msk.f32.vlgmr.msrb.gmra.mxu2 %vm223_vm1, %v8565_v11 }
0x3667   :  { %v8772_v6 = vpop.permute.xlu1 %8771 }
0x3668   :  { %9936 = vmatmul.msk.f32.vlgmr.msra.gmra.mxu2 %vm223_vm1, %v8772_v6 }
0x3684   :  { %v12692_v33 = vpop.f32.mrf.mxu0 }
0x368c   :  { %v12694_v58 = vpop.f32.mrf.mxu0 }
0x3692   :  { %v8182_v41 = vpop.xlane.xlu1 %8181 }
0x3693   :  { %v8192_v59 = vsub.f32 %v8093_v45, %v8182_v41 }
0x3694   :  { %v12696_v61 = vpop.f32.mrf.mxu0 }
0x3695   :  { %v8196_v14 = vmul.f32 1.442695, %v8192_v59 }
0x3697   :  { %10567 = vpow2.f32 %v8196_v14 }
0x369c   :  { %v8740_v21 = vpop.f32.mrf.mxu0 }
0x369d   :  { %v10568_v35 = vpop.eup %10567  ;;  %v8827_v5 = vsel %vm223_vm1, %v8740_v21, -inf }
0x369e   :  { %8828 = vmax.xlane.f32.xlu0 %v8827_v5  ;;  %v8204_v8 = vsel %vm223_vm1, %v10568_v35, 0.0  ;;  %v7810_v5 = vld [vmem:[#allocation6 + $0x418] sm:$0xff] }
0x369f   :  { %8205 = vadd.xlane.f32.xlu1 %v8204_v8 }
0x36b2   :  { %8224 = vrot.lane.b32.xlu0 %v11761_v46, %s10700_s11 }
0x36b5   :  { %v12702_v57 = vpop.f32.mrf.mxu1 }
0x36bd   :  { %v12704_v63 = vpop.f32.mrf.mxu1 }
0x36c5   :  { %v8768_v48 = vpop.f32.mrf.mxu1 }
0x36c6   :  { %v8830_v16 = vsel %vm223_vm1, %v8768_v48, -inf }
0x36c7   :  { %8831 = vmax.xlane.f32.xlu2 %v8830_v16 }
0x36ca   :  { %v8824_v54 = vpop.f32.mrf.mxu0 }
0x36cb   :  { %v8836_v34 = vsel %vm223_vm1, %v8824_v54, -inf }
0x36cc   :  { %8837 = vmax.xlane.f32.xlu1 %v8836_v34 }
0x36d4   :  { %v12708_v2 = vpop.f32.mrf.mxu2 }
0x36dc   :  { %v12710_v42 = vpop.f32.mrf.mxu2 }
0x36eb   :  { %v8796_v31 = vpop.f32.mrf.mxu2 }
0x36ec   :  { %v8833_v30 = vsel %vm223_vm1, %v8796_v31, -inf }
0x36ed   :  { %8834 = vmax.xlane.f32.xlu2 %v8833_v30 }
0x3711   :  { %v8829_v46 = vpop.xlane.xlu0 %8828 }
0x3712   :  { %v8839_v32 = vsub.f32 %v8740_v21, %v8829_v46  ;;  %v8206_v55 = vpop.xlane.xlu1 %8205  ;;  %v10129_v46 = vld [vmem:[#allocation6 + $0x420] ss:$0 sm:$0xff] }
0x3714   :  { %v8843_v10 = vmul.f32 1.442695, %v8839_v32 }
0x3716   :  { %10569 = vpow2.f32 %v8843_v10 }
0x3717   :  { %10571 = vrcp.f32 %v8206_v55 }
0x371c   :  { %v10570_v25 = vpop.eup %10569 }
0x371d   :  { %v8851_v15 = vsel %vm223_vm1, %v10570_v25, 0.0  ;;  %v10572_v12 = vpop.eup %10571 }
0x371e   :  { %8852 = vadd.xlane.f32.xlu2 %v8851_v15  ;;  %v8220_v23 = vmul.f32 %v10572_v12, %v10568_v35 }
0x3724   :  { %v8225_v28 = vpop.permute.xlu0 %8224 }
0x3725   :  { %8245 = vmatpush.msra.mxu3 %v8225_v28 }
0x3726   :  { %9903 = vmatmul.msk.f32.vlgmr.msra.gmra.mxu3 %vm223_vm1, %v8220_v23 }
0x3727   :  { %8355 = vmatpush.msrb.mxu3 %v7808_v19 }
0x3729   :  { %8697 = vmatpush.msra.mxu3 %v7809_v20  ;;  %v9143_v20 = vld [vmem:[#allocation6 + $0x448] sm:$0xff] }
0x3736   :  { %10089 = vrot.lane.b32.xlu2 %v11957_v49, %s10685_s21 }
0x373a   :  { %v8832_v43 = vpop.xlane.xlu2 %8831 }
0x373b   :  { %v8840_v56 = vsub.f32 %v8768_v48, %v8832_v43 }
0x373d   :  { %v8845_v53 = vmul.f32 1.442695, %v8840_v56 }
0x373e   :  { %8949 = vrot.lane.b32.xlu2 %v11778_v29, %s10685_s21 }
0x373f   :  { %10573 = vpow2.f32 %v8845_v53  ;;  %v8838_v3 = vpop.xlane.xlu1 %8837 }
0x3740   :  { %v8842_v45 = vsub.f32 %v8824_v54, %v8838_v3 }
0x3742   :  { %v8849_v52 = vmul.f32 1.442695, %v8842_v45 }
0x3744   :  { %10575 = vpow2.f32 %v8849_v52 }
0x3745   :  { %v10574_v7 = vpop.eup %10573 }
0x3746   :  { %v8854_v40 = vsel %vm223_vm1, %v10574_v7, 0.0 }
0x3747   :  { %8855 = vadd.xlane.f32.xlu1 %v8854_v40 }
0x374a   :  { %v10576_v24 = vpop.eup %10575 }
0x374b   :  { %v8860_v47 = vsel %vm223_vm1, %v10576_v24, 0.0 }
0x374c   :  { %8861 = vadd.xlane.f32.xlu0 %v8860_v47 }
0x3760   :  { %v8835_v49 = vpop.xlane.xlu2 %8834 }
0x3761   :  { %v8841_v51 = vsub.f32 %v8796_v31, %v8835_v49 }
0x3763   :  { %v8847_v26 = vmul.f32 1.442695, %v8841_v51 }
0x3765   :  { %10577 = vpow2.f32 %v8847_v26 }
0x376b   :  { %v10578_v9 = vpop.eup %10577 }
0x376c   :  { %v8857_v29 = vsel %vm223_vm1, %v10578_v9, 0.0 }
0x376d   :  { %8858 = vadd.xlane.f32.xlu1 %v8857_v29 }
0x3786   :  { %8923 = vrot.lane.b32.xlu1 %v11764_v17, %s10685_s21 }
0x3791   :  { %v8853_v1 = vpop.xlane.xlu2 %8852 }
0x3792   :  { %10579 = vrcp.f32 %v8853_v1 }
0x3798   :  { %v10580_v36 = vpop.eup %10579 }
0x3799   :  { %v10090_v60 = vpop.permute.xlu2 %10089  ;;  %v8867_v22 = vmul.f32 %v10580_v36, %v10570_v25 }
0x379a   :  { %v10092_v62 = vunpack.i.h.bf16 %v10090_v60  ;;  %v10091_v18 = vunpack.i.l.bf16 %v10090_v60 }
0x379c   :  { %8892 = vmatpush.msrb.mxu1 %v10091_v18  ;;  %8918 = vmatpush.msrb.mxu2 %v10092_v62 }
0x379d   :  { %9939 = vmatmul.msk.f32.vlgmr.msrb.gmra.mxu1 %vm223_vm1, %v8867_v22 }
0x379e   :  { %9002 = vmatpush.msra.mxu2 %v7810_v5 }
0x37a1   :  { %v8950_v27 = vpop.permute.xlu2 %8949 }
0x37a2   :  { %8970 = vmatpush.msra.mxu1 %v8950_v27  ;;  %v9144_v27 = vld [vmem:[#allocation6 + $0x450] sm:$0xff] }
0x37a9   :  { %v8247_v11 = vpop.f32.mrf.mxu3 }
0x37aa   :  { %9907 = vmatmul.msk.f32.vlgmr.msrb.gmra.mxu3 %vm223_vm1, %v8247_v11 }
0x37b2   :  { %9908 = vmatmul.msk.f32.gmra.mxu3 %vm223_vm1, %v12688_v0 }
0x37ba   :  { %9909 = vmatmul.msk.f32.gmra.mxu3 %vm223_vm1, %v12644_v39  ;;  %v8856_v17 = vpop.xlane.xlu1 %8855 }
0x37bb   :  { %10581 = vrcp.f32 %v8856_v17 }
0x37bf   :  { %v8862_v6 = vpop.xlane.xlu0 %8861 }
0x37c0   :  { %10583 = vrcp.f32 %v8862_v6  ;;  %v9141_v6 = vld [vmem:[#allocation6 + $0x438] sm:$0xff] }
0x37c1   :  { %v10582_v41 = vpop.eup %10581 }
0x37c2   :  { %v8868_v59 = vmul.f32 %v10582_v41, %v10574_v7  ;;  %9910 = vmatmul.msk.f32.gmra.mxu3 %vm223_vm1, %v12648_v50 }
0x37c4   :  { %9940 = vmatmul.msk.f32.vlgmr.msrb.gmra.mxu2 %vm223_vm1, %v8868_v59 }
0x37c6   :  { %v10584_v14 = vpop.eup %10583 }
0x37c7   :  { %v8870_v21 = vmul.f32 %v10584_v14, %v10576_v24 }
0x37c9   :  { %9942 = vmatmul.msk.f32.vlgmr.msra.gmra.mxu1 %vm223_vm1, %v8870_v21 }
0x37ca   :  { %9927 = vmatmul.msk.f32.vlgmr.msra.gmra.mxu3 %vm223_vm1, %v12702_v57 }
0x37d2   :  { %9928 = vmatmul.msk.f32.gmra.mxu3 %vm223_vm1, %v12708_v2 }
0x37da   :  { %9929 = vmatmul.msk.f32.gmra.mxu3 %vm223_vm1, %v12704_v63 }
0x37e0   :  { %v8859_v39 = vpop.xlane.xlu1 %8858 }
0x37e1   :  { %10585 = vrcp.f32 %v8859_v39 }
0x37e2   :  { %9930 = vmatmul.msk.f32.gmra.mxu3 %vm223_vm1, %v12710_v42 }
0x37e7   :  { %v10586_v50 = vpop.eup %10585 }
0x37e8   :  { %v8869_v0 = vmul.f32 %v10586_v50, %v10578_v9 }
0x37f8   :  { %v8924_v35 = vpop.permute.xlu1 %8923 }
0x37f9   :  { %8944 = vmatpush.msrb.mxu0 %v8924_v35 }
0x37fa   :  { %9941 = vmatmul.msk.f32.vlgmr.msrb.gmra.mxu0 %vm223_vm1, %v8869_v0 }
0x37fb   :  { %9180 = vmatpush.msra.mxu0 %v9144_v27  ;;  %v9151_v27 = vld [vmem:[#allocation6 + $0x488] sm:$0xff] }
0x37fd   :  { %9181 = vmatpush.msra.mxu0 %v9143_v20  ;;  %v9150_v20 = vld [vmem:[#allocation6 + $0x480] sm:$0xff] }
0x381a   :  { %v8894_v8 = vpop.f32.mrf.mxu1 }
0x381b   :  { %9943 = vmatmul.msk.f32.vlgmr.msra.gmra.mxu2 %vm223_vm1, %v8894_v8 }
0x382d   :  { %v8357_v63 = vpop.f32.mrf.mxu3 }
0x382e   :  { %v8399_v31 = vadd.f32 %v12690_v37, %v8357_v63 }
0x3835   :  { %v8360_v16 = vpop.f32.mrf.mxu3 }
0x3836   :  { %v8402_v37 = vadd.f32 %v12692_v33, %v8360_v16  ;;  %v12784_v16 = vld [vmem:[#allocation6 + $0x428] ss:$0 sm:$0xff] }
0x383d   :  { %v8363_v34 = vpop.f32.mrf.mxu3 }
0x383e   :  { %v8405_v33 = vadd.f32 %v12694_v58, %v8363_v34  ;;  %v12786_v34 = vld [vmem:[#allocation6 + $0x430] ss:$0 sm:$0xff] }
0x3845   :  { %v8366_v2 = vpop.f32.mrf.mxu3 }
0x3846   :  { %v8972_v54 = vpop.f32.mrf.mxu1 }
0x3847   :  { %v8920_v57 = vpop.f32.mrf.mxu2 }
0x3848   :  { %9944 = vmatmul.msk.f32.gmra.mxu2 %vm223_vm1, %v8920_v57 }
0x384d   :  { %v8699_v42 = vpop.f32.mrf.mxu3 }
0x384e   :  { %v8711_v30 = vadd.f32 %v8699_v42, %v8399_v31 }
0x3855   :  { %v8702_v28 = vpop.f32.mrf.mxu3 }
0x3856   :  { %v8712_v43 = vadd.f32 %v8702_v28, %v8402_v37 }
0x385d   :  { %v8705_v40 = vpop.f32.mrf.mxu3 }
0x385e   :  { %v8713_v24 = vadd.f32 %v8705_v40, %v8405_v33 }
0x3865   :  { %v8708_v26 = vpop.f32.mrf.mxu3 }
0x3877   :  { %v8946_v48 = vpop.f32.mrf.mxu0 }
0x3878   :  { %9945 = vmatmul.msk.f32.gmra.mxu2 %vm223_vm1, %v8946_v48 }
0x3880   :  { %9946 = vmatmul.msk.f32.gmra.mxu2 %vm223_vm1, %v8972_v54 }
0x389e   :  { %v9004_v32 = vpop.f32.mrf.mxu2 }
0x389f   :  { %v9016_v10 = vadd.f32 %v9004_v32, %v8711_v30 }
0x38a1   :  { %v9021_v55 = vadd.f32 %v10129_v46, %v9016_v10 }
0x38a3   :  { %v12749_v25 = vadd.f32 %v9021_v55, %v12504_v13 }
0x38a5   :  { %v9031_v15 = vsel %vm71_vm0, %v12749_v25, 0.0  ;;  %v9047_v12 = vmul.f32 %v12749_v25, %v12749_v25 }
0x38a6   :  { %9032 = vadd.xlane.f32.xlu2 %v9031_v15 }
0x38a7   :  { %v9051_v23 = vsel %vm71_vm0, %v9047_v12, 0.0 }
0x38a8   :  { %9052 = vadd.xlane.f32.xlu1 %v9051_v23 }
0x38cb   :  { %v9007_v56 = vpop.f32.mrf.mxu2 }
0x38cc   :  { %v9017_v53 = vadd.f32 %v9007_v56, %v8712_v43 }
0x38ce   :  { %v9022_v3 = vadd.f32 %v10129_v46, %v9017_v53 }
0x38d0   :  { %v12758_v13 = vadd.f32 %v9022_v3, %v12512_v38  ;;  %v8408_v38 = vadd.f32 %v12696_v61, %v8366_v2 }
0x38d2   :  { %v9034_v45 = vsel %vm71_vm0, %v12758_v13, 0.0  ;;  %v9048_v52 = vmul.f32 %v12758_v13, %v12758_v13  ;;  %v8714_v29 = vadd.f32 %v8708_v26, %v8408_v38 }
0x38d3   :  { %9035 = vadd.xlane.f32.xlu0 %v9034_v45 }
0x38d4   :  { %v9054_v7 = vsel %vm71_vm0, %v9048_v52, 0.0 }
0x38db   :  { %9055 = vadd.xlane.f32.xlu0 %v9054_v7 }
0x38fb   :  { %v9010_v47 = vpop.f32.mrf.mxu2 }
0x38fc   :  { %v9018_v49 = vadd.f32 %v9010_v47, %v8713_v24 }
0x38fe   :  { %v9023_v51 = vadd.f32 %v10129_v46, %v9018_v49 }
0x3900   :  { %v12768_v9 = vadd.f32 %v9023_v51, %v12519_v4 }
0x3902   :  { %v9037_v19 = vsel %vm71_vm0, %v12768_v9, 0.0  ;;  %v9049_v58 = vmul.f32 %v12768_v9, %v12768_v9 }
0x3903   :  { %9038 = vadd.xlane.f32.xlu0 %v9037_v19  ;;  %v9013_v1 = vpop.f32.mrf.mxu2 }
0x3904   :  { %v9019_v36 = vadd.f32 %v9013_v1, %v8714_v29  ;;  %v9057_v18 = vsel %vm71_vm0, %v9049_v58, 0.0 }
0x3906   :  { %v9024_v60 = vadd.f32 %v10129_v46, %v9019_v36 }
0x3908   :  { %v12775_v62 = vadd.f32 %v9024_v60, %v12528_v44  ;;  %v9142_v44 = vld [vmem:[#allocation6 + $0x440] sm:$0xff] }
0x3909   :  { %9182 = vmatpush.msra.mxu0 %v9142_v44  ;;  %v9149_v44 = vld [vmem:[#allocation6 + $0x478] sm:$0xff] }
0x390a   :  { %v9040_v4 = vsel %vm71_vm0, %v12775_v62, 0.0  ;;  %v9050_v61 = vmul.f32 %v12775_v62, %v12775_v62 }
0x390b   :  { %9058 = vadd.xlane.f32.xlu0 %v9057_v18  ;;  %9041 = vadd.xlane.f32.xlu2 %v9040_v4 }
0x390c   :  { %v9060_v22 = vsel %vm71_vm0, %v9050_v61, 0.0  ;;  %9183 = vmatpush.msra.mxu0 %v9141_v6  ;;  %v9153_v61 = vld [vmem:[#allocation6 + $0x498] sm:$0xff] }
0x390d   :  { %9061 = vadd.xlane.f32.xlu1 %v9060_v22  ;;  %v9152_v22 = vld [vmem:[#allocation6 + $0x490] sm:$0xff]  ;;  %9222 = vmatpush.msrb.mxu3 %v9153_v61 }
0x390f   :  { %9223 = vmatpush.msrb.mxu3 %v9152_v22 }
0x3911   :  { %9224 = vmatpush.msrb.mxu3 %v9151_v27 }
0x3913   :  { %9225 = vmatpush.msrb.mxu3 %v9150_v20 }
0x3915   :  { %9226 = vmatpush.msrb.mxu3 %v9149_v44 }
0x3919   :  { %v9033_v11 = vpop.xlane.xlu2 %9032 }
0x391a   :  { %v9043_v17 = vmul.f32 0.03125, %v9033_v11 }
0x391b   :  { %v9053_v41 = vpop.xlane.xlu1 %9052 }
0x391c   :  { %v9067_v59 = vmul.f32 %v9043_v17, %v9043_v17  ;;  %v9063_v14 = vmul.f32 0.03125, %v9053_v41  ;;  %v9079_v48 = vsub.f32 %v12749_v25, %v9043_v17 }
0x391e   :  { %v9071_v21 = vsub.f32 %v9063_v14, %v9067_v59 }
0x3920   :  { %v9075_v39 = vmax.f32 %v9071_v21, 0.0 }
0x3922   :  { %v9083_v50 = vadd.f32 1e-05, %v9075_v39 }
0x3924   :  { %10587 = vrsqrt.f32 %v9083_v50  ;;  %vm9093_vm7 = vweird.f32 %v9083_v50 }
0x392a   :  { %v10588_v0 = vpop.eup %10587 }
0x392b   :  { %v9088_v35 = vmul.f32 %v10588_v0, %v9083_v50  ;;  %vm9094_vm1 = vweird.f32 %v10588_v0 }
0x392c   :  { %vm9095_vm8 = vmor %vm9093_vm7, %vm9094_vm1 }
0x392d   :  { %v9089_v5 = vmul.f32 %v10588_v0, %v9088_v35 }
0x392f   :  { %v9090_v8 = vmul.f32 0.5, %v9089_v5 }
0x3931   :  { %v9091_v57 = vsub.f32 1.5, %v9090_v8 }
0x3933   :  { %v9092_v63 = vmul.f32 %v10588_v0, %v9091_v57 }
0x3935   :  { %v9096_v54 = vsel %vm9095_vm8, %v10588_v0, %v9092_v63 }
0x3936   :  { %v9127_v2 = vmul.f32 %v9096_v54, %v9079_v48  ;;  %v9148_v48 = vld [vmem:[#allocation6 + $0x470] sm:$0xff] }
0x3937   :  { %9227 = vmatpush.msrb.mxu3 %v9148_v48 }
0x3938   :  { %v9132_v42 = vmul.f32 %v12784_v16, %v9127_v2 }
0x393a   :  { %v12790_v31 = vadd.f32 %v12786_v34, %v9132_v42 }
0x393c   :  { %9947 = vmatmul.msk.f32.vlgmr.msra.gmra.mxu0 %vm71_vm0, %v12790_v31 }
0x3946   :  { %v9036_v30 = vpop.xlane.xlu0 %9035 }
0x3947   :  { %v9044_v46 = vmul.f32 0.03125, %v9036_v30  ;;  %v9147_v30 = vld [vmem:[#allocation6 + $0x468] sm:$0xff] }
0x3948   :  { %9228 = vmatpush.msrb.mxu3 %v9147_v30 }
0x3949   :  { %v9068_v10 = vmul.f32 %v9044_v46, %v9044_v46  ;;  %v9080_v3 = vsub.f32 %v12758_v13, %v9044_v46  ;;  %v9146_v46 = vld [vmem:[#allocation6 + $0x460] sm:$0xff] }
0x394a   :  { %9229 = vmatpush.msrb.mxu3 %v9146_v46 }
0x394e   :  { %v9056_v32 = vpop.xlane.xlu0 %9055 }
0x394f   :  { %v9064_v55 = vmul.f32 0.03125, %v9056_v32 }
0x3951   :  { %v9072_v25 = vsub.f32 %v9064_v55, %v9068_v10 }
0x3953   :  { %v9076_v15 = vmax.f32 %v9072_v25, 0.0  ;;  %v10132_v25 = vld [vmem:[#allocation6 + $0x458] ss:$0 sm:$0xff] }
0x3955   :  { %v9084_v12 = vadd.f32 1e-05, %v9076_v15 }
0x3957   :  { %10589 = vrsqrt.f32 %v9084_v12  ;;  %vm9103_vm10 = vweird.f32 %v9084_v12 }
0x395d   :  { %v10590_v23 = vpop.eup %10589 }
0x395e   :  { %v9098_v28 = vmul.f32 %v10590_v23, %v9084_v12  ;;  %vm9104_vm9 = vweird.f32 %v10590_v23 }
0x395f   :  { %vm9105_vm11 = vmor %vm9103_vm10, %vm9104_vm9 }
0x3960   :  { %v9099_v37 = vmul.f32 %v10590_v23, %v9098_v28 }
0x3962   :  { %v9100_v43 = vmul.f32 0.5, %v9099_v37 }
0x3964   :  { %v9101_v56 = vsub.f32 1.5, %v9100_v43 }
0x3966   :  { %v9102_v53 = vmul.f32 %v10590_v23, %v9101_v56 }
0x3968   :  { %v9106_v45 = vsel %vm9105_vm11, %v10590_v23, %v9102_v53 }
0x3969   :  { %v9128_v52 = vmul.f32 %v9106_v45, %v9080_v3  ;;  %v10133_v45 = vld [vmem:[#allocation6 + $0x4a0] ss:$0 sm:$0xff] }
0x396b   :  { %v9133_v7 = vmul.f32 %v12784_v16, %v9128_v52 }
0x396d   :  { %v12797_v40 = vadd.f32 %v12786_v34, %v9133_v7 }
0x396f   :  { %9948 = vmatmul.msk.f32.gmra.mxu0 %vm71_vm0, %v12797_v40 }
0x3976   :  { %v9039_v33 = vpop.xlane.xlu0 %9038 }
0x3977   :  { %v9045_v24 = vmul.f32 0.03125, %v9039_v33 }
0x3979   :  { %v9069_v51 = vmul.f32 %v9045_v24, %v9045_v24  ;;  %v9081_v5 = vsub.f32 %v12768_v9, %v9045_v24 }
0x397e   :  { %v9059_v47 = vpop.xlane.xlu0 %9058  ;;  %v9042_v49 = vpop.xlane.xlu2 %9041 }
0x397f   :  { %v9065_v26 = vmul.f32 0.03125, %v9059_v47  ;;  %v9046_v38 = vmul.f32 0.03125, %v9042_v49 }
0x3980   :  { %v9062_v29 = vpop.xlane.xlu1 %9061 }
0x3981   :  { %v9073_v13 = vsub.f32 %v9065_v26, %v9069_v51  ;;  %v9070_v19 = vmul.f32 %v9046_v38, %v9046_v38  ;;  %v9066_v1 = vmul.f32 0.03125, %v9062_v29  ;;  %v9082_v2 = vsub.f32 %v12775_v62, %v9046_v38 }
0x3983   :  { %v9077_v36 = vmax.f32 %v9073_v13, 0.0  ;;  %v9074_v60 = vsub.f32 %v9066_v1, %v9070_v19 }
0x3985   :  { %v9085_v58 = vadd.f32 1e-05, %v9077_v36  ;;  %v9078_v18 = vmax.f32 %v9074_v60, 0.0 }
0x3987   :  { %10591 = vrsqrt.f32 %v9085_v58  ;;  %v9086_v4 = vadd.f32 1e-05, %v9078_v18  ;;  %vm9113_vm13 = vweird.f32 %v9085_v58 }
0x3989   :  { %10593 = vrsqrt.f32 %v9086_v4  ;;  %vm9123_vm3 = vweird.f32 %v9086_v4 }
0x398d   :  { %v10592_v11 = vpop.eup %10591 }
0x398e   :  { %v9108_v17 = vmul.f32 %v10592_v11, %v9085_v58  ;;  %vm9114_vm12 = vweird.f32 %v10592_v11 }
0x398f   :  { %v10594_v6 = vpop.eup %10593  ;;  %vm9115_vm2 = vmor %vm9113_vm13, %vm9114_vm12 }
0x3990   :  { %v9109_v41 = vmul.f32 %v10592_v11, %v9108_v17  ;;  %v9118_v59 = vmul.f32 %v10594_v6, %v9086_v4  ;;  %vm9124_vm15 = vweird.f32 %v10594_v6 }
0x3991   :  { %vm9125_vm4 = vmor %vm9123_vm3, %vm9124_vm15  ;;  %vm9410_vm3 = vcmask 1041409  }
0x3992   :  { %v9110_v14 = vmul.f32 0.5, %v9109_v41  ;;  %v9119_v21 = vmul.f32 %v10594_v6, %v9118_v59 }
0x3994   :  { %v9111_v39 = vsub.f32 1.5, %v9110_v14  ;;  %v9120_v50 = vmul.f32 0.5, %v9119_v21 }
0x3996   :  { %v9112_v0 = vmul.f32 %v10592_v11, %v9111_v39  ;;  %v9121_v35 = vsub.f32 1.5, %v9120_v50 }
0x3998   :  { %v9116_v8 = vsel %vm9115_vm2, %v10592_v11, %v9112_v0  ;;  %v9122_v57 = vmul.f32 %v10594_v6, %v9121_v35 }
0x3999   :  { %v9129_v63 = vmul.f32 %v9116_v8, %v9081_v5 }
0x399a   :  { %v9126_v54 = vsel %vm9125_vm4, %v10594_v6, %v9122_v57  ;;  %vm9495_vm4 = vcmask 17408  }
0x399b   :  { %v9134_v42 = vmul.f32 %v12784_v16, %v9129_v63  ;;  %v9130_v10 = vmul.f32 %v9126_v54, %v9082_v2 }
0x399d   :  { %v9139_v32 = vadd.f32 %v12786_v34, %v9134_v42  ;;  %v9135_v9 = vmul.f32 %v12784_v16, %v9130_v10 }
0x399f   :  { %9949 = vmatmul.msk.f32.gmra.mxu0 %vm71_vm0, %v9139_v32  ;;  %v9140_v55 = vadd.f32 %v12786_v34, %v9135_v9 }
0x39a7   :  { %9950 = vmatmul.msk.f32.gmra.mxu0 %vm71_vm0, %v9140_v55 }
0x39b9   :  { %v9185_v15 = vpop.f32.mrf.mxu0 }
0x39ba   :  { %v9186_v62 = vadd.f32 %v10132_v25, %v9185_v15 }
0x39bc   :  { %v9197_v12 = vmax.f32 %v9186_v62, 0.0 }
0x39be   :  { %9951 = vmatmul.msk.f32.vlgmr.msrb.gmra.mxu3 %vm1611_vm14, %v9197_v12 }
0x39ec   :  { %v9188_v23 = vpop.f32.mrf.mxu0 }
0x39ed   :  { %v9189_v28 = vadd.f32 %v10132_v25, %v9188_v23 }
0x39ef   :  { %v9198_v37 = vmax.f32 %v9189_v28, 0.0 }
0x39f1   :  { %9952 = vmatmul.msk.f32.gmra.mxu3 %vm1611_vm14, %v9198_v37 }
0x3a1c   :  { %v9191_v43 = vpop.f32.mrf.mxu0 }
0x3a1d   :  { %v9192_v56 = vadd.f32 %v10132_v25, %v9191_v43 }
0x3a1f   :  { %v9199_v53 = vmax.f32 %v9192_v56, 0.0 }
0x3a21   :  { %9953 = vmatmul.msk.f32.gmra.mxu3 %vm1611_vm14, %v9199_v53 }
0x3a24   :  { %v9194_v16 = vpop.f32.mrf.mxu0 }
0x3a25   :  { %v9195_v34 = vadd.f32 %v10132_v25, %v9194_v16 }
0x3a27   :  { %v9200_v3 = vmax.f32 %v9195_v34, 0.0 }
0x3a29   :  { %9954 = vmatmul.msk.f32.gmra.mxu3 %vm1611_vm14, %v9200_v3 }
0x3a41   :  { %v9231_v52 = vpop.f32.mrf.mxu3 }
0x3a42   :  { %v9232_v7 = vadd.f32 %v10133_v45, %v9231_v52  ;;  %v9404_v52 = vld [vmem:[#allocation6 + $0x4c8] sm:$0xff] }
0x3a44   :  { %v12814_v33 = vadd.f32 %v9232_v7, %v12790_v31 }
0x3a46   :  { %v9249_v24 = vsel %vm71_vm0, %v12814_v33, 0.0  ;;  %v9265_v47 = vmul.f32 %v12814_v33, %v12814_v33 }
0x3a47   :  { %9250 = vadd.xlane.f32.xlu0 %v9249_v24  ;;  %v12856_v24 = vld [vmem:[#allocation6 + $0x4a8] ss:$0 sm:$0xff] }
0x3a48   :  { %v9269_v49 = vsel %vm71_vm0, %v9265_v47, 0.0 }
0x3a49   :  { %9270 = vadd.xlane.f32.xlu2 %v9269_v49 }
0x3a74   :  { %v9234_v51 = vpop.f32.mrf.mxu3 }
0x3a75   :  { %v9235_v26 = vadd.f32 %v10133_v45, %v9234_v51 }
0x3a77   :  { %v12822_v38 = vadd.f32 %v9235_v26, %v12797_v40  ;;  %v9403_v26 = vld [vmem:[#allocation6 + $0x4c0] sm:$0xff] }
0x3a79   :  { %v9252_v29 = vsel %vm71_vm0, %v12822_v38, 0.0  ;;  %v9266_v58 = vmul.f32 %v12822_v38, %v12822_v38 }
0x3a7a   :  { %9253 = vadd.xlane.f32.xlu2 %v9252_v29 }
0x3a7b   :  { %v9272_v40 = vsel %vm71_vm0, %v9266_v58, 0.0 }
0x3aa4   :  { %v9237_v31 = vpop.f32.mrf.mxu3 }
0x3aa5   :  { %v9238_v13 = vadd.f32 %v10133_v45, %v9237_v31 }
0x3aa7   :  { %v12826_v19 = vadd.f32 %v9238_v13, %v9139_v32 }
0x3aa9   :  { %v9255_v1 = vsel %vm71_vm0, %v12826_v19, 0.0  ;;  %v9267_v27 = vmul.f32 %v12826_v19, %v12826_v19 }
0x3aaa   :  { %9256 = vadd.xlane.f32.xlu1 %v9255_v1  ;;  %v9402_v1 = vld [vmem:[#allocation6 + $0x4b8] sm:$0xff] }
0x3aab   :  { %v9275_v20 = vsel %vm71_vm0, %v9267_v27, 0.0  ;;  %v10702_v27 = vmov 8.0  }
0x3aac   :  { %v9240_v36 = vpop.f32.mrf.mxu3 }
0x3aad   :  { %v9241_v60 = vadd.f32 %v10133_v45, %v9240_v36  ;;  %v9405_v45 = vld [vmem:[#allocation6 + $0x4d0] sm:$0xff] }
0x3aae   :  { %9426 = vmatpush.msrb.mxu1 %v9405_v45  ;;  %v10135_v36 = vld [vmem:[#allocation6 + $0x4b0] ss:$0 sm:$0xff] }
0x3aaf   :  { %v12832_v18 = vadd.f32 %v9241_v60, %v9140_v55 }
0x3ab0   :  { %9427 = vmatpush.msrb.mxu1 %v9404_v52 }
0x3ab1   :  { %v9258_v4 = vsel %vm71_vm0, %v12832_v18, 0.0  ;;  %v9268_v61 = vmul.f32 %v12832_v18, %v12832_v18 }
0x3ab2   :  { %9273 = vadd.xlane.f32.xlu1 %v9272_v40  ;;  %9259 = vadd.xlane.f32.xlu0 %v9258_v4 }
0x3ab3   :  { %v9278_v22 = vsel %vm71_vm0, %v9268_v61, 0.0  ;;  %9428 = vmatpush.msrb.mxu1 %v9403_v26 }
0x3ab4   :  { %9279 = vadd.xlane.f32.xlu2 %v9278_v22 }
0x3ab5   :  { %9429 = vmatpush.msrb.mxu1 %v9402_v1 }
0x3aba   :  { %9276 = vadd.xlane.f32.xlu0 %v9275_v20  ;;  %v9251_v11 = vpop.xlane.xlu0 %9250 }
0x3abb   :  { %v9261_v44 = vmul.f32 0.03125, %v9251_v11 }
0x3abc   :  { %v9271_v17 = vpop.xlane.xlu2 %9270 }
0x3abd   :  { %v9285_v6 = vmul.f32 %v9261_v44, %v9261_v44  ;;  %v9281_v41 = vmul.f32 0.03125, %v9271_v17  ;;  %v9297_v34 = vsub.f32 %v12814_v33, %v9261_v44 }
0x3abf   :  { %v9289_v59 = vsub.f32 %v9281_v41, %v9285_v6 }
0x3ac1   :  { %v9293_v14 = vmax.f32 %v9289_v59, 0.0 }
0x3ac3   :  { %v9301_v21 = vadd.f32 1e-05, %v9293_v14 }
0x3ac5   :  { %10595 = vrsqrt.f32 %v9301_v21  ;;  %vm9311_vm5 = vweird.f32 %v9301_v21 }
0x3acb   :  { %v10596_v39 = vpop.eup %10595 }
0x3acc   :  { %v9306_v50 = vmul.f32 %v10596_v39, %v9301_v21  ;;  %vm9312_vm14 = vweird.f32 %v10596_v39 }
0x3acd   :  { %vm9313_vm6 = vmor %vm9311_vm5, %vm9312_vm14 }
0x3ace   :  { %v9307_v5 = vmul.f32 %v10596_v39, %v9306_v50 }
0x3ad0   :  { %v9308_v57 = vmul.f32 0.5, %v9307_v5 }
0x3ad2   :  { %v9309_v9 = vsub.f32 1.5, %v9308_v57 }
0x3ad4   :  { %v9310_v23 = vmul.f32 %v10596_v39, %v9309_v9 }
0x3ad6   :  { %v9314_v16 = vsel %vm9313_vm6, %v10596_v39, %v9310_v23 }
0x3ad7   :  { %v9345_v47 = vmul.f32 %v9314_v16, %v9297_v34 }
0x3ad9   :  { %v9350_v33 = vmul.f32 %v12856_v24, %v9345_v47 }
0x3adb   :  { %v9355_v22 = vadd.f32 %v10135_v36, %v9350_v33 }
0x3add   :  { %v9359_v14 = vsel %vm71_vm0, %v9355_v22, 0.0 }
0x3aed   :  { %v9254_v35 = vpop.xlane.xlu2 %9253 }
0x3aee   :  { %v12843_v8 = vmul.f32 0.03125, %v9254_v35 }
0x3af0   :  { %v9286_v54 = vmul.f32 %v12843_v8, %v12843_v8  ;;  %v9298_v17 = vsub.f32 %v12822_v38, %v12843_v8  ;;  %v9360_v38 = vrot.slane %v9359_v14, 4 }
0x3b1d   :  { %v9257_v0 = vpop.xlane.xlu1 %9256 }
0x3b1e   :  { %v12851_v55 = vmul.f32 0.03125, %v9257_v0 }
0x3b20   :  { %v9287_v37 = vmul.f32 %v12851_v55, %v12851_v55 }
0x3b25   :  { %v9260_v63 = vpop.xlane.xlu0 %9259  ;;  %v9274_v48 = vpop.xlane.xlu1 %9273 }
0x3b26   :  { %v12847_v2 = vmul.f32 0.03125, %v9260_v63  ;;  %v9282_v42 = vmul.f32 0.03125, %v9274_v48  ;;  %v9438_v63 = vld [vmem:[#allocation6 + $0x4f8] sm:$0xff] }
0x3b27   :  { %v9280_v30 = vpop.xlane.xlu2 %9279  ;;  %9456 = vmatpush.msra.mxu1 %v9438_v63 }
0x3b28   :  { %v9288_v46 = vmul.f32 %v12847_v2, %v12847_v2  ;;  %v9290_v32 = vsub.f32 %v9282_v42, %v9286_v54  ;;  %v9284_v10 = vmul.f32 0.03125, %v9280_v30  ;;  %v9300_v21 = vsub.f32 %v12832_v18, %v12847_v2 }
0x3b29   :  { %v9299_v18 = vsub.f32 %v12826_v19, %v12851_v55 }
0x3b2a   :  { %v9294_v25 = vmax.f32 %v9290_v32, 0.0  ;;  %v9292_v15 = vsub.f32 %v9284_v10, %v9288_v46  ;;  %v9361_v32 = vadd.f32 %v9360_v38, %v9359_v14  ;;  %v10136_v14 = vld [vmem:[#allocation6 + $0x4d8] ss:$0 sm:$0xff] }
0x3b2c   :  { %v9302_v62 = vadd.f32 1e-05, %v9294_v25  ;;  %v9296_v12 = vmax.f32 %v9292_v15, 0.0 }
0x3b2d   :  { %v9277_v28 = vpop.xlane.xlu0 %9276 }
0x3b2e   :  { %10597 = vrsqrt.f32 %v9302_v62  ;;  %v9304_v43 = vadd.f32 1e-05, %v9296_v12  ;;  %v9283_v56 = vmul.f32 0.03125, %v9277_v28  ;;  %vm9321_vm7 = vweird.f32 %v9302_v62 }
0x3b30   :  { %10599 = vrsqrt.f32 %v9304_v43  ;;  %v9291_v53 = vsub.f32 %v9283_v56, %v9287_v37  ;;  %vm9341_vm10 = vweird.f32 %v9304_v43  ;;  %v9362_v37 = vrot.slane %v9361_v32, 2 }
0x3b32   :  { %v9295_v3 = vmax.f32 %v9291_v53, 0.0  ;;  %v9363_v45 = vadd.f32 %v9362_v37, %v9361_v32 }
0x3b34   :  { %v10598_v7 = vpop.eup %10597  ;;  %v9303_v49 = vadd.f32 1e-05, %v9295_v3 }
0x3b35   :  { %v9316_v51 = vmul.f32 %v10598_v7, %v9302_v62  ;;  %vm9322_vm1 = vweird.f32 %v10598_v7 }
0x3b36   :  { %v10600_v29 = vpop.eup %10599  ;;  %10601 = vrsqrt.f32 %v9303_v49  ;;  %vm9323_vm9 = vmor %vm9321_vm7, %vm9322_vm1  ;;  %vm9331_vm13 = vweird.f32 %v9303_v49 }
0x3b37   :  { %v9317_v31 = vmul.f32 %v10598_v7, %v9316_v51  ;;  %v9336_v13 = vmul.f32 %v10600_v29, %v9304_v43  ;;  %10603 = vrcp.f32 %v10702_v27  ;;  %vm9342_vm8 = vweird.f32 %v10600_v29 }
0x3b38   :  { %vm9343_vm11 = vmor %vm9341_vm10, %vm9342_vm8 }
0x3b39   :  { %v9318_v60 = vmul.f32 0.5, %v9317_v31  ;;  %v9337_v58 = vmul.f32 %v10600_v29, %v9336_v13 }
0x3b3b   :  { %v9319_v40 = vsub.f32 1.5, %v9318_v60  ;;  %v9338_v4 = vmul.f32 0.5, %v9337_v58 }
0x3b3c   :  { %v10602_v61 = vpop.eup %10601 }
0x3b3d   :  { %v9320_v20 = vmul.f32 %v10598_v7, %v9319_v40  ;;  %v9339_v11 = vsub.f32 1.5, %v9338_v4  ;;  %v9326_v44 = vmul.f32 %v10602_v61, %v9303_v49  ;;  %v10604_v35 = vpop.eup %10603  ;;  %vm9332_vm12 = vweird.f32 %v10602_v61 }
0x3b3e   :  { %vm9333_vm15 = vmor %vm9331_vm13, %vm9332_vm12  ;;  %v9388_v46 = vmul.f32 8.0, %v10604_v35  ;;  %vm9392_vm2 = vweird.f32 %v10604_v35 }
0x3b3f   :  { %v9324_v6 = vsel %vm9323_vm9, %v10598_v7, %v9320_v20  ;;  %v9340_v41 = vmul.f32 %v10600_v29, %v9339_v11  ;;  %v9327_v59 = vmul.f32 %v10602_v61, %v9326_v44 }
0x3b40   :  { %v9346_v39 = vmul.f32 %v9324_v6, %v9298_v17  ;;  %v9389_v28 = vsub.f32 1.0, %v9388_v46  ;;  %v9437_v17 = vld [vmem:[#allocation6 + $0x4f0] sm:$0xff]  ;;  %v9436_v6 = vld [vmem:[#allocation6 + $0x4e8] sm:$0xff] }
0x3b41   :  { %v9344_v50 = vsel %vm9343_vm11, %v10600_v29, %v9340_v41  ;;  %v9328_v0 = vmul.f32 0.5, %v9327_v59  ;;  %v9364_v29 = vrot.slane %v9363_v45, 1  ;;  %9457 = vmatpush.msra.mxu1 %v9437_v17  ;;  %v9435_v41 = vld [vmem:[#allocation6 + $0x4e0] sm:$0xff] }
0x3b42   :  { %v9351_v5 = vmul.f32 %v12856_v24, %v9346_v39  ;;  %v9348_v57 = vmul.f32 %v9344_v50, %v9300_v21  ;;  %v9390_v34 = vmul.f32 %v10604_v35, %v9389_v28  ;;  %v9468_v59 = vld [vmem:[#allocation6 + $0x520] sm:$0xff] }
0x3b43   :  { %v9329_v8 = vsub.f32 1.5, %v9328_v0  ;;  %9458 = vmatpush.msra.mxu1 %v9436_v6  ;;  %v9467_v0 = vld [vmem:[#allocation6 + $0x518] sm:$0xff] }
0x3b44   :  { %v9356_v48 = vadd.f32 %v10135_v36, %v9351_v5  ;;  %v9353_v54 = vmul.f32 %v12856_v24, %v9348_v57  ;;  %v9391_v51 = vadd.f32 %v10604_v35, %v9390_v34  ;;  %v9465_v5 = vld [vmem:[#allocation6 + $0x508] sm:$0xff]  ;;  %v10137_v57 = vld [vmem:[#allocation6 + $0x500] ss:$0 sm:$0xff] }
0x3b45   :  { %v9330_v42 = vmul.f32 %v10602_v61, %v9329_v8  ;;  %9459 = vmatpush.msra.mxu1 %v9435_v41 }
0x3b46   :  { %v9366_v2 = vsel %vm71_vm0, %v9356_v48, 0.0  ;;  %v9358_v30 = vadd.f32 %v10135_v36, %v9353_v54  ;;  %v9393_v1 = vsel %vm9392_vm2, %v10604_v35, %v9391_v51  ;;  %v9466_v35 = vld [vmem:[#allocation6 + $0x510] sm:$0xff]  ;;  %v10138_v48 = vld [vmem:[#allocation6 + $0x528] ss:$0 sm:$0xff] }
0x3b47   :  { %v9367_v10 = vrot.slane %v9366_v2, 4  ;;  %v9334_v9 = vsel %vm9333_vm15, %v10602_v61, %v9330_v42 }
0x3b48   :  { %v9380_v25 = vsel %vm71_vm0, %v9358_v30, 0.0  ;;  %v9347_v15 = vmul.f32 %v9334_v9, %v9299_v18 }
0x3b49   :  { %v9368_v62 = vadd.f32 %v9367_v10, %v9366_v2  ;;  %v9381_v12 = vrot.slane %v9380_v25, 4 }
0x3b4a   :  { %v9352_v23 = vmul.f32 %v12856_v24, %v9347_v15 }
0x3b4b   :  { %v9369_v43 = vrot.slane %v9368_v62, 2  ;;  %v9382_v56 = vadd.f32 %v9381_v12, %v9380_v25 }
0x3b4c   :  { %v9357_v19 = vadd.f32 %v10135_v36, %v9352_v23  ;;  %v9365_v36 = vadd.f32 %v9364_v29, %v9363_v45 }
0x3b4d   :  { %v9383_v55 = vrot.slane %v9382_v56, 2  ;;  %v9370_v53 = vadd.f32 %v9369_v43, %v9368_v62 }
0x3b4e   :  { %v9373_v16 = vsel %vm71_vm0, %v9357_v19, 0.0  ;;  %v9394_v4 = vmul.f32 %v9393_v1, %v9365_v36 }
0x3b4f   :  { %v9374_v3 = vrot.slane %v9373_v16, 4  ;;  %v9384_v52 = vadd.f32 %v9383_v55, %v9382_v56  ;;  %v9371_v47 = vrot.slane %v9370_v53, 1 }
0x3b51   :  { %v9375_v7 = vadd.f32 %v9374_v3, %v9373_v16  ;;  %v9385_v49 = vrot.slane %v9384_v52, 1  ;;  %v9372_v31 = vadd.f32 %v9371_v47, %v9370_v53 }
0x3b53   :  { %v9376_v26 = vrot.slane %v9375_v7, 2  ;;  %v9386_v24 = vadd.f32 %v9385_v49, %v9384_v52  ;;  %v9395_v40 = vmul.f32 %v9393_v1, %v9372_v31 }
0x3b55   :  { %v9377_v13 = vadd.f32 %v9376_v26, %v9375_v7  ;;  %v9397_v60 = vmul.f32 %v9393_v1, %v9386_v24 }
0x3b57   :  { %v9378_v33 = vrot.slane %v9377_v13, 1  ;;  %v9399_v22 = vadd.f32 %v9397_v60, %v9395_v40 }
0x3b59   :  { %v9379_v58 = vadd.f32 %v9378_v33, %v9377_v13  ;;  %v9401_v11 = vmul.f32 0.5, %v9399_v22 }
0x3b5b   :  { %v9396_v61 = vmul.f32 %v9393_v1, %v9379_v58 }
0x3b5d   :  { %v9398_v27 = vadd.f32 %v9396_v61, %v9394_v4 }
0x3b5f   :  { %v9400_v20 = vmul.f32 0.5, %v9398_v27 }
0x3b61   :  { %v9411_v44 = vsel %vm9410_vm3, %v9401_v11, %v9400_v20 }
0x3b62   :  { %9955 = vmatmul.msk.f32.vlgmr.msrb.gmra.mxu1 %vm71_vm0, %v9411_v44 }
0x3b63   :  { %9486 = vmatpush.msrb.mxu1 %v9468_v59 }
0x3b65   :  { %9487 = vmatpush.msrb.mxu1 %v9467_v0 }
0x3b67   :  { %9488 = vmatpush.msrb.mxu1 %v9466_v35 }
0x3b69   :  { %9489 = vmatpush.msrb.mxu1 %v9465_v5 }
0x3bdf   :  { %v9431_v21 = vpop.f32.mrf.mxu1 }
0x3be0   :  { %v9432_v39 = vadd.f32 %v10136_v14, %v9431_v21 }
0x3be2   :  { %v9434_v50 = vmax.f32 %v9432_v39, 0.0 }
0x3be4   :  { %9956 = vmatmul.msk.f32.vlgmr.msra.gmra.mxu1 %vm71_vm0, %v9434_v50 }
0x3c61   :  { %v9461_v63 = vpop.f32.mrf.mxu1 }
0x3c62   :  { %v9462_v38 = vadd.f32 %v10137_v57, %v9461_v63 }
0x3c64   :  { %v9464_v8 = vmax.f32 %v9462_v38, 0.0 }
0x3c66   :  { %9957 = vmatmul.msk.f32.vlgmr.msrb.gmra.mxu1 %vm71_vm0, %v9464_v8 }
0x3ce3   :  { %v9491_v54 = vpop.f32.mrf.mxu1 }
0x3ce4   :  { %v9492_v42 = vadd.f32 %v10138_v48, %v9491_v54 }
0x3ce6   :  { %10605 = vtanh.f32 %v9492_v42 }
0x3cec   :  { %v10606_v18 = vpop.eup %10605 }
0x3ced   :  { %9496 = vst.msk [vmem:[%s12881_s3] sm:$0x3] %vm9495_vm4, %v10606_v18 }
0x3cee   :  { %9501 = vsyncpa [#allocation3], 1 }
0x3cef   :  { %9502 = vsyncpa [#allocation5], 1 }

</bundles_post_ra>
